<compile_context>
chip_gen: v7x
topology: tpu7x:2x2x1
jax: 0.10.0
libtpu: 0.0.40
codegen_flags: <defaults>
</compile_context>

<pallas_src>
import jax
import jax.numpy as jnp
import numpy as np
from jax.experimental import pallas as pl
from jax.experimental.pallas import tpu as pltpu

BN_EPS = 1e-5

_H0 = 7                       # feature-map side after decoder_z view (B, 32, 7, 7)
_C1, _C2 = 16, 8              # channels after stage 1 / stage 2
_L = 224                      # shared lane width: 7*32 == 14*16 == 28*8


# ------------------------------ fused kernel -------------------------------

def _vae_decoder_kernel(z_ref, w1_ref, b1_ref, w2_ref, b2_ref,
                        wc1_ref, bias1_ref, g1_ref, be1_ref,
                        wc2_ref, bias2_ref, g2_ref, be2_ref,
                        wc3_ref, g3_ref, be3_ref,
                        out_ref,
                        x1s, e1s, g00s, g11s):
    """Whole VAE-decoder forward in one kernel; intermediates stay in VMEM."""
    B = z_ref.shape[0]
    R = _H0 * B                               # rows per phase group (= 7*B)
    f32, bf16 = jnp.float32, jnp.bfloat16

    def relu(x):
        return jnp.maximum(x, 0.0)

    def ch_fold(v, c):
        # (1, Q*c) laid out (q, channel) -> per-channel sum (1, c)
        acc = v[:, 0:c]
        for q in range(1, v.shape[-1] // c):
            acc = acc + v[:, q * c:(q + 1) * c]
        return acc

    def ch_tile(v, reps):
        # (1, c) -> (1, reps*c); concatenate keeps lowering simple
        return jnp.concatenate([v] * reps, axis=-1)

    # ----------------- decoder_z: Linear(100->800) + ReLU -----------------
    h = jnp.dot(z_ref[...].astype(bf16), w1_ref[...],
                preferred_element_type=f32) + b1_ref[...]
    h = relu(h).astype(bf16)

    # ------ Linear(800->1568) + ReLU, emitted per feature-map row --------
    # w2 is pre-split per output spatial row (columns ordered (w, c)), so the
    # result lands directly in the (m, b) x (n, c) row layout -- no reshape.
    x1s[R:R + B, :] = jnp.zeros((B, _L), f32)              # zero pad block (m = 7)
    for m in range(_H0):
        row = jnp.dot(h, w2_ref[m], preferred_element_type=f32) + b2_ref[m]
        x1s[m * B:(m + 1) * B, :] = relu(row)

    x1 = x1s[0:R, :].astype(bf16)                # x(m)
    x1_dn = x1s[B:R + B, :].astype(bf16)         # x(m+1), zero past bottom edge

    # ---- stage 1: ConvTranspose2d(32->16, 3, s2, p1, op1) + ReLU + BN(16) ----
    # even output rows p=2m and odd rows p=2m+1, each (R, 224), lanes (q, c)
    oe = jnp.dot(x1, wc1_ref[1], preferred_element_type=f32) + bias1_ref[...]
    oo = (jnp.dot(x1, wc1_ref[2], preferred_element_type=f32) +
          jnp.dot(x1_dn, wc1_ref[0], preferred_element_type=f32) + bias1_ref[...])
    oe, oo = relu(oe), relu(oo)

    cnt1 = 2.0 * R * 14.0                                   # = N * H_out * W_out
    s = jnp.sum(oe, axis=0, keepdims=True) + jnp.sum(oo, axis=0, keepdims=True)
    mean1 = ch_fold(s, _C1) * (1.0 / cnt1)
    mean1_t = ch_tile(mean1, 14)
    de, do = oe - mean1_t, oo - mean1_t                     # centered two-pass var
    sq = (jnp.sum(de * de, axis=0, keepdims=True) +
          jnp.sum(do * do, axis=0, keepdims=True))
    var1 = ch_fold(sq, _C1) * (1.0 / cnt1)
    scale1_t = ch_tile(g1_ref[...] * jax.lax.rsqrt(var1 + BN_EPS), 14)
    beta1_t = ch_tile(be1_ref[...], 14)
    oe = de * scale1_t + beta1_t
    oo = do * scale1_t + beta1_t

    # stash even rows with a zero pad block for the next stage's down-shift
    e1s[0:R, :] = oe
    e1s[R:R + B, :] = jnp.zeros((B, _L), f32)
    oe_b, oo_b = oe.astype(bf16), oo.astype(bf16)
    oe_dn_b = e1s[B:R + B, :].astype(bf16)

    # ---- stage 2: ConvTranspose2d(16->8, 3, s2, p1, op1) + ReLU + BN(8) ----
    # output rows r = 4m+g, kept as 4 phase groups g in {0,1,2,3}
    g00 = jnp.dot(oe_b, wc2_ref[1], preferred_element_type=f32) + bias2_ref[...]
    g01 = (jnp.dot(oe_b, wc2_ref[2], preferred_element_type=f32) +
           jnp.dot(oo_b, wc2_ref[0], preferred_element_type=f32) + bias2_ref[...])
    g10 = jnp.dot(oo_b, wc2_ref[1], preferred_element_type=f32) + bias2_ref[...]
    g11 = (jnp.dot(oo_b, wc2_ref[2], preferred_element_type=f32) +
           jnp.dot(oe_dn_b, wc2_ref[0], preferred_element_type=f32) + bias2_ref[...])
    g00, g01, g10, g11 = relu(g00), relu(g01), relu(g10), relu(g11)

    cnt2 = 4.0 * R * 28.0
    s = (jnp.sum(g00, axis=0, keepdims=True) + jnp.sum(g01, axis=0, keepdims=True) +
         jnp.sum(g10, axis=0, keepdims=True) + jnp.sum(g11, axis=0, keepdims=True))
    mean2 = ch_fold(s, _C2) * (1.0 / cnt2)
    mean2_t = ch_tile(mean2, 28)
    d00, d01, d10, d11 = g00 - mean2_t, g01 - mean2_t, g10 - mean2_t, g11 - mean2_t
    sq = (jnp.sum(d00 * d00, axis=0, keepdims=True) +
          jnp.sum(d01 * d01, axis=0, keepdims=True) +
          jnp.sum(d10 * d10, axis=0, keepdims=True) +
          jnp.sum(d11 * d11, axis=0, keepdims=True))
    var2 = ch_fold(sq, _C2) * (1.0 / cnt2)
    scale2_t = ch_tile(g2_ref[...] * jax.lax.rsqrt(var2 + BN_EPS), 28)
    beta2_t = ch_tile(be2_ref[...], 28)
    g00 = d00 * scale2_t + beta2_t
    g01 = d01 * scale2_t + beta2_t
    g10 = d10 * scale2_t + beta2_t
    g11 = d11 * scale2_t + beta2_t

    # stash the phase groups needed with a vertical shift by the last stage
    g00s[0:R, :] = g00
    g00s[R:R + B, :] = jnp.zeros((B, _L), f32)
    g11s[B:R + B, :] = g11
    g11s[0:B, :] = jnp.zeros((B, _L), f32)
    g00b, g01b = g00.astype(bf16), g01.astype(bf16)
    g10b, g11b = g10.astype(bf16), g11.astype(bf16)
    g00_dn = g00s[B:R + B, :].astype(bf16)       # row r+1 source for r = 4m+3
    g11_up = g11s[0:R, :].astype(bf16)           # row r-1 source for r = 4m

    # ---- stage 3: ConvTranspose2d(8->1, 3, s1, p1) + BN(1) + sigmoid ----
    # output row r uses input rows r-1 (kh=2), r (kh=1), r+1 (kh=0).
    # Conv bias is dropped: BN(1)'s mean subtraction absorbs it exactly.
    h0 = (jnp.dot(g11_up, wc3_ref[2], preferred_element_type=f32) +
          jnp.dot(g00b, wc3_ref[1], preferred_element_type=f32) +
          jnp.dot(g01b, wc3_ref[0], preferred_element_type=f32))
    h1 = (jnp.dot(g00b, wc3_ref[2], preferred_element_type=f32) +
          jnp.dot(g01b, wc3_ref[1], preferred_element_type=f32) +
          jnp.dot(g10b, wc3_ref[0], preferred_element_type=f32))
    h2 = (jnp.dot(g01b, wc3_ref[2], preferred_element_type=f32) +
          jnp.dot(g10b, wc3_ref[1], preferred_element_type=f32) +
          jnp.dot(g11b, wc3_ref[0], preferred_element_type=f32))
    h3 = (jnp.dot(g10b, wc3_ref[2], preferred_element_type=f32) +
          jnp.dot(g11b, wc3_ref[1], preferred_element_type=f32) +
          jnp.dot(g00_dn, wc3_ref[0], preferred_element_type=f32))

    y = jnp.concatenate([h0, h1, h2, h3], axis=-1)            # (R, 112), lanes (g, q)
    cnt3 = R * 112.0                                          # = N * 28 * 28
    mean3 = jnp.sum(jnp.sum(y, axis=0, keepdims=True),
                    axis=1, keepdims=True) * (1.0 / cnt3)
    d = y - mean3
    var3 = jnp.sum(jnp.sum(d * d, axis=0, keepdims=True),
                   axis=1, keepdims=True) * (1.0 / cnt3)
    yn = d * (g3_ref[...] * jax.lax.rsqrt(var3 + BN_EPS)) + be3_ref[...]
    # sigmoid: exp on the EUP + approximate reciprocal; clamp for exact [0,1]
    out_ref[...] = jnp.clip(pl.reciprocal(1.0 + jnp.exp(-yn), approx=True), 0.0, 1.0)


# ------------------------- host-side weight folding -------------------------

def _band_s2(wt, kh, w_in):
    """Stride-2 ConvTranspose2d (3x3, p1, op1) kernel row kh as a banded
    (w_in*Cin, 2*w_in*Cout) matrix acting on the (col, channel) lane layout."""
    cin, cout = wt.shape[0], wt.shape[1]
    w_out = 2 * w_in
    a = np.zeros((w_in * cin, w_out * cout), np.float32)
    for n in range(w_in):
        for kw in range(3):
            q = 2 * n + kw - 1
            if 0 <= q < w_out:
                a[n * cin:(n + 1) * cin, q * cout:(q + 1) * cout] = wt[:, :, kh, kw]
    return a


def _band_s1(wt, kh, w_in):
    """Stride-1 ConvTranspose2d (3x3, p1) kernel row kh as a banded
    (w_in*Cin, w_in*Cout) matrix in the same lane layout."""
    cin, cout = wt.shape[0], wt.shape[1]
    a = np.zeros((w_in * cin, w_in * cout), np.float32)
    for n in range(w_in):
        for kw in range(3):
            q = n + kw - 1
            if 0 <= q < w_in:
                a[n * cin:(n + 1) * cin, q * cout:(q + 1) * cout] = wt[:, :, kh, kw]
    return a


def init_params(key, h_dim=800, z_dim=100):
    ks = jax.random.split(key, 10)

    def lin_w(k, din, dout):
        return (1.0 / np.sqrt(din)) * jax.random.normal(k, (din, dout), jnp.float32)

    w1 = lin_w(ks[0], z_dim, h_dim)
    b1 = 0.01 * jax.random.normal(ks[1], (1, h_dim), jnp.float32)
    # NOTE: w2/b2 columns are stored in (h, w, c)-flatten order.  To load real
    # torch weights: our column h*224 + w*32 + c  <-  torch unit c*49 + h*7 + w.
    w2 = lin_w(ks[2], h_dim, 32 * 7 * 7)
    b2 = 0.01 * jax.random.normal(ks[3], (1, 32 * 7 * 7), jnp.float32)

    # torch ConvTranspose2d weight layout: (Cin, Cout, kH, kW)
    wt1 = np.asarray(0.1 * jax.random.normal(ks[4], (32, 16, 3, 3), jnp.float32))
    wt2 = np.asarray(0.1 * jax.random.normal(ks[5], (16, 8, 3, 3), jnp.float32))
    wt3 = np.asarray(0.1 * jax.random.normal(ks[6], (8, 1, 3, 3), jnp.float32))
    bc1 = np.asarray(0.01 * jax.random.normal(ks[7], (16,), jnp.float32))
    bc2 = np.asarray(0.01 * jax.random.normal(ks[8], (8,), jnp.float32))
    # (third conv's bias omitted: BatchNorm2d(1) mean subtraction absorbs it)

    wc1 = np.stack([_band_s2(wt1, kh, 7) for kh in range(3)])      # (3, 224, 224)
    wc2 = np.stack([_band_s2(wt2, kh, 14) for kh in range(3)])     # (3, 224, 224)
    wc3 = np.stack([_band_s1(wt3, kh, 28) for kh in range(3)])     # (3, 224, 28)

    return dict(
        w1=w1.astype(jnp.bfloat16),
        b1=b1,
        w2=jnp.transpose(w2.reshape(h_dim, _H0, _L), (1, 0, 2)).astype(jnp.bfloat16),
        b2=jnp.transpose(b2.reshape(1, _H0, _L), (1, 0, 2)),
        wc1=jnp.asarray(wc1, jnp.bfloat16),
        bias1=jnp.asarray(np.tile(bc1[None, :], (1, 14)), jnp.float32),   # (1, 224)
        g1=jnp.ones((1, _C1), jnp.float32), be1=jnp.zeros((1, _C1), jnp.float32),
        wc2=jnp.asarray(wc2, jnp.bfloat16),
        bias2=jnp.asarray(np.tile(bc2[None, :], (1, 28)), jnp.float32),   # (1, 224)
        g2=jnp.ones((1, _C2), jnp.float32), be2=jnp.zeros((1, _C2), jnp.float32),
        wc3=jnp.asarray(wc3, jnp.bfloat16),
        g3=jnp.ones((1, 1), jnp.float32), be3=jnp.zeros((1, 1), jnp.float32),
    )


# --------------------------------- forward ----------------------------------

def decoder_forward(params, z):
    """z: (B, 100) -> reconstruction (B, 1, 28, 28)."""
    B = z.shape[0]
    R = _H0 * B
    p = params
    out2d = pl.pallas_call(
        _vae_decoder_kernel,
        out_shape=jax.ShapeDtypeStruct((R, 4 * 28), jnp.float32),
        in_specs=[pl.BlockSpec(memory_space=pltpu.MemorySpace.VMEM)] * 16,
        out_specs=pl.BlockSpec(memory_space=pltpu.MemorySpace.VMEM),
        scratch_shapes=[pltpu.VMEM((R + B, _L), jnp.float32)] * 4,
    )(z, p['w1'], p['b1'], p['w2'], p['b2'],
      p['wc1'], p['bias1'], p['g1'], p['be1'],
      p['wc2'], p['bias2'], p['g2'], p['be2'],
      p['wc3'], p['g3'], p['be3'])
    # kernel rows are (m, b) and lanes are (g, q); image row r = 4*m + g.
    # This reorder is a single ~6 KB XLA transpose on the final output only.
    img = out2d.reshape(_H0, B, 4, 28)
    img = jnp.transpose(img, (1, 0, 2, 3)).reshape(B, 28, 28)
    return img[:, None, :, :]


# ----------------------------------- main ------------------------------------

if __name__ == "__main__":
    key = jax.random.PRNGKey(0)
    kz, kp = jax.random.split(key)

    B, Z = 2, 100
    z = jax.random.normal(kz, (B, Z), jnp.float32)
    params = init_params(kp, h_dim=800, z_dim=Z)

    recon = jax.jit(decoder_forward)(params, z)
    jax.block_until_ready(recon)

    assert recon.shape == (B, 1, 28, 28)
    assert bool(jnp.all(jnp.isfinite(recon)))
    assert bool(jnp.all((recon >= 0.0) & (recon <= 1.0)))
    print("KERNEL_OK")
</pallas_src>

<mosaic_0001>
module attributes {stable_mosaic.version = 11 : i64} {
  func.func @_vae_decoder_kernel(%arg0: memref<2x100xf32, #tpu.memory_space<vmem>>, %arg1: memref<100x800xbf16, #tpu.memory_space<vmem>>, %arg2: memref<1x800xf32, #tpu.memory_space<vmem>>, %arg3: memref<7x800x224xbf16, #tpu.memory_space<vmem>>, %arg4: memref<7x1x224xf32, #tpu.memory_space<vmem>>, %arg5: memref<3x224x224xbf16, #tpu.memory_space<vmem>>, %arg6: memref<1x224xf32, #tpu.memory_space<vmem>>, %arg7: memref<1x16xf32, #tpu.memory_space<vmem>>, %arg8: memref<1x16xf32, #tpu.memory_space<vmem>>, %arg9: memref<3x224x224xbf16, #tpu.memory_space<vmem>>, %arg10: memref<1x224xf32, #tpu.memory_space<vmem>>, %arg11: memref<1x8xf32, #tpu.memory_space<vmem>>, %arg12: memref<1x8xf32, #tpu.memory_space<vmem>>, %arg13: memref<3x224x28xbf16, #tpu.memory_space<vmem>>, %arg14: memref<1x1xf32, #tpu.memory_space<vmem>>, %arg15: memref<1x1xf32, #tpu.memory_space<vmem>>, %arg16: memref<14x112xf32, #tpu.memory_space<vmem>>, %arg17: memref<16x224xf32, #tpu.memory_space<vmem>>, %arg18: memref<16x224xf32, #tpu.memory_space<vmem>>, %arg19: memref<16x224xf32, #tpu.memory_space<vmem>>, %arg20: memref<16x224xf32, #tpu.memory_space<vmem>>) attributes {dimension_semantics = [], scalar_prefetch = 0 : i64, scratch_operands = 4 : i64, tpu.core_type = #tpu.core_type<tc>} {
    %c0 = arith.constant 0 : index
    %c0_0 = arith.constant 0 : index
    %0 = vector.load %arg0[%c0, %c0_0] : memref<2x100xf32, #tpu.memory_space<vmem>>, vector<2x100xf32>
    %1 = arith.truncf %0 : vector<2x100xf32> to vector<2x100xbf16>
    %c0_1 = arith.constant 0 : index
    %c0_2 = arith.constant 0 : index
    %2 = vector.load %arg1[%c0_1, %c0_2] : memref<100x800xbf16, #tpu.memory_space<vmem>>, vector<100x800xbf16>
    %cst = arith.constant dense<0.000000e+00> : vector<2x800xf32>
    %3 = tpu.matmul %1, %2, %cst {dimension_numbers = #tpu.dot_dimension_numbers<[1], [0], [0], [1], [0, 0, 1, 1], [], []>} : vector<2x100xbf16>, vector<100x800xbf16>, vector<2x800xf32> -> vector<2x800xf32>
    %c0_3 = arith.constant 0 : index
    %c0_4 = arith.constant 0 : index
    %4 = vector.load %arg2[%c0_3, %c0_4] : memref<1x800xf32, #tpu.memory_space<vmem>>, vector<1x800xf32>
    %5 = vector.broadcast %4 : vector<1x800xf32> to vector<2x800xf32>
    %6 = arith.addf %3, %5 : vector<2x800xf32>
    %cst_5 = arith.constant 0.000000e+00 : f32
    %7 = vector.broadcast %cst_5 : f32 to vector<2x800xf32>
    %8 = arith.maximumf %6, %7 : vector<2x800xf32>
    %9 = arith.truncf %8 : vector<2x800xf32> to vector<2x800xbf16>
    %cst_6 = arith.constant 0.000000e+00 : f32
    %10 = vector.broadcast %cst_6 : f32 to vector<2x224xf32>
    %c14 = arith.constant 14 : index
    %c0_7 = arith.constant 0 : index
    %11 = vector.load %arg17[%c14, %c0_7] : memref<16x224xf32, #tpu.memory_space<vmem>>, vector<2x224xf32>
    tpu.vector_store %arg17[%c14, %c0_7], %10 {strides = array<i32>} : memref<16x224xf32, #tpu.memory_space<vmem>>, vector<2x224xf32>,
    %c0_8 = arith.constant 0 : index
    %c0_9 = arith.constant 0 : index
    %c0_10 = arith.constant 0 : index
    %12 = vector.load %arg3[%c0_8, %c0_9, %c0_10] : memref<7x800x224xbf16, #tpu.memory_space<vmem>>, vector<1x800x224xbf16>
    %13 = vector.shape_cast %12 : vector<1x800x224xbf16> to vector<800x224xbf16>
    %cst_11 = arith.constant dense<0.000000e+00> : vector<2x224xf32>
    %14 = tpu.matmul %9, %13, %cst_11 {dimension_numbers = #tpu.dot_dimension_numbers<[1], [0], [0], [1], [0, 0, 1, 1], [], []>} : vector<2x800xbf16>, vector<800x224xbf16>, vector<2x224xf32> -> vector<2x224xf32>
    %c0_12 = arith.constant 0 : index
    %c0_13 = arith.constant 0 : index
    %c0_14 = arith.constant 0 : index
    %15 = vector.load %arg4[%c0_12, %c0_13, %c0_14] : memref<7x1x224xf32, #tpu.memory_space<vmem>>, vector<1x1x224xf32>
    %16 = vector.shape_cast %15 : vector<1x1x224xf32> to vector<1x224xf32>
    %17 = vector.broadcast %16 : vector<1x224xf32> to vector<2x224xf32>
    %18 = arith.addf %14, %17 : vector<2x224xf32>
    %cst_15 = arith.constant 0.000000e+00 : f32
    %19 = vector.broadcast %cst_15 : f32 to vector<2x224xf32>
    %20 = arith.maximumf %18, %19 : vector<2x224xf32>
    %c0_16 = arith.constant 0 : index
    %c0_17 = arith.constant 0 : index
    %21 = vector.load %arg17[%c0_16, %c0_17] : memref<16x224xf32, #tpu.memory_space<vmem>>, vector<2x224xf32>
    tpu.vector_store %arg17[%c0_16, %c0_17], %20 {strides = array<i32>} : memref<16x224xf32, #tpu.memory_space<vmem>>, vector<2x224xf32>,
    %c1 = arith.constant 1 : index
    %c0_18 = arith.constant 0 : index
    %c0_19 = arith.constant 0 : index
    %22 = vector.load %arg3[%c1, %c0_18, %c0_19] : memref<7x800x224xbf16, #tpu.memory_space<vmem>>, vector<1x800x224xbf16>
    %23 = vector.shape_cast %22 : vector<1x800x224xbf16> to vector<800x224xbf16>
    %cst_20 = arith.constant dense<0.000000e+00> : vector<2x224xf32>
    %24 = tpu.matmul %9, %23, %cst_20 {dimension_numbers = #tpu.dot_dimension_numbers<[1], [0], [0], [1], [0, 0, 1, 1], [], []>} : vector<2x800xbf16>, vector<800x224xbf16>, vector<2x224xf32> -> vector<2x224xf32>
    %c1_21 = arith.constant 1 : index
    %c0_22 = arith.constant 0 : index
    %c0_23 = arith.constant 0 : index
    %25 = vector.load %arg4[%c1_21, %c0_22, %c0_23] : memref<7x1x224xf32, #tpu.memory_space<vmem>>, vector<1x1x224xf32>
    %26 = vector.shape_cast %25 : vector<1x1x224xf32> to vector<1x224xf32>
    %27 = vector.broadcast %26 : vector<1x224xf32> to vector<2x224xf32>
    %28 = arith.addf %24, %27 : vector<2x224xf32>
    %cst_24 = arith.constant 0.000000e+00 : f32
    %29 = vector.broadcast %cst_24 : f32 to vector<2x224xf32>
    %30 = arith.maximumf %28, %29 : vector<2x224xf32>
    %c2 = arith.constant 2 : index
    %c0_25 = arith.constant 0 : index
    %31 = vector.load %arg17[%c2, %c0_25] : memref<16x224xf32, #tpu.memory_space<vmem>>, vector<2x224xf32>
    tpu.vector_store %arg17[%c2, %c0_25], %30 {strides = array<i32>} : memref<16x224xf32, #tpu.memory_space<vmem>>, vector<2x224xf32>,
    %c2_26 = arith.constant 2 : index
    %c0_27 = arith.constant 0 : index
    %c0_28 = arith.constant 0 : index
    %32 = vector.load %arg3[%c2_26, %c0_27, %c0_28] : memref<7x800x224xbf16, #tpu.memory_space<vmem>>, vector<1x800x224xbf16>
    %33 = vector.shape_cast %32 : vector<1x800x224xbf16> to vector<800x224xbf16>
    %cst_29 = arith.constant dense<0.000000e+00> : vector<2x224xf32>
    %34 = tpu.matmul %9, %33, %cst_29 {dimension_numbers = #tpu.dot_dimension_numbers<[1], [0], [0], [1], [0, 0, 1, 1], [], []>} : vector<2x800xbf16>, vector<800x224xbf16>, vector<2x224xf32> -> vector<2x224xf32>
    %c2_30 = arith.constant 2 : index
    %c0_31 = arith.constant 0 : index
    %c0_32 = arith.constant 0 : index
    %35 = vector.load %arg4[%c2_30, %c0_31, %c0_32] : memref<7x1x224xf32, #tpu.memory_space<vmem>>, vector<1x1x224xf32>
    %36 = vector.shape_cast %35 : vector<1x1x224xf32> to vector<1x224xf32>
    %37 = vector.broadcast %36 : vector<1x224xf32> to vector<2x224xf32>
    %38 = arith.addf %34, %37 : vector<2x224xf32>
    %cst_33 = arith.constant 0.000000e+00 : f32
    %39 = vector.broadcast %cst_33 : f32 to vector<2x224xf32>
    %40 = arith.maximumf %38, %39 : vector<2x224xf32>
    %c4 = arith.constant 4 : index
    %c0_34 = arith.constant 0 : index
    %41 = vector.load %arg17[%c4, %c0_34] : memref<16x224xf32, #tpu.memory_space<vmem>>, vector<2x224xf32>
    tpu.vector_store %arg17[%c4, %c0_34], %40 {strides = array<i32>} : memref<16x224xf32, #tpu.memory_space<vmem>>, vector<2x224xf32>,
    %c3 = arith.constant 3 : index
    %c0_35 = arith.constant 0 : index
    %c0_36 = arith.constant 0 : index
    %42 = vector.load %arg3[%c3, %c0_35, %c0_36] : memref<7x800x224xbf16, #tpu.memory_space<vmem>>, vector<1x800x224xbf16>
    %43 = vector.shape_cast %42 : vector<1x800x224xbf16> to vector<800x224xbf16>
    %cst_37 = arith.constant dense<0.000000e+00> : vector<2x224xf32>
    %44 = tpu.matmul %9, %43, %cst_37 {dimension_numbers = #tpu.dot_dimension_numbers<[1], [0], [0], [1], [0, 0, 1, 1], [], []>} : vector<2x800xbf16>, vector<800x224xbf16>, vector<2x224xf32> -> vector<2x224xf32>
    %c3_38 = arith.constant 3 : index
    %c0_39 = arith.constant 0 : index
    %c0_40 = arith.constant 0 : index
    %45 = vector.load %arg4[%c3_38, %c0_39, %c0_40] : memref<7x1x224xf32, #tpu.memory_space<vmem>>, vector<1x1x224xf32>
    %46 = vector.shape_cast %45 : vector<1x1x224xf32> to vector<1x224xf32>
    %47 = vector.broadcast %46 : vector<1x224xf32> to vector<2x224xf32>
    %48 = arith.addf %44, %47 : vector<2x224xf32>
    %cst_41 = arith.constant 0.000000e+00 : f32
    %49 = vector.broadcast %cst_41 : f32 to vector<2x224xf32>
    %50 = arith.maximumf %48, %49 : vector<2x224xf32>
    %c6 = arith.constant 6 : index
    %c0_42 = arith.constant 0 : index
    %51 = vector.load %arg17[%c6, %c0_42] : memref<16x224xf32, #tpu.memory_space<vmem>>, vector<2x224xf32>
    tpu.vector_store %arg17[%c6, %c0_42], %50 {strides = array<i32>} : memref<16x224xf32, #tpu.memory_space<vmem>>, vector<2x224xf32>,
    %c4_43 = arith.constant 4 : index
    %c0_44 = arith.constant 0 : index
    %c0_45 = arith.constant 0 : index
    %52 = vector.load %arg3[%c4_43, %c0_44, %c0_45] : memref<7x800x224xbf16, #tpu.memory_space<vmem>>, vector<1x800x224xbf16>
    %53 = vector.shape_cast %52 : vector<1x800x224xbf16> to vector<800x224xbf16>
    %cst_46 = arith.constant dense<0.000000e+00> : vector<2x224xf32>
    %54 = tpu.matmul %9, %53, %cst_46 {dimension_numbers = #tpu.dot_dimension_numbers<[1], [0], [0], [1], [0, 0, 1, 1], [], []>} : vector<2x800xbf16>, vector<800x224xbf16>, vector<2x224xf32> -> vector<2x224xf32>
    %c4_47 = arith.constant 4 : index
    %c0_48 = arith.constant 0 : index
    %c0_49 = arith.constant 0 : index
    %55 = vector.load %arg4[%c4_47, %c0_48, %c0_49] : memref<7x1x224xf32, #tpu.memory_space<vmem>>, vector<1x1x224xf32>
    %56 = vector.shape_cast %55 : vector<1x1x224xf32> to vector<1x224xf32>
    %57 = vector.broadcast %56 : vector<1x224xf32> to vector<2x224xf32>
    %58 = arith.addf %54, %57 : vector<2x224xf32>
    %cst_50 = arith.constant 0.000000e+00 : f32
    %59 = vector.broadcast %cst_50 : f32 to vector<2x224xf32>
    %60 = arith.maximumf %58, %59 : vector<2x224xf32>
    %c8 = arith.constant 8 : index
    %c0_51 = arith.constant 0 : index
    %61 = vector.load %arg17[%c8, %c0_51] : memref<16x224xf32, #tpu.memory_space<vmem>>, vector<2x224xf32>
    tpu.vector_store %arg17[%c8, %c0_51], %60 {strides = array<i32>} : memref<16x224xf32, #tpu.memory_space<vmem>>, vector<2x224xf32>,
    %c5 = arith.constant 5 : index
    %c0_52 = arith.constant 0 : index
    %c0_53 = arith.constant 0 : index
    %62 = vector.load %arg3[%c5, %c0_52, %c0_53] : memref<7x800x224xbf16, #tpu.memory_space<vmem>>, vector<1x800x224xbf16>
    %63 = vector.shape_cast %62 : vector<1x800x224xbf16> to vector<800x224xbf16>
    %cst_54 = arith.constant dense<0.000000e+00> : vector<2x224xf32>
    %64 = tpu.matmul %9, %63, %cst_54 {dimension_numbers = #tpu.dot_dimension_numbers<[1], [0], [0], [1], [0, 0, 1, 1], [], []>} : vector<2x800xbf16>, vector<800x224xbf16>, vector<2x224xf32> -> vector<2x224xf32>
    %c5_55 = arith.constant 5 : index
    %c0_56 = arith.constant 0 : index
    %c0_57 = arith.constant 0 : index
    %65 = vector.load %arg4[%c5_55, %c0_56, %c0_57] : memref<7x1x224xf32, #tpu.memory_space<vmem>>, vector<1x1x224xf32>
    %66 = vector.shape_cast %65 : vector<1x1x224xf32> to vector<1x224xf32>
    %67 = vector.broadcast %66 : vector<1x224xf32> to vector<2x224xf32>
    %68 = arith.addf %64, %67 : vector<2x224xf32>
    %cst_58 = arith.constant 0.000000e+00 : f32
    %69 = vector.broadcast %cst_58 : f32 to vector<2x224xf32>
    %70 = arith.maximumf %68, %69 : vector<2x224xf32>
    %c10 = arith.constant 10 : index
    %c0_59 = arith.constant 0 : index
    %71 = vector.load %arg17[%c10, %c0_59] : memref<16x224xf32, #tpu.memory_space<vmem>>, vector<2x224xf32>
    tpu.vector_store %arg17[%c10, %c0_59], %70 {strides = array<i32>} : memref<16x224xf32, #tpu.memory_space<vmem>>, vector<2x224xf32>,
    %c6_60 = arith.constant 6 : index
    %c0_61 = arith.constant 0 : index
    %c0_62 = arith.constant 0 : index
    %72 = vector.load %arg3[%c6_60, %c0_61, %c0_62] : memref<7x800x224xbf16, #tpu.memory_space<vmem>>, vector<1x800x224xbf16>
    %73 = vector.shape_cast %72 : vector<1x800x224xbf16> to vector<800x224xbf16>
    %cst_63 = arith.constant dense<0.000000e+00> : vector<2x224xf32>
    %74 = tpu.matmul %9, %73, %cst_63 {dimension_numbers = #tpu.dot_dimension_numbers<[1], [0], [0], [1], [0, 0, 1, 1], [], []>} : vector<2x800xbf16>, vector<800x224xbf16>, vector<2x224xf32> -> vector<2x224xf32>
    %c6_64 = arith.constant 6 : index
    %c0_65 = arith.constant 0 : index
    %c0_66 = arith.constant 0 : index
    %75 = vector.load %arg4[%c6_64, %c0_65, %c0_66] : memref<7x1x224xf32, #tpu.memory_space<vmem>>, vector<1x1x224xf32>
    %76 = vector.shape_cast %75 : vector<1x1x224xf32> to vector<1x224xf32>
    %77 = vector.broadcast %76 : vector<1x224xf32> to vector<2x224xf32>
    %78 = arith.addf %74, %77 : vector<2x224xf32>
    %cst_67 = arith.constant 0.000000e+00 : f32
    %79 = vector.broadcast %cst_67 : f32 to vector<2x224xf32>
    %80 = arith.maximumf %78, %79 : vector<2x224xf32>
    %c12 = arith.constant 12 : index
    %c0_68 = arith.constant 0 : index
    %81 = vector.load %arg17[%c12, %c0_68] : memref<16x224xf32, #tpu.memory_space<vmem>>, vector<2x224xf32>
    tpu.vector_store %arg17[%c12, %c0_68], %80 {strides = array<i32>} : memref<16x224xf32, #tpu.memory_space<vmem>>, vector<2x224xf32>,
    %c0_69 = arith.constant 0 : index
    %c0_70 = arith.constant 0 : index
    %82 = vector.load %arg17[%c0_69, %c0_70] : memref<16x224xf32, #tpu.memory_space<vmem>>, vector<14x224xf32>
    %83 = arith.truncf %82 : vector<14x224xf32> to vector<14x224xbf16>
    %c2_71 = arith.constant 2 : index
    %c0_72 = arith.constant 0 : index
    %84 = vector.load %arg17[%c2_71, %c0_72] : memref<16x224xf32, #tpu.memory_space<vmem>>, vector<14x224xf32>
    %85 = arith.truncf %84 : vector<14x224xf32> to vector<14x224xbf16>
    %c1_73 = arith.constant 1 : index
    %c0_74 = arith.constant 0 : index
    %c0_75 = arith.constant 0 : index
    %86 = vector.load %arg5[%c1_73, %c0_74, %c0_75] : memref<3x224x224xbf16, #tpu.memory_space<vmem>>, vector<1x224x224xbf16>
    %87 = vector.shape_cast %86 : vector<1x224x224xbf16> to vector<224x224xbf16>
    %cst_76 = arith.constant dense<0.000000e+00> : vector<14x224xf32>
    %88 = tpu.matmul %83, %87, %cst_76 {dimension_numbers = #tpu.dot_dimension_numbers<[1], [0], [0], [1], [0, 0, 1, 1], [], []>} : vector<14x224xbf16>, vector<224x224xbf16>, vector<14x224xf32> -> vector<14x224xf32>
    %c0_77 = arith.constant 0 : index
    %c0_78 = arith.constant 0 : index
    %89 = vector.load %arg6[%c0_77, %c0_78] : memref<1x224xf32, #tpu.memory_space<vmem>>, vector<1x224xf32>
    %90 = vector.broadcast %89 : vector<1x224xf32> to vector<14x224xf32>
    %91 = arith.addf %88, %90 : vector<14x224xf32>
    %c2_79 = arith.constant 2 : index
    %c0_80 = arith.constant 0 : index
    %c0_81 = arith.constant 0 : index
    %92 = vector.load %arg5[%c2_79, %c0_80, %c0_81] : memref<3x224x224xbf16, #tpu.memory_space<vmem>>, vector<1x224x224xbf16>
    %93 = vector.shape_cast %92 : vector<1x224x224xbf16> to vector<224x224xbf16>
    %cst_82 = arith.constant dense<0.000000e+00> : vector<14x224xf32>
    %94 = tpu.matmul %83, %93, %cst_82 {dimension_numbers = #tpu.dot_dimension_numbers<[1], [0], [0], [1], [0, 0, 1, 1], [], []>} : vector<14x224xbf16>, vector<224x224xbf16>, vector<14x224xf32> -> vector<14x224xf32>
    %c0_83 = arith.constant 0 : index
    %c0_84 = arith.constant 0 : index
    %c0_85 = arith.constant 0 : index
    %95 = vector.load %arg5[%c0_83, %c0_84, %c0_85] : memref<3x224x224xbf16, #tpu.memory_space<vmem>>, vector<1x224x224xbf16>
    %96 = vector.shape_cast %95 : vector<1x224x224xbf16> to vector<224x224xbf16>
    %cst_86 = arith.constant dense<0.000000e+00> : vector<14x224xf32>
    %97 = tpu.matmul %85, %96, %cst_86 {dimension_numbers = #tpu.dot_dimension_numbers<[1], [0], [0], [1], [0, 0, 1, 1], [], []>} : vector<14x224xbf16>, vector<224x224xbf16>, vector<14x224xf32> -> vector<14x224xf32>
    %98 = arith.addf %94, %97 : vector<14x224xf32>
    %c0_87 = arith.constant 0 : index
    %c0_88 = arith.constant 0 : index
    %99 = vector.load %arg6[%c0_87, %c0_88] : memref<1x224xf32, #tpu.memory_space<vmem>>, vector<1x224xf32>
    %100 = vector.broadcast %99 : vector<1x224xf32> to vector<14x224xf32>
    %101 = arith.addf %98, %100 : vector<14x224xf32>
    %cst_89 = arith.constant 0.000000e+00 : f32
    %102 = vector.broadcast %cst_89 : f32 to vector<14x224xf32>
    %103 = arith.maximumf %91, %102 : vector<14x224xf32>
    %cst_90 = arith.constant 0.000000e+00 : f32
    %104 = vector.broadcast %cst_90 : f32 to vector<14x224xf32>
    %105 = arith.maximumf %101, %104 : vector<14x224xf32>
    %cst_91 = arith.constant dense<0.000000e+00> : vector<224xf32>
    %106 = vector.multi_reduction <add>, %103, %cst_91 [0] : vector<14x224xf32> to vector<224xf32>
    %107 = vector.shape_cast %106 : vector<224xf32> to vector<1x224xf32>
    %cst_92 = arith.constant dense<0.000000e+00> : vector<224xf32>
    %108 = vector.multi_reduction <add>, %105, %cst_92 [0] : vector<14x224xf32> to vector<224xf32>
    %109 = vector.shape_cast %108 : vector<224xf32> to vector<1x224xf32>
    %110 = arith.addf %107, %109 : vector<1x224xf32>
    %111 = vector.extract_strided_slice %110 {offsets = [0, 0], sizes = [1, 16], strides = [1, 1]} : vector<1x224xf32> to vector<1x16xf32>
    %112 = vector.extract_strided_slice %110 {offsets = [0, 16], sizes = [1, 16], strides = [1, 1]} : vector<1x224xf32> to vector<1x16xf32>
    %113 = arith.addf %111, %112 : vector<1x16xf32>
    %114 = vector.extract_strided_slice %110 {offsets = [0, 32], sizes = [1, 16], strides = [1, 1]} : vector<1x224xf32> to vector<1x16xf32>
    %115 = arith.addf %113, %114 : vector<1x16xf32>
    %116 = vector.extract_strided_slice %110 {offsets = [0, 48], sizes = [1, 16], strides = [1, 1]} : vector<1x224xf32> to vector<1x16xf32>
    %117 = arith.addf %115, %116 : vector<1x16xf32>
    %118 = vector.extract_strided_slice %110 {offsets = [0, 64], sizes = [1, 16], strides = [1, 1]} : vector<1x224xf32> to vector<1x16xf32>
    %119 = arith.addf %117, %118 : vector<1x16xf32>
    %120 = vector.extract_strided_slice %110 {offsets = [0, 80], sizes = [1, 16], strides = [1, 1]} : vector<1x224xf32> to vector<1x16xf32>
    %121 = arith.addf %119, %120 : vector<1x16xf32>
    %122 = vector.extract_strided_slice %110 {offsets = [0, 96], sizes = [1, 16], strides = [1, 1]} : vector<1x224xf32> to vector<1x16xf32>
    %123 = arith.addf %121, %122 : vector<1x16xf32>
    %124 = vector.extract_strided_slice %110 {offsets = [0, 112], sizes = [1, 16], strides = [1, 1]} : vector<1x224xf32> to vector<1x16xf32>
    %125 = arith.addf %123, %124 : vector<1x16xf32>
    %126 = vector.extract_strided_slice %110 {offsets = [0, 128], sizes = [1, 16], strides = [1, 1]} : vector<1x224xf32> to vector<1x16xf32>
    %127 = arith.addf %125, %126 : vector<1x16xf32>
    %128 = vector.extract_strided_slice %110 {offsets = [0, 144], sizes = [1, 16], strides = [1, 1]} : vector<1x224xf32> to vector<1x16xf32>
    %129 = arith.addf %127, %128 : vector<1x16xf32>
    %130 = vector.extract_strided_slice %110 {offsets = [0, 160], sizes = [1, 16], strides = [1, 1]} : vector<1x224xf32> to vector<1x16xf32>
    %131 = arith.addf %129, %130 : vector<1x16xf32>
    %132 = vector.extract_strided_slice %110 {offsets = [0, 176], sizes = [1, 16], strides = [1, 1]} : vector<1x224xf32> to vector<1x16xf32>
    %133 = arith.addf %131, %132 : vector<1x16xf32>
    %134 = vector.extract_strided_slice %110 {offsets = [0, 192], sizes = [1, 16], strides = [1, 1]} : vector<1x224xf32> to vector<1x16xf32>
    %135 = arith.addf %133, %134 : vector<1x16xf32>
    %136 = vector.extract_strided_slice %110 {offsets = [0, 208], sizes = [1, 16], strides = [1, 1]} : vector<1x224xf32> to vector<1x16xf32>
    %137 = arith.addf %135, %136 : vector<1x16xf32>
    %cst_93 = arith.constant 0.00255102036 : f32
    %138 = vector.broadcast %cst_93 : f32 to vector<1x16xf32>
    %139 = arith.mulf %137, %138 : vector<1x16xf32>
    %140 = tpu.concatenate %139, %139, %139, %139, %139, %139, %139, %139, %139, %139, %139, %139, %139, %139 in 1 : vector<1x16xf32>, vector<1x16xf32>, vector<1x16xf32>, vector<1x16xf32>, vector<1x16xf32>, vector<1x16xf32>, vector<1x16xf32>, vector<1x16xf32>, vector<1x16xf32>, vector<1x16xf32>, vector<1x16xf32>, vector<1x16xf32>, vector<1x16xf32>, vector<1x16xf32> -> vector<1x224xf32>
    %141 = vector.broadcast %140 : vector<1x224xf32> to vector<14x224xf32>
    %142 = arith.subf %103, %141 : vector<14x224xf32>
    %143 = vector.broadcast %140 : vector<1x224xf32> to vector<14x224xf32>
    %144 = arith.subf %105, %143 : vector<14x224xf32>
    %145 = arith.mulf %142, %142 : vector<14x224xf32>
    %cst_94 = arith.constant dense<0.000000e+00> : vector<224xf32>
    %146 = vector.multi_reduction <add>, %145, %cst_94 [0] : vector<14x224xf32> to vector<224xf32>
    %147 = vector.shape_cast %146 : vector<224xf32> to vector<1x224xf32>
    %148 = arith.mulf %144, %144 : vector<14x224xf32>
    %cst_95 = arith.constant dense<0.000000e+00> : vector<224xf32>
    %149 = vector.multi_reduction <add>, %148, %cst_95 [0] : vector<14x224xf32> to vector<224xf32>
    %150 = vector.shape_cast %149 : vector<224xf32> to vector<1x224xf32>
    %151 = arith.addf %147, %150 : vector<1x224xf32>
    %152 = vector.extract_strided_slice %151 {offsets = [0, 0], sizes = [1, 16], strides = [1, 1]} : vector<1x224xf32> to vector<1x16xf32>
    %153 = vector.extract_strided_slice %151 {offsets = [0, 16], sizes = [1, 16], strides = [1, 1]} : vector<1x224xf32> to vector<1x16xf32>
    %154 = arith.addf %152, %153 : vector<1x16xf32>
    %155 = vector.extract_strided_slice %151 {offsets = [0, 32], sizes = [1, 16], strides = [1, 1]} : vector<1x224xf32> to vector<1x16xf32>
    %156 = arith.addf %154, %155 : vector<1x16xf32>
    %157 = vector.extract_strided_slice %151 {offsets = [0, 48], sizes = [1, 16], strides = [1, 1]} : vector<1x224xf32> to vector<1x16xf32>
    %158 = arith.addf %156, %157 : vector<1x16xf32>
    %159 = vector.extract_strided_slice %151 {offsets = [0, 64], sizes = [1, 16], strides = [1, 1]} : vector<1x224xf32> to vector<1x16xf32>
    %160 = arith.addf %158, %159 : vector<1x16xf32>
    %161 = vector.extract_strided_slice %151 {offsets = [0, 80], sizes = [1, 16], strides = [1, 1]} : vector<1x224xf32> to vector<1x16xf32>
    %162 = arith.addf %160, %161 : vector<1x16xf32>
    %163 = vector.extract_strided_slice %151 {offsets = [0, 96], sizes = [1, 16], strides = [1, 1]} : vector<1x224xf32> to vector<1x16xf32>
    %164 = arith.addf %162, %163 : vector<1x16xf32>
    %165 = vector.extract_strided_slice %151 {offsets = [0, 112], sizes = [1, 16], strides = [1, 1]} : vector<1x224xf32> to vector<1x16xf32>
    %166 = arith.addf %164, %165 : vector<1x16xf32>
    %167 = vector.extract_strided_slice %151 {offsets = [0, 128], sizes = [1, 16], strides = [1, 1]} : vector<1x224xf32> to vector<1x16xf32>
    %168 = arith.addf %166, %167 : vector<1x16xf32>
    %169 = vector.extract_strided_slice %151 {offsets = [0, 144], sizes = [1, 16], strides = [1, 1]} : vector<1x224xf32> to vector<1x16xf32>
    %170 = arith.addf %168, %169 : vector<1x16xf32>
    %171 = vector.extract_strided_slice %151 {offsets = [0, 160], sizes = [1, 16], strides = [1, 1]} : vector<1x224xf32> to vector<1x16xf32>
    %172 = arith.addf %170, %171 : vector<1x16xf32>
    %173 = vector.extract_strided_slice %151 {offsets = [0, 176], sizes = [1, 16], strides = [1, 1]} : vector<1x224xf32> to vector<1x16xf32>
    %174 = arith.addf %172, %173 : vector<1x16xf32>
    %175 = vector.extract_strided_slice %151 {offsets = [0, 192], sizes = [1, 16], strides = [1, 1]} : vector<1x224xf32> to vector<1x16xf32>
    %176 = arith.addf %174, %175 : vector<1x16xf32>
    %177 = vector.extract_strided_slice %151 {offsets = [0, 208], sizes = [1, 16], strides = [1, 1]} : vector<1x224xf32> to vector<1x16xf32>
    %178 = arith.addf %176, %177 : vector<1x16xf32>
    %cst_96 = arith.constant 0.00255102036 : f32
    %179 = vector.broadcast %cst_96 : f32 to vector<1x16xf32>
    %180 = arith.mulf %178, %179 : vector<1x16xf32>
    %c0_97 = arith.constant 0 : index
    %c0_98 = arith.constant 0 : index
    %181 = vector.load %arg7[%c0_97, %c0_98] : memref<1x16xf32, #tpu.memory_space<vmem>>, vector<1x16xf32>
    %cst_99 = arith.constant 9.99999974E-6 : f32
    %182 = vector.broadcast %cst_99 : f32 to vector<1x16xf32>
    %183 = arith.addf %180, %182 : vector<1x16xf32>
    %184 = math.rsqrt %183 : vector<1x16xf32>
    %185 = arith.mulf %181, %184 : vector<1x16xf32>
    %186 = tpu.concatenate %185, %185, %185, %185, %185, %185, %185, %185, %185, %185, %185, %185, %185, %185 in 1 : vector<1x16xf32>, vector<1x16xf32>, vector<1x16xf32>, vector<1x16xf32>, vector<1x16xf32>, vector<1x16xf32>, vector<1x16xf32>, vector<1x16xf32>, vector<1x16xf32>, vector<1x16xf32>, vector<1x16xf32>, vector<1x16xf32>, vector<1x16xf32>, vector<1x16xf32> -> vector<1x224xf32>
    %c0_100 = arith.constant 0 : index
    %c0_101 = arith.constant 0 : index
    %187 = vector.load %arg8[%c0_100, %c0_101] : memref<1x16xf32, #tpu.memory_space<vmem>>, vector<1x16xf32>
    %188 = tpu.concatenate %187, %187, %187, %187, %187, %187, %187, %187, %187, %187, %187, %187, %187, %187 in 1 : vector<1x16xf32>, vector<1x16xf32>, vector<1x16xf32>, vector<1x16xf32>, vector<1x16xf32>, vector<1x16xf32>, vector<1x16xf32>, vector<1x16xf32>, vector<1x16xf32>, vector<1x16xf32>, vector<1x16xf32>, vector<1x16xf32>, vector<1x16xf32>, vector<1x16xf32> -> vector<1x224xf32>
    %189 = vector.broadcast %186 : vector<1x224xf32> to vector<14x224xf32>
    %190 = arith.mulf %142, %189 : vector<14x224xf32>
    %191 = vector.broadcast %188 : vector<1x224xf32> to vector<14x224xf32>
    %192 = arith.addf %190, %191 : vector<14x224xf32>
    %193 = vector.broadcast %186 : vector<1x224xf32> to vector<14x224xf32>
    %194 = arith.mulf %144, %193 : vector<14x224xf32>
    %195 = vector.broadcast %188 : vector<1x224xf32> to vector<14x224xf32>
    %196 = arith.addf %194, %195 : vector<14x224xf32>
    %c0_102 = arith.constant 0 : index
    %c0_103 = arith.constant 0 : index
    %197 = vector.load %arg18[%c0_102, %c0_103] : memref<16x224xf32, #tpu.memory_space<vmem>>, vector<14x224xf32>
    tpu.vector_store %arg18[%c0_102, %c0_103], %192 {strides = array<i32>} : memref<16x224xf32, #tpu.memory_space<vmem>>, vector<14x224xf32>,
    %cst_104 = arith.constant 0.000000e+00 : f32
    %198 = vector.broadcast %cst_104 : f32 to vector<2x224xf32>
    %c14_105 = arith.constant 14 : index
    %c0_106 = arith.constant 0 : index
    %199 = vector.load %arg18[%c14_105, %c0_106] : memref<16x224xf32, #tpu.memory_space<vmem>>, vector<2x224xf32>
    tpu.vector_store %arg18[%c14_105, %c0_106], %198 {strides = array<i32>} : memref<16x224xf32, #tpu.memory_space<vmem>>, vector<2x224xf32>,
    %200 = arith.truncf %192 : vector<14x224xf32> to vector<14x224xbf16>
    %201 = arith.truncf %196 : vector<14x224xf32> to vector<14x224xbf16>
    %c2_107 = arith.constant 2 : index
    %c0_108 = arith.constant 0 : index
    %202 = vector.load %arg18[%c2_107, %c0_108] : memref<16x224xf32, #tpu.memory_space<vmem>>, vector<14x224xf32>
    %203 = arith.truncf %202 : vector<14x224xf32> to vector<14x224xbf16>
    %c1_109 = arith.constant 1 : index
    %c0_110 = arith.constant 0 : index
    %c0_111 = arith.constant 0 : index
    %204 = vector.load %arg9[%c1_109, %c0_110, %c0_111] : memref<3x224x224xbf16, #tpu.memory_space<vmem>>, vector<1x224x224xbf16>
    %205 = vector.shape_cast %204 : vector<1x224x224xbf16> to vector<224x224xbf16>
    %cst_112 = arith.constant dense<0.000000e+00> : vector<14x224xf32>
    %206 = tpu.matmul %200, %205, %cst_112 {dimension_numbers = #tpu.dot_dimension_numbers<[1], [0], [0], [1], [0, 0, 1, 1], [], []>} : vector<14x224xbf16>, vector<224x224xbf16>, vector<14x224xf32> -> vector<14x224xf32>
    %c0_113 = arith.constant 0 : index
    %c0_114 = arith.constant 0 : index
    %207 = vector.load %arg10[%c0_113, %c0_114] : memref<1x224xf32, #tpu.memory_space<vmem>>, vector<1x224xf32>
    %208 = vector.broadcast %207 : vector<1x224xf32> to vector<14x224xf32>
    %209 = arith.addf %206, %208 : vector<14x224xf32>
    %c2_115 = arith.constant 2 : index
    %c0_116 = arith.constant 0 : index
    %c0_117 = arith.constant 0 : index
    %210 = vector.load %arg9[%c2_115, %c0_116, %c0_117] : memref<3x224x224xbf16, #tpu.memory_space<vmem>>, vector<1x224x224xbf16>
    %211 = vector.shape_cast %210 : vector<1x224x224xbf16> to vector<224x224xbf16>
    %cst_118 = arith.constant dense<0.000000e+00> : vector<14x224xf32>
    %212 = tpu.matmul %200, %211, %cst_118 {dimension_numbers = #tpu.dot_dimension_numbers<[1], [0], [0], [1], [0, 0, 1, 1], [], []>} : vector<14x224xbf16>, vector<224x224xbf16>, vector<14x224xf32> -> vector<14x224xf32>
    %c0_119 = arith.constant 0 : index
    %c0_120 = arith.constant 0 : index
    %c0_121 = arith.constant 0 : index
    %213 = vector.load %arg9[%c0_119, %c0_120, %c0_121] : memref<3x224x224xbf16, #tpu.memory_space<vmem>>, vector<1x224x224xbf16>
    %214 = vector.shape_cast %213 : vector<1x224x224xbf16> to vector<224x224xbf16>
    %cst_122 = arith.constant dense<0.000000e+00> : vector<14x224xf32>
    %215 = tpu.matmul %201, %214, %cst_122 {dimension_numbers = #tpu.dot_dimension_numbers<[1], [0], [0], [1], [0, 0, 1, 1], [], []>} : vector<14x224xbf16>, vector<224x224xbf16>, vector<14x224xf32> -> vector<14x224xf32>
    %216 = arith.addf %212, %215 : vector<14x224xf32>
    %c0_123 = arith.constant 0 : index
    %c0_124 = arith.constant 0 : index
    %217 = vector.load %arg10[%c0_123, %c0_124] : memref<1x224xf32, #tpu.memory_space<vmem>>, vector<1x224xf32>
    %218 = vector.broadcast %217 : vector<1x224xf32> to vector<14x224xf32>
    %219 = arith.addf %216, %218 : vector<14x224xf32>
    %c1_125 = arith.constant 1 : index
    %c0_126 = arith.constant 0 : index
    %c0_127 = arith.constant 0 : index
    %220 = vector.load %arg9[%c1_125, %c0_126, %c0_127] : memref<3x224x224xbf16, #tpu.memory_space<vmem>>, vector<1x224x224xbf16>
    %221 = vector.shape_cast %220 : vector<1x224x224xbf16> to vector<224x224xbf16>
    %cst_128 = arith.constant dense<0.000000e+00> : vector<14x224xf32>
    %222 = tpu.matmul %201, %221, %cst_128 {dimension_numbers = #tpu.dot_dimension_numbers<[1], [0], [0], [1], [0, 0, 1, 1], [], []>} : vector<14x224xbf16>, vector<224x224xbf16>, vector<14x224xf32> -> vector<14x224xf32>
    %c0_129 = arith.constant 0 : index
    %c0_130 = arith.constant 0 : index
    %223 = vector.load %arg10[%c0_129, %c0_130] : memref<1x224xf32, #tpu.memory_space<vmem>>, vector<1x224xf32>
    %224 = vector.broadcast %223 : vector<1x224xf32> to vector<14x224xf32>
    %225 = arith.addf %222, %224 : vector<14x224xf32>
    %c2_131 = arith.constant 2 : index
    %c0_132 = arith.constant 0 : index
    %c0_133 = arith.constant 0 : index
    %226 = vector.load %arg9[%c2_131, %c0_132, %c0_133] : memref<3x224x224xbf16, #tpu.memory_space<vmem>>, vector<1x224x224xbf16>
    %227 = vector.shape_cast %226 : vector<1x224x224xbf16> to vector<224x224xbf16>
    %cst_134 = arith.constant dense<0.000000e+00> : vector<14x224xf32>
    %228 = tpu.matmul %201, %227, %cst_134 {dimension_numbers = #tpu.dot_dimension_numbers<[1], [0], [0], [1], [0, 0, 1, 1], [], []>} : vector<14x224xbf16>, vector<224x224xbf16>, vector<14x224xf32> -> vector<14x224xf32>
    %c0_135 = arith.constant 0 : index
    %c0_136 = arith.constant 0 : index
    %c0_137 = arith.constant 0 : index
    %229 = vector.load %arg9[%c0_135, %c0_136, %c0_137] : memref<3x224x224xbf16, #tpu.memory_space<vmem>>, vector<1x224x224xbf16>
    %230 = vector.shape_cast %229 : vector<1x224x224xbf16> to vector<224x224xbf16>
    %cst_138 = arith.constant dense<0.000000e+00> : vector<14x224xf32>
    %231 = tpu.matmul %203, %230, %cst_138 {dimension_numbers = #tpu.dot_dimension_numbers<[1], [0], [0], [1], [0, 0, 1, 1], [], []>} : vector<14x224xbf16>, vector<224x224xbf16>, vector<14x224xf32> -> vector<14x224xf32>
    %232 = arith.addf %228, %231 : vector<14x224xf32>
    %c0_139 = arith.constant 0 : index
    %c0_140 = arith.constant 0 : index
    %233 = vector.load %arg10[%c0_139, %c0_140] : memref<1x224xf32, #tpu.memory_space<vmem>>, vector<1x224xf32>
    %234 = vector.broadcast %233 : vector<1x224xf32> to vector<14x224xf32>
    %235 = arith.addf %232, %234 : vector<14x224xf32>
    %cst_141 = arith.constant 0.000000e+00 : f32
    %236 = vector.broadcast %cst_141 : f32 to vector<14x224xf32>
    %237 = arith.maximumf %209, %236 : vector<14x224xf32>
    %cst_142 = arith.constant 0.000000e+00 : f32
    %238 = vector.broadcast %cst_142 : f32 to vector<14x224xf32>
    %239 = arith.maximumf %219, %238 : vector<14x224xf32>
    %cst_143 = arith.constant 0.000000e+00 : f32
    %240 = vector.broadcast %cst_143 : f32 to vector<14x224xf32>
    %241 = arith.maximumf %225, %240 : vector<14x224xf32>
    %cst_144 = arith.constant 0.000000e+00 : f32
    %242 = vector.broadcast %cst_144 : f32 to vector<14x224xf32>
    %243 = arith.maximumf %235, %242 : vector<14x224xf32>
    %cst_145 = arith.constant dense<0.000000e+00> : vector<224xf32>
    %244 = vector.multi_reduction <add>, %237, %cst_145 [0] : vector<14x224xf32> to vector<224xf32>
    %245 = vector.shape_cast %244 : vector<224xf32> to vector<1x224xf32>
    %cst_146 = arith.constant dense<0.000000e+00> : vector<224xf32>
    %246 = vector.multi_reduction <add>, %239, %cst_146 [0] : vector<14x224xf32> to vector<224xf32>
    %247 = vector.shape_cast %246 : vector<224xf32> to vector<1x224xf32>
    %248 = arith.addf %245, %247 : vector<1x224xf32>
    %cst_147 = arith.constant dense<0.000000e+00> : vector<224xf32>
    %249 = vector.multi_reduction <add>, %241, %cst_147 [0] : vector<14x224xf32> to vector<224xf32>
    %250 = vector.shape_cast %249 : vector<224xf32> to vector<1x224xf32>
    %251 = arith.addf %248, %250 : vector<1x224xf32>
    %cst_148 = arith.constant dense<0.000000e+00> : vector<224xf32>
    %252 = vector.multi_reduction <add>, %243, %cst_148 [0] : vector<14x224xf32> to vector<224xf32>
    %253 = vector.shape_cast %252 : vector<224xf32> to vector<1x224xf32>
    %254 = arith.addf %251, %253 : vector<1x224xf32>
    %255 = vector.extract_strided_slice %254 {offsets = [0, 0], sizes = [1, 8], strides = [1, 1]} : vector<1x224xf32> to vector<1x8xf32>
    %256 = vector.extract_strided_slice %254 {offsets = [0, 8], sizes = [1, 8], strides = [1, 1]} : vector<1x224xf32> to vector<1x8xf32>
    %257 = arith.addf %255, %256 : vector<1x8xf32>
    %258 = vector.extract_strided_slice %254 {offsets = [0, 16], sizes = [1, 8], strides = [1, 1]} : vector<1x224xf32> to vector<1x8xf32>
    %259 = arith.addf %257, %258 : vector<1x8xf32>
    %260 = vector.extract_strided_slice %254 {offsets = [0, 24], sizes = [1, 8], strides = [1, 1]} : vector<1x224xf32> to vector<1x8xf32>
    %261 = arith.addf %259, %260 : vector<1x8xf32>
    %262 = vector.extract_strided_slice %254 {offsets = [0, 32], sizes = [1, 8], strides = [1, 1]} : vector<1x224xf32> to vector<1x8xf32>
    %263 = arith.addf %261, %262 : vector<1x8xf32>
    %264 = vector.extract_strided_slice %254 {offsets = [0, 40], sizes = [1, 8], strides = [1, 1]} : vector<1x224xf32> to vector<1x8xf32>
    %265 = arith.addf %263, %264 : vector<1x8xf32>
    %266 = vector.extract_strided_slice %254 {offsets = [0, 48], sizes = [1, 8], strides = [1, 1]} : vector<1x224xf32> to vector<1x8xf32>
    %267 = arith.addf %265, %266 : vector<1x8xf32>
    %268 = vector.extract_strided_slice %254 {offsets = [0, 56], sizes = [1, 8], strides = [1, 1]} : vector<1x224xf32> to vector<1x8xf32>
    %269 = arith.addf %267, %268 : vector<1x8xf32>
    %270 = vector.extract_strided_slice %254 {offsets = [0, 64], sizes = [1, 8], strides = [1, 1]} : vector<1x224xf32> to vector<1x8xf32>
    %271 = arith.addf %269, %270 : vector<1x8xf32>
    %272 = vector.extract_strided_slice %254 {offsets = [0, 72], sizes = [1, 8], strides = [1, 1]} : vector<1x224xf32> to vector<1x8xf32>
    %273 = arith.addf %271, %272 : vector<1x8xf32>
    %274 = vector.extract_strided_slice %254 {offsets = [0, 80], sizes = [1, 8], strides = [1, 1]} : vector<1x224xf32> to vector<1x8xf32>
    %275 = arith.addf %273, %274 : vector<1x8xf32>
    %276 = vector.extract_strided_slice %254 {offsets = [0, 88], sizes = [1, 8], strides = [1, 1]} : vector<1x224xf32> to vector<1x8xf32>
    %277 = arith.addf %275, %276 : vector<1x8xf32>
    %278 = vector.extract_strided_slice %254 {offsets = [0, 96], sizes = [1, 8], strides = [1, 1]} : vector<1x224xf32> to vector<1x8xf32>
    %279 = arith.addf %277, %278 : vector<1x8xf32>
    %280 = vector.extract_strided_slice %254 {offsets = [0, 104], sizes = [1, 8], strides = [1, 1]} : vector<1x224xf32> to vector<1x8xf32>
    %281 = arith.addf %279, %280 : vector<1x8xf32>
    %282 = vector.extract_strided_slice %254 {offsets = [0, 112], sizes = [1, 8], strides = [1, 1]} : vector<1x224xf32> to vector<1x8xf32>
    %283 = arith.addf %281, %282 : vector<1x8xf32>
    %284 = vector.extract_strided_slice %254 {offsets = [0, 120], sizes = [1, 8], strides = [1, 1]} : vector<1x224xf32> to vector<1x8xf32>
    %285 = arith.addf %283, %284 : vector<1x8xf32>
    %286 = vector.extract_strided_slice %254 {offsets = [0, 128], sizes = [1, 8], strides = [1, 1]} : vector<1x224xf32> to vector<1x8xf32>
    %287 = arith.addf %285, %286 : vector<1x8xf32>
    %288 = vector.extract_strided_slice %254 {offsets = [0, 136], sizes = [1, 8], strides = [1, 1]} : vector<1x224xf32> to vector<1x8xf32>
    %289 = arith.addf %287, %288 : vector<1x8xf32>
    %290 = vector.extract_strided_slice %254 {offsets = [0, 144], sizes = [1, 8], strides = [1, 1]} : vector<1x224xf32> to vector<1x8xf32>
    %291 = arith.addf %289, %290 : vector<1x8xf32>
    %292 = vector.extract_strided_slice %254 {offsets = [0, 152], sizes = [1, 8], strides = [1, 1]} : vector<1x224xf32> to vector<1x8xf32>
    %293 = arith.addf %291, %292 : vector<1x8xf32>
    %294 = vector.extract_strided_slice %254 {offsets = [0, 160], sizes = [1, 8], strides = [1, 1]} : vector<1x224xf32> to vector<1x8xf32>
    %295 = arith.addf %293, %294 : vector<1x8xf32>
    %296 = vector.extract_strided_slice %254 {offsets = [0, 168], sizes = [1, 8], strides = [1, 1]} : vector<1x224xf32> to vector<1x8xf32>
    %297 = arith.addf %295, %296 : vector<1x8xf32>
    %298 = vector.extract_strided_slice %254 {offsets = [0, 176], sizes = [1, 8], strides = [1, 1]} : vector<1x224xf32> to vector<1x8xf32>
    %299 = arith.addf %297, %298 : vector<1x8xf32>
    %300 = vector.extract_strided_slice %254 {offsets = [0, 184], sizes = [1, 8], strides = [1, 1]} : vector<1x224xf32> to vector<1x8xf32>
    %301 = arith.addf %299, %300 : vector<1x8xf32>
    %302 = vector.extract_strided_slice %254 {offsets = [0, 192], sizes = [1, 8], strides = [1, 1]} : vector<1x224xf32> to vector<1x8xf32>
    %303 = arith.addf %301, %302 : vector<1x8xf32>
    %304 = vector.extract_strided_slice %254 {offsets = [0, 200], sizes = [1, 8], strides = [1, 1]} : vector<1x224xf32> to vector<1x8xf32>
    %305 = arith.addf %303, %304 : vector<1x8xf32>
    %306 = vector.extract_strided_slice %254 {offsets = [0, 208], sizes = [1, 8], strides = [1, 1]} : vector<1x224xf32> to vector<1x8xf32>
    %307 = arith.addf %305, %306 : vector<1x8xf32>
    %308 = vector.extract_strided_slice %254 {offsets = [0, 216], sizes = [1, 8], strides = [1, 1]} : vector<1x224xf32> to vector<1x8xf32>
    %309 = arith.addf %307, %308 : vector<1x8xf32>
    %cst_149 = arith.constant 6.37755089E-4 : f32
    %310 = vector.broadcast %cst_149 : f32 to vector<1x8xf32>
    %311 = arith.mulf %309, %310 : vector<1x8xf32>
    %312 = tpu.concatenate %311, %311, %311, %311, %311, %311, %311, %311, %311, %311, %311, %311, %311, %311, %311, %311 in 1 : vector<1x8xf32>, vector<1x8xf32>, vector<1x8xf32>, vector<1x8xf32>, vector<1x8xf32>, vector<1x8xf32>, vector<1x8xf32>, vector<1x8xf32>, vector<1x8xf32>, vector<1x8xf32>, vector<1x8xf32>, vector<1x8xf32>, vector<1x8xf32>, vector<1x8xf32>, vector<1x8xf32>, vector<1x8xf32> -> vector<1x128xf32>
    %313 = tpu.concatenate %311, %311, %311, %311, %311, %311, %311, %311, %311, %311, %311, %311 in 1 : vector<1x8xf32>, vector<1x8xf32>, vector<1x8xf32>, vector<1x8xf32>, vector<1x8xf32>, vector<1x8xf32>, vector<1x8xf32>, vector<1x8xf32>, vector<1x8xf32>, vector<1x8xf32>, vector<1x8xf32>, vector<1x8xf32> -> vector<1x96xf32>
    %314 = tpu.concatenate %312, %313 in 1 : vector<1x128xf32>, vector<1x96xf32> -> vector<1x224xf32>
    %315 = vector.broadcast %314 : vector<1x224xf32> to vector<14x224xf32>
    %316 = arith.subf %237, %315 : vector<14x224xf32>
    %317 = vector.broadcast %314 : vector<1x224xf32> to vector<14x224xf32>
    %318 = arith.subf %239, %317 : vector<14x224xf32>
    %319 = vector.broadcast %314 : vector<1x224xf32> to vector<14x224xf32>
    %320 = arith.subf %241, %319 : vector<14x224xf32>
    %321 = vector.broadcast %314 : vector<1x224xf32> to vector<14x224xf32>
    %322 = arith.subf %243, %321 : vector<14x224xf32>
    %323 = arith.mulf %316, %316 : vector<14x224xf32>
    %cst_150 = arith.constant dense<0.000000e+00> : vector<224xf32>
    %324 = vector.multi_reduction <add>, %323, %cst_150 [0] : vector<14x224xf32> to vector<224xf32>
    %325 = vector.shape_cast %324 : vector<224xf32> to vector<1x224xf32>
    %326 = arith.mulf %318, %318 : vector<14x224xf32>
    %cst_151 = arith.constant dense<0.000000e+00> : vector<224xf32>
    %327 = vector.multi_reduction <add>, %326, %cst_151 [0] : vector<14x224xf32> to vector<224xf32>
    %328 = vector.shape_cast %327 : vector<224xf32> to vector<1x224xf32>
    %329 = arith.addf %325, %328 : vector<1x224xf32>
    %330 = arith.mulf %320, %320 : vector<14x224xf32>
    %cst_152 = arith.constant dense<0.000000e+00> : vector<224xf32>
    %331 = vector.multi_reduction <add>, %330, %cst_152 [0] : vector<14x224xf32> to vector<224xf32>
    %332 = vector.shape_cast %331 : vector<224xf32> to vector<1x224xf32>
    %333 = arith.addf %329, %332 : vector<1x224xf32>
    %334 = arith.mulf %322, %322 : vector<14x224xf32>
    %cst_153 = arith.constant dense<0.000000e+00> : vector<224xf32>
    %335 = vector.multi_reduction <add>, %334, %cst_153 [0] : vector<14x224xf32> to vector<224xf32>
    %336 = vector.shape_cast %335 : vector<224xf32> to vector<1x224xf32>
    %337 = arith.addf %333, %336 : vector<1x224xf32>
    %338 = vector.extract_strided_slice %337 {offsets = [0, 0], sizes = [1, 8], strides = [1, 1]} : vector<1x224xf32> to vector<1x8xf32>
    %339 = vector.extract_strided_slice %337 {offsets = [0, 8], sizes = [1, 8], strides = [1, 1]} : vector<1x224xf32> to vector<1x8xf32>
    %340 = arith.addf %338, %339 : vector<1x8xf32>
    %341 = vector.extract_strided_slice %337 {offsets = [0, 16], sizes = [1, 8], strides = [1, 1]} : vector<1x224xf32> to vector<1x8xf32>
    %342 = arith.addf %340, %341 : vector<1x8xf32>
    %343 = vector.extract_strided_slice %337 {offsets = [0, 24], sizes = [1, 8], strides = [1, 1]} : vector<1x224xf32> to vector<1x8xf32>
    %344 = arith.addf %342, %343 : vector<1x8xf32>
    %345 = vector.extract_strided_slice %337 {offsets = [0, 32], sizes = [1, 8], strides = [1, 1]} : vector<1x224xf32> to vector<1x8xf32>
    %346 = arith.addf %344, %345 : vector<1x8xf32>
    %347 = vector.extract_strided_slice %337 {offsets = [0, 40], sizes = [1, 8], strides = [1, 1]} : vector<1x224xf32> to vector<1x8xf32>
    %348 = arith.addf %346, %347 : vector<1x8xf32>
    %349 = vector.extract_strided_slice %337 {offsets = [0, 48], sizes = [1, 8], strides = [1, 1]} : vector<1x224xf32> to vector<1x8xf32>
    %350 = arith.addf %348, %349 : vector<1x8xf32>
    %351 = vector.extract_strided_slice %337 {offsets = [0, 56], sizes = [1, 8], strides = [1, 1]} : vector<1x224xf32> to vector<1x8xf32>
    %352 = arith.addf %350, %351 : vector<1x8xf32>
    %353 = vector.extract_strided_slice %337 {offsets = [0, 64], sizes = [1, 8], strides = [1, 1]} : vector<1x224xf32> to vector<1x8xf32>
    %354 = arith.addf %352, %353 : vector<1x8xf32>
    %355 = vector.extract_strided_slice %337 {offsets = [0, 72], sizes = [1, 8], strides = [1, 1]} : vector<1x224xf32> to vector<1x8xf32>
    %356 = arith.addf %354, %355 : vector<1x8xf32>
    %357 = vector.extract_strided_slice %337 {offsets = [0, 80], sizes = [1, 8], strides = [1, 1]} : vector<1x224xf32> to vector<1x8xf32>
    %358 = arith.addf %356, %357 : vector<1x8xf32>
    %359 = vector.extract_strided_slice %337 {offsets = [0, 88], sizes = [1, 8], strides = [1, 1]} : vector<1x224xf32> to vector<1x8xf32>
    %360 = arith.addf %358, %359 : vector<1x8xf32>
    %361 = vector.extract_strided_slice %337 {offsets = [0, 96], sizes = [1, 8], strides = [1, 1]} : vector<1x224xf32> to vector<1x8xf32>
    %362 = arith.addf %360, %361 : vector<1x8xf32>
    %363 = vector.extract_strided_slice %337 {offsets = [0, 104], sizes = [1, 8], strides = [1, 1]} : vector<1x224xf32> to vector<1x8xf32>
    %364 = arith.addf %362, %363 : vector<1x8xf32>
    %365 = vector.extract_strided_slice %337 {offsets = [0, 112], sizes = [1, 8], strides = [1, 1]} : vector<1x224xf32> to vector<1x8xf32>
    %366 = arith.addf %364, %365 : vector<1x8xf32>
    %367 = vector.extract_strided_slice %337 {offsets = [0, 120], sizes = [1, 8], strides = [1, 1]} : vector<1x224xf32> to vector<1x8xf32>
    %368 = arith.addf %366, %367 : vector<1x8xf32>
    %369 = vector.extract_strided_slice %337 {offsets = [0, 128], sizes = [1, 8], strides = [1, 1]} : vector<1x224xf32> to vector<1x8xf32>
    %370 = arith.addf %368, %369 : vector<1x8xf32>
    %371 = vector.extract_strided_slice %337 {offsets = [0, 136], sizes = [1, 8], strides = [1, 1]} : vector<1x224xf32> to vector<1x8xf32>
    %372 = arith.addf %370, %371 : vector<1x8xf32>
    %373 = vector.extract_strided_slice %337 {offsets = [0, 144], sizes = [1, 8], strides = [1, 1]} : vector<1x224xf32> to vector<1x8xf32>
    %374 = arith.addf %372, %373 : vector<1x8xf32>
    %375 = vector.extract_strided_slice %337 {offsets = [0, 152], sizes = [1, 8], strides = [1, 1]} : vector<1x224xf32> to vector<1x8xf32>
    %376 = arith.addf %374, %375 : vector<1x8xf32>
    %377 = vector.extract_strided_slice %337 {offsets = [0, 160], sizes = [1, 8], strides = [1, 1]} : vector<1x224xf32> to vector<1x8xf32>
    %378 = arith.addf %376, %377 : vector<1x8xf32>
    %379 = vector.extract_strided_slice %337 {offsets = [0, 168], sizes = [1, 8], strides = [1, 1]} : vector<1x224xf32> to vector<1x8xf32>
    %380 = arith.addf %378, %379 : vector<1x8xf32>
    %381 = vector.extract_strided_slice %337 {offsets = [0, 176], sizes = [1, 8], strides = [1, 1]} : vector<1x224xf32> to vector<1x8xf32>
    %382 = arith.addf %380, %381 : vector<1x8xf32>
    %383 = vector.extract_strided_slice %337 {offsets = [0, 184], sizes = [1, 8], strides = [1, 1]} : vector<1x224xf32> to vector<1x8xf32>
    %384 = arith.addf %382, %383 : vector<1x8xf32>
    %385 = vector.extract_strided_slice %337 {offsets = [0, 192], sizes = [1, 8], strides = [1, 1]} : vector<1x224xf32> to vector<1x8xf32>
    %386 = arith.addf %384, %385 : vector<1x8xf32>
    %387 = vector.extract_strided_slice %337 {offsets = [0, 200], sizes = [1, 8], strides = [1, 1]} : vector<1x224xf32> to vector<1x8xf32>
    %388 = arith.addf %386, %387 : vector<1x8xf32>
    %389 = vector.extract_strided_slice %337 {offsets = [0, 208], sizes = [1, 8], strides = [1, 1]} : vector<1x224xf32> to vector<1x8xf32>
    %390 = arith.addf %388, %389 : vector<1x8xf32>
    %391 = vector.extract_strided_slice %337 {offsets = [0, 216], sizes = [1, 8], strides = [1, 1]} : vector<1x224xf32> to vector<1x8xf32>
    %392 = arith.addf %390, %391 : vector<1x8xf32>
    %cst_154 = arith.constant 6.37755089E-4 : f32
    %393 = vector.broadcast %cst_154 : f32 to vector<1x8xf32>
    %394 = arith.mulf %392, %393 : vector<1x8xf32>
    %c0_155 = arith.constant 0 : index
    %c0_156 = arith.constant 0 : index
    %395 = vector.load %arg11[%c0_155, %c0_156] : memref<1x8xf32, #tpu.memory_space<vmem>>, vector<1x8xf32>
    %cst_157 = arith.constant 9.99999974E-6 : f32
    %396 = vector.broadcast %cst_157 : f32 to vector<1x8xf32>
    %397 = arith.addf %394, %396 : vector<1x8xf32>
    %398 = math.rsqrt %397 : vector<1x8xf32>
    %399 = arith.mulf %395, %398 : vector<1x8xf32>
    %400 = tpu.concatenate %399, %399, %399, %399, %399, %399, %399, %399, %399, %399, %399, %399, %399, %399, %399, %399 in 1 : vector<1x8xf32>, vector<1x8xf32>, vector<1x8xf32>, vector<1x8xf32>, vector<1x8xf32>, vector<1x8xf32>, vector<1x8xf32>, vector<1x8xf32>, vector<1x8xf32>, vector<1x8xf32>, vector<1x8xf32>, vector<1x8xf32>, vector<1x8xf32>, vector<1x8xf32>, vector<1x8xf32>, vector<1x8xf32> -> vector<1x128xf32>
    %401 = tpu.concatenate %399, %399, %399, %399, %399, %399, %399, %399, %399, %399, %399, %399 in 1 : vector<1x8xf32>, vector<1x8xf32>, vector<1x8xf32>, vector<1x8xf32>, vector<1x8xf32>, vector<1x8xf32>, vector<1x8xf32>, vector<1x8xf32>, vector<1x8xf32>, vector<1x8xf32>, vector<1x8xf32>, vector<1x8xf32> -> vector<1x96xf32>
    %402 = tpu.concatenate %400, %401 in 1 : vector<1x128xf32>, vector<1x96xf32> -> vector<1x224xf32>
    %c0_158 = arith.constant 0 : index
    %c0_159 = arith.constant 0 : index
    %403 = vector.load %arg12[%c0_158, %c0_159] : memref<1x8xf32, #tpu.memory_space<vmem>>, vector<1x8xf32>
    %404 = tpu.concatenate %403, %403, %403, %403, %403, %403, %403, %403, %403, %403, %403, %403, %403, %403, %403, %403 in 1 : vector<1x8xf32>, vector<1x8xf32>, vector<1x8xf32>, vector<1x8xf32>, vector<1x8xf32>, vector<1x8xf32>, vector<1x8xf32>, vector<1x8xf32>, vector<1x8xf32>, vector<1x8xf32>, vector<1x8xf32>, vector<1x8xf32>, vector<1x8xf32>, vector<1x8xf32>, vector<1x8xf32>, vector<1x8xf32> -> vector<1x128xf32>
    %405 = tpu.concatenate %403, %403, %403, %403, %403, %403, %403, %403, %403, %403, %403, %403 in 1 : vector<1x8xf32>, vector<1x8xf32>, vector<1x8xf32>, vector<1x8xf32>, vector<1x8xf32>, vector<1x8xf32>, vector<1x8xf32>, vector<1x8xf32>, vector<1x8xf32>, vector<1x8xf32>, vector<1x8xf32>, vector<1x8xf32> -> vector<1x96xf32>
    %406 = tpu.concatenate %404, %405 in 1 : vector<1x128xf32>, vector<1x96xf32> -> vector<1x224xf32>
    %407 = vector.broadcast %402 : vector<1x224xf32> to vector<14x224xf32>
    %408 = arith.mulf %316, %407 : vector<14x224xf32>
    %409 = vector.broadcast %406 : vector<1x224xf32> to vector<14x224xf32>
    %410 = arith.addf %408, %409 : vector<14x224xf32>
    %411 = vector.broadcast %402 : vector<1x224xf32> to vector<14x224xf32>
    %412 = arith.mulf %318, %411 : vector<14x224xf32>
    %413 = vector.broadcast %406 : vector<1x224xf32> to vector<14x224xf32>
    %414 = arith.addf %412, %413 : vector<14x224xf32>
    %415 = vector.broadcast %402 : vector<1x224xf32> to vector<14x224xf32>
    %416 = arith.mulf %320, %415 : vector<14x224xf32>
    %417 = vector.broadcast %406 : vector<1x224xf32> to vector<14x224xf32>
    %418 = arith.addf %416, %417 : vector<14x224xf32>
    %419 = vector.broadcast %402 : vector<1x224xf32> to vector<14x224xf32>
    %420 = arith.mulf %322, %419 : vector<14x224xf32>
    %421 = vector.broadcast %406 : vector<1x224xf32> to vector<14x224xf32>
    %422 = arith.addf %420, %421 : vector<14x224xf32>
    %c0_160 = arith.constant 0 : index
    %c0_161 = arith.constant 0 : index
    %423 = vector.load %arg19[%c0_160, %c0_161] : memref<16x224xf32, #tpu.memory_space<vmem>>, vector<14x224xf32>
    tpu.vector_store %arg19[%c0_160, %c0_161], %410 {strides = array<i32>} : memref<16x224xf32, #tpu.memory_space<vmem>>, vector<14x224xf32>,
    %cst_162 = arith.constant 0.000000e+00 : f32
    %424 = vector.broadcast %cst_162 : f32 to vector<2x224xf32>
    %c14_163 = arith.constant 14 : index
    %c0_164 = arith.constant 0 : index
    %425 = vector.load %arg19[%c14_163, %c0_164] : memref<16x224xf32, #tpu.memory_space<vmem>>, vector<2x224xf32>
    tpu.vector_store %arg19[%c14_163, %c0_164], %424 {strides = array<i32>} : memref<16x224xf32, #tpu.memory_space<vmem>>, vector<2x224xf32>,
    %c2_165 = arith.constant 2 : index
    %c0_166 = arith.constant 0 : index
    %426 = vector.load %arg20[%c2_165, %c0_166] : memref<16x224xf32, #tpu.memory_space<vmem>>, vector<14x224xf32>
    tpu.vector_store %arg20[%c2_165, %c0_166], %422 {strides = array<i32>} : memref<16x224xf32, #tpu.memory_space<vmem>>, vector<14x224xf32>,
    %cst_167 = arith.constant 0.000000e+00 : f32
    %427 = vector.broadcast %cst_167 : f32 to vector<2x224xf32>
    %c0_168 = arith.constant 0 : index
    %c0_169 = arith.constant 0 : index
    %428 = vector.load %arg20[%c0_168, %c0_169] : memref<16x224xf32, #tpu.memory_space<vmem>>, vector<2x224xf32>
    tpu.vector_store %arg20[%c0_168, %c0_169], %427 {strides = array<i32>} : memref<16x224xf32, #tpu.memory_space<vmem>>, vector<2x224xf32>,
    %429 = arith.truncf %410 : vector<14x224xf32> to vector<14x224xbf16>
    %430 = arith.truncf %414 : vector<14x224xf32> to vector<14x224xbf16>
    %431 = arith.truncf %418 : vector<14x224xf32> to vector<14x224xbf16>
    %432 = arith.truncf %422 : vector<14x224xf32> to vector<14x224xbf16>
    %c2_170 = arith.constant 2 : index
    %c0_171 = arith.constant 0 : index
    %433 = vector.load %arg19[%c2_170, %c0_171] : memref<16x224xf32, #tpu.memory_space<vmem>>, vector<14x224xf32>
    %434 = arith.truncf %433 : vector<14x224xf32> to vector<14x224xbf16>
    %c0_172 = arith.constant 0 : index
    %c0_173 = arith.constant 0 : index
    %435 = vector.load %arg20[%c0_172, %c0_173] : memref<16x224xf32, #tpu.memory_space<vmem>>, vector<14x224xf32>
    %436 = arith.truncf %435 : vector<14x224xf32> to vector<14x224xbf16>
    %c2_174 = arith.constant 2 : index
    %c0_175 = arith.constant 0 : index
    %c0_176 = arith.constant 0 : index
    %437 = vector.load %arg13[%c2_174, %c0_175, %c0_176] : memref<3x224x28xbf16, #tpu.memory_space<vmem>>, vector<1x224x28xbf16>
    %438 = vector.shape_cast %437 : vector<1x224x28xbf16> to vector<224x28xbf16>
    %cst_177 = arith.constant dense<0.000000e+00> : vector<14x28xf32>
    %439 = tpu.matmul %436, %438, %cst_177 {dimension_numbers = #tpu.dot_dimension_numbers<[1], [0], [0], [1], [0, 0, 1, 1], [], []>} : vector<14x224xbf16>, vector<224x28xbf16>, vector<14x28xf32> -> vector<14x28xf32>
    %c1_178 = arith.constant 1 : index
    %c0_179 = arith.constant 0 : index
    %c0_180 = arith.constant 0 : index
    %440 = vector.load %arg13[%c1_178, %c0_179, %c0_180] : memref<3x224x28xbf16, #tpu.memory_space<vmem>>, vector<1x224x28xbf16>
    %441 = vector.shape_cast %440 : vector<1x224x28xbf16> to vector<224x28xbf16>
    %cst_181 = arith.constant dense<0.000000e+00> : vector<14x28xf32>
    %442 = tpu.matmul %429, %441, %cst_181 {dimension_numbers = #tpu.dot_dimension_numbers<[1], [0], [0], [1], [0, 0, 1, 1], [], []>} : vector<14x224xbf16>, vector<224x28xbf16>, vector<14x28xf32> -> vector<14x28xf32>
    %443 = arith.addf %439, %442 : vector<14x28xf32>
    %c0_182 = arith.constant 0 : index
    %c0_183 = arith.constant 0 : index
    %c0_184 = arith.constant 0 : index
    %444 = vector.load %arg13[%c0_182, %c0_183, %c0_184] : memref<3x224x28xbf16, #tpu.memory_space<vmem>>, vector<1x224x28xbf16>
    %445 = vector.shape_cast %444 : vector<1x224x28xbf16> to vector<224x28xbf16>
    %cst_185 = arith.constant dense<0.000000e+00> : vector<14x28xf32>
    %446 = tpu.matmul %430, %445, %cst_185 {dimension_numbers = #tpu.dot_dimension_numbers<[1], [0], [0], [1], [0, 0, 1, 1], [], []>} : vector<14x224xbf16>, vector<224x28xbf16>, vector<14x28xf32> -> vector<14x28xf32>
    %447 = arith.addf %443, %446 : vector<14x28xf32>
    %c2_186 = arith.constant 2 : index
    %c0_187 = arith.constant 0 : index
    %c0_188 = arith.constant 0 : index
    %448 = vector.load %arg13[%c2_186, %c0_187, %c0_188] : memref<3x224x28xbf16, #tpu.memory_space<vmem>>, vector<1x224x28xbf16>
    %449 = vector.shape_cast %448 : vector<1x224x28xbf16> to vector<224x28xbf16>
    %cst_189 = arith.constant dense<0.000000e+00> : vector<14x28xf32>
    %450 = tpu.matmul %429, %449, %cst_189 {dimension_numbers = #tpu.dot_dimension_numbers<[1], [0], [0], [1], [0, 0, 1, 1], [], []>} : vector<14x224xbf16>, vector<224x28xbf16>, vector<14x28xf32> -> vector<14x28xf32>
    %c1_190 = arith.constant 1 : index
    %c0_191 = arith.constant 0 : index
    %c0_192 = arith.constant 0 : index
    %451 = vector.load %arg13[%c1_190, %c0_191, %c0_192] : memref<3x224x28xbf16, #tpu.memory_space<vmem>>, vector<1x224x28xbf16>
    %452 = vector.shape_cast %451 : vector<1x224x28xbf16> to vector<224x28xbf16>
    %cst_193 = arith.constant dense<0.000000e+00> : vector<14x28xf32>
    %453 = tpu.matmul %430, %452, %cst_193 {dimension_numbers = #tpu.dot_dimension_numbers<[1], [0], [0], [1], [0, 0, 1, 1], [], []>} : vector<14x224xbf16>, vector<224x28xbf16>, vector<14x28xf32> -> vector<14x28xf32>
    %454 = arith.addf %450, %453 : vector<14x28xf32>
    %c0_194 = arith.constant 0 : index
    %c0_195 = arith.constant 0 : index
    %c0_196 = arith.constant 0 : index
    %455 = vector.load %arg13[%c0_194, %c0_195, %c0_196] : memref<3x224x28xbf16, #tpu.memory_space<vmem>>, vector<1x224x28xbf16>
    %456 = vector.shape_cast %455 : vector<1x224x28xbf16> to vector<224x28xbf16>
    %cst_197 = arith.constant dense<0.000000e+00> : vector<14x28xf32>
    %457 = tpu.matmul %431, %456, %cst_197 {dimension_numbers = #tpu.dot_dimension_numbers<[1], [0], [0], [1], [0, 0, 1, 1], [], []>} : vector<14x224xbf16>, vector<224x28xbf16>, vector<14x28xf32> -> vector<14x28xf32>
    %458 = arith.addf %454, %457 : vector<14x28xf32>
    %c2_198 = arith.constant 2 : index
    %c0_199 = arith.constant 0 : index
    %c0_200 = arith.constant 0 : index
    %459 = vector.load %arg13[%c2_198, %c0_199, %c0_200] : memref<3x224x28xbf16, #tpu.memory_space<vmem>>, vector<1x224x28xbf16>
    %460 = vector.shape_cast %459 : vector<1x224x28xbf16> to vector<224x28xbf16>
    %cst_201 = arith.constant dense<0.000000e+00> : vector<14x28xf32>
    %461 = tpu.matmul %430, %460, %cst_201 {dimension_numbers = #tpu.dot_dimension_numbers<[1], [0], [0], [1], [0, 0, 1, 1], [], []>} : vector<14x224xbf16>, vector<224x28xbf16>, vector<14x28xf32> -> vector<14x28xf32>
    %c1_202 = arith.constant 1 : index
    %c0_203 = arith.constant 0 : index
    %c0_204 = arith.constant 0 : index
    %462 = vector.load %arg13[%c1_202, %c0_203, %c0_204] : memref<3x224x28xbf16, #tpu.memory_space<vmem>>, vector<1x224x28xbf16>
    %463 = vector.shape_cast %462 : vector<1x224x28xbf16> to vector<224x28xbf16>
    %cst_205 = arith.constant dense<0.000000e+00> : vector<14x28xf32>
    %464 = tpu.matmul %431, %463, %cst_205 {dimension_numbers = #tpu.dot_dimension_numbers<[1], [0], [0], [1], [0, 0, 1, 1], [], []>} : vector<14x224xbf16>, vector<224x28xbf16>, vector<14x28xf32> -> vector<14x28xf32>
    %465 = arith.addf %461, %464 : vector<14x28xf32>
    %c0_206 = arith.constant 0 : index
    %c0_207 = arith.constant 0 : index
    %c0_208 = arith.constant 0 : index
    %466 = vector.load %arg13[%c0_206, %c0_207, %c0_208] : memref<3x224x28xbf16, #tpu.memory_space<vmem>>, vector<1x224x28xbf16>
    %467 = vector.shape_cast %466 : vector<1x224x28xbf16> to vector<224x28xbf16>
    %cst_209 = arith.constant dense<0.000000e+00> : vector<14x28xf32>
    %468 = tpu.matmul %432, %467, %cst_209 {dimension_numbers = #tpu.dot_dimension_numbers<[1], [0], [0], [1], [0, 0, 1, 1], [], []>} : vector<14x224xbf16>, vector<224x28xbf16>, vector<14x28xf32> -> vector<14x28xf32>
    %469 = arith.addf %465, %468 : vector<14x28xf32>
    %c2_210 = arith.constant 2 : index
    %c0_211 = arith.constant 0 : index
    %c0_212 = arith.constant 0 : index
    %470 = vector.load %arg13[%c2_210, %c0_211, %c0_212] : memref<3x224x28xbf16, #tpu.memory_space<vmem>>, vector<1x224x28xbf16>
    %471 = vector.shape_cast %470 : vector<1x224x28xbf16> to vector<224x28xbf16>
    %cst_213 = arith.constant dense<0.000000e+00> : vector<14x28xf32>
    %472 = tpu.matmul %431, %471, %cst_213 {dimension_numbers = #tpu.dot_dimension_numbers<[1], [0], [0], [1], [0, 0, 1, 1], [], []>} : vector<14x224xbf16>, vector<224x28xbf16>, vector<14x28xf32> -> vector<14x28xf32>
    %c1_214 = arith.constant 1 : index
    %c0_215 = arith.constant 0 : index
    %c0_216 = arith.constant 0 : index
    %473 = vector.load %arg13[%c1_214, %c0_215, %c0_216] : memref<3x224x28xbf16, #tpu.memory_space<vmem>>, vector<1x224x28xbf16>
    %474 = vector.shape_cast %473 : vector<1x224x28xbf16> to vector<224x28xbf16>
    %cst_217 = arith.constant dense<0.000000e+00> : vector<14x28xf32>
    %475 = tpu.matmul %432, %474, %cst_217 {dimension_numbers = #tpu.dot_dimension_numbers<[1], [0], [0], [1], [0, 0, 1, 1], [], []>} : vector<14x224xbf16>, vector<224x28xbf16>, vector<14x28xf32> -> vector<14x28xf32>
    %476 = arith.addf %472, %475 : vector<14x28xf32>
    %c0_218 = arith.constant 0 : index
    %c0_219 = arith.constant 0 : index
    %c0_220 = arith.constant 0 : index
    %477 = vector.load %arg13[%c0_218, %c0_219, %c0_220] : memref<3x224x28xbf16, #tpu.memory_space<vmem>>, vector<1x224x28xbf16>
    %478 = vector.shape_cast %477 : vector<1x224x28xbf16> to vector<224x28xbf16>
    %cst_221 = arith.constant dense<0.000000e+00> : vector<14x28xf32>
    %479 = tpu.matmul %434, %478, %cst_221 {dimension_numbers = #tpu.dot_dimension_numbers<[1], [0], [0], [1], [0, 0, 1, 1], [], []>} : vector<14x224xbf16>, vector<224x28xbf16>, vector<14x28xf32> -> vector<14x28xf32>
    %480 = arith.addf %476, %479 : vector<14x28xf32>
    %481 = tpu.concatenate %447, %458, %469, %480 in 1 : vector<14x28xf32>, vector<14x28xf32>, vector<14x28xf32>, vector<14x28xf32> -> vector<14x112xf32>
    %cst_222 = arith.constant dense<0.000000e+00> : vector<112xf32>
    %482 = vector.multi_reduction <add>, %481, %cst_222 [0] : vector<14x112xf32> to vector<112xf32>
    %483 = vector.shape_cast %482 : vector<112xf32> to vector<1x112xf32>
    %cst_223 = arith.constant dense<0.000000e+00> : vector<1xf32>
    %484 = vector.multi_reduction <add>, %483, %cst_223 [1] : vector<1x112xf32> to vector<1xf32>
    %485 = vector.shape_cast %484 : vector<1xf32> to vector<1x1xf32>
    %cst_224 = arith.constant 6.37755089E-4 : f32
    %486 = vector.broadcast %cst_224 : f32 to vector<1x1xf32>
    %487 = arith.mulf %485, %486 : vector<1x1xf32>
    %488 = vector.broadcast %487 : vector<1x1xf32> to vector<14x112xf32>
    %489 = arith.subf %481, %488 : vector<14x112xf32>
    %490 = arith.mulf %489, %489 : vector<14x112xf32>
    %cst_225 = arith.constant dense<0.000000e+00> : vector<112xf32>
    %491 = vector.multi_reduction <add>, %490, %cst_225 [0] : vector<14x112xf32> to vector<112xf32>
    %492 = vector.shape_cast %491 : vector<112xf32> to vector<1x112xf32>
    %cst_226 = arith.constant dense<0.000000e+00> : vector<1xf32>
    %493 = vector.multi_reduction <add>, %492, %cst_226 [1] : vector<1x112xf32> to vector<1xf32>
    %494 = vector.shape_cast %493 : vector<1xf32> to vector<1x1xf32>
    %cst_227 = arith.constant 6.37755089E-4 : f32
    %495 = vector.broadcast %cst_227 : f32 to vector<1x1xf32>
    %496 = arith.mulf %494, %495 : vector<1x1xf32>
    %c0_228 = arith.constant 0 : index
    %c0_229 = arith.constant 0 : index
    %497 = vector.load %arg14[%c0_228, %c0_229] : memref<1x1xf32, #tpu.memory_space<vmem>>, vector<1x1xf32>
    %cst_230 = arith.constant 9.99999974E-6 : f32
    %498 = vector.broadcast %cst_230 : f32 to vector<1x1xf32>
    %499 = arith.addf %496, %498 : vector<1x1xf32>
    %500 = math.rsqrt %499 : vector<1x1xf32>
    %501 = arith.mulf %497, %500 : vector<1x1xf32>
    %502 = vector.broadcast %501 : vector<1x1xf32> to vector<14x112xf32>
    %503 = arith.mulf %489, %502 : vector<14x112xf32>
    %c0_231 = arith.constant 0 : index
    %c0_232 = arith.constant 0 : index
    %504 = vector.load %arg15[%c0_231, %c0_232] : memref<1x1xf32, #tpu.memory_space<vmem>>, vector<1x1xf32>
    %505 = vector.broadcast %504 : vector<1x1xf32> to vector<14x112xf32>
    %506 = arith.addf %503, %505 : vector<14x112xf32>
    %cst_233 = arith.constant 0.000000e+00 : f32
    %507 = vector.broadcast %cst_233 : f32 to vector<14x112xf32>
    %508 = arith.subf %507, %506 : vector<14x112xf32>
    %509 = math.exp %508 : vector<14x112xf32>
    %cst_234 = arith.constant 1.000000e+00 : f32
    %510 = vector.broadcast %cst_234 : f32 to vector<14x112xf32>
    %511 = arith.addf %510, %509 : vector<14x112xf32>
    %512 = tpu.reciprocal %511 {approx = true} : vector<14x112xf32> -> vector<14x112xf32>
    %cst_235 = arith.constant 0.000000e+00 : f32
    %cst_236 = arith.constant 1.000000e+00 : f32
    %513 = vector.broadcast %cst_235 : f32 to vector<14x112xf32>
    %514 = arith.maximumf %513, %512 : vector<14x112xf32>
    %515 = vector.broadcast %cst_236 : f32 to vector<14x112xf32>
    %516 = arith.minimumf %515, %514 : vector<14x112xf32>
    %c0_237 = arith.constant 0 : index
    %c0_238 = arith.constant 0 : index
    %517 = vector.load %arg16[%c0_237, %c0_238] : memref<14x112xf32, #tpu.memory_space<vmem>>, vector<14x112xf32>
    tpu.vector_store %arg16[%c0_237, %c0_238], %516 {strides = array<i32>} : memref<14x112xf32, #tpu.memory_space<vmem>>, vector<14x112xf32>,
    return
  }
}

</mosaic_0001>

<bundles_post_ra>
// kernel: decoder_forward.1
= control target key start
LH: loop header
LB: loop body
LE: loop exit
PB: predicated region body
PF: predicated region fallthrough
CT: control target
= control target key end

     0   :  { %v17753_v1 = vmov 0   ;;  %v13008_v2 = vmov 0.0   ;;  %vm13009_vm0 = vmmov 0   ;;  %vm17775_vm1 = vcmask 1041408   ;;  %s13013_s29 = smov 96   ;;  %s13015_s30 = smov 48   ;;  %s17735_s1 = inlined_call_operand.vmem [shape: bf16[100,800], index: 1, kind: input, shape index: {}]   ;;  %s17736_s0 = inlined_call_operand.vmem [shape: f32[2,100], index: 0, kind: input, shape index: {}]   ;;  %s17737_s3 = inlined_call_operand.vmem [shape: bf16[7,800,224], index: 3, kind: input, shape index: {}]   ;;  %s17738_s2 = inlined_call_operand.vmem [shape: f32[1,800], index: 2, kind: input, shape index: {}]   ;;  %s17739_s4 = inlined_call_operand.vmem [shape: f32[7,1,224], index: 4, kind: input, shape index: {}]   ;;  %s17740_s5 = inlined_call_operand.vmem [shape: bf16[3,224,224], index: 5, kind: input, shape index: {}]   ;;  %s17741_s6 = inlined_call_operand.vmem [shape: f32[1,224], index: 6, kind: input, shape index: {}]   ;;  %s17742_s8 = inlined_call_operand.vmem [shape: f32[1,16], index: 8, kind: input, shape index: {}]   ;;  %s17743_s9 = inlined_call_operand.vmem [shape: bf16[3,224,224], index: 9, kind: input, shape index: {}]   ;;  %s17744_s7 = inlined_call_operand.vmem [shape: f32[1,16], index: 7, kind: input, shape index: {}]   ;;  %s17745_s10 = inlined_call_operand.vmem [shape: f32[1,224], index: 10, kind: input, shape index: {}]   ;;  %s17746_s12 = inlined_call_operand.vmem [shape: f32[1,8], index: 12, kind: input, shape index: {}]   ;;  %s17747_s11 = inlined_call_operand.vmem [shape: f32[1,8], index: 11, kind: input, shape index: {}]   ;;  %s17748_s13 = inlined_call_operand.vmem [shape: bf16[3,224,28], index: 13, kind: input, shape index: {}]   ;;  %s17749_s14 = inlined_call_operand.<no memory space> [shape: f32[1,1], index: 14, kind: input, shape index: {}]   ;;  %s17750_s15 = inlined_call_operand.<no memory space> [shape: f32[1,1], index: 15, kind: input, shape index: {}]   ;;  %s17751_s16 = inlined_call_operand.vmem [shape: f32[14,112], index: 16, kind: output, shape index: {}]  }
   0x1   :  { %17777 = sst [smem:[#allocation28_spill]] %s17735_s1  ;;  %441 = vmatprep.mubr.bf16.mxu0 %v17753_v1  ;;  %11401 = vmatprep.subr.bf16.mxu1 %v13008_v2  ;;  %586 = vst [vmem:[#allocation2 + $0x10] sm:$0xc0] %v13008_v2  ;;  %7124 = vst [vmem:[#allocation3 + $0x10] sm:$0xc0] %v13008_v2  ;;  %vm383_vm2 = vcmask 818176  }
   0x2   :  { %s17778_s23 = sld [smem:[#allocation28_spill]]  ;;  %8610 = vst [vmem:[#allocation4 + $0x10] sm:$0xc0] %v13008_v2  ;;  %8631 = vst [vmem:[#allocation5] sm:$0x3] %v13008_v2  ;;  %11415 = vmatprep.mubr.msk.bf16.mxu1 %vm13009_vm0, %v13008_v2  ;;  %11579 = vset.pattern.permute.xlu0 %v17753_v1  ;;  %vm1201_vm3 = vcmask 261120  }
   0x3   :  { %11580 = vset.pattern.permute.xlu1 %v17753_v1  ;;  %v58_v17 = vld [vmem:[%s17736_s0] sm:$0x3]  ;;  %v11653_v40 = vld [vmem:[%s17737_s3 + $0x324] ss:$8 sps:$4 sm:$0xff]   ;;  %v11659_v45 = vld [vmem:[%s17737_s3 + $0x334] ss:$8 sps:$4 sm:$0xff]  }
   0x4   :  { %v13174_v22 = vpack.c.bf16 %v58_v17, %v58_v17  ;;  %v11651_v44 = vld [vmem:[%s17737_s3 + $0x320] ss:$8 sps:$4 sm:$0xff]   ;;  %v11657_v48 = vld [vmem:[%s17737_s3 + $0x330] ss:$8 sps:$4 sm:$0xff]   ;;  %v11665_v49 = vld [vmem:[%s17737_s3 + $0x344] ss:$8 sps:$4 sm:$0xff]  }
   0x5   :  { %v11663_v52 = vld [vmem:[%s17737_s3 + $0x340] ss:$8 sps:$4 sm:$0xff]   ;;  %v11671_v53 = vld [vmem:[%s17737_s3 + $0x354] ss:$8 sps:$4 sm:$0xff]   ;;  %v11669_v56 = vld [vmem:[%s17737_s3 + $0x350] ss:$8 sps:$4 sm:$0xff]  }
   0x6   :  { %v11677_v57 = vld [vmem:[%s17737_s3 + $0x364] ss:$8 sps:$4 sm:$0xff]   ;;  %v11675_v60 = vld [vmem:[%s17737_s3 + $0x360] ss:$8 sps:$4 sm:$0xff]   ;;  %v11683_v61 = vld [vmem:[%s17737_s3 + $0x374] ss:$8 sps:$4 sm:$0xff]  }
   0x7   :  { %v11707_v17 = vld [vmem:[%s17737_s3 + $0x3b4] ss:$8 sps:$4 sm:$0xff]   ;;  %vm1372_vm4 = vcmask 779264   ;;  %vm2161_vm5 = vcmask 781314   ;;  %vm587_vm6 = vcmask 785414   ;;  %vm2950_vm7 = vcmask 783364  }
   0x8   :  { %v11581_v0 = vld [vmem:[%s17778_s23 + $0x4] ss:$28 sps:$4 sm:$0xff]   ;;  %v11584_v4 = vld [vmem:[%s17778_s23 + $0x3c] ss:$28 sps:$4 sm:$0xff]   ;;  %v11587_v6 = vld [vmem:[%s17778_s23 + $0x74] ss:$28 sps:$4 sm:$0xff]  }
   0x9   :  { %v11583_v3 = vld [vmem:[%s17778_s23] ss:$28 sps:$4 sm:$0xff]   ;;  %409 = vmatprep.subr.bf16.mxu0 %v11581_v0  ;;  %v11586_v5 = vld [vmem:[%s17778_s23 + $0x38] ss:$28 sps:$4 sm:$0xff]   ;;  %v11589_v7 = vld [vmem:[%s17778_s23 + $0x70] ss:$28 sps:$4 sm:$0xff]  }
   0xa   :  { %410 = vmatpush1.bf16.msra.mxu0 %v11583_v3  ;;  %v11590_v8 = vld [vmem:[%s17778_s23 + $0xac] ss:$28 sps:$4 sm:$0xff]   ;;  %v11593_v10 = vld [vmem:[%s17778_s23 + $0xe4] ss:$28 sps:$4 sm:$0xff]   ;;  %v11596_v12 = vld [vmem:[%s17778_s23 + $0x11c] ss:$28 sps:$4 sm:$0xff]  }
   0xb   :  { %411 = vmatprep.subr.bf16.mxu0 %v11584_v4  ;;  %v11592_v9 = vld [vmem:[%s17778_s23 + $0xa8] ss:$28 sps:$4 sm:$0xff]   ;;  %v11595_v11 = vld [vmem:[%s17778_s23 + $0xe0] ss:$28 sps:$4 sm:$0xff]   ;;  %v108_v13 = vld [vmem:[%s17778_s23 + $0x150] sm:$0x33] }
   0xc   :  { %v11598_v14 = vld [vmem:[%s17778_s23 + $0x118] ss:$28 sps:$4 sm:$0xff]   ;;  %v9667_v15 = vcombine.high %v108_v13, %v108_v13  ;;  %v9666_v16 = vcombine.low %v108_v13, %v108_v13  ;;  %v11603_v20 = vld [vmem:[%s17778_s23 + $0xc] ss:$28 sps:$4 sm:$0xff]   ;;  %v11606_v24 = vld [vmem:[%s17778_s23 + $0x44] ss:$28 sps:$4 sm:$0xff]  }
   0xd   :  { %v11633_v18 = vld [vmem:[%s17778_s23 + $0x18] ss:$28 sps:$4 sm:$0xff]   ;;  %v11637_v21 = vld [vmem:[%s17778_s23 + $0x50] ss:$28 sps:$4 sm:$0xff]   ;;  %v11601_v23 = vld [vmem:[%s17778_s23 + $0x8] ss:$28 sps:$4 sm:$0xff]  }
   0xe   :  { %412 = vmatpush1.bf16.msra.mxu0 %v11586_v5  ;;  %v389_v19 = vsel %vm17775_vm1, %v9666_v16, 0  ;;  %11402 = vmatpush3.bf16.msra.mxu1 %v11633_v18  ;;  %v11641_v25 = vld [vmem:[%s17778_s23 + $0x88] ss:$28 sps:$4 sm:$0xff]   ;;  %v11604_v26 = vld [vmem:[%s17778_s23 + $0x40] ss:$28 sps:$4 sm:$0xff]   ;;  %vm6291_vm8 = vcmask 785408  }
   0xf   :  { %413 = vmatprep.subr.bf16.mxu0 %v11587_v6  ;;  %11403 = vmatprep.subr.bf16.mxu1 %v13008_v2  ;;  %v11609_v27 = vld [vmem:[%s17778_s23 + $0x7c] ss:$28 sps:$4 sm:$0xff]   ;;  %v11612_v30 = vld [vmem:[%s17778_s23 + $0xb4] ss:$28 sps:$4 sm:$0xff]   ;;  %v11615_v33 = vld [vmem:[%s17778_s23 + $0xec] ss:$28 sps:$4 sm:$0xff]  }
  0x10   :  { %v11644_v28 = vld [vmem:[%s17778_s23 + $0xc0] ss:$28 sps:$4 sm:$0xff]   ;;  %v11607_v29 = vld [vmem:[%s17778_s23 + $0x78] ss:$28 sps:$4 sm:$0xff]   ;;  %v11610_v32 = vld [vmem:[%s17778_s23 + $0xb0] ss:$28 sps:$4 sm:$0xff]  }
  0x11   :  { %v11645_v31 = vld [vmem:[%s17778_s23 + $0xf8] ss:$28 sps:$4 sm:$0xff]   ;;  %v11646_v34 = vld [vmem:[%s17778_s23 + $0x130] ss:$28 sps:$4 sm:$0xff]   ;;  %v11613_v36 = vld [vmem:[%s17778_s23 + $0xe8] ss:$28 sps:$4 sm:$0xff]  }
  0x12   :  { %414 = vmatpush1.bf16.msra.mxu0 %v11589_v7  ;;  %11404 = vmatpush3.bf16.msra.mxu1 %v11637_v21  ;;  %v11647_v35 = vld [vmem:[%s17778_s23 + $0x168] ss:$0 sps:$4 sm:$0x33]   ;;  %v11618_v37 = vld [vmem:[%s17778_s23 + $0x124] ss:$28 sps:$4 sm:$0xff]   ;;  %vm6781_vm9 = vcmask 1045504  }
  0x13   :  { %415 = vmatprep.subr.bf16.mxu0 %v11590_v8  ;;  %11405 = vmatprep.subr.bf16.mxu1 %v13008_v2  ;;  %v109_v38 = vld [vmem:[%s17778_s23 + $0x158] sm:$0x33]  ;;  %v407_v39 = vsel %vm17775_vm1, %v11647_v35, 0  ;;  %v11623_v47 = vld [vmem:[%s17778_s23 + $0x14] ss:$28 sps:$4 sm:$0xff]   ;;  %vm6791_vm10 = vcmask 783360  }
  0x14   :  { %v11616_v41 = vld [vmem:[%s17778_s23 + $0x120] ss:$28 sps:$4 sm:$0xff]   ;;  %v9669_v42 = vcombine.high %v109_v38, %v109_v38  ;;  %v9668_v43 = vcombine.low %v109_v38, %v109_v38  ;;  %v11621_v50 = vld [vmem:[%s17778_s23 + $0x10] ss:$28 sps:$4 sm:$0xff]   ;;  %v11624_v54 = vld [vmem:[%s17778_s23 + $0x48] ss:$28 sps:$4 sm:$0xff]  }
  0x15   :  { %v11626_v51 = vld [vmem:[%s17778_s23 + $0x4c] ss:$28 sps:$4 sm:$0xff]   ;;  %v11629_v55 = vld [vmem:[%s17778_s23 + $0x84] ss:$28 sps:$4 sm:$0xff]   ;;  %v11632_v59 = vld [vmem:[%s17778_s23 + $0xbc] ss:$28 sps:$4 sm:$0xff]  }
  0x16   :  { %416 = vmatpush1.bf16.msra.mxu0 %v11592_v9  ;;  %11406 = vmatpush3.bf16.msra.mxu1 %v11641_v25  ;;  %v395_v46 = vsel %vm17775_vm1, %v9668_v43, 0  ;;  %v11627_v58 = vld [vmem:[%s17778_s23 + $0x80] ss:$28 sps:$4 sm:$0xff]   ;;  %v11630_v62 = vld [vmem:[%s17778_s23 + $0xb8] ss:$28 sps:$4 sm:$0xff]   ;;  %s13016_s1 = smov 16  }
  0x17   :  { %417 = vmatprep.subr.bf16.mxu0 %v11593_v10  ;;  %11407 = vmatprep.subr.bf16.mxu1 %v13008_v2  ;;  %v11636_v63 = vld [vmem:[%s17778_s23 + $0xf4] ss:$28 sps:$4 sm:$0xff]   ;;  %v11689_v4 = vld [vmem:[%s17737_s3 + $0x384] ss:$8 sps:$4 sm:$0xff]   ;;  %v11687_v7 = vld [vmem:[%s17737_s3 + $0x380] ss:$8 sps:$4 sm:$0xff]  }
  0x18   :  { %v11634_v0 = vld [vmem:[%s17778_s23 + $0xf0] ss:$28 sps:$4 sm:$0xff]   ;;  %v110_v6 = vld [vmem:[%s17778_s23 + $0x160] sm:$0x33]  ;;  %v11695_v8 = vld [vmem:[%s17737_s3 + $0x394] ss:$8 sps:$4 sm:$0xff]  }
  0x19   :  { %v11681_v3 = vld [vmem:[%s17737_s3 + $0x370] ss:$8 sps:$4 sm:$0xff]   ;;  %v11640_v5 = vld [vmem:[%s17778_s23 + $0x12c] ss:$28 sps:$4 sm:$0xff]   ;;  %v11680_v35 = vld [vmem:[%s17737_s3 + $0x54] ss:$8 sps:$4 sm:$0xff]  }
  0x1a   :  { %418 = vmatpush1.bf16.msra.mxu0 %v11595_v11  ;;  %11408 = vmatpush3.bf16.msra.mxu1 %v11644_v28  ;;  %v11638_v9 = vld [vmem:[%s17778_s23 + $0x128] ss:$28 sps:$4 sm:$0xff]   ;;  %v11693_v10 = vld [vmem:[%s17737_s3 + $0x390] ss:$8 sps:$4 sm:$0xff]   ;;  %v9671_v11 = vcombine.high %v110_v6, %v110_v6  ;;  %8632 = vst.msk [vmem:[#allocation5 + $0x8] sm:$0x3] %vm1372_vm4, %v13008_v2 }
  0x1b   :  { %419 = vmatprep.subr.bf16.mxu0 %v11596_v12  ;;  %11409 = vmatprep.subr.bf16.mxu1 %v13008_v2  ;;  %v9670_v12 = vcombine.low %v110_v6, %v110_v6  ;;  %v11701_v13 = vld [vmem:[%s17737_s3 + $0x3a4] ss:$8 sps:$4 sm:$0xff]   ;;  %v11648_v18 = vld [vmem:[%s17737_s3] ss:$8 sps:$4 sm:$0xff]   ;;  %v11717_v28 = vld [vmem:[%s17737_s3 + $0x3d0] ss:$8 sps:$4 sm:$0xff]  }
  0x1c   :  { %v11713_v21 = vld [vmem:[%s17737_s3 + $0x3c4] ss:$8 sps:$4 sm:$0xff]   ;;  %v11711_v25 = vld [vmem:[%s17737_s3 + $0x3c0] ss:$8 sps:$4 sm:$0xff]   ;;  %588 = vst.msk [vmem:[#allocation2 + $0x18] sm:$0xc0] %vm587_vm6, %v13008_v2 }
  0x1d   :  { %v401_v16 = vsel %vm17775_vm1, %v9670_v12, 0  ;;  %v11686_v38 = vld [vmem:[%s17737_s3 + $0x64] ss:$8 sps:$4 sm:$0xff]   ;;  %7125 = vst.msk [vmem:[#allocation3 + $0x18] sm:$0xc0] %vm587_vm6, %v13008_v2  ;;  %vm6893_vm11 = vcmask 130048  }
  0x1e   :  { %420 = vmatpush1.bf16.msra.mxu0 %v11598_v14  ;;  %11410 = vmatpush3.bf16.msra.mxu1 %v11645_v31  ;;  %v11650_v14 = vld [vmem:[%s17737_s3 + $0x4] ss:$8 sps:$4 sm:$0xff]   ;;  %8611 = vst.msk [vmem:[#allocation4 + $0x18] sm:$0xc0] %vm587_vm6, %v13008_v2  ;;  %vm17776_vm12 = vcmask 392192   ;;  %vm6898_vm13 = vcmask 523264  }
  0x1f   :  { %9673 = vmatprep.subr.msk.bf16.mxu0 %vm17775_vm1, %v9667_v15  ;;  %11411 = vmatprep.subr.bf16.mxu1 %v13008_v2  ;;  %v11699_v15 = vld [vmem:[%s17737_s3 + $0x3a0] ss:$8 sps:$4 sm:$0xff]   ;;  %v11674_v31 = vld [vmem:[%s17737_s3 + $0x44] ss:$8 sps:$4 sm:$0xff]   ;;  %vm6900_vm14 = vcmask 654336   ;;  %vm6903_vm15 = vcmask 916480  }
  0x20   :  { %v11698_v43 = vld [vmem:[%s17737_s3 + $0x84] ss:$8 sps:$4 sm:$0xff]   ;;  %s13019_s18 = smov 88   ;;  %s13020_s19 = smov 72   ;;  %vm8178_vm0 = vcmask 64512  }
  0x21   :  { %s13022_s20 = smov 40   ;;  %s13023_s21 = smov 24  }
  0x22   :  { %422 = vmatpush1.bf16.msra.mxu0 %v389_v19  ;;  %11412 = vmatpush3.bf16.msra.mxu1 %v11646_v34  ;;  %v11656_v19 = vld [vmem:[%s17737_s3 + $0x14] ss:$8 sps:$4 sm:$0xff]   ;;  %v11672_v34 = vld [vmem:[%s17737_s3 + $0x40] ss:$8 sps:$4 sm:$0xff]   ;;  %s13024_s22 = smov 8  }
  0x23   :  { %450 = vmatprep.subr.bf16.mxu0 %v11603_v20  ;;  %11413 = vmatprep.subr.bf16.mxu1 %v13008_v2  ;;  %v11705_v20 = vld [vmem:[%s17737_s3 + $0x3b0] ss:$8 sps:$4 sm:$0xff]   ;;  %v12388_v2 = vld [vmem:[%s17737_s3 + $0x1134] ss:$8 sps:$4 sm:$0xff]  }
  0x25   :  { %9674 = vmatmul.mubr.msk.bf16.vlgmr.msra.gmra.mrb[0].mxu0 %vm383_vm2, %v13174_v22 }
  0x26   :  { %451 = vmatpush1.bf16.msra.mxu0 %v11601_v23  ;;  %482 = vmatprep.mubr.bf16.mxu0 %v17753_v1  ;;  %v11654_v23 = vld [vmem:[%s17737_s3 + $0x10] ss:$8 sps:$4 sm:$0xff]  }
  0x27   :  { %452 = vmatprep.subr.bf16.mxu0 %v11606_v24  ;;  %11414 = vmatpush3.bf16.msra.mxu1 %v407_v39  ;;  %v11662_v24 = vld [vmem:[%s17737_s3 + $0x24] ss:$8 sps:$4 sm:$0xff]   ;;  %v11684_v39 = vld [vmem:[%s17737_s3 + $0x60] ss:$8 sps:$4 sm:$0xff]  }
  0x28   :  { %1988 = vmatprep.subr.bf16.mxu1 %v11653_v40  ;;  %v11692_v40 = vld [vmem:[%s17737_s3 + $0x74] ss:$8 sps:$4 sm:$0xff]  }
  0x2a   :  { %453 = vmatpush1.bf16.msra.mxu0 %v11604_v26  ;;  %11416 = vmatmul.mubr.msk.bf16.vlgmr.msra.gmra.mrb[0].mxu1 %vm383_vm2, %v13174_v22  ;;  %v11719_v26 = vld [vmem:[%s17737_s3 + $0x3d4] ss:$8 sps:$4 sm:$0xff]  }
  0x2b   :  { %454 = vmatprep.subr.bf16.mxu0 %v11609_v27  ;;  %1989 = vmatpush1.bf16.msra.mxu1 %v11651_v44  ;;  %v11660_v27 = vld [vmem:[%s17737_s3 + $0x20] ss:$8 sps:$4 sm:$0xff]  }
  0x2c   :  { %1990 = vmatprep.subr.bf16.mxu1 %v11659_v45  ;;  %v11735_v44 = vld [vmem:[%s17737_s3 + $0x400] ss:$8 sps:$4 sm:$0xff]  }
  0x2d   :  { %v11696_v45 = vld [vmem:[%s17737_s3 + $0x80] ss:$8 sps:$4 sm:$0xff]  }
  0x2e   :  { %455 = vmatpush1.bf16.msra.mxu0 %v11607_v29  ;;  %v11725_v29 = vld [vmem:[%s17737_s3 + $0x3e4] ss:$8 sps:$4 sm:$0xff]  }
  0x2f   :  { %456 = vmatprep.subr.bf16.mxu0 %v11612_v30  ;;  %1991 = vmatpush1.bf16.msra.mxu1 %v11657_v48  ;;  %v11666_v30 = vld [vmem:[%s17737_s3 + $0x30] ss:$8 sps:$4 sm:$0xff]  }
  0x30   :  { %1992 = vmatprep.subr.bf16.mxu1 %v11665_v49  ;;  %v11741_v48 = vld [vmem:[%s17737_s3 + $0x410] ss:$8 sps:$4 sm:$0xff]  }
  0x31   :  { %v11702_v49 = vld [vmem:[%s17737_s3 + $0x90] ss:$8 sps:$4 sm:$0xff]  }
  0x32   :  { %457 = vmatpush1.bf16.msra.mxu0 %v11610_v32  ;;  %v11723_v32 = vld [vmem:[%s17737_s3 + $0x3e0] ss:$8 sps:$4 sm:$0xff]  }
  0x33   :  { %458 = vmatprep.subr.bf16.mxu0 %v11615_v33  ;;  %1993 = vmatpush1.bf16.msra.mxu1 %v11663_v52  ;;  %v11731_v33 = vld [vmem:[%s17737_s3 + $0x3f4] ss:$8 sps:$4 sm:$0xff]   ;;  %v11708_v52 = vld [vmem:[%s17737_s3 + $0xa0] ss:$8 sps:$4 sm:$0xff]  }
  0x34   :  { %1994 = vmatprep.subr.bf16.mxu1 %v11671_v53  ;;  %v11716_v53 = vld [vmem:[%s17737_s3 + $0xb4] ss:$8 sps:$4 sm:$0xff]  }
  0x36   :  { %459 = vmatpush1.bf16.msra.mxu0 %v11613_v36  ;;  %v11729_v36 = vld [vmem:[%s17737_s3 + $0x3f0] ss:$8 sps:$4 sm:$0xff]  }
  0x37   :  { %460 = vmatprep.subr.bf16.mxu0 %v11618_v37  ;;  %1995 = vmatpush1.bf16.msra.mxu1 %v11669_v56  ;;  %v11678_v37 = vld [vmem:[%s17737_s3 + $0x50] ss:$8 sps:$4 sm:$0xff]   ;;  %v11720_v56 = vld [vmem:[%s17737_s3 + $0xc0] ss:$8 sps:$4 sm:$0xff]  }
  0x38   :  { %1996 = vmatprep.subr.bf16.mxu1 %v11677_v57  ;;  %v11728_v57 = vld [vmem:[%s17737_s3 + $0xd4] ss:$8 sps:$4 sm:$0xff]  }
  0x3a   :  { %461 = vmatpush1.bf16.msra.mxu0 %v11616_v41  ;;  %v11690_v41 = vld [vmem:[%s17737_s3 + $0x70] ss:$8 sps:$4 sm:$0xff]  }
  0x3b   :  { %9675 = vmatprep.subr.msk.bf16.mxu0 %vm17775_vm1, %v9669_v42  ;;  %1997 = vmatpush1.bf16.msra.mxu1 %v11675_v60  ;;  %v11737_v42 = vld [vmem:[%s17737_s3 + $0x404] ss:$8 sps:$4 sm:$0xff]   ;;  %v11732_v60 = vld [vmem:[%s17737_s3 + $0xe0] ss:$8 sps:$4 sm:$0xff]  }
  0x3c   :  { %1998 = vmatprep.subr.bf16.mxu1 %v11683_v61  ;;  %v11740_v61 = vld [vmem:[%s17737_s3 + $0xf4] ss:$8 sps:$4 sm:$0xff]  }
  0x3e   :  { %463 = vmatpush1.bf16.msra.mxu0 %v395_v46  ;;  %v11743_v46 = vld [vmem:[%s17737_s3 + $0x414] ss:$8 sps:$4 sm:$0xff]  }
  0x3f   :  { %491 = vmatprep.subr.bf16.mxu0 %v11623_v47  ;;  %1999 = vmatpush1.bf16.msra.mxu1 %v11681_v3  ;;  %v11704_v47 = vld [vmem:[%s17737_s3 + $0x94] ss:$8 sps:$4 sm:$0xff]  }
  0x40   :  { %2000 = vmatprep.subr.bf16.mxu1 %v11689_v4 }
  0x41   :  { %9676 = vmatmul.mubr.msk.bf16.vlgmr.msra.gmra.mrb[4].mxu0 %vm383_vm2, %v13174_v22 }
  0x42   :  { %492 = vmatpush1.bf16.msra.mxu0 %v11621_v50  ;;  %523 = vmatprep.mubr.bf16.mxu0 %v17753_v1  ;;  %v11749_v50 = vld [vmem:[%s17737_s3 + $0x424] ss:$8 sps:$4 sm:$0xff]  }
  0x43   :  { %493 = vmatprep.subr.bf16.mxu0 %v11626_v51  ;;  %2001 = vmatpush1.bf16.msra.mxu1 %v11687_v7  ;;  %v11710_v51 = vld [vmem:[%s17737_s3 + $0xa4] ss:$8 sps:$4 sm:$0xff]  }
  0x44   :  { %2002 = vmatprep.subr.bf16.mxu1 %v11695_v8 }
  0x46   :  { %494 = vmatpush1.bf16.msra.mxu0 %v11624_v54  ;;  %v11714_v54 = vld [vmem:[%s17737_s3 + $0xb0] ss:$8 sps:$4 sm:$0xff]  }
  0x47   :  { %495 = vmatprep.subr.bf16.mxu0 %v11629_v55  ;;  %2003 = vmatpush1.bf16.msra.mxu1 %v11693_v10  ;;  %v11722_v55 = vld [vmem:[%s17737_s3 + $0xc4] ss:$8 sps:$4 sm:$0xff]  }
  0x48   :  { %2004 = vmatprep.subr.bf16.mxu1 %v11701_v13 }
  0x4a   :  { %496 = vmatpush1.bf16.msra.mxu0 %v11627_v58  ;;  %v11726_v58 = vld [vmem:[%s17737_s3 + $0xd0] ss:$8 sps:$4 sm:$0xff]  }
  0x4b   :  { %497 = vmatprep.subr.bf16.mxu0 %v11632_v59  ;;  %2005 = vmatpush1.bf16.msra.mxu1 %v11699_v15  ;;  %v11734_v59 = vld [vmem:[%s17737_s3 + $0xe4] ss:$8 sps:$4 sm:$0xff]  }
  0x4c   :  { %2006 = vmatprep.subr.bf16.mxu1 %v11707_v17  ;;  %v11744_v17 = vld [vmem:[%s17737_s3 + $0x100] ss:$8 sps:$4 sm:$0xff]  }
  0x4e   :  { %498 = vmatpush1.bf16.msra.mxu0 %v11630_v62  ;;  %v11738_v62 = vld [vmem:[%s17737_s3 + $0xf0] ss:$8 sps:$4 sm:$0xff]  }
  0x4f   :  { %499 = vmatprep.subr.bf16.mxu0 %v11636_v63  ;;  %2007 = vmatpush1.bf16.msra.mxu1 %v11705_v20  ;;  %v11746_v63 = vld [vmem:[%s17737_s3 + $0x104] ss:$8 sps:$4 sm:$0xff]  }
  0x50   :  { %2008 = vmatprep.subr.bf16.mxu1 %v11713_v21 }
  0x52   :  { %500 = vmatpush1.bf16.msra.mxu0 %v11634_v0  ;;  %v114_v0 = vlaneseq }
  0x53   :  { %501 = vmatprep.subr.bf16.mxu0 %v11640_v5  ;;  %2009 = vmatpush1.bf16.msra.mxu1 %v11711_v25  ;;  %v13493_v5 = vld [vmem:[%s17738_s2] sm:$0x7f]  ;;  %v11753_v25 = vld [vmem:[%s17737_s3 + $0x430] ss:$8 sps:$4 sm:$0xff]  }
  0x54   :  { %2010 = vmatprep.subr.bf16.mxu1 %v11719_v26  ;;  %v13485_v3 = vshrl.u32 %v114_v0, 7  ;;  %v11758_v26 = vld [vmem:[%s17737_s3 + $0x124] ss:$8 sps:$4 sm:$0xff]   ;;  %v11792_v0 = vld [vmem:[%s17737_s3 + $0x180] ss:$8 sps:$4 sm:$0xff]  }
  0x56   :  { %502 = vmatpush1.bf16.msra.mxu0 %v11638_v9  ;;  %v13488_v4 = vsub.s32 0, %v13485_v3  ;;  %v13496_v6 = vsub.s32 1, %v13485_v3 }
  0x57   :  { %9677 = vmatprep.subr.msk.bf16.mxu0 %vm17775_vm1, %v9671_v11  ;;  %2011 = vmatpush1.bf16.msra.mxu1 %v11717_v28  ;;  %v11759_v28 = vld [vmem:[%s17737_s3 + $0x440] ss:$8 sps:$4 sm:$0xff]   ;;  %vm8196_vm1 = vcmask 850944  }
  0x58   :  { %2012 = vmatprep.subr.bf16.mxu1 %v11725_v29  ;;  %17779 = vst [vmem:[#allocation8_spill] sm:$0xff] %v13496_v6  ;;  %v117_v7 = vrot.slane %v13493_v5, %v13488_v4  ;;  %v121_v8 = vrot.slane %v13493_v5, %v13496_v6  ;;  %v11764_v29 = vld [vmem:[%s17737_s3 + $0x134] ss:$8 sps:$4 sm:$0xff]  }
  0x5a   :  { %504 = vmatpush1.bf16.msra.mxu0 %v401_v16 }
  0x5b   :  { %1205 = vmatprep.subr.bf16.mxu0 %v11650_v14  ;;  %2013 = vmatpush1.bf16.msra.mxu1 %v11723_v32  ;;  %v11765_v32 = vld [vmem:[%s17737_s3 + $0x450] ss:$8 sps:$4 sm:$0xff]  }
  0x5c   :  { %2014 = vmatprep.subr.bf16.mxu1 %v11731_v33  ;;  %v11770_v33 = vld [vmem:[%s17737_s3 + $0x144] ss:$8 sps:$4 sm:$0xff]  }
  0x5d   :  { %9678 = vmatmul.mubr.msk.bf16.vlgmr.msra.gmra.mrb[8].mxu0 %vm383_vm2, %v13174_v22  ;;  %v11668_v22 = vld [vmem:[%s17737_s3 + $0x34] ss:$8 sps:$4 sm:$0xff]   ;;  %vm8181_vm2 = vcmask 195584  }
  0x5e   :  { %1206 = vmatpush1.bf16.msra.mxu0 %v11648_v18  ;;  %v11747_v18 = vld [vmem:[%s17737_s3 + $0x420] ss:$8 sps:$4 sm:$0xff]  }
  0x5f   :  { %1207 = vmatprep.subr.bf16.mxu0 %v11656_v19  ;;  %2015 = vmatpush1.bf16.msra.mxu1 %v11729_v36  ;;  %v11752_v19 = vld [vmem:[%s17737_s3 + $0x114] ss:$8 sps:$4 sm:$0xff]   ;;  %v11771_v36 = vld [vmem:[%s17737_s3 + $0x460] ss:$8 sps:$4 sm:$0xff]  }
  0x60   :  { %2016 = vmatprep.subr.bf16.mxu1 %v11737_v42  ;;  %v11774_v42 = vld [vmem:[%s17737_s3 + $0x150] ss:$8 sps:$4 sm:$0xff]  }
  0x62   :  { %1208 = vmatpush1.bf16.msra.mxu0 %v11654_v23  ;;  %v11755_v23 = vld [vmem:[%s17737_s3 + $0x434] ss:$8 sps:$4 sm:$0xff]  }
  0x63   :  { %1209 = vmatprep.subr.bf16.mxu0 %v11662_v24  ;;  %2017 = vmatpush1.bf16.msra.mxu1 %v11735_v44  ;;  %v11750_v24 = vld [vmem:[%s17737_s3 + $0x110] ss:$8 sps:$4 sm:$0xff]  }
  0x64   :  { %2018 = vmatprep.subr.bf16.mxu1 %v11743_v46  ;;  %v11777_v44 = vld [vmem:[%s17737_s3 + $0x470] ss:$8 sps:$4 sm:$0xff]   ;;  %v11782_v46 = vld [vmem:[%s17737_s3 + $0x164] ss:$8 sps:$4 sm:$0xff]  }
  0x66   :  { %1210 = vmatpush1.bf16.msra.mxu0 %v11660_v27  ;;  %v11761_v27 = vld [vmem:[%s17737_s3 + $0x444] ss:$8 sps:$4 sm:$0xff]  }
  0x67   :  { %1211 = vmatprep.subr.bf16.mxu0 %v11668_v22  ;;  %2019 = vmatpush1.bf16.msra.mxu1 %v11741_v48  ;;  %v11756_v22 = vld [vmem:[%s17737_s3 + $0x120] ss:$8 sps:$4 sm:$0xff]  }
  0x68   :  { %2029 = vmatprep.subr.bf16.mxu1 %v11749_v50 }
  0x6a   :  { %1212 = vmatpush1.bf16.msra.mxu0 %v11666_v30  ;;  %v11767_v30 = vld [vmem:[%s17737_s3 + $0x454] ss:$8 sps:$4 sm:$0xff]  }
  0x6b   :  { %1213 = vmatprep.subr.bf16.mxu0 %v11674_v31  ;;  %v11762_v31 = vld [vmem:[%s17737_s3 + $0x130] ss:$8 sps:$4 sm:$0xff]  }
  0x6e   :  { %1214 = vmatpush1.bf16.msra.mxu0 %v11672_v34  ;;  %v11773_v34 = vld [vmem:[%s17737_s3 + $0x464] ss:$8 sps:$4 sm:$0xff]  }
  0x6f   :  { %1215 = vmatprep.subr.bf16.mxu0 %v11680_v35  ;;  %v11768_v35 = vld [vmem:[%s17737_s3 + $0x140] ss:$8 sps:$4 sm:$0xff]  }
  0x72   :  { %1216 = vmatpush1.bf16.msra.mxu0 %v11678_v37  ;;  %v11776_v37 = vld [vmem:[%s17737_s3 + $0x154] ss:$8 sps:$4 sm:$0xff]  }
  0x73   :  { %1217 = vmatprep.subr.bf16.mxu0 %v11686_v38  ;;  %v11779_v38 = vld [vmem:[%s17737_s3 + $0x474] ss:$8 sps:$4 sm:$0xff]  }
  0x76   :  { %1218 = vmatpush1.bf16.msra.mxu0 %v11684_v39  ;;  %v128_v39 = vsub.s32 3, %v13485_v3 }
  0x77   :  { %1219 = vmatprep.subr.bf16.mxu0 %v11692_v40 }
  0x78   :  { %v129_v48 = vrot.slane %v13493_v5, %v128_v39  ;;  %v11828_v39 = vld [vmem:[%s17737_s3 + $0x1e0] ss:$8 sps:$4 sm:$0xff]  }
  0x7a   :  { %1220 = vmatpush1.bf16.msra.mxu0 %v11690_v41 }
  0x7b   :  { %1221 = vmatprep.subr.bf16.mxu0 %v11698_v43 }
  0x7e   :  { %1222 = vmatpush1.bf16.msra.mxu0 %v11696_v45 }
  0x7f   :  { %1223 = vmatprep.subr.bf16.mxu0 %v11704_v47  ;;  %v11785_v47 = vld [vmem:[%s17737_s3 + $0x484] ss:$8 sps:$4 sm:$0xff]  }
  0x82   :  { %1224 = vmatpush1.bf16.msra.mxu0 %v11702_v49  ;;  %v11780_v49 = vld [vmem:[%s17737_s3 + $0x160] ss:$8 sps:$4 sm:$0xff]  }
  0x83   :  { %1225 = vmatprep.subr.bf16.mxu0 %v11710_v51  ;;  %v11783_v51 = vld [vmem:[%s17737_s3 + $0x480] ss:$8 sps:$4 sm:$0xff]  }
  0x86   :  { %1226 = vmatpush1.bf16.msra.mxu0 %v11708_v52 }
  0x87   :  { %1227 = vmatprep.subr.bf16.mxu0 %v11716_v53 }
  0x8a   :  { %1228 = vmatpush1.bf16.msra.mxu0 %v11714_v54 }
  0x8b   :  { %1229 = vmatprep.subr.bf16.mxu0 %v11722_v55  ;;  %v11788_v55 = vld [vmem:[%s17737_s3 + $0x174] ss:$8 sps:$4 sm:$0xff]  }
  0x8e   :  { %1230 = vmatpush1.bf16.msra.mxu0 %v11720_v56  ;;  %v11791_v56 = vld [vmem:[%s17737_s3 + $0x494] ss:$8 sps:$4 sm:$0xff]  }
  0x8f   :  { %1231 = vmatprep.subr.bf16.mxu0 %v11728_v57 }
  0x92   :  { %1232 = vmatpush1.bf16.msra.mxu0 %v11726_v58  ;;  %v11786_v58 = vld [vmem:[%s17737_s3 + $0x170] ss:$8 sps:$4 sm:$0xff]  }
  0x93   :  { %1233 = vmatprep.subr.bf16.mxu0 %v11734_v59 }
  0x96   :  { %1234 = vmatpush1.bf16.msra.mxu0 %v11732_v60  ;;  %v11789_v60 = vld [vmem:[%s17737_s3 + $0x490] ss:$8 sps:$4 sm:$0xff]  }
  0x97   :  { %1235 = vmatprep.subr.bf16.mxu0 %v11740_v61 }
  0x9a   :  { %1236 = vmatpush1.bf16.msra.mxu0 %v11738_v62  ;;  %v11794_v62 = vld [vmem:[%s17737_s3 + $0x184] ss:$8 sps:$4 sm:$0xff]  }
  0x9b   :  { %1246 = vmatprep.subr.bf16.mxu0 %v11746_v63  ;;  %v11797_v63 = vld [vmem:[%s17737_s3 + $0x4a4] ss:$8 sps:$4 sm:$0xff]  }
  0xf8   :  { %v443_v9 = vpop.f32.mrb[0].mxu0 }
  0xf9   :  { %v444_v10 = vadd.f32 %v443_v9, %v117_v7  ;;  %v445_v11 = vpop.f32.mrb[1].mxu0  ;;  %v11795_v7 = vld [vmem:[%s17737_s3 + $0x4a0] ss:$8 sps:$4 sm:$0xff]   ;;  %v11803_v9 = vld [vmem:[%s17737_s3 + $0x4b4] ss:$8 sps:$4 sm:$0xff]  }
  0xfa   :  { %v446_v12 = vadd.f32 %v445_v11, %v121_v8  ;;  %v447_v13 = vpop.f32.mrb[2].mxu0  ;;  %v11800_v8 = vld [vmem:[%s17737_s3 + $0x194] ss:$8 sps:$4 sm:$0xff]   ;;  %v11801_v11 = vld [vmem:[%s17737_s3 + $0x4b0] ss:$8 sps:$4 sm:$0xff]  }
  0xfb   :  { %v572_v14 = vmax.f32 %v444_v10, 0.0  ;;  %v448_v15 = vpop.f32.mrb[3].mxu0  ;;  %v11798_v10 = vld [vmem:[%s17737_s3 + $0x190] ss:$8 sps:$4 sm:$0xff]   ;;  %v11809_v13 = vld [vmem:[%s17737_s3 + $0x4c4] ss:$8 sps:$4 sm:$0xff]  }
  0xfc   :  { %v573_v16 = vmax.f32 %v446_v12, 0.0  ;;  %v11806_v12 = vld [vmem:[%s17737_s3 + $0x1a4] ss:$8 sps:$4 sm:$0xff]   ;;  %v11807_v15 = vld [vmem:[%s17737_s3 + $0x4c0] ss:$8 sps:$4 sm:$0xff]  }
  0xfd   :  { %v13513_v21 = vpack.c.bf16 %v572_v14, %v572_v14  ;;  %v13571_v40 = vpop.f32.mrb[0].mxu1  ;;  %v11804_v14 = vld [vmem:[%s17737_s3 + $0x1a0] ss:$8 sps:$4 sm:$0xff]  }
  0xfe   :  { %v13511_v20 = vpack.c.bf16 %v573_v16, %v573_v16  ;;  %v11417_v41 = vpop.f32.mrb[1].mxu1  ;;  %v11812_v16 = vld [vmem:[%s17737_s3 + $0x1b4] ss:$8 sps:$4 sm:$0xff]  }
  0xff   :  { %v569_v43 = vpop.f32.mrb[2].mxu1 }
 0x100   :  { %1237 = vmatprep.mubr.bf16.mxu0 %v13511_v20  ;;  %2020 = vmatprep.mubr.bf16.mxu1 %v13511_v20  ;;  %v11418_v45 = vpop.f32.mrb[3].mxu1  ;;  %v11831_v43 = vld [vmem:[%s17737_s3 + $0x500] ss:$8 sps:$4 sm:$0xff]  }
 0x101   :  { %1238 = vmatmul.mubr.bf16.vlgmr.msra.gmra.mrb[12].mxu0 %v13513_v21  ;;  %2021 = vmatmul.mubr.bf16.vlgmr.msra.gmra.mrb[4].mxu1 %v13513_v21  ;;  %v11839_v45 = vld [vmem:[%s17737_s3 + $0x514] ss:$8 sps:$4 sm:$0xff]  }
 0x102   :  { %1247 = vmatpush1.bf16.msra.mxu0 %v11744_v17  ;;  %2030 = vmatpush1.bf16.msra.mxu1 %v11747_v18  ;;  %v11815_v17 = vld [vmem:[%s17737_s3 + $0x4d4] ss:$8 sps:$4 sm:$0xff]   ;;  %v11810_v18 = vld [vmem:[%s17737_s3 + $0x1b0] ss:$8 sps:$4 sm:$0xff]  }
 0x103   :  { %1248 = vmatprep.subr.bf16.mxu0 %v11752_v19  ;;  %2031 = vmatprep.subr.bf16.mxu1 %v11755_v23  ;;  %v11813_v19 = vld [vmem:[%s17737_s3 + $0x4d0] ss:$8 sps:$4 sm:$0xff]   ;;  %v11818_v23 = vld [vmem:[%s17737_s3 + $0x1c4] ss:$8 sps:$4 sm:$0xff]  }
 0x106   :  { %1249 = vmatpush1.bf16.msra.mxu0 %v11750_v24  ;;  %2032 = vmatpush1.bf16.msra.mxu1 %v11753_v25  ;;  %v11821_v24 = vld [vmem:[%s17737_s3 + $0x4e4] ss:$8 sps:$4 sm:$0xff]   ;;  %v11816_v25 = vld [vmem:[%s17737_s3 + $0x1c0] ss:$8 sps:$4 sm:$0xff]  }
 0x107   :  { %1250 = vmatprep.subr.bf16.mxu0 %v11758_v26  ;;  %2033 = vmatprep.subr.bf16.mxu1 %v11761_v27  ;;  %v11819_v26 = vld [vmem:[%s17737_s3 + $0x4e0] ss:$8 sps:$4 sm:$0xff]   ;;  %v124_v27 = vsub.s32 2, %v13485_v3 }
 0x10a   :  { %1251 = vmatpush1.bf16.msra.mxu0 %v11756_v22  ;;  %2034 = vmatpush1.bf16.msra.mxu1 %v11759_v28  ;;  %v11824_v22 = vld [vmem:[%s17737_s3 + $0x1d4] ss:$8 sps:$4 sm:$0xff]  }
 0x10b   :  { %1252 = vmatprep.subr.bf16.mxu0 %v11764_v29  ;;  %2035 = vmatprep.subr.bf16.mxu1 %v11767_v30  ;;  %v11827_v28 = vld [vmem:[%s17737_s3 + $0x4f4] ss:$8 sps:$4 sm:$0xff]   ;;  %v11822_v29 = vld [vmem:[%s17737_s3 + $0x1d0] ss:$8 sps:$4 sm:$0xff]  }
 0x10e   :  { %1253 = vmatpush1.bf16.msra.mxu0 %v11762_v31  ;;  %2036 = vmatpush1.bf16.msra.mxu1 %v11765_v32  ;;  %v136_v31 = vsub.s32 5, %v13485_v3  ;;  %v11825_v32 = vld [vmem:[%s17737_s3 + $0x4f0] ss:$8 sps:$4 sm:$0xff]  }
 0x10f   :  { %1254 = vmatprep.subr.bf16.mxu0 %v11770_v33  ;;  %2037 = vmatprep.subr.bf16.mxu1 %v11773_v34  ;;  %v125_v33 = vrot.slane %v13493_v5, %v124_v27  ;;  %v11887_v27 = vld [vmem:[%s17737_s3 + $0x594] ss:$8 sps:$4 sm:$0xff]  }
 0x110   :  { %v137_v41 = vrot.slane %v13493_v5, %v136_v31  ;;  %v11834_v5 = vld [vmem:[%s17737_s3 + $0x1f0] ss:$8 sps:$4 sm:$0xff]   ;;  %v11893_v31 = vld [vmem:[%s17737_s3 + $0x5a4] ss:$8 sps:$4 sm:$0xff]  }
 0x112   :  { %1255 = vmatpush1.bf16.msra.mxu0 %v11768_v35  ;;  %2038 = vmatpush1.bf16.msra.mxu1 %v11771_v36  ;;  %v11830_v36 = vld [vmem:[%s17737_s3 + $0x1e4] ss:$8 sps:$4 sm:$0xff]  }
 0x113   :  { %1256 = vmatprep.subr.bf16.mxu0 %v11776_v37  ;;  %2039 = vmatprep.subr.bf16.mxu1 %v11779_v38  ;;  %v11833_v37 = vld [vmem:[%s17737_s3 + $0x504] ss:$8 sps:$4 sm:$0xff]  }
 0x114   :  { %v13589_v50 = vpop.f32.mrb[4].mxu0 }
 0x115   :  { %v486_v52 = vpop.f32.mrb[5].mxu0 }
 0x116   :  { %1257 = vmatpush1.bf16.msra.mxu0 %v11774_v42  ;;  %2040 = vmatpush1.bf16.msra.mxu1 %v11777_v44  ;;  %v487_v53 = vadd.f32 %v486_v52, %v129_v48  ;;  %v488_v54 = vpop.f32.mrb[6].mxu0  ;;  %v485_v42 = vadd.f32 %v13589_v50, %v125_v33  ;;  %v11836_v44 = vld [vmem:[%s17737_s3 + $0x1f4] ss:$8 sps:$4 sm:$0xff]   ;;  %v11837_v48 = vld [vmem:[%s17737_s3 + $0x510] ss:$8 sps:$4 sm:$0xff]  }
 0x117   :  { %1258 = vmatprep.subr.bf16.mxu0 %v11782_v46  ;;  %2041 = vmatprep.subr.bf16.mxu1 %v11785_v47  ;;  %v489_v57 = vpop.f32.mrb[7].mxu0  ;;  %v11845_v50 = vld [vmem:[%s17737_s3 + $0x524] ss:$8 sps:$4 sm:$0xff]   ;;  %v11843_v54 = vld [vmem:[%s17737_s3 + $0x520] ss:$8 sps:$4 sm:$0xff]  }
 0x118   :  { %v575_v59 = vmax.f32 %v487_v53, 0.0  ;;  %v574_v47 = vmax.f32 %v485_v42, 0.0  ;;  %v11846_v57 = vld [vmem:[%s17737_s3 + $0x210] ss:$8 sps:$4 sm:$0xff]   ;;  %v11891_v33 = vld [vmem:[%s17737_s3 + $0x5a0] ss:$8 sps:$4 sm:$0xff]  }
 0x119   :  { %v11903_v42 = vld [vmem:[%s17737_s3 + $0x5c0] ss:$8 sps:$4 sm:$0xff]  }
 0x11a   :  { %1259 = vmatpush1.bf16.msra.mxu0 %v11780_v49  ;;  %2042 = vmatpush1.bf16.msra.mxu1 %v11783_v51  ;;  %v13606_v61 = vpack.c.bf16 %v575_v59, %v575_v59  ;;  %v11842_v49 = vld [vmem:[%s17737_s3 + $0x204] ss:$8 sps:$4 sm:$0xff]   ;;  %v11840_v51 = vld [vmem:[%s17737_s3 + $0x200] ss:$8 sps:$4 sm:$0xff]   ;;  %v13722_v53 = vpack.c.bf16 %v574_v47, %v574_v47  ;;  %v11849_v59 = vld [vmem:[%s17737_s3 + $0x530] ss:$8 sps:$4 sm:$0xff]  }
 0x11b   :  { %1260 = vmatprep.subr.bf16.mxu0 %v11788_v55  ;;  %2043 = vmatprep.subr.bf16.mxu1 %v11791_v56  ;;  %v11848_v55 = vld [vmem:[%s17737_s3 + $0x214] ss:$8 sps:$4 sm:$0xff]   ;;  %v11917_v47 = vld [vmem:[%s17737_s3 + $0x5e4] ss:$8 sps:$4 sm:$0xff]  }
 0x11c   :  { %1278 = vmatprep.mubr.bf16.mxu0 %v13606_v61  ;;  %2061 = vmatprep.mubr.bf16.mxu1 %v13606_v61  ;;  %v11851_v56 = vld [vmem:[%s17737_s3 + $0x534] ss:$8 sps:$4 sm:$0xff]  }
 0x11e   :  { %1261 = vmatpush1.bf16.msra.mxu0 %v11786_v58  ;;  %2044 = vmatpush1.bf16.msra.mxu1 %v11789_v60  ;;  %v11854_v60 = vld [vmem:[%s17737_s3 + $0x224] ss:$8 sps:$4 sm:$0xff]  }
 0x11f   :  { %1262 = vmatprep.subr.bf16.mxu0 %v11794_v62  ;;  %2045 = vmatprep.subr.bf16.mxu1 %v11797_v63  ;;  %v11857_v62 = vld [vmem:[%s17737_s3 + $0x544] ss:$8 sps:$4 sm:$0xff]   ;;  %v11852_v63 = vld [vmem:[%s17737_s3 + $0x220] ss:$8 sps:$4 sm:$0xff]  }
 0x122   :  { %1263 = vmatpush1.bf16.msra.mxu0 %v11792_v0  ;;  %2046 = vmatpush1.bf16.msra.mxu1 %v11795_v7  ;;  %v11855_v0 = vld [vmem:[%s17737_s3 + $0x540] ss:$8 sps:$4 sm:$0xff]   ;;  %v11860_v7 = vld [vmem:[%s17737_s3 + $0x234] ss:$8 sps:$4 sm:$0xff]  }
 0x123   :  { %1264 = vmatprep.subr.bf16.mxu0 %v11800_v8  ;;  %2047 = vmatprep.subr.bf16.mxu1 %v11803_v9  ;;  %v11863_v8 = vld [vmem:[%s17737_s3 + $0x554] ss:$8 sps:$4 sm:$0xff]   ;;  %v11858_v9 = vld [vmem:[%s17737_s3 + $0x230] ss:$8 sps:$4 sm:$0xff]  }
 0x126   :  { %1265 = vmatpush1.bf16.msra.mxu0 %v11798_v10  ;;  %2048 = vmatpush1.bf16.msra.mxu1 %v11801_v11  ;;  %v11861_v10 = vld [vmem:[%s17737_s3 + $0x550] ss:$8 sps:$4 sm:$0xff]   ;;  %v11866_v11 = vld [vmem:[%s17737_s3 + $0x244] ss:$8 sps:$4 sm:$0xff]  }
 0x127   :  { %1266 = vmatprep.subr.bf16.mxu0 %v11806_v12  ;;  %2049 = vmatprep.subr.bf16.mxu1 %v11809_v13  ;;  %v11869_v12 = vld [vmem:[%s17737_s3 + $0x564] ss:$8 sps:$4 sm:$0xff]   ;;  %v11864_v13 = vld [vmem:[%s17737_s3 + $0x240] ss:$8 sps:$4 sm:$0xff]  }
 0x12a   :  { %1267 = vmatpush1.bf16.msra.mxu0 %v11804_v14  ;;  %2050 = vmatpush1.bf16.msra.mxu1 %v11807_v15  ;;  %v11867_v14 = vld [vmem:[%s17737_s3 + $0x560] ss:$8 sps:$4 sm:$0xff]   ;;  %v11872_v15 = vld [vmem:[%s17737_s3 + $0x254] ss:$8 sps:$4 sm:$0xff]  }
 0x12b   :  { %1268 = vmatprep.subr.bf16.mxu0 %v11812_v16  ;;  %2051 = vmatprep.subr.bf16.mxu1 %v11815_v17  ;;  %v11875_v16 = vld [vmem:[%s17737_s3 + $0x574] ss:$8 sps:$4 sm:$0xff]   ;;  %v11870_v17 = vld [vmem:[%s17737_s3 + $0x250] ss:$8 sps:$4 sm:$0xff]  }
 0x12e   :  { %1269 = vmatpush1.bf16.msra.mxu0 %v11810_v18  ;;  %2052 = vmatpush1.bf16.msra.mxu1 %v11813_v19  ;;  %v11873_v18 = vld [vmem:[%s17737_s3 + $0x570] ss:$8 sps:$4 sm:$0xff]   ;;  %v11878_v19 = vld [vmem:[%s17737_s3 + $0x264] ss:$8 sps:$4 sm:$0xff]  }
 0x12f   :  { %1270 = vmatprep.subr.bf16.mxu0 %v11818_v23  ;;  %2053 = vmatprep.subr.bf16.mxu1 %v11821_v24  ;;  %v11881_v23 = vld [vmem:[%s17737_s3 + $0x584] ss:$8 sps:$4 sm:$0xff]   ;;  %v11876_v24 = vld [vmem:[%s17737_s3 + $0x260] ss:$8 sps:$4 sm:$0xff]  }
 0x130   :  { %v13680_v30 = vpop.f32.mrb[8].mxu0 }
 0x131   :  { %v527_v34 = vpop.f32.mrb[9].mxu0 }
 0x132   :  { %1271 = vmatpush1.bf16.msra.mxu0 %v11816_v25  ;;  %2054 = vmatpush1.bf16.msra.mxu1 %v11819_v26  ;;  %v529_v35 = vpop.f32.mrb[10].mxu0  ;;  %v528_v46 = vadd.f32 %v527_v34, %v137_v41  ;;  %v11879_v25 = vld [vmem:[%s17737_s3 + $0x580] ss:$8 sps:$4 sm:$0xff]   ;;  %v11884_v26 = vld [vmem:[%s17737_s3 + $0x274] ss:$8 sps:$4 sm:$0xff]  }
 0x133   :  { %1272 = vmatprep.subr.bf16.mxu0 %v11824_v22  ;;  %2055 = vmatprep.subr.bf16.mxu1 %v11827_v28  ;;  %v530_v38 = vpop.f32.mrb[11].mxu0  ;;  %v11882_v22 = vld [vmem:[%s17737_s3 + $0x270] ss:$8 sps:$4 sm:$0xff]   ;;  %v11896_v34 = vld [vmem:[%s17737_s3 + $0x294] ss:$8 sps:$4 sm:$0xff]  }
 0x134   :  { %v577_v52 = vmax.f32 %v528_v46, 0.0  ;;  %v11885_v28 = vld [vmem:[%s17737_s3 + $0x590] ss:$8 sps:$4 sm:$0xff]   ;;  %v11899_v35 = vld [vmem:[%s17737_s3 + $0x5b4] ss:$8 sps:$4 sm:$0xff]  }
 0x135   :  { %v11902_v38 = vld [vmem:[%s17737_s3 + $0x2a4] ss:$8 sps:$4 sm:$0xff]   ;;  %v11900_v41 = vld [vmem:[%s17737_s3 + $0x2a0] ss:$8 sps:$4 sm:$0xff]  }
 0x136   :  { %1273 = vmatpush1.bf16.msra.mxu0 %v11822_v29  ;;  %2056 = vmatpush1.bf16.msra.mxu1 %v11825_v32  ;;  %v13736_v58 = vpack.c.bf16 %v577_v52, %v577_v52  ;;  %v11890_v29 = vld [vmem:[%s17737_s3 + $0x284] ss:$8 sps:$4 sm:$0xff]   ;;  %v11888_v32 = vld [vmem:[%s17737_s3 + $0x280] ss:$8 sps:$4 sm:$0xff]   ;;  %v11923_v52 = vld [vmem:[%s17737_s3 + $0x5f4] ss:$8 sps:$4 sm:$0xff]  }
 0x137   :  { %1274 = vmatprep.subr.bf16.mxu0 %v11830_v36  ;;  %2057 = vmatprep.subr.bf16.mxu1 %v11833_v37  ;;  %v11894_v36 = vld [vmem:[%s17737_s3 + $0x290] ss:$8 sps:$4 sm:$0xff]   ;;  %v11914_v46 = vld [vmem:[%s17737_s3 + $0x2c4] ss:$8 sps:$4 sm:$0xff]  }
 0x138   :  { %v11897_v37 = vld [vmem:[%s17737_s3 + $0x5b0] ss:$8 sps:$4 sm:$0xff]  }
 0x13a   :  { %1275 = vmatpush1.bf16.msra.mxu0 %v11828_v39  ;;  %2058 = vmatpush1.bf16.msra.mxu1 %v11831_v43  ;;  %v11905_v39 = vld [vmem:[%s17737_s3 + $0x5c4] ss:$8 sps:$4 sm:$0xff]   ;;  %v11908_v43 = vld [vmem:[%s17737_s3 + $0x2b4] ss:$8 sps:$4 sm:$0xff]  }
 0x13b   :  { %1276 = vmatprep.subr.bf16.mxu0 %v11836_v44  ;;  %2059 = vmatprep.subr.bf16.mxu1 %v11839_v45  ;;  %v11911_v44 = vld [vmem:[%s17737_s3 + $0x5d4] ss:$8 sps:$4 sm:$0xff]   ;;  %v11906_v45 = vld [vmem:[%s17737_s3 + $0x2b0] ss:$8 sps:$4 sm:$0xff]  }
 0x13e   :  { %1277 = vmatpush1.bf16.msra.mxu0 %v11834_v5  ;;  %2060 = vmatpush1.bf16.msra.mxu1 %v11837_v48  ;;  %v11909_v5 = vld [vmem:[%s17737_s3 + $0x5d0] ss:$8 sps:$4 sm:$0xff]   ;;  %v11912_v48 = vld [vmem:[%s17737_s3 + $0x2c0] ss:$8 sps:$4 sm:$0xff]  }
 0x13f   :  { %1287 = vmatprep.subr.bf16.mxu0 %v11842_v49  ;;  %2070 = vmatprep.subr.bf16.mxu1 %v11845_v50  ;;  %v11915_v49 = vld [vmem:[%s17737_s3 + $0x5e0] ss:$8 sps:$4 sm:$0xff]   ;;  %v132_v50 = vsub.s32 4, %v13485_v3 }
 0x141   :  { %1279 = vmatmul.mubr.bf16.vlgmr.msra.gmra.mrb[12].mxu0 %v13722_v53  ;;  %2062 = vmatmul.mubr.bf16.vlgmr.msra.gmra.mrb[4].mxu1 %v13722_v53 }
 0x142   :  { %1288 = vmatpush1.bf16.msra.mxu0 %v11840_v51  ;;  %2071 = vmatpush1.bf16.msra.mxu1 %v11843_v54  ;;  %v11920_v51 = vld [vmem:[%s17737_s3 + $0x2d4] ss:$8 sps:$4 sm:$0xff]   ;;  %v11918_v54 = vld [vmem:[%s17737_s3 + $0x2d0] ss:$8 sps:$4 sm:$0xff]  }
 0x143   :  { %1289 = vmatprep.subr.bf16.mxu0 %v11848_v55  ;;  %2072 = vmatprep.subr.bf16.mxu1 %v11851_v56  ;;  %v11921_v55 = vld [vmem:[%s17737_s3 + $0x5f0] ss:$8 sps:$4 sm:$0xff]   ;;  %v13006_v56 = vld [vmem:[%s17738_s2] sm:$0x7f] }
 0x144   :  { %1319 = vmatprep.mubr.bf16.mxu0 %v13736_v58  ;;  %2102 = vmatprep.mubr.bf16.mxu1 %v13736_v58 }
 0x146   :  { %1290 = vmatpush1.bf16.msra.mxu0 %v11846_v57  ;;  %2073 = vmatpush1.bf16.msra.mxu1 %v11849_v59  ;;  %v133_v57 = vrot.slane %v13006_v56, %v132_v50  ;;  %v11926_v59 = vld [vmem:[%s17737_s3 + $0x2e4] ss:$8 sps:$4 sm:$0xff]   ;;  %v11981_v50 = vld [vmem:[%s17737_s3 + $0x670] ss:$8 sps:$4 sm:$0xff]  }
 0x147   :  { %1291 = vmatprep.subr.bf16.mxu0 %v11854_v60  ;;  %2074 = vmatprep.subr.bf16.mxu1 %v11857_v62  ;;  %v11929_v60 = vld [vmem:[%s17737_s3 + $0x604] ss:$8 sps:$4 sm:$0xff]   ;;  %v11924_v62 = vld [vmem:[%s17737_s3 + $0x2e0] ss:$8 sps:$4 sm:$0xff]  }
 0x14a   :  { %1292 = vmatpush1.bf16.msra.mxu0 %v11852_v63  ;;  %2075 = vmatpush1.bf16.msra.mxu1 %v11855_v0  ;;  %v11927_v63 = vld [vmem:[%s17737_s3 + $0x600] ss:$8 sps:$4 sm:$0xff]   ;;  %v526_v0 = vadd.f32 %v13680_v30, %v133_v57  ;;  %v11933_v30 = vld [vmem:[%s17737_s3 + $0x610] ss:$8 sps:$4 sm:$0xff]   ;;  %v11995_v57 = vld [vmem:[%s17737_s3 + $0x694] ss:$8 sps:$4 sm:$0xff]  }
 0x14b   :  { %1293 = vmatprep.subr.bf16.mxu0 %v11860_v7  ;;  %2076 = vmatprep.subr.bf16.mxu1 %v11863_v8  ;;  %v11932_v7 = vld [vmem:[%s17737_s3 + $0x2f4] ss:$8 sps:$4 sm:$0xff]  }
 0x14c   :  { %v11935_v8 = vld [vmem:[%s17737_s3 + $0x614] ss:$8 sps:$4 sm:$0xff]  }
 0x14e   :  { %1294 = vmatpush1.bf16.msra.mxu0 %v11858_v9  ;;  %2077 = vmatpush1.bf16.msra.mxu1 %v11861_v10  ;;  %v140_v9 = vsub.s32 6, %v13485_v3  ;;  %v11930_v10 = vld [vmem:[%s17737_s3 + $0x2f0] ss:$8 sps:$4 sm:$0xff]   ;;  %v11941_v3 = vld [vmem:[%s17737_s3 + $0x964] ss:$8 sps:$4 sm:$0xff]  }
 0x14f   :  { %1295 = vmatprep.subr.bf16.mxu0 %v11866_v11  ;;  %2078 = vmatprep.subr.bf16.mxu1 %v11869_v12  ;;  %v576_v11 = vmax.f32 %v526_v0, 0.0  ;;  %v11938_v12 = vld [vmem:[%s17737_s3 + $0x304] ss:$8 sps:$4 sm:$0xff]   ;;  %v12004_v0 = vld [vmem:[%s17737_s3 + $0xa14] ss:$8 sps:$4 sm:$0xff]  }
 0x152   :  { %1296 = vmatpush1.bf16.msra.mxu0 %v11864_v13  ;;  %2079 = vmatpush1.bf16.msra.mxu1 %v11867_v14  ;;  %v141_v13 = vrot.slane %v13006_v56, %v140_v9  ;;  %v11936_v14 = vld [vmem:[%s17737_s3 + $0x300] ss:$8 sps:$4 sm:$0xff]   ;;  %v11990_v56 = vld [vmem:[%s17737_s3 + $0x9f0] ss:$8 sps:$4 sm:$0xff]   ;;  %v12007_v9 = vld [vmem:[%s17737_s3 + $0x6b4] ss:$8 sps:$4 sm:$0xff]  }
 0x153   :  { %1297 = vmatprep.subr.bf16.mxu0 %v11872_v15  ;;  %2080 = vmatprep.subr.bf16.mxu1 %v11875_v16  ;;  %v11939_v15 = vld [vmem:[%s17737_s3 + $0x960] ss:$8 sps:$4 sm:$0xff]   ;;  %v13931_v16 = vpack.c.bf16 %v576_v11, %v576_v11 }
 0x154   :  { %v12008_v11 = vld [vmem:[%s17737_s3 + $0xa20] ss:$8 sps:$4 sm:$0xff]  }
 0x156   :  { %1298 = vmatpush1.bf16.msra.mxu0 %v11870_v17  ;;  %2081 = vmatpush1.bf16.msra.mxu1 %v11873_v18  ;;  %v11944_v17 = vld [vmem:[%s17737_s3 + $0x974] ss:$8 sps:$4 sm:$0xff]  }
 0x157   :  { %1299 = vmatprep.subr.bf16.mxu0 %v11878_v19  ;;  %2082 = vmatprep.subr.bf16.mxu1 %v11881_v23  ;;  %v11947_v18 = vld [vmem:[%s17737_s3 + $0x314] ss:$8 sps:$4 sm:$0xff]   ;;  %v567_v19 = vadd.f32 %v13571_v40, %v141_v13  ;;  %v11942_v23 = vld [vmem:[%s17737_s3 + $0x970] ss:$8 sps:$4 sm:$0xff]   ;;  %v11953_v40 = vld [vmem:[%s17737_s3 + $0x624] ss:$8 sps:$4 sm:$0xff]  }
 0x158   :  { %v12011_v13 = vld [vmem:[%s17737_s3 + $0x6c0] ss:$8 sps:$4 sm:$0xff]  }
 0x15a   :  { %1300 = vmatpush1.bf16.msra.mxu0 %v11876_v24  ;;  %2083 = vmatpush1.bf16.msra.mxu1 %v11879_v25  ;;  %v11945_v24 = vld [vmem:[%s17737_s3 + $0x310] ss:$8 sps:$4 sm:$0xff]   ;;  %v11950_v25 = vld [vmem:[%s17737_s3 + $0x984] ss:$8 sps:$4 sm:$0xff]  }
 0x15b   :  { %1301 = vmatprep.subr.bf16.mxu0 %v11884_v26  ;;  %2084 = vmatprep.subr.bf16.mxu1 %v11887_v27  ;;  %v578_v26 = vmax.f32 %v567_v19, 0.0  ;;  %v11948_v27 = vld [vmem:[%s17737_s3 + $0x980] ss:$8 sps:$4 sm:$0xff]  }
 0x15c   :  { %v12020_v19 = vld [vmem:[%s17737_s3 + $0xa40] ss:$8 sps:$4 sm:$0xff]  }
 0x15e   :  { %1302 = vmatpush1.bf16.msra.mxu0 %v11882_v22  ;;  %2085 = vmatpush1.bf16.msra.mxu1 %v11885_v28  ;;  %v11956_v22 = vld [vmem:[%s17737_s3 + $0x994] ss:$8 sps:$4 sm:$0xff]   ;;  %v13962_v28 = vpack.c.bf16 %v578_v26, %v578_v26 }
 0x15f   :  { %1303 = vmatprep.subr.bf16.mxu0 %v11890_v29  ;;  %2086 = vmatprep.subr.bf16.mxu1 %v11893_v31  ;;  %v11951_v29 = vld [vmem:[%s17737_s3 + $0x620] ss:$8 sps:$4 sm:$0xff]   ;;  %v11954_v31 = vld [vmem:[%s17737_s3 + $0x990] ss:$8 sps:$4 sm:$0xff]   ;;  %v12031_v26 = vld [vmem:[%s17737_s3 + $0x6f4] ss:$8 sps:$4 sm:$0xff]  }
 0x162   :  { %1304 = vmatpush1.bf16.msra.mxu0 %v11888_v32  ;;  %2087 = vmatpush1.bf16.msra.mxu1 %v11891_v33  ;;  %v11959_v32 = vld [vmem:[%s17737_s3 + $0x634] ss:$8 sps:$4 sm:$0xff]   ;;  %v11962_v33 = vld [vmem:[%s17737_s3 + $0x9a4] ss:$8 sps:$4 sm:$0xff]  }
 0x163   :  { %1305 = vmatprep.subr.bf16.mxu0 %v11896_v34  ;;  %2088 = vmatprep.subr.bf16.mxu1 %v11899_v35  ;;  %v11957_v34 = vld [vmem:[%s17737_s3 + $0x630] ss:$8 sps:$4 sm:$0xff]   ;;  %v11960_v35 = vld [vmem:[%s17737_s3 + $0x9a0] ss:$8 sps:$4 sm:$0xff]  }
 0x166   :  { %1306 = vmatpush1.bf16.msra.mxu0 %v11894_v36  ;;  %2089 = vmatpush1.bf16.msra.mxu1 %v11897_v37  ;;  %v11965_v36 = vld [vmem:[%s17737_s3 + $0x644] ss:$8 sps:$4 sm:$0xff]   ;;  %v11968_v37 = vld [vmem:[%s17737_s3 + $0x9b4] ss:$8 sps:$4 sm:$0xff]  }
 0x167   :  { %1307 = vmatprep.subr.bf16.mxu0 %v11902_v38  ;;  %2090 = vmatprep.subr.bf16.mxu1 %v11905_v39  ;;  %v11963_v38 = vld [vmem:[%s17737_s3 + $0x640] ss:$8 sps:$4 sm:$0xff]   ;;  %v11966_v39 = vld [vmem:[%s17737_s3 + $0x9b0] ss:$8 sps:$4 sm:$0xff]  }
 0x16a   :  { %1308 = vmatpush1.bf16.msra.mxu0 %v11900_v41  ;;  %2091 = vmatpush1.bf16.msra.mxu1 %v11903_v42  ;;  %v11971_v41 = vld [vmem:[%s17737_s3 + $0x654] ss:$8 sps:$4 sm:$0xff]   ;;  %v11974_v42 = vld [vmem:[%s17737_s3 + $0x9c4] ss:$8 sps:$4 sm:$0xff]  }
 0x16b   :  { %1309 = vmatprep.subr.bf16.mxu0 %v11908_v43  ;;  %2092 = vmatprep.subr.bf16.mxu1 %v11911_v44  ;;  %v11969_v43 = vld [vmem:[%s17737_s3 + $0x650] ss:$8 sps:$4 sm:$0xff]   ;;  %v11972_v44 = vld [vmem:[%s17737_s3 + $0x9c0] ss:$8 sps:$4 sm:$0xff]  }
 0x16e   :  { %1310 = vmatpush1.bf16.msra.mxu0 %v11906_v45  ;;  %2093 = vmatpush1.bf16.msra.mxu1 %v11909_v5  ;;  %v11977_v45 = vld [vmem:[%s17737_s3 + $0x664] ss:$8 sps:$4 sm:$0xff]   ;;  %v11980_v5 = vld [vmem:[%s17737_s3 + $0x9d4] ss:$8 sps:$4 sm:$0xff]  }
 0x16f   :  { %1311 = vmatprep.subr.bf16.mxu0 %v11914_v46  ;;  %2094 = vmatprep.subr.bf16.mxu1 %v11917_v47  ;;  %v11975_v46 = vld [vmem:[%s17737_s3 + $0x660] ss:$8 sps:$4 sm:$0xff]   ;;  %v11978_v47 = vld [vmem:[%s17737_s3 + $0x9d0] ss:$8 sps:$4 sm:$0xff]  }
 0x172   :  { %1312 = vmatpush1.bf16.msra.mxu0 %v11912_v48  ;;  %2095 = vmatpush1.bf16.msra.mxu1 %v11915_v49  ;;  %v11983_v48 = vld [vmem:[%s17737_s3 + $0x674] ss:$8 sps:$4 sm:$0xff]   ;;  %v11986_v49 = vld [vmem:[%s17737_s3 + $0x9e4] ss:$8 sps:$4 sm:$0xff]  }
 0x173   :  { %1313 = vmatprep.subr.bf16.mxu0 %v11920_v51  ;;  %2096 = vmatprep.subr.bf16.mxu1 %v11923_v52  ;;  %v11984_v51 = vld [vmem:[%s17737_s3 + $0x9e0] ss:$8 sps:$4 sm:$0xff]   ;;  %v11989_v52 = vld [vmem:[%s17737_s3 + $0x684] ss:$8 sps:$4 sm:$0xff]  }
 0x176   :  { %1314 = vmatpush1.bf16.msra.mxu0 %v11918_v54  ;;  %2097 = vmatpush1.bf16.msra.mxu1 %v11921_v55  ;;  %v11992_v54 = vld [vmem:[%s17737_s3 + $0x9f4] ss:$8 sps:$4 sm:$0xff]   ;;  %v11987_v55 = vld [vmem:[%s17737_s3 + $0x680] ss:$8 sps:$4 sm:$0xff]  }
 0x177   :  { %1315 = vmatprep.subr.bf16.mxu0 %v11926_v59  ;;  %2098 = vmatprep.subr.bf16.mxu1 %v11929_v60  ;;  %v11998_v59 = vld [vmem:[%s17737_s3 + $0xa04] ss:$8 sps:$4 sm:$0xff]   ;;  %v11993_v60 = vld [vmem:[%s17737_s3 + $0x690] ss:$8 sps:$4 sm:$0xff]  }
 0x17a   :  { %1316 = vmatpush1.bf16.msra.mxu0 %v11924_v62  ;;  %2099 = vmatpush1.bf16.msra.mxu1 %v11927_v63  ;;  %v11996_v62 = vld [vmem:[%s17737_s3 + $0xa00] ss:$8 sps:$4 sm:$0xff]   ;;  %v12001_v63 = vld [vmem:[%s17737_s3 + $0x6a4] ss:$8 sps:$4 sm:$0xff]  }
 0x17b   :  { %1317 = vmatprep.subr.bf16.mxu0 %v11932_v7  ;;  %2100 = vmatprep.subr.bf16.mxu1 %v11935_v8  ;;  %v11999_v7 = vld [vmem:[%s17737_s3 + $0x6a0] ss:$8 sps:$4 sm:$0xff]   ;;  %v12002_v8 = vld [vmem:[%s17737_s3 + $0xa10] ss:$8 sps:$4 sm:$0xff]  }
 0x17e   :  { %1318 = vmatpush1.bf16.msra.mxu0 %v11930_v10  ;;  %2101 = vmatpush1.bf16.msra.mxu1 %v11933_v30  ;;  %v12010_v10 = vld [vmem:[%s17737_s3 + $0xa24] ss:$8 sps:$4 sm:$0xff]   ;;  %v12005_v30 = vld [vmem:[%s17737_s3 + $0x6b0] ss:$8 sps:$4 sm:$0xff]  }
 0x17f   :  { %1328 = vmatprep.subr.bf16.mxu0 %v11938_v12  ;;  %3566 = vmatprep.subr.bf16.mxu1 %v11941_v3  ;;  %v12013_v12 = vld [vmem:[%s17737_s3 + $0x6c4] ss:$8 sps:$4 sm:$0xff]   ;;  %v12016_v3 = vld [vmem:[%s17737_s3 + $0xa34] ss:$8 sps:$4 sm:$0xff]  }
 0x181   :  { %1320 = vmatmul.mubr.bf16.vlgmr.msra.gmra.mrb[12].mxu0 %v13931_v16  ;;  %2103 = vmatmul.mubr.bf16.vlgmr.msra.gmra.mrb[4].mxu1 %v13931_v16 }
 0x182   :  { %1329 = vmatpush1.bf16.msra.mxu0 %v11936_v14  ;;  %3567 = vmatpush1.bf16.msra.mxu1 %v11939_v15  ;;  %v12014_v14 = vld [vmem:[%s17737_s3 + $0xa30] ss:$8 sps:$4 sm:$0xff]   ;;  %v12019_v15 = vld [vmem:[%s17737_s3 + $0x6d4] ss:$8 sps:$4 sm:$0xff]  }
 0x183   :  { %3598 = vmatprep.mubr.bf16.mxu1 %v13511_v20  ;;  %3568 = vmatprep.subr.bf16.mxu1 %v11944_v17  ;;  %v12022_v17 = vld [vmem:[%s17737_s3 + $0xa44] ss:$8 sps:$4 sm:$0xff]  }
 0x184   :  { %1330 = vmatprep.subr.bf16.mxu0 %v11947_v18  ;;  %1360 = vmatprep.mubr.bf16.mxu0 %v17753_v1  ;;  %v12017_v18 = vld [vmem:[%s17737_s3 + $0x6d0] ss:$8 sps:$4 sm:$0xff]  }
 0x186   :  { %3569 = vmatpush1.bf16.msra.mxu1 %v11942_v23  ;;  %1331 = vmatpush1.bf16.msra.mxu0 %v11945_v24  ;;  %v12025_v23 = vld [vmem:[%s17737_s3 + $0x6e4] ss:$8 sps:$4 sm:$0xff]   ;;  %v12028_v24 = vld [vmem:[%s17737_s3 + $0xa54] ss:$8 sps:$4 sm:$0xff]  }
 0x187   :  { %3570 = vmatprep.subr.bf16.mxu1 %v11950_v25  ;;  %2111 = vmatprep.subr.bf16.mxu0 %v11953_v40  ;;  %v12023_v25 = vld [vmem:[%s17737_s3 + $0x6e0] ss:$8 sps:$4 sm:$0xff]   ;;  %v12026_v40 = vld [vmem:[%s17737_s3 + $0xa50] ss:$8 sps:$4 sm:$0xff]  }
 0x18a   :  { %3571 = vmatpush1.bf16.msra.mxu1 %v11948_v27  ;;  %v12034_v27 = vld [vmem:[%s17737_s3 + $0xa64] ss:$8 sps:$4 sm:$0xff]  }
 0x18b   :  { %3572 = vmatprep.subr.bf16.mxu1 %v11956_v22  ;;  %v12029_v22 = vld [vmem:[%s17737_s3 + $0x6f0] ss:$8 sps:$4 sm:$0xff]  }
 0x18d   :  { %9780 = vmatmul.mubr.msk.bf16.vlgmr.msra.gmra.mrb[12].mxu0 %vm1201_vm3, %v13962_v28 }
 0x18e   :  { %2112 = vmatpush1.bf16.msra.mxu0 %v11951_v29  ;;  %3573 = vmatpush1.bf16.msra.mxu1 %v11954_v31  ;;  %v12032_v29 = vld [vmem:[%s17737_s3 + $0xa60] ss:$8 sps:$4 sm:$0xff]   ;;  %v12037_v31 = vld [vmem:[%s17737_s3 + $0x704] ss:$8 sps:$4 sm:$0xff]  }
 0x18f   :  { %2113 = vmatprep.subr.bf16.mxu0 %v11959_v32  ;;  %3574 = vmatprep.subr.bf16.mxu1 %v11962_v33  ;;  %v12040_v32 = vld [vmem:[%s17737_s3 + $0xa74] ss:$8 sps:$4 sm:$0xff]   ;;  %v12035_v33 = vld [vmem:[%s17737_s3 + $0x700] ss:$8 sps:$4 sm:$0xff]  }
 0x190   :  { %2143 = vmatprep.mubr.bf16.mxu0 %v17753_v1 }
 0x192   :  { %2114 = vmatpush1.bf16.msra.mxu0 %v11957_v34  ;;  %3575 = vmatpush1.bf16.msra.mxu1 %v11960_v35  ;;  %v12038_v34 = vld [vmem:[%s17737_s3 + $0xa70] ss:$8 sps:$4 sm:$0xff]   ;;  %v12043_v35 = vld [vmem:[%s17737_s3 + $0x714] ss:$8 sps:$4 sm:$0xff]  }
 0x193   :  { %2777 = vmatprep.subr.bf16.mxu0 %v11965_v36  ;;  %3576 = vmatprep.subr.bf16.mxu1 %v11968_v37  ;;  %v12046_v36 = vld [vmem:[%s17737_s3 + $0xa84] ss:$8 sps:$4 sm:$0xff]   ;;  %v12041_v37 = vld [vmem:[%s17737_s3 + $0x710] ss:$8 sps:$4 sm:$0xff]  }
 0x195   :  { %9982 = vmatmul.mubr.msk.bf16.vlgmr.msra.gmra.mrb[16].mxu0 %vm1201_vm3, %v13962_v28 }
 0x196   :  { %2778 = vmatpush1.bf16.msra.mxu0 %v11963_v38  ;;  %2809 = vmatprep.mubr.bf16.mxu0 %v13511_v20  ;;  %v12044_v38 = vld [vmem:[%s17737_s3 + $0xa80] ss:$8 sps:$4 sm:$0xff]  }
 0x197   :  { %3577 = vmatpush1.bf16.msra.mxu1 %v11966_v39  ;;  %2779 = vmatprep.subr.bf16.mxu0 %v11971_v41  ;;  %v12049_v39 = vld [vmem:[%s17737_s3 + $0x724] ss:$8 sps:$4 sm:$0xff]   ;;  %v12052_v41 = vld [vmem:[%s17737_s3 + $0xa94] ss:$8 sps:$4 sm:$0xff]  }
 0x198   :  { %3578 = vmatprep.subr.bf16.mxu1 %v11974_v42  ;;  %v12047_v42 = vld [vmem:[%s17737_s3 + $0x720] ss:$8 sps:$4 sm:$0xff]  }
 0x19a   :  { %2780 = vmatpush1.bf16.msra.mxu0 %v11969_v43  ;;  %v12050_v43 = vld [vmem:[%s17737_s3 + $0xa90] ss:$8 sps:$4 sm:$0xff]  }
 0x19b   :  { %3579 = vmatpush1.bf16.msra.mxu1 %v11972_v44  ;;  %2781 = vmatprep.subr.bf16.mxu0 %v11977_v45  ;;  %v12055_v44 = vld [vmem:[%s17737_s3 + $0x734] ss:$8 sps:$4 sm:$0xff]   ;;  %v12058_v45 = vld [vmem:[%s17737_s3 + $0xaa4] ss:$8 sps:$4 sm:$0xff]  }
 0x19c   :  { %3580 = vmatprep.subr.bf16.mxu1 %v11980_v5  ;;  %v12053_v5 = vld [vmem:[%s17737_s3 + $0x730] ss:$8 sps:$4 sm:$0xff]  }
 0x19e   :  { %2782 = vmatpush1.bf16.msra.mxu0 %v11975_v46  ;;  %v12056_v46 = vld [vmem:[%s17737_s3 + $0xaa0] ss:$8 sps:$4 sm:$0xff]  }
 0x19f   :  { %3581 = vmatpush1.bf16.msra.mxu1 %v11978_v47  ;;  %2783 = vmatprep.subr.bf16.mxu0 %v11983_v48  ;;  %v12061_v47 = vld [vmem:[%s17737_s3 + $0x744] ss:$8 sps:$4 sm:$0xff]   ;;  %v12064_v48 = vld [vmem:[%s17737_s3 + $0xab4] ss:$8 sps:$4 sm:$0xff]  }
 0x1a0   :  { %3582 = vmatprep.subr.bf16.mxu1 %v11986_v49  ;;  %v12059_v49 = vld [vmem:[%s17737_s3 + $0x740] ss:$8 sps:$4 sm:$0xff]  }
 0x1a2   :  { %2784 = vmatpush1.bf16.msra.mxu0 %v11981_v50  ;;  %v12062_v50 = vld [vmem:[%s17737_s3 + $0xab0] ss:$8 sps:$4 sm:$0xff]  }
 0x1a3   :  { %3583 = vmatpush1.bf16.msra.mxu1 %v11984_v51  ;;  %2785 = vmatprep.subr.bf16.mxu0 %v11989_v52  ;;  %v12067_v51 = vld [vmem:[%s17737_s3 + $0x754] ss:$8 sps:$4 sm:$0xff]   ;;  %v12070_v52 = vld [vmem:[%s17737_s3 + $0xac4] ss:$8 sps:$4 sm:$0xff]  }
 0x1a4   :  { %3584 = vmatprep.subr.bf16.mxu1 %v11992_v54  ;;  %v12065_v54 = vld [vmem:[%s17737_s3 + $0x750] ss:$8 sps:$4 sm:$0xff]  }
 0x1a6   :  { %2786 = vmatpush1.bf16.msra.mxu0 %v11987_v55  ;;  %v12068_v55 = vld [vmem:[%s17737_s3 + $0xac0] ss:$8 sps:$4 sm:$0xff]  }
 0x1a7   :  { %3585 = vmatpush1.bf16.msra.mxu1 %v11990_v56  ;;  %2787 = vmatprep.subr.bf16.mxu0 %v11995_v57  ;;  %v12073_v56 = vld [vmem:[%s17737_s3 + $0x764] ss:$8 sps:$4 sm:$0xff]   ;;  %v12076_v57 = vld [vmem:[%s17737_s3 + $0xad4] ss:$8 sps:$4 sm:$0xff]  }
 0x1a8   :  { %3586 = vmatprep.subr.bf16.mxu1 %v11998_v59  ;;  %v12071_v59 = vld [vmem:[%s17737_s3 + $0x760] ss:$8 sps:$4 sm:$0xff]  }
 0x1aa   :  { %2788 = vmatpush1.bf16.msra.mxu0 %v11993_v60  ;;  %v12074_v60 = vld [vmem:[%s17737_s3 + $0xad0] ss:$8 sps:$4 sm:$0xff]  }
 0x1ab   :  { %3587 = vmatpush1.bf16.msra.mxu1 %v11996_v62  ;;  %2789 = vmatprep.subr.bf16.mxu0 %v12001_v63  ;;  %v12079_v62 = vld [vmem:[%s17737_s3 + $0x774] ss:$8 sps:$4 sm:$0xff]   ;;  %v12082_v63 = vld [vmem:[%s17737_s3 + $0xae4] ss:$8 sps:$4 sm:$0xff]  }
 0x1ac   :  { %3588 = vmatprep.subr.bf16.mxu1 %v12004_v0  ;;  %v12077_v0 = vld [vmem:[%s17737_s3 + $0x770] ss:$8 sps:$4 sm:$0xff]  }
 0x1ae   :  { %2790 = vmatpush1.bf16.msra.mxu0 %v11999_v7  ;;  %v12080_v7 = vld [vmem:[%s17737_s3 + $0xae0] ss:$8 sps:$4 sm:$0xff]  }
 0x1af   :  { %3589 = vmatpush1.bf16.msra.mxu1 %v12002_v8  ;;  %2791 = vmatprep.subr.bf16.mxu0 %v12007_v9  ;;  %v12085_v8 = vld [vmem:[%s17737_s3 + $0x784] ss:$8 sps:$4 sm:$0xff]   ;;  %v12088_v9 = vld [vmem:[%s17737_s3 + $0xaf4] ss:$8 sps:$4 sm:$0xff]  }
 0x1b0   :  { %3590 = vmatprep.subr.bf16.mxu1 %v12010_v10  ;;  %v12083_v10 = vld [vmem:[%s17737_s3 + $0x780] ss:$8 sps:$4 sm:$0xff]  }
 0x1b2   :  { %2792 = vmatpush1.bf16.msra.mxu0 %v12005_v30  ;;  %v12086_v30 = vld [vmem:[%s17737_s3 + $0xaf0] ss:$8 sps:$4 sm:$0xff]  }
 0x1b3   :  { %3591 = vmatpush1.bf16.msra.mxu1 %v12008_v11  ;;  %2793 = vmatprep.subr.bf16.mxu0 %v12013_v12  ;;  %v12091_v11 = vld [vmem:[%s17737_s3 + $0x794] ss:$8 sps:$4 sm:$0xff]   ;;  %v12094_v12 = vld [vmem:[%s17737_s3 + $0xb04] ss:$8 sps:$4 sm:$0xff]  }
 0x1b4   :  { %3592 = vmatprep.subr.bf16.mxu1 %v12016_v3  ;;  %v12089_v3 = vld [vmem:[%s17737_s3 + $0x790] ss:$8 sps:$4 sm:$0xff]  }
 0x1b6   :  { %2794 = vmatpush1.bf16.msra.mxu0 %v12011_v13  ;;  %v12092_v13 = vld [vmem:[%s17737_s3 + $0xb00] ss:$8 sps:$4 sm:$0xff]  }
 0x1b7   :  { %3593 = vmatpush1.bf16.msra.mxu1 %v12014_v14  ;;  %2795 = vmatprep.subr.bf16.mxu0 %v12019_v15  ;;  %v12097_v14 = vld [vmem:[%s17737_s3 + $0x7a4] ss:$8 sps:$4 sm:$0xff]   ;;  %v12100_v15 = vld [vmem:[%s17737_s3 + $0xb14] ss:$8 sps:$4 sm:$0xff]  }
 0x1b8   :  { %3594 = vmatprep.subr.bf16.mxu1 %v12022_v17  ;;  %v12095_v17 = vld [vmem:[%s17737_s3 + $0x7a0] ss:$8 sps:$4 sm:$0xff]  }
 0x1ba   :  { %2796 = vmatpush1.bf16.msra.mxu0 %v12017_v18  ;;  %v12098_v18 = vld [vmem:[%s17737_s3 + $0xb10] ss:$8 sps:$4 sm:$0xff]  }
 0x1bb   :  { %3595 = vmatpush1.bf16.msra.mxu1 %v12020_v19  ;;  %2797 = vmatprep.subr.bf16.mxu0 %v12025_v23  ;;  %v12103_v19 = vld [vmem:[%s17737_s3 + $0x7b4] ss:$8 sps:$4 sm:$0xff]   ;;  %v12106_v23 = vld [vmem:[%s17737_s3 + $0xb24] ss:$8 sps:$4 sm:$0xff]  }
 0x1bc   :  { %3596 = vmatprep.subr.bf16.mxu1 %v12028_v24  ;;  %v12101_v24 = vld [vmem:[%s17737_s3 + $0x7b0] ss:$8 sps:$4 sm:$0xff]  }
 0x1be   :  { %2798 = vmatpush1.bf16.msra.mxu0 %v12023_v25  ;;  %v12104_v25 = vld [vmem:[%s17737_s3 + $0xb20] ss:$8 sps:$4 sm:$0xff]  }
 0x1bf   :  { %3597 = vmatpush1.bf16.msra.mxu1 %v12026_v40  ;;  %2799 = vmatprep.subr.bf16.mxu0 %v12031_v26  ;;  %v12109_v40 = vld [vmem:[%s17737_s3 + $0x7c4] ss:$8 sps:$4 sm:$0xff]   ;;  %v12112_v26 = vld [vmem:[%s17737_s3 + $0xb34] ss:$8 sps:$4 sm:$0xff]  }
 0x1c0   :  { %3607 = vmatprep.subr.bf16.mxu1 %v12034_v27  ;;  %v12107_v27 = vld [vmem:[%s17737_s3 + $0x7c0] ss:$8 sps:$4 sm:$0xff]  }
 0x1c2   :  { %2800 = vmatpush1.bf16.msra.mxu0 %v12029_v22  ;;  %3599 = vmatmul.mubr.bf16.vlgmr.msra.gmra.mrb[8].mxu1 %v13513_v21  ;;  %v12110_v22 = vld [vmem:[%s17737_s3 + $0xb30] ss:$8 sps:$4 sm:$0xff]  }
 0x1c3   :  { %3608 = vmatpush1.bf16.msra.mxu1 %v12032_v29  ;;  %3639 = vmatprep.mubr.bf16.mxu1 %v13606_v61  ;;  %v12115_v29 = vld [vmem:[%s17737_s3 + $0x7d4] ss:$8 sps:$4 sm:$0xff]  }
 0x1c4   :  { %2801 = vmatprep.subr.bf16.mxu0 %v12037_v31  ;;  %3609 = vmatprep.subr.bf16.mxu1 %v12040_v32  ;;  %v12118_v31 = vld [vmem:[%s17737_s3 + $0xb44] ss:$8 sps:$4 sm:$0xff]   ;;  %v12113_v32 = vld [vmem:[%s17737_s3 + $0x7d0] ss:$8 sps:$4 sm:$0xff]  }
 0x1c6   :  { %2802 = vmatpush1.bf16.msra.mxu0 %v12035_v33  ;;  %v12116_v33 = vld [vmem:[%s17737_s3 + $0xb40] ss:$8 sps:$4 sm:$0xff]  }
 0x1c7   :  { %3610 = vmatpush1.bf16.msra.mxu1 %v12038_v34  ;;  %2803 = vmatprep.subr.bf16.mxu0 %v12043_v35  ;;  %v12121_v34 = vld [vmem:[%s17737_s3 + $0x7e4] ss:$8 sps:$4 sm:$0xff]   ;;  %v12124_v35 = vld [vmem:[%s17737_s3 + $0xb54] ss:$8 sps:$4 sm:$0xff]  }
 0x1c8   :  { %3611 = vmatprep.subr.bf16.mxu1 %v12046_v36  ;;  %v12119_v36 = vld [vmem:[%s17737_s3 + $0x7e0] ss:$8 sps:$4 sm:$0xff]  }
 0x1ca   :  { %2804 = vmatpush1.bf16.msra.mxu0 %v12041_v37  ;;  %v12122_v37 = vld [vmem:[%s17737_s3 + $0xb50] ss:$8 sps:$4 sm:$0xff]  }
 0x1cb   :  { %3612 = vmatpush1.bf16.msra.mxu1 %v12044_v38  ;;  %2805 = vmatprep.subr.bf16.mxu0 %v12049_v39  ;;  %v12127_v38 = vld [vmem:[%s17737_s3 + $0x7f4] ss:$8 sps:$4 sm:$0xff]   ;;  %v12130_v39 = vld [vmem:[%s17737_s3 + $0xb64] ss:$8 sps:$4 sm:$0xff]  }
 0x1cc   :  { %3613 = vmatprep.subr.bf16.mxu1 %v12052_v41  ;;  %v12125_v41 = vld [vmem:[%s17737_s3 + $0x7f0] ss:$8 sps:$4 sm:$0xff]  }
 0x1ce   :  { %2806 = vmatpush1.bf16.msra.mxu0 %v12047_v42  ;;  %v12128_v42 = vld [vmem:[%s17737_s3 + $0xb60] ss:$8 sps:$4 sm:$0xff]  }
 0x1cf   :  { %3614 = vmatpush1.bf16.msra.mxu1 %v12050_v43  ;;  %2807 = vmatprep.subr.bf16.mxu0 %v12055_v44  ;;  %v12133_v43 = vld [vmem:[%s17737_s3 + $0x804] ss:$8 sps:$4 sm:$0xff]   ;;  %v12136_v44 = vld [vmem:[%s17737_s3 + $0xb74] ss:$8 sps:$4 sm:$0xff]  }
 0x1d0   :  { %3615 = vmatprep.subr.bf16.mxu1 %v12058_v45  ;;  %v12131_v45 = vld [vmem:[%s17737_s3 + $0x800] ss:$8 sps:$4 sm:$0xff]  }
 0x1d2   :  { %2808 = vmatpush1.bf16.msra.mxu0 %v12053_v5  ;;  %v12134_v5 = vld [vmem:[%s17737_s3 + $0xb70] ss:$8 sps:$4 sm:$0xff]  }
 0x1d3   :  { %3616 = vmatpush1.bf16.msra.mxu1 %v12056_v46  ;;  %2818 = vmatprep.subr.bf16.mxu0 %v12061_v47  ;;  %v12139_v46 = vld [vmem:[%s17737_s3 + $0x814] ss:$8 sps:$4 sm:$0xff]   ;;  %v12142_v47 = vld [vmem:[%s17737_s3 + $0xb84] ss:$8 sps:$4 sm:$0xff]  }
 0x1d4   :  { %3617 = vmatprep.subr.bf16.mxu1 %v12064_v48  ;;  %v12137_v48 = vld [vmem:[%s17737_s3 + $0x810] ss:$8 sps:$4 sm:$0xff]  }
 0x1d5   :  { %2810 = vmatmul.mubr.bf16.vlgmr.msra.gmra.mrb[20].mxu0 %v13513_v21 }
 0x1d6   :  { %2819 = vmatpush1.bf16.msra.mxu0 %v12059_v49  ;;  %2850 = vmatprep.mubr.bf16.mxu0 %v13606_v61  ;;  %v12140_v49 = vld [vmem:[%s17737_s3 + $0xb80] ss:$8 sps:$4 sm:$0xff]  }
 0x1d7   :  { %3618 = vmatpush1.bf16.msra.mxu1 %v12062_v50  ;;  %2820 = vmatprep.subr.bf16.mxu0 %v12067_v51  ;;  %v12145_v50 = vld [vmem:[%s17737_s3 + $0x824] ss:$8 sps:$4 sm:$0xff]   ;;  %v12148_v51 = vld [vmem:[%s17737_s3 + $0xb94] ss:$8 sps:$4 sm:$0xff]  }
 0x1d8   :  { %3619 = vmatprep.subr.bf16.mxu1 %v12070_v52  ;;  %v12143_v52 = vld [vmem:[%s17737_s3 + $0x820] ss:$8 sps:$4 sm:$0xff]  }
 0x1da   :  { %2821 = vmatpush1.bf16.msra.mxu0 %v12065_v54  ;;  %v12146_v54 = vld [vmem:[%s17737_s3 + $0xb90] ss:$8 sps:$4 sm:$0xff]  }
 0x1db   :  { %3620 = vmatpush1.bf16.msra.mxu1 %v12068_v55  ;;  %2822 = vmatprep.subr.bf16.mxu0 %v12073_v56  ;;  %v12151_v55 = vld [vmem:[%s17737_s3 + $0x834] ss:$8 sps:$4 sm:$0xff]   ;;  %v12154_v56 = vld [vmem:[%s17737_s3 + $0xba4] ss:$8 sps:$4 sm:$0xff]  }
 0x1dc   :  { %3621 = vmatprep.subr.bf16.mxu1 %v12076_v57  ;;  %v12149_v57 = vld [vmem:[%s17737_s3 + $0x830] ss:$8 sps:$4 sm:$0xff]  }
 0x1de   :  { %2823 = vmatpush1.bf16.msra.mxu0 %v12071_v59  ;;  %v12152_v59 = vld [vmem:[%s17737_s3 + $0xba0] ss:$8 sps:$4 sm:$0xff]  }
 0x1df   :  { %3622 = vmatpush1.bf16.msra.mxu1 %v12074_v60  ;;  %2824 = vmatprep.subr.bf16.mxu0 %v12079_v62  ;;  %v12157_v60 = vld [vmem:[%s17737_s3 + $0x844] ss:$8 sps:$4 sm:$0xff]   ;;  %v12160_v62 = vld [vmem:[%s17737_s3 + $0xbb4] ss:$8 sps:$4 sm:$0xff]  }
 0x1e0   :  { %3623 = vmatprep.subr.bf16.mxu1 %v12082_v63  ;;  %v12155_v63 = vld [vmem:[%s17737_s3 + $0x840] ss:$8 sps:$4 sm:$0xff]  }
 0x1e2   :  { %2825 = vmatpush1.bf16.msra.mxu0 %v12077_v0  ;;  %v12158_v0 = vld [vmem:[%s17737_s3 + $0xbb0] ss:$8 sps:$4 sm:$0xff]  }
 0x1e3   :  { %3624 = vmatpush1.bf16.msra.mxu1 %v12080_v7  ;;  %2826 = vmatprep.subr.bf16.mxu0 %v12085_v8  ;;  %v12163_v7 = vld [vmem:[%s17737_s3 + $0x854] ss:$8 sps:$4 sm:$0xff]   ;;  %v12166_v8 = vld [vmem:[%s17737_s3 + $0xbc4] ss:$8 sps:$4 sm:$0xff]  }
 0x1e4   :  { %3625 = vmatprep.subr.bf16.mxu1 %v12088_v9  ;;  %v12161_v9 = vld [vmem:[%s17737_s3 + $0x850] ss:$8 sps:$4 sm:$0xff]  }
 0x1e6   :  { %2827 = vmatpush1.bf16.msra.mxu0 %v12083_v10  ;;  %v12164_v10 = vld [vmem:[%s17737_s3 + $0xbc0] ss:$8 sps:$4 sm:$0xff]  }
 0x1e7   :  { %3626 = vmatpush1.bf16.msra.mxu1 %v12086_v30  ;;  %2828 = vmatprep.subr.bf16.mxu0 %v12091_v11  ;;  %v12169_v30 = vld [vmem:[%s17737_s3 + $0x864] ss:$8 sps:$4 sm:$0xff]   ;;  %v12172_v11 = vld [vmem:[%s17737_s3 + $0xbd4] ss:$8 sps:$4 sm:$0xff]  }
 0x1e8   :  { %3627 = vmatprep.subr.bf16.mxu1 %v12094_v12  ;;  %v12167_v12 = vld [vmem:[%s17737_s3 + $0x860] ss:$8 sps:$4 sm:$0xff]  }
 0x1ea   :  { %2829 = vmatpush1.bf16.msra.mxu0 %v12089_v3  ;;  %v12170_v3 = vld [vmem:[%s17737_s3 + $0xbd0] ss:$8 sps:$4 sm:$0xff]  }
 0x1eb   :  { %3628 = vmatpush1.bf16.msra.mxu1 %v12092_v13  ;;  %2830 = vmatprep.subr.bf16.mxu0 %v12097_v14  ;;  %v12175_v13 = vld [vmem:[%s17737_s3 + $0x874] ss:$8 sps:$4 sm:$0xff]   ;;  %v12178_v14 = vld [vmem:[%s17737_s3 + $0xbe4] ss:$8 sps:$4 sm:$0xff]  }
 0x1ec   :  { %3629 = vmatprep.subr.bf16.mxu1 %v12100_v15  ;;  %v12173_v15 = vld [vmem:[%s17737_s3 + $0x870] ss:$8 sps:$4 sm:$0xff]  }
 0x1ee   :  { %2831 = vmatpush1.bf16.msra.mxu0 %v12095_v17  ;;  %v12176_v17 = vld [vmem:[%s17737_s3 + $0xbe0] ss:$8 sps:$4 sm:$0xff]  }
 0x1ef   :  { %3630 = vmatpush1.bf16.msra.mxu1 %v12098_v18  ;;  %2832 = vmatprep.subr.bf16.mxu0 %v12103_v19  ;;  %v12181_v18 = vld [vmem:[%s17737_s3 + $0x884] ss:$8 sps:$4 sm:$0xff]   ;;  %v12184_v19 = vld [vmem:[%s17737_s3 + $0xbf4] ss:$8 sps:$4 sm:$0xff]  }
 0x1f0   :  { %3631 = vmatprep.subr.bf16.mxu1 %v12106_v23  ;;  %v12179_v23 = vld [vmem:[%s17737_s3 + $0x880] ss:$8 sps:$4 sm:$0xff]  }
 0x1f2   :  { %2833 = vmatpush1.bf16.msra.mxu0 %v12101_v24  ;;  %v12182_v24 = vld [vmem:[%s17737_s3 + $0xbf0] ss:$8 sps:$4 sm:$0xff]  }
 0x1f3   :  { %3632 = vmatpush1.bf16.msra.mxu1 %v12104_v25  ;;  %2834 = vmatprep.subr.bf16.mxu0 %v12109_v40  ;;  %v12187_v25 = vld [vmem:[%s17737_s3 + $0x894] ss:$8 sps:$4 sm:$0xff]   ;;  %v12190_v40 = vld [vmem:[%s17737_s3 + $0xc04] ss:$8 sps:$4 sm:$0xff]  }
 0x1f4   :  { %3633 = vmatprep.subr.bf16.mxu1 %v12112_v26  ;;  %v12185_v26 = vld [vmem:[%s17737_s3 + $0x890] ss:$8 sps:$4 sm:$0xff]  }
 0x1f6   :  { %2835 = vmatpush1.bf16.msra.mxu0 %v12107_v27  ;;  %v12188_v27 = vld [vmem:[%s17737_s3 + $0xc00] ss:$8 sps:$4 sm:$0xff]  }
 0x1f7   :  { %3634 = vmatpush1.bf16.msra.mxu1 %v12110_v22  ;;  %2836 = vmatprep.subr.bf16.mxu0 %v12115_v29  ;;  %v12193_v22 = vld [vmem:[%s17737_s3 + $0x8a4] ss:$8 sps:$4 sm:$0xff]   ;;  %v12196_v29 = vld [vmem:[%s17737_s3 + $0xc14] ss:$8 sps:$4 sm:$0xff]  }
 0x1f8   :  { %3635 = vmatprep.subr.bf16.mxu1 %v12118_v31  ;;  %v12191_v31 = vld [vmem:[%s17737_s3 + $0x8a0] ss:$8 sps:$4 sm:$0xff]  }
 0x1fa   :  { %2837 = vmatpush1.bf16.msra.mxu0 %v12113_v32  ;;  %v12194_v32 = vld [vmem:[%s17737_s3 + $0xc10] ss:$8 sps:$4 sm:$0xff]  }
 0x1fb   :  { %3636 = vmatpush1.bf16.msra.mxu1 %v12116_v33  ;;  %2838 = vmatprep.subr.bf16.mxu0 %v12121_v34  ;;  %v12199_v33 = vld [vmem:[%s17737_s3 + $0x8b4] ss:$8 sps:$4 sm:$0xff]   ;;  %v12202_v34 = vld [vmem:[%s17737_s3 + $0xc24] ss:$8 sps:$4 sm:$0xff]  }
 0x1fc   :  { %3637 = vmatprep.subr.bf16.mxu1 %v12124_v35  ;;  %v12197_v35 = vld [vmem:[%s17737_s3 + $0x8b0] ss:$8 sps:$4 sm:$0xff]  }
 0x1fe   :  { %2839 = vmatpush1.bf16.msra.mxu0 %v12119_v36  ;;  %v12200_v36 = vld [vmem:[%s17737_s3 + $0xc20] ss:$8 sps:$4 sm:$0xff]  }
 0x1ff   :  { %3638 = vmatpush1.bf16.msra.mxu1 %v12122_v37  ;;  %2840 = vmatprep.subr.bf16.mxu0 %v12127_v38  ;;  %v12205_v37 = vld [vmem:[%s17737_s3 + $0x8c4] ss:$8 sps:$4 sm:$0xff]   ;;  %v12208_v38 = vld [vmem:[%s17737_s3 + $0xc34] ss:$8 sps:$4 sm:$0xff]  }
 0x200   :  { %3648 = vmatprep.subr.bf16.mxu1 %v12130_v39  ;;  %v12203_v39 = vld [vmem:[%s17737_s3 + $0x8c0] ss:$8 sps:$4 sm:$0xff]  }
 0x202   :  { %2841 = vmatpush1.bf16.msra.mxu0 %v12125_v41  ;;  %3640 = vmatmul.mubr.bf16.vlgmr.msra.gmra.mrb[8].mxu1 %v13722_v53  ;;  %v12206_v41 = vld [vmem:[%s17737_s3 + $0xc30] ss:$8 sps:$4 sm:$0xff]  }
 0x203   :  { %3649 = vmatpush1.bf16.msra.mxu1 %v12128_v42  ;;  %3680 = vmatprep.mubr.bf16.mxu1 %v13736_v58  ;;  %v12211_v42 = vld [vmem:[%s17737_s3 + $0x8d4] ss:$8 sps:$4 sm:$0xff]  }
 0x204   :  { %2842 = vmatprep.subr.bf16.mxu0 %v12133_v43  ;;  %3650 = vmatprep.subr.bf16.mxu1 %v12136_v44  ;;  %v12214_v43 = vld [vmem:[%s17737_s3 + $0xc44] ss:$8 sps:$4 sm:$0xff]   ;;  %v12209_v44 = vld [vmem:[%s17737_s3 + $0x8d0] ss:$8 sps:$4 sm:$0xff]  }
 0x206   :  { %2843 = vmatpush1.bf16.msra.mxu0 %v12131_v45  ;;  %v12212_v45 = vld [vmem:[%s17737_s3 + $0xc40] ss:$8 sps:$4 sm:$0xff]  }
 0x207   :  { %3651 = vmatpush1.bf16.msra.mxu1 %v12134_v5  ;;  %2844 = vmatprep.subr.bf16.mxu0 %v12139_v46  ;;  %v12217_v5 = vld [vmem:[%s17737_s3 + $0x8e4] ss:$8 sps:$4 sm:$0xff]   ;;  %v12220_v46 = vld [vmem:[%s17737_s3 + $0xc54] ss:$8 sps:$4 sm:$0xff]  }
 0x208   :  { %3652 = vmatprep.subr.bf16.mxu1 %v12142_v47  ;;  %v12215_v47 = vld [vmem:[%s17737_s3 + $0x8e0] ss:$8 sps:$4 sm:$0xff]  }
 0x20a   :  { %2845 = vmatpush1.bf16.msra.mxu0 %v12137_v48  ;;  %v12218_v48 = vld [vmem:[%s17737_s3 + $0xc50] ss:$8 sps:$4 sm:$0xff]  }
 0x20b   :  { %3653 = vmatpush1.bf16.msra.mxu1 %v12140_v49  ;;  %2846 = vmatprep.subr.bf16.mxu0 %v12145_v50  ;;  %v12223_v49 = vld [vmem:[%s17737_s3 + $0x8f4] ss:$8 sps:$4 sm:$0xff]   ;;  %v12229_v50 = vld [vmem:[%s17737_s3 + $0xc64] ss:$8 sps:$4 sm:$0xff]  }
 0x20c   :  { %3654 = vmatprep.subr.bf16.mxu1 %v12148_v51  ;;  %v12221_v51 = vld [vmem:[%s17737_s3 + $0x8f0] ss:$8 sps:$4 sm:$0xff]  }
 0x20e   :  { %2847 = vmatpush1.bf16.msra.mxu0 %v12143_v52  ;;  %v12226_v52 = vld [vmem:[%s17737_s3 + $0x904] ss:$8 sps:$4 sm:$0xff]  }
 0x20f   :  { %3655 = vmatpush1.bf16.msra.mxu1 %v12146_v54  ;;  %2848 = vmatprep.subr.bf16.mxu0 %v12151_v55  ;;  %v12227_v54 = vld [vmem:[%s17737_s3 + $0xc60] ss:$8 sps:$4 sm:$0xff]   ;;  %v12235_v55 = vld [vmem:[%s17737_s3 + $0xc74] ss:$8 sps:$4 sm:$0xff]  }
 0x210   :  { %3656 = vmatprep.subr.bf16.mxu1 %v12154_v56  ;;  %v12224_v56 = vld [vmem:[%s17737_s3 + $0x900] ss:$8 sps:$4 sm:$0xff]  }
 0x212   :  { %2849 = vmatpush1.bf16.msra.mxu0 %v12149_v57  ;;  %v12232_v57 = vld [vmem:[%s17737_s3 + $0x914] ss:$8 sps:$4 sm:$0xff]  }
 0x213   :  { %3657 = vmatpush1.bf16.msra.mxu1 %v12152_v59  ;;  %2859 = vmatprep.subr.bf16.mxu0 %v12157_v60  ;;  %v12233_v59 = vld [vmem:[%s17737_s3 + $0xc70] ss:$8 sps:$4 sm:$0xff]   ;;  %v12241_v60 = vld [vmem:[%s17737_s3 + $0xfa4] ss:$8 sps:$4 sm:$0xff]  }
 0x214   :  { %3658 = vmatprep.subr.bf16.mxu1 %v12160_v62  ;;  %v12230_v62 = vld [vmem:[%s17737_s3 + $0x910] ss:$8 sps:$4 sm:$0xff]  }
 0x215   :  { %2851 = vmatmul.mubr.bf16.vlgmr.msra.gmra.mrb[20].mxu0 %v13722_v53 }
 0x216   :  { %2860 = vmatpush1.bf16.msra.mxu0 %v12155_v63  ;;  %2891 = vmatprep.mubr.bf16.mxu0 %v13736_v58  ;;  %v12238_v63 = vld [vmem:[%s17737_s3 + $0x924] ss:$8 sps:$4 sm:$0xff]  }
 0x217   :  { %3659 = vmatpush1.bf16.msra.mxu1 %v12158_v0  ;;  %2861 = vmatprep.subr.bf16.mxu0 %v12163_v7  ;;  %v12236_v0 = vld [vmem:[%s17737_s3 + $0x920] ss:$8 sps:$4 sm:$0xff]  }
 0x218   :  { %3660 = vmatprep.subr.bf16.mxu1 %v12166_v8  ;;  %v12239_v7 = vld [vmem:[%s17737_s3 + $0xfa0] ss:$8 sps:$4 sm:$0xff]   ;;  %v12244_v8 = vld [vmem:[%s17737_s3 + $0x934] ss:$8 sps:$4 sm:$0xff]  }
 0x21a   :  { %2862 = vmatpush1.bf16.msra.mxu0 %v12161_v9  ;;  %v12247_v9 = vld [vmem:[%s17737_s3 + $0xfb4] ss:$8 sps:$4 sm:$0xff]  }
 0x21b   :  { %3661 = vmatpush1.bf16.msra.mxu1 %v12164_v10  ;;  %2863 = vmatprep.subr.bf16.mxu0 %v12169_v30  ;;  %v12242_v10 = vld [vmem:[%s17737_s3 + $0x930] ss:$8 sps:$4 sm:$0xff]  }
 0x21c   :  { %3662 = vmatprep.subr.bf16.mxu1 %v12172_v11  ;;  %v12245_v30 = vld [vmem:[%s17737_s3 + $0xfb0] ss:$8 sps:$4 sm:$0xff]   ;;  %v12250_v11 = vld [vmem:[%s17737_s3 + $0x944] ss:$8 sps:$4 sm:$0xff]  }
 0x21e   :  { %2864 = vmatpush1.bf16.msra.mxu0 %v12167_v12  ;;  %v12253_v12 = vld [vmem:[%s17737_s3 + $0xfc4] ss:$8 sps:$4 sm:$0xff]  }
 0x21f   :  { %3663 = vmatpush1.bf16.msra.mxu1 %v12170_v3  ;;  %2865 = vmatprep.subr.bf16.mxu0 %v12175_v13  ;;  %v12248_v3 = vld [vmem:[%s17737_s3 + $0x940] ss:$8 sps:$4 sm:$0xff]  }
 0x220   :  { %3664 = vmatprep.subr.bf16.mxu1 %v12178_v14  ;;  %v12251_v13 = vld [vmem:[%s17737_s3 + $0xfc0] ss:$8 sps:$4 sm:$0xff]   ;;  %v12259_v14 = vld [vmem:[%s17737_s3 + $0x954] ss:$8 sps:$4 sm:$0xff]  }
 0x222   :  { %2866 = vmatpush1.bf16.msra.mxu0 %v12173_v15 }
 0x223   :  { %3665 = vmatpush1.bf16.msra.mxu1 %v12176_v17  ;;  %2867 = vmatprep.subr.bf16.mxu0 %v12181_v18  ;;  %v12256_v17 = vld [vmem:[%s17737_s3 + $0xfd4] ss:$8 sps:$4 sm:$0xff]  }
 0x224   :  { %3666 = vmatprep.subr.bf16.mxu1 %v12184_v19 }
 0x226   :  { %2868 = vmatpush1.bf16.msra.mxu0 %v12179_v23  ;;  %v12257_v23 = vld [vmem:[%s17737_s3 + $0x950] ss:$8 sps:$4 sm:$0xff]  }
 0x227   :  { %3667 = vmatpush1.bf16.msra.mxu1 %v12182_v24  ;;  %2869 = vmatprep.subr.bf16.mxu0 %v12187_v25  ;;  %v12254_v25 = vld [vmem:[%s17737_s3 + $0xfd0] ss:$8 sps:$4 sm:$0xff]  }
 0x228   :  { %3668 = vmatprep.subr.bf16.mxu1 %v12190_v40  ;;  %v12265_v40 = vld [vmem:[%s17737_s3 + $0xc84] ss:$8 sps:$4 sm:$0xff]  }
 0x22a   :  { %2870 = vmatpush1.bf16.msra.mxu0 %v12185_v26  ;;  %v12262_v26 = vld [vmem:[%s17737_s3 + $0xfe4] ss:$8 sps:$4 sm:$0xff]  }
 0x22b   :  { %3669 = vmatpush1.bf16.msra.mxu1 %v12188_v27  ;;  %2871 = vmatprep.subr.bf16.mxu0 %v12193_v22  ;;  %v689_v27 = vld [vmem:[%s17739_s4] sm:$0x3] }
 0x22c   :  { %3670 = vmatprep.subr.bf16.mxu1 %v12196_v29  ;;  %v12260_v22 = vld [vmem:[%s17737_s3 + $0xfe0] ss:$8 sps:$4 sm:$0xff]   ;;  %v12268_v29 = vld [vmem:[%s17737_s3 + $0xff4] ss:$8 sps:$4 sm:$0xff]  }
 0x22e   :  { %2872 = vmatpush1.bf16.msra.mxu0 %v12191_v31  ;;  %v694_v31 = vrot.slane %v689_v27, %v13488_v4 }
 0x22f   :  { %3671 = vmatpush1.bf16.msra.mxu1 %v12194_v32  ;;  %2873 = vmatprep.subr.bf16.mxu0 %v12199_v33  ;;  %v12263_v32 = vld [vmem:[%s17737_s3 + $0xc80] ss:$8 sps:$4 sm:$0xff]   ;;  %v698_v33 = vrot.slane %v689_v27, %v13496_v6  ;;  %v12302_v27 = vld [vmem:[%s17737_s3 + $0x1050] ss:$8 sps:$4 sm:$0xff]  }
 0x230   :  { %3672 = vmatprep.subr.bf16.mxu1 %v12202_v34  ;;  %v12266_v34 = vld [vmem:[%s17737_s3 + $0xff0] ss:$8 sps:$4 sm:$0xff]  }
 0x232   :  { %2874 = vmatpush1.bf16.msra.mxu0 %v12197_v35  ;;  %v12271_v35 = vld [vmem:[%s17737_s3 + $0xc94] ss:$8 sps:$4 sm:$0xff]  }
 0x233   :  { %3673 = vmatpush1.bf16.msra.mxu1 %v12200_v36  ;;  %2875 = vmatprep.subr.bf16.mxu0 %v12205_v37  ;;  %v9881_v36 = vld [vmem:[%s17739_s4 + $0x2] sm:$0x3] }
 0x234   :  { %3674 = vmatprep.subr.bf16.mxu1 %v12208_v38  ;;  %v12274_v38 = vld [vmem:[%s17737_s3 + $0x1004] ss:$8 sps:$4 sm:$0xff]  }
 0x236   :  { %2876 = vmatpush1.bf16.msra.mxu0 %v12203_v39 }
 0x237   :  { %3675 = vmatpush1.bf16.msra.mxu1 %v12206_v41  ;;  %2877 = vmatprep.subr.bf16.mxu0 %v12211_v42 }
 0x238   :  { %3676 = vmatprep.subr.bf16.mxu1 %v12214_v43 }
 0x23a   :  { %2878 = vmatpush1.bf16.msra.mxu0 %v12209_v44  ;;  %v12269_v44 = vld [vmem:[%s17737_s3 + $0xc90] ss:$8 sps:$4 sm:$0xff]  }
 0x23b   :  { %3677 = vmatpush1.bf16.msra.mxu1 %v12212_v45  ;;  %2879 = vmatprep.subr.bf16.mxu0 %v12217_v5  ;;  %v1481_v45 = vrot.slane %v9881_v36, %v13488_v4 }
 0x23c   :  { %3678 = vmatprep.subr.bf16.mxu1 %v12220_v46 }
 0x23e   :  { %2880 = vmatpush1.bf16.msra.mxu0 %v12215_v47  ;;  %v12272_v47 = vld [vmem:[%s17737_s3 + $0x1000] ss:$8 sps:$4 sm:$0xff]  }
 0x23f   :  { %3679 = vmatpush1.bf16.msra.mxu1 %v12218_v48  ;;  %2881 = vmatprep.subr.bf16.mxu0 %v12223_v49  ;;  %v12277_v48 = vld [vmem:[%s17737_s3 + $0xca4] ss:$8 sps:$4 sm:$0xff]   ;;  %v1485_v49 = vrot.slane %v9881_v36, %v13496_v6  ;;  %v12314_v36 = vld [vmem:[%s17737_s3 + $0x1070] ss:$8 sps:$4 sm:$0xff]  }
 0x240   :  { %3689 = vmatprep.subr.bf16.mxu1 %v12229_v50 }
 0x242   :  { %2882 = vmatpush1.bf16.msra.mxu0 %v12221_v51  ;;  %3681 = vmatmul.mubr.bf16.vlgmr.msra.gmra.mrb[8].mxu1 %v13931_v16  ;;  %v12280_v51 = vld [vmem:[%s17737_s3 + $0x1014] ss:$8 sps:$4 sm:$0xff]  }
 0x243   :  { %2883 = vmatprep.subr.bf16.mxu0 %v12226_v52  ;;  %3690 = vmatpush1.bf16.msra.mxu1 %v12227_v54  ;;  %v12275_v52 = vld [vmem:[%s17737_s3 + $0xca0] ss:$8 sps:$4 sm:$0xff]  }
 0x244   :  { %3691 = vmatprep.subr.bf16.mxu1 %v12235_v55  ;;  %3721 = vmatprep.mubr.bf16.mxu1 %v17753_v1  ;;  %v12278_v55 = vld [vmem:[%s17737_s3 + $0x1010] ss:$8 sps:$4 sm:$0xff]  }
 0x246   :  { %2884 = vmatpush1.bf16.msra.mxu0 %v12224_v56  ;;  %v12283_v56 = vld [vmem:[%s17737_s3 + $0xcb4] ss:$8 sps:$4 sm:$0xff]  }
 0x247   :  { %2885 = vmatprep.subr.bf16.mxu0 %v12232_v57  ;;  %3692 = vmatpush1.bf16.msra.mxu1 %v12233_v59 }
 0x248   :  { %5136 = vmatprep.subr.bf16.mxu1 %v12241_v60  ;;  %v12286_v60 = vld [vmem:[%s17737_s3 + $0x1024] ss:$8 sps:$4 sm:$0xff]  }
 0x24a   :  { %2886 = vmatpush1.bf16.msra.mxu0 %v12230_v62 }
 0x24b   :  { %2887 = vmatprep.subr.bf16.mxu0 %v12238_v63 }
 0x24e   :  { %2888 = vmatpush1.bf16.msra.mxu0 %v12236_v0  ;;  %10386 = vmatmul.mubr.msk.bf16.vlgmr.msra.gmra.mrb[8].mxu1 %vm1201_vm3, %v13962_v28 }
 0x24f   :  { %5137 = vmatpush1.bf16.msra.mxu1 %v12239_v7  ;;  %5168 = vmatprep.mubr.bf16.mxu1 %v13511_v20 }
 0x250   :  { %2889 = vmatprep.subr.bf16.mxu0 %v12244_v8  ;;  %5138 = vmatprep.subr.bf16.mxu1 %v12247_v9  ;;  %v12281_v8 = vld [vmem:[%s17737_s3 + $0xcb0] ss:$8 sps:$4 sm:$0xff]  }
 0x252   :  { %2890 = vmatpush1.bf16.msra.mxu0 %v12242_v10 }
 0x253   :  { %5139 = vmatpush1.bf16.msra.mxu1 %v12245_v30  ;;  %2900 = vmatprep.subr.bf16.mxu0 %v12250_v11  ;;  %v12284_v30 = vld [vmem:[%s17737_s3 + $0x1020] ss:$8 sps:$4 sm:$0xff]   ;;  %v12289_v11 = vld [vmem:[%s17737_s3 + $0xcc4] ss:$8 sps:$4 sm:$0xff]  }
 0x254   :  { %v2104_v15 = vpop.f32.mrb[4].mxu1  ;;  %5140 = vmatprep.subr.bf16.mxu1 %v12253_v12 }
 0x255   :  { %2892 = vmatmul.mubr.bf16.vlgmr.msra.gmra.mrb[20].mxu0 %v13931_v16  ;;  %v2106_v18 = vpop.f32.mrb[5].mxu1  ;;  %v11421_v54 = vadd.f32 %v2104_v15, %v1481_v45  ;;  %v12287_v15 = vld [vmem:[%s17737_s3 + $0xcc0] ss:$8 sps:$4 sm:$0xff]   ;;  %v12326_v45 = vld [vmem:[%s17737_s3 + $0x1090] ss:$8 sps:$4 sm:$0xff]  }
 0x256   :  { %2901 = vmatpush1.bf16.msra.mxu0 %v12248_v3  ;;  %v2108_v19 = vpop.f32.mrb[6].mxu1  ;;  %2932 = vmatprep.mubr.bf16.mxu0 %v17753_v1  ;;  %v11423_v57 = vadd.f32 %v2106_v18, %v1485_v49  ;;  %v12292_v3 = vld [vmem:[%s17737_s3 + $0x1034] ss:$8 sps:$4 sm:$0xff]   ;;  %v12337_v49 = vld [vmem:[%s17737_s3 + $0xd44] ss:$8 sps:$4 sm:$0xff]  }
 0x257   :  { %5141 = vmatpush1.bf16.msra.mxu1 %v12251_v13  ;;  %v2109_v24 = vpop.f32.mrb[7].mxu1  ;;  %2902 = vmatprep.subr.bf16.mxu0 %v12259_v14  ;;  %v12295_v18 = vld [vmem:[%s17737_s3 + $0xcd4] ss:$8 sps:$4 sm:$0xff]   ;;  %v12298_v19 = vld [vmem:[%s17737_s3 + $0x1044] ss:$8 sps:$4 sm:$0xff]  }
 0x258   :  { %5142 = vmatprep.subr.bf16.mxu1 %v12256_v17  ;;  %v12290_v17 = vld [vmem:[%s17737_s3 + $0x1030] ss:$8 sps:$4 sm:$0xff]   ;;  %v12296_v24 = vld [vmem:[%s17737_s3 + $0x1040] ss:$8 sps:$4 sm:$0xff]  }
 0x25a   :  { %2903 = vmatpush1.bf16.msra.mxu0 %v12257_v23  ;;  %v12293_v23 = vld [vmem:[%s17737_s3 + $0xcd0] ss:$8 sps:$4 sm:$0xff]  }
 0x25b   :  { %5143 = vmatpush1.bf16.msra.mxu1 %v12254_v25  ;;  %4354 = vmatprep.subr.bf16.mxu0 %v12265_v40  ;;  %v12301_v25 = vld [vmem:[%s17737_s3 + $0xce4] ss:$8 sps:$4 sm:$0xff]   ;;  %v12304_v40 = vld [vmem:[%s17737_s3 + $0x1054] ss:$8 sps:$4 sm:$0xff]  }
 0x25c   :  { %5144 = vmatprep.subr.bf16.mxu1 %v12262_v26  ;;  %v12299_v26 = vld [vmem:[%s17737_s3 + $0xce0] ss:$8 sps:$4 sm:$0xff]  }
 0x25f   :  { %5145 = vmatpush1.bf16.msra.mxu1 %v12260_v22  ;;  %v12307_v22 = vld [vmem:[%s17737_s3 + $0xcf4] ss:$8 sps:$4 sm:$0xff]  }
 0x260   :  { %v1362_v37 = vpop.f32.mrb[12].mxu0  ;;  %5146 = vmatprep.subr.bf16.mxu1 %v12268_v29  ;;  %v12310_v29 = vld [vmem:[%s17737_s3 + $0x1064] ss:$8 sps:$4 sm:$0xff]  }
 0x261   :  { %v11419_v39 = vadd.f32 %v1362_v37, %v694_v31  ;;  %10184 = vmatmul.mubr.msk.bf16.vlgmr.msra.gmra.mrb[20].mxu0 %vm1201_vm3, %v13962_v28  ;;  %v1364_v41 = vpop.f32.mrb[13].mxu0  ;;  %v12305_v31 = vld [vmem:[%s17737_s3 + $0xcf0] ss:$8 sps:$4 sm:$0xff]   ;;  %v12319_v37 = vld [vmem:[%s17737_s3 + $0xd14] ss:$8 sps:$4 sm:$0xff]  }
 0x262   :  { %4355 = vmatpush1.bf16.msra.mxu0 %v12263_v32  ;;  %v11420_v42 = vadd.f32 %v1364_v41, %v698_v33  ;;  %4386 = vmatprep.mubr.bf16.mxu0 %v13511_v20  ;;  %v1366_v43 = vpop.f32.mrb[14].mxu0  ;;  %v12308_v32 = vld [vmem:[%s17737_s3 + $0x1060] ss:$8 sps:$4 sm:$0xff]   ;;  %v12313_v33 = vld [vmem:[%s17737_s3 + $0xd04] ss:$8 sps:$4 sm:$0xff]  }
 0x263   :  { %v1369_v5 = vmax.f32 %v11419_v39, 0.0  ;;  %5147 = vmatpush1.bf16.msra.mxu1 %v12266_v34  ;;  %v1367_v46 = vpop.f32.mrb[15].mxu0  ;;  %4356 = vmatprep.subr.bf16.mxu0 %v12271_v35  ;;  %v12316_v34 = vld [vmem:[%s17737_s3 + $0x1074] ss:$8 sps:$4 sm:$0xff]   ;;  %v12311_v35 = vld [vmem:[%s17737_s3 + $0xd00] ss:$8 sps:$4 sm:$0xff]  }
 0x264   :  { %v1370_v50 = vmax.f32 %v11420_v42, 0.0  ;;  %5148 = vmatprep.subr.bf16.mxu1 %v12274_v38  ;;  %v12322_v38 = vld [vmem:[%s17737_s3 + $0x1084] ss:$8 sps:$4 sm:$0xff]   ;;  %v12317_v39 = vld [vmem:[%s17737_s3 + $0xd10] ss:$8 sps:$4 sm:$0xff]  }
 0x265   :  { %1371 = vst [vmem:[#allocation2] sm:$0x3] %v1369_v5  ;;  %v12320_v41 = vld [vmem:[%s17737_s3 + $0x1080] ss:$8 sps:$4 sm:$0xff]   ;;  %v12325_v42 = vld [vmem:[%s17737_s3 + $0xd24] ss:$8 sps:$4 sm:$0xff]  }
 0x266   :  { %1373 = vst.msk [vmem:[#allocation2 + $0x8] sm:$0x3] %vm1372_vm4, %v1370_v50  ;;  %4357 = vmatpush1.bf16.msra.mxu0 %v12269_v44  ;;  %v12328_v43 = vld [vmem:[%s17737_s3 + $0x1094] ss:$8 sps:$4 sm:$0xff]   ;;  %v12323_v44 = vld [vmem:[%s17737_s3 + $0xd20] ss:$8 sps:$4 sm:$0xff]  }
 0x267   :  { %5149 = vmatpush1.bf16.msra.mxu1 %v12272_v47  ;;  %4358 = vmatprep.subr.bf16.mxu0 %v12277_v48  ;;  %v12331_v5 = vld [vmem:[%s17737_s3 + $0xd34] ss:$8 sps:$4 sm:$0xff]   ;;  %v12334_v46 = vld [vmem:[%s17737_s3 + $0x10a4] ss:$8 sps:$4 sm:$0xff]   ;;  %v12329_v47 = vld [vmem:[%s17737_s3 + $0xd30] ss:$8 sps:$4 sm:$0xff]  }
 0x268   :  { %v2145_v59 = vpop.f32.mrb[16].mxu0  ;;  %5150 = vmatprep.subr.bf16.mxu1 %v12280_v51  ;;  %v12332_v48 = vld [vmem:[%s17737_s3 + $0x10a0] ss:$8 sps:$4 sm:$0xff]   ;;  %v12340_v50 = vld [vmem:[%s17737_s3 + $0x10b4] ss:$8 sps:$4 sm:$0xff]  }
 0x269   :  { %v11422_v62 = vadd.f32 %v11421_v54, %v2145_v59  ;;  %v2147_v63 = vpop.f32.mrb[17].mxu0  ;;  %v12335_v51 = vld [vmem:[%s17737_s3 + $0xd40] ss:$8 sps:$4 sm:$0xff]   ;;  %v12343_v54 = vld [vmem:[%s17737_s3 + $0xd54] ss:$8 sps:$4 sm:$0xff]  }
 0x26a   :  { %4359 = vmatpush1.bf16.msra.mxu0 %v12275_v52  ;;  %v11424_v0 = vadd.f32 %v11423_v57, %v2147_v63  ;;  %v2149_v7 = vpop.f32.mrb[18].mxu0  ;;  %v12338_v52 = vld [vmem:[%s17737_s3 + $0x10b0] ss:$8 sps:$4 sm:$0xff]   ;;  %v12344_v57 = vld [vmem:[%s17737_s3 + $0x10c0] ss:$8 sps:$4 sm:$0xff]  }
 0x26b   :  { %v2152_v9 = vmax.f32 %v11422_v62, 0.0  ;;  %5151 = vmatpush1.bf16.msra.mxu1 %v12278_v55  ;;  %v2150_v10 = vpop.f32.mrb[19].mxu0  ;;  %4360 = vmatprep.subr.bf16.mxu0 %v12283_v56  ;;  %v12346_v55 = vld [vmem:[%s17737_s3 + $0x10c4] ss:$8 sps:$4 sm:$0xff]   ;;  %v12341_v56 = vld [vmem:[%s17737_s3 + $0xd50] ss:$8 sps:$4 sm:$0xff]  }
 0x26c   :  { %v2153_v12 = vmax.f32 %v11424_v0, 0.0  ;;  %5152 = vmatprep.subr.bf16.mxu1 %v12286_v60  ;;  %v12349_v59 = vld [vmem:[%s17737_s3 + $0xd64] ss:$8 sps:$4 sm:$0xff]   ;;  %v12352_v60 = vld [vmem:[%s17737_s3 + $0x10d4] ss:$8 sps:$4 sm:$0xff]  }
 0x26d   :  { %v2156_v13 = vrot.slane %v2152_v9, 6  ;;  %v12347_v62 = vld [vmem:[%s17737_s3 + $0xd60] ss:$8 sps:$4 sm:$0xff]   ;;  %v12350_v63 = vld [vmem:[%s17737_s3 + $0x10d0] ss:$8 sps:$4 sm:$0xff]  }
 0x26e   :  { %v2157_v14 = vrot.slane %v2153_v12, 6  ;;  %4361 = vmatpush1.bf16.msra.mxu0 %v12281_v8  ;;  %v12355_v0 = vld [vmem:[%s17737_s3 + $0xd74] ss:$8 sps:$4 sm:$0xff]   ;;  %v12358_v7 = vld [vmem:[%s17737_s3 + $0x10e4] ss:$8 sps:$4 sm:$0xff]  }
 0x26f   :  { %2160 = vst [vmem:[#allocation2] sm:$0xc] %v2156_v13  ;;  %5153 = vmatpush1.bf16.msra.mxu1 %v12284_v30  ;;  %4362 = vmatprep.subr.bf16.mxu0 %v12289_v11  ;;  %v12353_v8 = vld [vmem:[%s17737_s3 + $0xd70] ss:$8 sps:$4 sm:$0xff]   ;;  %v12356_v9 = vld [vmem:[%s17737_s3 + $0x10e0] ss:$8 sps:$4 sm:$0xff]  }
 0x270   :  { %2162 = vst.msk [vmem:[#allocation2 + $0x8] sm:$0xc] %vm2161_vm5, %v2157_v14  ;;  %5154 = vmatprep.subr.bf16.mxu1 %v12292_v3  ;;  %v12361_v10 = vld [vmem:[%s17737_s3 + $0xd84] ss:$8 sps:$4 sm:$0xff]   ;;  %v12364_v30 = vld [vmem:[%s17737_s3 + $0x10f4] ss:$8 sps:$4 sm:$0xff]  }
 0x271   :  { %v12359_v11 = vld [vmem:[%s17737_s3 + $0xd80] ss:$8 sps:$4 sm:$0xff]   ;;  %v12362_v12 = vld [vmem:[%s17737_s3 + $0x10f0] ss:$8 sps:$4 sm:$0xff]   ;;  %v12367_v3 = vld [vmem:[%s17737_s3 + $0xd94] ss:$8 sps:$4 sm:$0xff]  }
 0x272   :  { %4363 = vmatpush1.bf16.msra.mxu0 %v12287_v15  ;;  %v12370_v13 = vld [vmem:[%s17737_s3 + $0x1104] ss:$8 sps:$4 sm:$0xff]   ;;  %v12365_v14 = vld [vmem:[%s17737_s3 + $0xd90] ss:$8 sps:$4 sm:$0xff]   ;;  %v12368_v15 = vld [vmem:[%s17737_s3 + $0x1100] ss:$8 sps:$4 sm:$0xff]  }
 0x273   :  { %5155 = vmatpush1.bf16.msra.mxu1 %v12290_v17  ;;  %4364 = vmatprep.subr.bf16.mxu0 %v12295_v18  ;;  %v12373_v17 = vld [vmem:[%s17737_s3 + $0xda4] ss:$8 sps:$4 sm:$0xff]   ;;  %v12376_v18 = vld [vmem:[%s17737_s3 + $0x1114] ss:$8 sps:$4 sm:$0xff]  }
 0x274   :  { %5156 = vmatprep.subr.bf16.mxu1 %v12298_v19  ;;  %v12371_v19 = vld [vmem:[%s17737_s3 + $0xda0] ss:$8 sps:$4 sm:$0xff]  }
 0x276   :  { %4365 = vmatpush1.bf16.msra.mxu0 %v12293_v23  ;;  %v12374_v23 = vld [vmem:[%s17737_s3 + $0x1110] ss:$8 sps:$4 sm:$0xff]  }
 0x277   :  { %5157 = vmatpush1.bf16.msra.mxu1 %v12296_v24  ;;  %4366 = vmatprep.subr.bf16.mxu0 %v12301_v25  ;;  %v12379_v24 = vld [vmem:[%s17737_s3 + $0xdb4] ss:$8 sps:$4 sm:$0xff]   ;;  %v12382_v25 = vld [vmem:[%s17737_s3 + $0x1124] ss:$8 sps:$4 sm:$0xff]  }
 0x278   :  { %5158 = vmatprep.subr.bf16.mxu1 %v12304_v40  ;;  %v12377_v40 = vld [vmem:[%s17737_s3 + $0xdb0] ss:$8 sps:$4 sm:$0xff]  }
 0x27a   :  { %4367 = vmatpush1.bf16.msra.mxu0 %v12299_v26  ;;  %v12380_v26 = vld [vmem:[%s17737_s3 + $0x1120] ss:$8 sps:$4 sm:$0xff]  }
 0x27b   :  { %5159 = vmatpush1.bf16.msra.mxu1 %v12302_v27  ;;  %4368 = vmatprep.subr.bf16.mxu0 %v12307_v22  ;;  %v12385_v27 = vld [vmem:[%s17737_s3 + $0xdc4] ss:$8 sps:$4 sm:$0xff]   ;;  %v12383_v22 = vld [vmem:[%s17737_s3 + $0xdc0] ss:$8 sps:$4 sm:$0xff]  }
 0x27c   :  { %5160 = vmatprep.subr.bf16.mxu1 %v12310_v29  ;;  %v12386_v29 = vld [vmem:[%s17737_s3 + $0x1130] ss:$8 sps:$4 sm:$0xff]  }
 0x27e   :  { %4369 = vmatpush1.bf16.msra.mxu0 %v12305_v31  ;;  %v12391_v31 = vld [vmem:[%s17737_s3 + $0xdd4] ss:$8 sps:$4 sm:$0xff]  }
 0x27f   :  { %5161 = vmatpush1.bf16.msra.mxu1 %v12308_v32  ;;  %4370 = vmatprep.subr.bf16.mxu0 %v12313_v33  ;;  %v12394_v32 = vld [vmem:[%s17737_s3 + $0x1144] ss:$8 sps:$4 sm:$0xff]   ;;  %v12389_v33 = vld [vmem:[%s17737_s3 + $0xdd0] ss:$8 sps:$4 sm:$0xff]  }
 0x280   :  { %5162 = vmatprep.subr.bf16.mxu1 %v12316_v34  ;;  %v12392_v34 = vld [vmem:[%s17737_s3 + $0x1140] ss:$8 sps:$4 sm:$0xff]  }
 0x282   :  { %4371 = vmatpush1.bf16.msra.mxu0 %v12311_v35  ;;  %v12397_v35 = vld [vmem:[%s17737_s3 + $0xde4] ss:$8 sps:$4 sm:$0xff]  }
 0x283   :  { %5163 = vmatpush1.bf16.msra.mxu1 %v12314_v36  ;;  %4372 = vmatprep.subr.bf16.mxu0 %v12319_v37  ;;  %v12400_v36 = vld [vmem:[%s17737_s3 + $0x1154] ss:$8 sps:$4 sm:$0xff]   ;;  %v12395_v37 = vld [vmem:[%s17737_s3 + $0xde0] ss:$8 sps:$4 sm:$0xff]  }
 0x284   :  { %5164 = vmatprep.subr.bf16.mxu1 %v12322_v38  ;;  %v12398_v38 = vld [vmem:[%s17737_s3 + $0x1150] ss:$8 sps:$4 sm:$0xff]  }
 0x286   :  { %4373 = vmatpush1.bf16.msra.mxu0 %v12317_v39  ;;  %v12403_v39 = vld [vmem:[%s17737_s3 + $0xdf4] ss:$8 sps:$4 sm:$0xff]  }
 0x287   :  { %5165 = vmatpush1.bf16.msra.mxu1 %v12320_v41  ;;  %4374 = vmatprep.subr.bf16.mxu0 %v12325_v42  ;;  %v12406_v41 = vld [vmem:[%s17737_s3 + $0x1164] ss:$8 sps:$4 sm:$0xff]   ;;  %v12401_v42 = vld [vmem:[%s17737_s3 + $0xdf0] ss:$8 sps:$4 sm:$0xff]  }
 0x288   :  { %5166 = vmatprep.subr.bf16.mxu1 %v12328_v43  ;;  %v12404_v43 = vld [vmem:[%s17737_s3 + $0x1160] ss:$8 sps:$4 sm:$0xff]  }
 0x28a   :  { %4375 = vmatpush1.bf16.msra.mxu0 %v12323_v44  ;;  %v12409_v44 = vld [vmem:[%s17737_s3 + $0xe04] ss:$8 sps:$4 sm:$0xff]  }
 0x28b   :  { %5167 = vmatpush1.bf16.msra.mxu1 %v12326_v45  ;;  %4376 = vmatprep.subr.bf16.mxu0 %v12331_v5  ;;  %v12412_v45 = vld [vmem:[%s17737_s3 + $0x1174] ss:$8 sps:$4 sm:$0xff]   ;;  %v12407_v5 = vld [vmem:[%s17737_s3 + $0xe00] ss:$8 sps:$4 sm:$0xff]  }
 0x28c   :  { %5177 = vmatprep.subr.bf16.mxu1 %v12334_v46  ;;  %v12410_v46 = vld [vmem:[%s17737_s3 + $0x1170] ss:$8 sps:$4 sm:$0xff]  }
 0x28e   :  { %4377 = vmatpush1.bf16.msra.mxu0 %v12329_v47  ;;  %5169 = vmatmul.mubr.bf16.vlgmr.msra.gmra.mrb[12].mxu1 %v13513_v21  ;;  %v12415_v47 = vld [vmem:[%s17737_s3 + $0xe14] ss:$8 sps:$4 sm:$0xff]  }
 0x28f   :  { %5178 = vmatpush1.bf16.msra.mxu1 %v12332_v48  ;;  %5209 = vmatprep.mubr.bf16.mxu1 %v13606_v61  ;;  %v12418_v48 = vld [vmem:[%s17737_s3 + $0x1184] ss:$8 sps:$4 sm:$0xff]  }
 0x290   :  { %4378 = vmatprep.subr.bf16.mxu0 %v12337_v49  ;;  %5179 = vmatprep.subr.bf16.mxu1 %v12340_v50  ;;  %v12413_v49 = vld [vmem:[%s17737_s3 + $0xe10] ss:$8 sps:$4 sm:$0xff]   ;;  %v12416_v50 = vld [vmem:[%s17737_s3 + $0x1180] ss:$8 sps:$4 sm:$0xff]  }
 0x292   :  { %4379 = vmatpush1.bf16.msra.mxu0 %v12335_v51  ;;  %v12421_v51 = vld [vmem:[%s17737_s3 + $0xe24] ss:$8 sps:$4 sm:$0xff]  }
 0x293   :  { %5180 = vmatpush1.bf16.msra.mxu1 %v12338_v52  ;;  %4380 = vmatprep.subr.bf16.mxu0 %v12343_v54  ;;  %v12424_v52 = vld [vmem:[%s17737_s3 + $0x1194] ss:$8 sps:$4 sm:$0xff]   ;;  %v12419_v54 = vld [vmem:[%s17737_s3 + $0xe20] ss:$8 sps:$4 sm:$0xff]  }
 0x294   :  { %5181 = vmatprep.subr.bf16.mxu1 %v12346_v55  ;;  %v12422_v55 = vld [vmem:[%s17737_s3 + $0x1190] ss:$8 sps:$4 sm:$0xff]  }
 0x296   :  { %4381 = vmatpush1.bf16.msra.mxu0 %v12341_v56  ;;  %v12427_v56 = vld [vmem:[%s17737_s3 + $0xe34] ss:$8 sps:$4 sm:$0xff]  }
 0x297   :  { %5182 = vmatpush1.bf16.msra.mxu1 %v12344_v57  ;;  %4382 = vmatprep.subr.bf16.mxu0 %v12349_v59  ;;  %v12430_v57 = vld [vmem:[%s17737_s3 + $0x11a4] ss:$8 sps:$4 sm:$0xff]   ;;  %v12425_v59 = vld [vmem:[%s17737_s3 + $0xe30] ss:$8 sps:$4 sm:$0xff]  }
 0x298   :  { %5183 = vmatprep.subr.bf16.mxu1 %v12352_v60  ;;  %v12428_v60 = vld [vmem:[%s17737_s3 + $0x11a0] ss:$8 sps:$4 sm:$0xff]  }
 0x29a   :  { %4383 = vmatpush1.bf16.msra.mxu0 %v12347_v62  ;;  %v12433_v62 = vld [vmem:[%s17737_s3 + $0xe44] ss:$8 sps:$4 sm:$0xff]  }
 0x29b   :  { %5184 = vmatpush1.bf16.msra.mxu1 %v12350_v63  ;;  %4384 = vmatprep.subr.bf16.mxu0 %v12355_v0  ;;  %v12436_v63 = vld [vmem:[%s17737_s3 + $0x11b4] ss:$8 sps:$4 sm:$0xff]   ;;  %v12431_v0 = vld [vmem:[%s17737_s3 + $0xe40] ss:$8 sps:$4 sm:$0xff]  }
 0x29c   :  { %5185 = vmatprep.subr.bf16.mxu1 %v12358_v7  ;;  %v12434_v7 = vld [vmem:[%s17737_s3 + $0x11b0] ss:$8 sps:$4 sm:$0xff]  }
 0x29e   :  { %4385 = vmatpush1.bf16.msra.mxu0 %v12353_v8  ;;  %v12439_v8 = vld [vmem:[%s17737_s3 + $0xe54] ss:$8 sps:$4 sm:$0xff]  }
 0x29f   :  { %5186 = vmatpush1.bf16.msra.mxu1 %v12356_v9  ;;  %4395 = vmatprep.subr.bf16.mxu0 %v12361_v10  ;;  %v12442_v9 = vld [vmem:[%s17737_s3 + $0x11c4] ss:$8 sps:$4 sm:$0xff]   ;;  %v12437_v10 = vld [vmem:[%s17737_s3 + $0xe50] ss:$8 sps:$4 sm:$0xff]  }
 0x2a0   :  { %5187 = vmatprep.subr.bf16.mxu1 %v12364_v30  ;;  %v12440_v30 = vld [vmem:[%s17737_s3 + $0x11c0] ss:$8 sps:$4 sm:$0xff]  }
 0x2a1   :  { %4387 = vmatmul.mubr.bf16.vlgmr.msra.gmra.mrb[24].mxu0 %v13513_v21 }
 0x2a2   :  { %4396 = vmatpush1.bf16.msra.mxu0 %v12359_v11  ;;  %4427 = vmatprep.mubr.bf16.mxu0 %v13606_v61  ;;  %v12445_v11 = vld [vmem:[%s17737_s3 + $0xe64] ss:$8 sps:$4 sm:$0xff]  }
 0x2a3   :  { %5188 = vmatpush1.bf16.msra.mxu1 %v12362_v12  ;;  %4397 = vmatprep.subr.bf16.mxu0 %v12367_v3  ;;  %v12448_v12 = vld [vmem:[%s17737_s3 + $0x11d4] ss:$8 sps:$4 sm:$0xff]   ;;  %v12443_v3 = vld [vmem:[%s17737_s3 + $0xe60] ss:$8 sps:$4 sm:$0xff]  }
 0x2a4   :  { %5189 = vmatprep.subr.bf16.mxu1 %v12370_v13  ;;  %v12446_v13 = vld [vmem:[%s17737_s3 + $0x11d0] ss:$8 sps:$4 sm:$0xff]  }
 0x2a6   :  { %4398 = vmatpush1.bf16.msra.mxu0 %v12365_v14  ;;  %v12451_v14 = vld [vmem:[%s17737_s3 + $0xe74] ss:$8 sps:$4 sm:$0xff]  }
 0x2a7   :  { %5190 = vmatpush1.bf16.msra.mxu1 %v12368_v15  ;;  %4399 = vmatprep.subr.bf16.mxu0 %v12373_v17  ;;  %v12454_v15 = vld [vmem:[%s17737_s3 + $0x11e4] ss:$8 sps:$4 sm:$0xff]   ;;  %v12449_v17 = vld [vmem:[%s17737_s3 + $0xe70] ss:$8 sps:$4 sm:$0xff]  }
 0x2a8   :  { %5191 = vmatprep.subr.bf16.mxu1 %v12376_v18  ;;  %v12452_v18 = vld [vmem:[%s17737_s3 + $0x11e0] ss:$8 sps:$4 sm:$0xff]  }
 0x2aa   :  { %4400 = vmatpush1.bf16.msra.mxu0 %v12371_v19  ;;  %v12457_v19 = vld [vmem:[%s17737_s3 + $0xe84] ss:$8 sps:$4 sm:$0xff]  }
 0x2ab   :  { %5192 = vmatpush1.bf16.msra.mxu1 %v12374_v23  ;;  %4401 = vmatprep.subr.bf16.mxu0 %v12379_v24  ;;  %v12460_v23 = vld [vmem:[%s17737_s3 + $0x11f4] ss:$8 sps:$4 sm:$0xff]   ;;  %v12455_v24 = vld [vmem:[%s17737_s3 + $0xe80] ss:$8 sps:$4 sm:$0xff]  }
 0x2ac   :  { %5193 = vmatprep.subr.bf16.mxu1 %v12382_v25  ;;  %v12458_v25 = vld [vmem:[%s17737_s3 + $0x11f0] ss:$8 sps:$4 sm:$0xff]  }
 0x2ae   :  { %4402 = vmatpush1.bf16.msra.mxu0 %v12377_v40  ;;  %v12463_v40 = vld [vmem:[%s17737_s3 + $0xe94] ss:$8 sps:$4 sm:$0xff]  }
 0x2af   :  { %5194 = vmatpush1.bf16.msra.mxu1 %v12380_v26  ;;  %4403 = vmatprep.subr.bf16.mxu0 %v12385_v27  ;;  %v12466_v26 = vld [vmem:[%s17737_s3 + $0x1204] ss:$8 sps:$4 sm:$0xff]   ;;  %v12461_v27 = vld [vmem:[%s17737_s3 + $0xe90] ss:$8 sps:$4 sm:$0xff]  }
 0x2b0   :  { %5195 = vmatprep.subr.bf16.mxu1 %v12388_v2  ;;  %v12464_v2 = vld [vmem:[%s17737_s3 + $0x1200] ss:$8 sps:$4 sm:$0xff]  }
 0x2b2   :  { %4404 = vmatpush1.bf16.msra.mxu0 %v12383_v22  ;;  %v12469_v22 = vld [vmem:[%s17737_s3 + $0xea4] ss:$8 sps:$4 sm:$0xff]  }
 0x2b3   :  { %5196 = vmatpush1.bf16.msra.mxu1 %v12386_v29  ;;  %4405 = vmatprep.subr.bf16.mxu0 %v12391_v31  ;;  %v12472_v29 = vld [vmem:[%s17737_s3 + $0x1214] ss:$8 sps:$4 sm:$0xff]   ;;  %v12467_v31 = vld [vmem:[%s17737_s3 + $0xea0] ss:$8 sps:$4 sm:$0xff]  }
 0x2b4   :  { %5197 = vmatprep.subr.bf16.mxu1 %v12394_v32  ;;  %v12470_v32 = vld [vmem:[%s17737_s3 + $0x1210] ss:$8 sps:$4 sm:$0xff]  }
 0x2b6   :  { %4406 = vmatpush1.bf16.msra.mxu0 %v12389_v33  ;;  %v12475_v33 = vld [vmem:[%s17737_s3 + $0xeb4] ss:$8 sps:$4 sm:$0xff]  }
 0x2b7   :  { %5198 = vmatpush1.bf16.msra.mxu1 %v12392_v34  ;;  %4407 = vmatprep.subr.bf16.mxu0 %v12397_v35  ;;  %v12478_v34 = vld [vmem:[%s17737_s3 + $0x1224] ss:$8 sps:$4 sm:$0xff]   ;;  %v12473_v35 = vld [vmem:[%s17737_s3 + $0xeb0] ss:$8 sps:$4 sm:$0xff]  }
 0x2b8   :  { %5199 = vmatprep.subr.bf16.mxu1 %v12400_v36  ;;  %v12476_v36 = vld [vmem:[%s17737_s3 + $0x1220] ss:$8 sps:$4 sm:$0xff]  }
 0x2ba   :  { %4408 = vmatpush1.bf16.msra.mxu0 %v12395_v37  ;;  %v12481_v37 = vld [vmem:[%s17737_s3 + $0xec4] ss:$8 sps:$4 sm:$0xff]  }
 0x2bb   :  { %5200 = vmatpush1.bf16.msra.mxu1 %v12398_v38  ;;  %4409 = vmatprep.subr.bf16.mxu0 %v12403_v39  ;;  %v12484_v38 = vld [vmem:[%s17737_s3 + $0x1234] ss:$8 sps:$4 sm:$0xff]   ;;  %v12479_v39 = vld [vmem:[%s17737_s3 + $0xec0] ss:$8 sps:$4 sm:$0xff]  }
 0x2bc   :  { %5201 = vmatprep.subr.bf16.mxu1 %v12406_v41  ;;  %v12482_v41 = vld [vmem:[%s17737_s3 + $0x1230] ss:$8 sps:$4 sm:$0xff]  }
 0x2be   :  { %4410 = vmatpush1.bf16.msra.mxu0 %v12401_v42  ;;  %v12487_v42 = vld [vmem:[%s17737_s3 + $0xed4] ss:$8 sps:$4 sm:$0xff]  }
 0x2bf   :  { %5202 = vmatpush1.bf16.msra.mxu1 %v12404_v43  ;;  %4411 = vmatprep.subr.bf16.mxu0 %v12409_v44  ;;  %v12490_v43 = vld [vmem:[%s17737_s3 + $0x1244] ss:$8 sps:$4 sm:$0xff]   ;;  %v12485_v44 = vld [vmem:[%s17737_s3 + $0xed0] ss:$8 sps:$4 sm:$0xff]  }
 0x2c0   :  { %5203 = vmatprep.subr.bf16.mxu1 %v12412_v45  ;;  %v12488_v45 = vld [vmem:[%s17737_s3 + $0x1240] ss:$8 sps:$4 sm:$0xff]  }
 0x2c2   :  { %4412 = vmatpush1.bf16.msra.mxu0 %v12407_v5  ;;  %v12493_v5 = vld [vmem:[%s17737_s3 + $0xee4] ss:$8 sps:$4 sm:$0xff]  }
 0x2c3   :  { %5204 = vmatpush1.bf16.msra.mxu1 %v12410_v46  ;;  %4413 = vmatprep.subr.bf16.mxu0 %v12415_v47  ;;  %v12496_v46 = vld [vmem:[%s17737_s3 + $0x1254] ss:$8 sps:$4 sm:$0xff]   ;;  %v12491_v47 = vld [vmem:[%s17737_s3 + $0xee0] ss:$8 sps:$4 sm:$0xff]  }
 0x2c4   :  { %5205 = vmatprep.subr.bf16.mxu1 %v12418_v48  ;;  %v12494_v48 = vld [vmem:[%s17737_s3 + $0x1250] ss:$8 sps:$4 sm:$0xff]  }
 0x2c6   :  { %4414 = vmatpush1.bf16.msra.mxu0 %v12413_v49  ;;  %v12499_v49 = vld [vmem:[%s17737_s3 + $0xef4] ss:$8 sps:$4 sm:$0xff]  }
 0x2c7   :  { %5206 = vmatpush1.bf16.msra.mxu1 %v12416_v50  ;;  %4415 = vmatprep.subr.bf16.mxu0 %v12421_v51  ;;  %v12502_v50 = vld [vmem:[%s17737_s3 + $0x1264] ss:$8 sps:$4 sm:$0xff]   ;;  %v12497_v51 = vld [vmem:[%s17737_s3 + $0xef0] ss:$8 sps:$4 sm:$0xff]  }
 0x2c8   :  { %5207 = vmatprep.subr.bf16.mxu1 %v12424_v52  ;;  %v12500_v52 = vld [vmem:[%s17737_s3 + $0x1260] ss:$8 sps:$4 sm:$0xff]  }
 0x2ca   :  { %4416 = vmatpush1.bf16.msra.mxu0 %v12419_v54  ;;  %v12505_v54 = vld [vmem:[%s17737_s3 + $0xf04] ss:$8 sps:$4 sm:$0xff]  }
 0x2cb   :  { %5208 = vmatpush1.bf16.msra.mxu1 %v12422_v55  ;;  %4417 = vmatprep.subr.bf16.mxu0 %v12427_v56  ;;  %v12508_v55 = vld [vmem:[%s17737_s3 + $0x1274] ss:$8 sps:$4 sm:$0xff]   ;;  %v12503_v56 = vld [vmem:[%s17737_s3 + $0xf00] ss:$8 sps:$4 sm:$0xff]  }
 0x2cc   :  { %5218 = vmatprep.subr.bf16.mxu1 %v12430_v57  ;;  %v12506_v57 = vld [vmem:[%s17737_s3 + $0x1270] ss:$8 sps:$4 sm:$0xff]  }
 0x2ce   :  { %4418 = vmatpush1.bf16.msra.mxu0 %v12425_v59  ;;  %5210 = vmatmul.mubr.bf16.vlgmr.msra.gmra.mrb[12].mxu1 %v13722_v53  ;;  %v12511_v59 = vld [vmem:[%s17737_s3 + $0xf14] ss:$8 sps:$4 sm:$0xff]  }
 0x2cf   :  { %5219 = vmatpush1.bf16.msra.mxu1 %v12428_v60  ;;  %5250 = vmatprep.mubr.bf16.mxu1 %v13736_v58  ;;  %v12514_v60 = vld [vmem:[%s17737_s3 + $0x1284] ss:$8 sps:$4 sm:$0xff]  }
 0x2d0   :  { %4419 = vmatprep.subr.bf16.mxu0 %v12433_v62  ;;  %5220 = vmatprep.subr.bf16.mxu1 %v12436_v63  ;;  %v12509_v62 = vld [vmem:[%s17737_s3 + $0xf10] ss:$8 sps:$4 sm:$0xff]   ;;  %v12512_v63 = vld [vmem:[%s17737_s3 + $0x1280] ss:$8 sps:$4 sm:$0xff]  }
 0x2d2   :  { %4420 = vmatpush1.bf16.msra.mxu0 %v12431_v0  ;;  %v12517_v0 = vld [vmem:[%s17737_s3 + $0xf24] ss:$8 sps:$4 sm:$0xff]  }
 0x2d3   :  { %5221 = vmatpush1.bf16.msra.mxu1 %v12434_v7  ;;  %4421 = vmatprep.subr.bf16.mxu0 %v12439_v8  ;;  %v12520_v7 = vld [vmem:[%s17737_s3 + $0x1294] ss:$8 sps:$4 sm:$0xff]   ;;  %v12515_v8 = vld [vmem:[%s17737_s3 + $0xf20] ss:$8 sps:$4 sm:$0xff]  }
 0x2d4   :  { %5222 = vmatprep.subr.bf16.mxu1 %v12442_v9  ;;  %v12518_v9 = vld [vmem:[%s17737_s3 + $0x1290] ss:$8 sps:$4 sm:$0xff]  }
 0x2d6   :  { %4422 = vmatpush1.bf16.msra.mxu0 %v12437_v10  ;;  %v12523_v10 = vld [vmem:[%s17737_s3 + $0xf34] ss:$8 sps:$4 sm:$0xff]  }
 0x2d7   :  { %5223 = vmatpush1.bf16.msra.mxu1 %v12440_v30  ;;  %4423 = vmatprep.subr.bf16.mxu0 %v12445_v11  ;;  %v12529_v30 = vld [vmem:[%s17737_s3 + $0x12a4] ss:$8 sps:$4 sm:$0xff]   ;;  %v12521_v11 = vld [vmem:[%s17737_s3 + $0xf30] ss:$8 sps:$4 sm:$0xff]  }
 0x2d8   :  { %5224 = vmatprep.subr.bf16.mxu1 %v12448_v12  ;;  %v12526_v12 = vld [vmem:[%s17737_s3 + $0xf44] ss:$8 sps:$4 sm:$0xff]  }
 0x2da   :  { %4424 = vmatpush1.bf16.msra.mxu0 %v12443_v3  ;;  %v12527_v3 = vld [vmem:[%s17737_s3 + $0x12a0] ss:$8 sps:$4 sm:$0xff]  }
 0x2db   :  { %5225 = vmatpush1.bf16.msra.mxu1 %v12446_v13  ;;  %4425 = vmatprep.subr.bf16.mxu0 %v12451_v14  ;;  %v12535_v13 = vld [vmem:[%s17737_s3 + $0x12b4] ss:$8 sps:$4 sm:$0xff]   ;;  %v12524_v14 = vld [vmem:[%s17737_s3 + $0xf40] ss:$8 sps:$4 sm:$0xff]  }
 0x2dc   :  { %5226 = vmatprep.subr.bf16.mxu1 %v12454_v15  ;;  %v12532_v15 = vld [vmem:[%s17737_s3 + $0xf54] ss:$8 sps:$4 sm:$0xff]  }
 0x2de   :  { %4426 = vmatpush1.bf16.msra.mxu0 %v12449_v17  ;;  %v12533_v17 = vld [vmem:[%s17737_s3 + $0x12b0] ss:$8 sps:$4 sm:$0xff]  }
 0x2df   :  { %5227 = vmatpush1.bf16.msra.mxu1 %v12452_v18  ;;  %4436 = vmatprep.subr.bf16.mxu0 %v12457_v19  ;;  %v12530_v18 = vld [vmem:[%s17737_s3 + $0xf50] ss:$8 sps:$4 sm:$0xff]   ;;  %v12538_v19 = vld [vmem:[%s17737_s3 + $0xf64] ss:$8 sps:$4 sm:$0xff]  }
 0x2e0   :  { %5228 = vmatprep.subr.bf16.mxu1 %v12460_v23  ;;  %v12536_v23 = vld [vmem:[%s17737_s3 + $0xf60] ss:$8 sps:$4 sm:$0xff]  }
 0x2e1   :  { %4428 = vmatmul.mubr.bf16.vlgmr.msra.gmra.mrb[24].mxu0 %v13722_v53 }
 0x2e2   :  { %4437 = vmatpush1.bf16.msra.mxu0 %v12455_v24  ;;  %4468 = vmatprep.mubr.bf16.mxu0 %v13736_v58  ;;  %v12541_v24 = vld [vmem:[%s17737_s3 + $0xf74] ss:$8 sps:$4 sm:$0xff]  }
 0x2e3   :  { %5229 = vmatpush1.bf16.msra.mxu1 %v12458_v25  ;;  %4438 = vmatprep.subr.bf16.mxu0 %v12463_v40  ;;  %v12539_v25 = vld [vmem:[%s17737_s3 + $0xf70] ss:$8 sps:$4 sm:$0xff]   ;;  %v12544_v40 = vld [vmem:[%s17737_s3 + $0xf84] ss:$8 sps:$4 sm:$0xff]  }
 0x2e4   :  { %5230 = vmatprep.subr.bf16.mxu1 %v12466_v26  ;;  %v10285_v26 = vld [vmem:[%s17739_s4 + $0x6] sm:$0x3] }
 0x2e6   :  { %4439 = vmatpush1.bf16.msra.mxu0 %v12461_v27  ;;  %v12542_v27 = vld [vmem:[%s17737_s3 + $0xf80] ss:$8 sps:$4 sm:$0xff]  }
 0x2e7   :  { %5231 = vmatpush1.bf16.msra.mxu1 %v12464_v2  ;;  %4440 = vmatprep.subr.bf16.mxu0 %v12469_v22  ;;  %v3059_v2 = vrot.slane %v10285_v26, %v13488_v4  ;;  %v3063_v22 = vrot.slane %v10285_v26, %v13496_v6  ;;  %v12589_v26 = vld [vmem:[%s17737_s3 + $0x1394] ss:$8 sps:$4 sm:$0xff]  }
 0x2e8   :  { %5232 = vmatprep.subr.bf16.mxu1 %v12472_v29  ;;  %v12547_v29 = vld [vmem:[%s17737_s3 + $0xf94] ss:$8 sps:$4 sm:$0xff]  }
 0x2ea   :  { %4441 = vmatpush1.bf16.msra.mxu0 %v12467_v31 }
 0x2eb   :  { %5233 = vmatpush1.bf16.msra.mxu1 %v12470_v32  ;;  %4442 = vmatprep.subr.bf16.mxu0 %v12475_v33 }
 0x2ec   :  { %5234 = vmatprep.subr.bf16.mxu1 %v12478_v34  ;;  %v12545_v34 = vld [vmem:[%s17737_s3 + $0xf90] ss:$8 sps:$4 sm:$0xff]  }
 0x2ee   :  { %4443 = vmatpush1.bf16.msra.mxu0 %v12473_v35 }
 0x2ef   :  { %5235 = vmatpush1.bf16.msra.mxu1 %v12476_v36  ;;  %4444 = vmatprep.subr.bf16.mxu0 %v12481_v37  ;;  %v12550_v37 = vld [vmem:[%s17737_s3 + $0x12c4] ss:$8 sps:$4 sm:$0xff]  }
 0x2f0   :  { %5236 = vmatprep.subr.bf16.mxu1 %v12484_v38 }
 0x2f2   :  { %4445 = vmatpush1.bf16.msra.mxu0 %v12479_v39 }
 0x2f3   :  { %5237 = vmatpush1.bf16.msra.mxu1 %v12482_v41  ;;  %4446 = vmatprep.subr.bf16.mxu0 %v12487_v42 }
 0x2f4   :  { %5238 = vmatprep.subr.bf16.mxu1 %v12490_v43 }
 0x2f6   :  { %4447 = vmatpush1.bf16.msra.mxu0 %v12485_v44  ;;  %v12548_v44 = vld [vmem:[%s17737_s3 + $0x12c0] ss:$8 sps:$4 sm:$0xff]  }
 0x2f7   :  { %5239 = vmatpush1.bf16.msra.mxu1 %v12488_v45  ;;  %4448 = vmatprep.subr.bf16.mxu0 %v12493_v5  ;;  %v12553_v45 = vld [vmem:[%s17737_s3 + $0x12d4] ss:$8 sps:$4 sm:$0xff]   ;;  %v12551_v5 = vld [vmem:[%s17737_s3 + $0x12d0] ss:$8 sps:$4 sm:$0xff]  }
 0x2f8   :  { %5240 = vmatprep.subr.bf16.mxu1 %v12496_v46  ;;  %v10083_v46 = vld [vmem:[%s17739_s4 + $0x4] sm:$0x3] }
 0x2fa   :  { %4449 = vmatpush1.bf16.msra.mxu0 %v12491_v47  ;;  %v12556_v47 = vld [vmem:[%s17737_s3 + $0x12e4] ss:$8 sps:$4 sm:$0xff]  }
 0x2fb   :  { %5241 = vmatpush1.bf16.msra.mxu1 %v12494_v48  ;;  %4450 = vmatprep.subr.bf16.mxu0 %v12499_v49  ;;  %v2270_v48 = vrot.slane %v10083_v46, %v13488_v4  ;;  %v2274_v49 = vrot.slane %v10083_v46, %v13496_v6  ;;  %v12622_v46 = vld [vmem:[%s17737_s3 + $0x1444] ss:$8 sps:$4 sm:$0xff]  }
 0x2fc   :  { %5242 = vmatprep.subr.bf16.mxu1 %v12502_v50  ;;  %v12559_v50 = vld [vmem:[%s17737_s3 + $0x12f4] ss:$8 sps:$4 sm:$0xff]  }
 0x2fe   :  { %4451 = vmatpush1.bf16.msra.mxu0 %v12497_v51 }
 0x2ff   :  { %5243 = vmatpush1.bf16.msra.mxu1 %v12500_v52  ;;  %4452 = vmatprep.subr.bf16.mxu0 %v12505_v54 }
 0x300   :  { %5244 = vmatprep.subr.bf16.mxu1 %v12508_v55 }
 0x302   :  { %4453 = vmatpush1.bf16.msra.mxu0 %v12503_v56 }
 0x303   :  { %5245 = vmatpush1.bf16.msra.mxu1 %v12506_v57  ;;  %4454 = vmatprep.subr.bf16.mxu0 %v12511_v59  ;;  %v12557_v57 = vld [vmem:[%s17737_s3 + $0x12f0] ss:$8 sps:$4 sm:$0xff]  }
 0x304   :  { %5246 = vmatprep.subr.bf16.mxu1 %v12514_v60 }
 0x306   :  { %4455 = vmatpush1.bf16.msra.mxu0 %v12509_v62  ;;  %v12562_v62 = vld [vmem:[%s17737_s3 + $0x1304] ss:$8 sps:$4 sm:$0xff]  }
 0x307   :  { %5247 = vmatpush1.bf16.msra.mxu1 %v12512_v63  ;;  %4456 = vmatprep.subr.bf16.mxu0 %v12517_v0 }
 0x308   :  { %5248 = vmatprep.subr.bf16.mxu1 %v12520_v7 }
 0x30a   :  { %4457 = vmatpush1.bf16.msra.mxu0 %v12515_v8  ;;  %v12560_v8 = vld [vmem:[%s17737_s3 + $0x1300] ss:$8 sps:$4 sm:$0xff]  }
 0x30b   :  { %5249 = vmatpush1.bf16.msra.mxu1 %v12518_v9  ;;  %4458 = vmatprep.subr.bf16.mxu0 %v12523_v10  ;;  %v12565_v9 = vld [vmem:[%s17737_s3 + $0x1314] ss:$8 sps:$4 sm:$0xff]   ;;  %v12563_v10 = vld [vmem:[%s17737_s3 + $0x1310] ss:$8 sps:$4 sm:$0xff]  }
 0x30c   :  { %5259 = vmatprep.subr.bf16.mxu1 %v12529_v30  ;;  %v12568_v30 = vld [vmem:[%s17737_s3 + $0x1324] ss:$8 sps:$4 sm:$0xff]  }
 0x30e   :  { %4459 = vmatpush1.bf16.msra.mxu0 %v12521_v11  ;;  %5251 = vmatmul.mubr.bf16.vlgmr.msra.gmra.mrb[12].mxu1 %v13931_v16  ;;  %v12566_v11 = vld [vmem:[%s17737_s3 + $0x1320] ss:$8 sps:$4 sm:$0xff]  }
 0x30f   :  { %4460 = vmatprep.subr.bf16.mxu0 %v12526_v12  ;;  %5260 = vmatpush1.bf16.msra.mxu1 %v12527_v3  ;;  %v12571_v12 = vld [vmem:[%s17737_s3 + $0x1334] ss:$8 sps:$4 sm:$0xff]   ;;  %v12569_v3 = vld [vmem:[%s17737_s3 + $0x1330] ss:$8 sps:$4 sm:$0xff]  }
 0x310   :  { %5261 = vmatprep.subr.bf16.mxu1 %v12535_v13  ;;  %5291 = vmatprep.mubr.bf16.mxu1 %v17753_v1  ;;  %v12574_v13 = vld [vmem:[%s17737_s3 + $0x1344] ss:$8 sps:$4 sm:$0xff]  }
 0x312   :  { %4461 = vmatpush1.bf16.msra.mxu0 %v12524_v14  ;;  %v12572_v14 = vld [vmem:[%s17737_s3 + $0x1340] ss:$8 sps:$4 sm:$0xff]  }
 0x313   :  { %4462 = vmatprep.subr.bf16.mxu0 %v12532_v15  ;;  %5262 = vmatpush1.bf16.msra.mxu1 %v12533_v17  ;;  %v12577_v15 = vld [vmem:[%s17737_s3 + $0x1354] ss:$8 sps:$4 sm:$0xff]   ;;  %v12575_v17 = vld [vmem:[%s17737_s3 + $0x1350] ss:$8 sps:$4 sm:$0xff]  }
 0x316   :  { %4463 = vmatpush1.bf16.msra.mxu0 %v12530_v18  ;;  %v12580_v18 = vld [vmem:[%s17737_s3 + $0x1364] ss:$8 sps:$4 sm:$0xff]  }
 0x317   :  { %4464 = vmatprep.subr.bf16.mxu0 %v12538_v19  ;;  %v12578_v19 = vld [vmem:[%s17737_s3 + $0x1360] ss:$8 sps:$4 sm:$0xff]  }
 0x31a   :  { %4465 = vmatpush1.bf16.msra.mxu0 %v12536_v23  ;;  %10790 = vmatmul.mubr.msk.bf16.vlgmr.msra.gmra.mrb[12].mxu1 %vm1201_vm3, %v13962_v28  ;;  %v12583_v23 = vld [vmem:[%s17737_s3 + $0x1374] ss:$8 sps:$4 sm:$0xff]  }
 0x31b   :  { %4466 = vmatprep.subr.bf16.mxu0 %v12541_v24  ;;  %v12581_v24 = vld [vmem:[%s17737_s3 + $0x1370] ss:$8 sps:$4 sm:$0xff]  }
 0x31e   :  { %4467 = vmatpush1.bf16.msra.mxu0 %v12539_v25  ;;  %v12586_v25 = vld [vmem:[%s17737_s3 + $0x1384] ss:$8 sps:$4 sm:$0xff]  }
 0x31f   :  { %4477 = vmatprep.subr.bf16.mxu0 %v12544_v40  ;;  %v12584_v40 = vld [vmem:[%s17737_s3 + $0x1380] ss:$8 sps:$4 sm:$0xff]  }
 0x321   :  { %4469 = vmatmul.mubr.bf16.vlgmr.msra.gmra.mrb[24].mxu0 %v13931_v16  ;;  %v3723_v31 = vpop.f32.mrb[8].mxu1 }
 0x322   :  { %v11427_v32 = vadd.f32 %v3723_v31, %v3059_v2  ;;  %4478 = vmatpush1.bf16.msra.mxu0 %v12542_v27  ;;  %v3725_v33 = vpop.f32.mrb[9].mxu1  ;;  %4509 = vmatprep.mubr.bf16.mxu0 %v17753_v1  ;;  %v12587_v27 = vld [vmem:[%s17737_s3 + $0x1390] ss:$8 sps:$4 sm:$0xff]   ;;  %v12592_v2 = vld [vmem:[%s17737_s3 + $0x13a4] ss:$8 sps:$4 sm:$0xff]  }
 0x323   :  { %v11428_v35 = vadd.f32 %v3725_v33, %v3063_v22  ;;  %v3727_v36 = vpop.f32.mrb[10].mxu1  ;;  %4479 = vmatprep.subr.bf16.mxu0 %v12547_v29  ;;  %v12590_v22 = vld [vmem:[%s17737_s3 + $0x13a0] ss:$8 sps:$4 sm:$0xff]   ;;  %v12595_v29 = vld [vmem:[%s17737_s3 + $0x13b4] ss:$8 sps:$4 sm:$0xff]  }
 0x324   :  { %v3730_v38 = vmax.f32 %v11427_v32, 0.0  ;;  %v3728_v39 = vpop.f32.mrb[11].mxu1  ;;  %v12593_v31 = vld [vmem:[%s17737_s3 + $0x13b0] ss:$8 sps:$4 sm:$0xff]   ;;  %v12598_v32 = vld [vmem:[%s17737_s3 + $0x13c4] ss:$8 sps:$4 sm:$0xff]  }
 0x325   :  { %v3731_v41 = vmax.f32 %v11428_v35, 0.0  ;;  %v12596_v33 = vld [vmem:[%s17737_s3 + $0x13c0] ss:$8 sps:$4 sm:$0xff]   ;;  %v12599_v35 = vld [vmem:[%s17737_s3 + $0x13d0] ss:$8 sps:$4 sm:$0xff]  }
 0x326   :  { %v3734_v42 = vrot.slane %v3730_v38, 2  ;;  %4480 = vmatpush1.bf16.msra.mxu0 %v12545_v34  ;;  %v12601_v34 = vld [vmem:[%s17737_s3 + $0x13d4] ss:$8 sps:$4 sm:$0xff]   ;;  %v12604_v36 = vld [vmem:[%s17737_s3 + $0x13e4] ss:$8 sps:$4 sm:$0xff]  }
 0x327   :  { %v3735_v43 = vrot.slane %v3731_v41, 2  ;;  %5924 = vmatprep.subr.bf16.mxu0 %v12550_v37  ;;  %v12602_v37 = vld [vmem:[%s17737_s3 + $0x13e0] ss:$8 sps:$4 sm:$0xff]   ;;  %v12610_v38 = vld [vmem:[%s17737_s3 + $0x1404] ss:$8 sps:$4 sm:$0xff]  }
 0x328   :  { %3738 = vst [vmem:[#allocation2] sm:$0xc0] %v3734_v42  ;;  %v12608_v39 = vld [vmem:[%s17737_s3 + $0x1400] ss:$8 sps:$4 sm:$0xff]   ;;  %v12613_v41 = vld [vmem:[%s17737_s3 + $0x1414] ss:$8 sps:$4 sm:$0xff]  }
 0x329   :  { %3739 = vst.msk [vmem:[#allocation2 + $0x8] sm:$0xc0] %vm587_vm6, %v3735_v43  ;;  %v12611_v42 = vld [vmem:[%s17737_s3 + $0x1410] ss:$8 sps:$4 sm:$0xff]   ;;  %v12616_v43 = vld [vmem:[%s17737_s3 + $0x1424] ss:$8 sps:$4 sm:$0xff]  }
 0x32a   :  { %vm8190_vm6 = vcmask 588800  }
 0x32d   :  { %10588 = vmatmul.mubr.msk.bf16.vlgmr.msra.gmra.mrb[24].mxu0 %vm1201_vm3, %v13962_v28 }
 0x32e   :  { %5925 = vmatpush1.bf16.msra.mxu0 %v12548_v44  ;;  %5956 = vmatprep.mubr.bf16.mxu0 %v13511_v20  ;;  %v12554_v20 = vld [vmem:[%s17737_s3 + $0x12e0] ss:$8 sps:$4 sm:$0xff]  }
 0x32f   :  { %5926 = vmatprep.subr.bf16.mxu0 %v12553_v45  ;;  %v12614_v44 = vld [vmem:[%s17737_s3 + $0x1420] ss:$8 sps:$4 sm:$0xff]   ;;  %v12619_v45 = vld [vmem:[%s17737_s3 + $0x1434] ss:$8 sps:$4 sm:$0xff]  }
 0x332   :  { %5927 = vmatpush1.bf16.msra.mxu0 %v12551_v5  ;;  %v12617_v5 = vld [vmem:[%s17737_s3 + $0x1430] ss:$8 sps:$4 sm:$0xff]  }
 0x333   :  { %5928 = vmatprep.subr.bf16.mxu0 %v12556_v47  ;;  %v12698_v47 = vld [vmem:[%s17740_s5 + $0xe0] ss:$8 sps:$4 sm:$0xff]  }
 0x334   :  { %v2934_v51 = vpop.f32.mrb[20].mxu0 }
 0x335   :  { %v11425_v52 = vadd.f32 %v2934_v51, %v2270_v48  ;;  %v2936_v54 = vpop.f32.mrb[21].mxu0  ;;  %v12700_v48 = vld [vmem:[%s17740_s5 + $0xe4] ss:$8 sps:$4 sm:$0xff]   ;;  %v12701_v51 = vld [vmem:[%s17740_s5 + $0xf0] ss:$8 sps:$4 sm:$0xff]  }
 0x336   :  { %5929 = vmatpush1.bf16.msra.mxu0 %v12554_v20  ;;  %v11426_v55 = vadd.f32 %v2936_v54, %v2274_v49  ;;  %v2938_v56 = vpop.f32.mrb[22].mxu0  ;;  %v12703_v20 = vld [vmem:[%s17740_s5 + $0xf4] ss:$8 sps:$4 sm:$0xff]   ;;  %v12620_v49 = vld [vmem:[%s17737_s3 + $0x1440] ss:$8 sps:$4 sm:$0xff]   ;;  %6295 = vmatprep.subr.bf16.mxu1 %v12700_v48 }
 0x337   :  { %v2941_v59 = vmax.f32 %v11425_v52, 0.0  ;;  %v2939_v60 = vpop.f32.mrb[23].mxu0  ;;  %5930 = vmatprep.subr.bf16.mxu0 %v12559_v50  ;;  %v12625_v50 = vld [vmem:[%s17737_s3 + $0x1454] ss:$8 sps:$4 sm:$0xff]   ;;  %6296 = vmatpush1.bf16.msra.mxu1 %v12698_v47  ;;  %v12706_v52 = vld [vmem:[%s17740_s5 + $0x104] ss:$8 sps:$4 sm:$0xff]  }
 0x338   :  { %v2942_v63 = vmax.f32 %v11426_v55, 0.0  ;;  %6297 = vmatprep.subr.bf16.mxu1 %v12703_v20  ;;  %v12623_v54 = vld [vmem:[%s17737_s3 + $0x1450] ss:$8 sps:$4 sm:$0xff]   ;;  %v12628_v55 = vld [vmem:[%s17737_s3 + $0x1464] ss:$8 sps:$4 sm:$0xff]  }
 0x339   :  { %v2945_v0 = vrot.slane %v2941_v59, 4  ;;  %v12704_v56 = vld [vmem:[%s17740_s5 + $0x100] ss:$8 sps:$4 sm:$0xff]   ;;  %v12631_v60 = vld [vmem:[%s17737_s3 + $0x1474] ss:$8 sps:$4 sm:$0xff]  }
 0x33a   :  { %v2946_v7 = vrot.slane %v2942_v63, 4  ;;  %5931 = vmatpush1.bf16.msra.mxu0 %v12557_v57  ;;  %v12709_v57 = vld [vmem:[%s17740_s5 + $0x114] ss:$8 sps:$4 sm:$0xff]   ;;  %v12626_v59 = vld [vmem:[%s17737_s3 + $0x1460] ss:$8 sps:$4 sm:$0xff]  }
 0x33b   :  { %2949 = vst [vmem:[#allocation2] sm:$0x30] %v2945_v0  ;;  %5932 = vmatprep.subr.bf16.mxu0 %v12562_v62  ;;  %6298 = vmatpush1.bf16.msra.mxu1 %v12701_v51  ;;  %v12707_v62 = vld [vmem:[%s17740_s5 + $0x110] ss:$8 sps:$4 sm:$0xff]   ;;  %v12712_v0 = vld [vmem:[%s17740_s5 + $0x124] ss:$8 sps:$4 sm:$0xff]  }
 0x33c   :  { %2951 = vst.msk [vmem:[#allocation2 + $0x8] sm:$0x30] %vm2950_vm7, %v2946_v7  ;;  %6299 = vmatprep.subr.bf16.mxu1 %v12706_v52  ;;  %v12629_v63 = vld [vmem:[%s17737_s3 + $0x1470] ss:$8 sps:$4 sm:$0xff]   ;;  %v12634_v7 = vld [vmem:[%s17737_s3 + $0x1484] ss:$8 sps:$4 sm:$0xff]  }
 0x33d   :  { %v12682_v47 = vld [vmem:[%s17737_s3 + $0x1584] ss:$8 sps:$4 sm:$0xff]   ;;  %v12680_v48 = vld [vmem:[%s17737_s3 + $0x1580] ss:$8 sps:$4 sm:$0xff]   ;;  %v12685_v20 = vld [vmem:[%s17737_s3 + $0x1594] ss:$8 sps:$4 sm:$0xff]  }
 0x33e   :  { %5933 = vmatpush1.bf16.msra.mxu0 %v12560_v8  ;;  %v12710_v8 = vld [vmem:[%s17740_s5 + $0x120] ss:$8 sps:$4 sm:$0xff]   ;;  %v12691_v52 = vld [vmem:[%s17737_s3 + $0x15b4] ss:$8 sps:$4 sm:$0xff]  }
 0x33f   :  { %5934 = vmatprep.subr.bf16.mxu0 %v12565_v9  ;;  %6300 = vmatpush1.bf16.msra.mxu1 %v12704_v56  ;;  %v12715_v9 = vld [vmem:[%s17740_s5 + $0x134] ss:$8 sps:$4 sm:$0xff]   ;;  %v12686_v51 = vld [vmem:[%s17737_s3 + $0x15a0] ss:$8 sps:$4 sm:$0xff]  }
 0x340   :  { %6301 = vmatprep.subr.bf16.mxu1 %v12709_v57  ;;  %v10689_v56 = vld [vmem:[%s17739_s4 + $0xa] sm:$0x3] }
 0x341   :  { %v12692_v57 = vld [vmem:[%s17737_s3 + $0x15c0] ss:$8 sps:$4 sm:$0xff]  }
 0x342   :  { %5935 = vmatpush1.bf16.msra.mxu0 %v12563_v10  ;;  %v12632_v10 = vld [vmem:[%s17737_s3 + $0x1480] ss:$8 sps:$4 sm:$0xff]  }
 0x343   :  { %5936 = vmatprep.subr.bf16.mxu0 %v12568_v30  ;;  %6302 = vmatpush1.bf16.msra.mxu1 %v12707_v62  ;;  %v12637_v30 = vld [vmem:[%s17737_s3 + $0x1494] ss:$8 sps:$4 sm:$0xff]  }
 0x344   :  { %6303 = vmatprep.subr.bf16.mxu1 %v12712_v0  ;;  %v12697_v62 = vld [vmem:[%s17737_s3 + $0x15d4] ss:$8 sps:$4 sm:$0xff]  }
 0x346   :  { %5937 = vmatpush1.bf16.msra.mxu0 %v12566_v11  ;;  %v12713_v11 = vld [vmem:[%s17740_s5 + $0x130] ss:$8 sps:$4 sm:$0xff]  }
 0x347   :  { %5938 = vmatprep.subr.bf16.mxu0 %v12571_v12  ;;  %v12718_v12 = vld [vmem:[%s17740_s5 + $0x144] ss:$8 sps:$4 sm:$0xff]   ;;  %6304 = vmatpush1.bf16.msra.mxu1 %v12710_v8  ;;  %v12695_v8 = vld [vmem:[%s17737_s3 + $0x15d0] ss:$8 sps:$4 sm:$0xff]  }
 0x348   :  { %6305 = vmatprep.subr.bf16.mxu1 %v12715_v9 }
 0x34a   :  { %5939 = vmatpush1.bf16.msra.mxu0 %v12569_v3  ;;  %v12635_v3 = vld [vmem:[%s17737_s3 + $0x1490] ss:$8 sps:$4 sm:$0xff]  }
 0x34b   :  { %5940 = vmatprep.subr.bf16.mxu0 %v12574_v13  ;;  %v12640_v13 = vld [vmem:[%s17737_s3 + $0x14a4] ss:$8 sps:$4 sm:$0xff]   ;;  %6306 = vmatpush1.bf16.msra.mxu1 %v12713_v11 }
 0x34c   :  { %6307 = vmatprep.subr.bf16.mxu1 %v12718_v12 }
 0x34e   :  { %5941 = vmatpush1.bf16.msra.mxu0 %v12572_v14  ;;  %v12716_v14 = vld [vmem:[%s17740_s5 + $0x140] ss:$8 sps:$4 sm:$0xff]  }
 0x34f   :  { %5942 = vmatprep.subr.bf16.mxu0 %v12577_v15  ;;  %v12721_v15 = vld [vmem:[%s17740_s5 + $0x154] ss:$8 sps:$4 sm:$0xff]   ;;  %6308 = vmatpush1.bf16.msra.mxu1 %v12716_v14 }
 0x350   :  { %6309 = vmatprep.subr.bf16.mxu1 %v12721_v15 }
 0x352   :  { %5943 = vmatpush1.bf16.msra.mxu0 %v12575_v17  ;;  %v12638_v17 = vld [vmem:[%s17737_s3 + $0x14a0] ss:$8 sps:$4 sm:$0xff]  }
 0x353   :  { %5944 = vmatprep.subr.bf16.mxu0 %v12580_v18  ;;  %v12643_v18 = vld [vmem:[%s17737_s3 + $0x14b4] ss:$8 sps:$4 sm:$0xff]  }
 0x356   :  { %5945 = vmatpush1.bf16.msra.mxu0 %v12578_v19  ;;  %v12719_v19 = vld [vmem:[%s17740_s5 + $0x150] ss:$8 sps:$4 sm:$0xff]  }
 0x357   :  { %5946 = vmatprep.subr.bf16.mxu0 %v12583_v23  ;;  %v12724_v23 = vld [vmem:[%s17740_s5 + $0x164] ss:$8 sps:$4 sm:$0xff]   ;;  %6310 = vmatpush1.bf16.msra.mxu1 %v12719_v19 }
 0x358   :  { %6311 = vmatprep.subr.bf16.mxu1 %v12724_v23 }
 0x35a   :  { %5947 = vmatpush1.bf16.msra.mxu0 %v12581_v24  ;;  %v12641_v24 = vld [vmem:[%s17737_s3 + $0x14b0] ss:$8 sps:$4 sm:$0xff]  }
 0x35b   :  { %5948 = vmatprep.subr.bf16.mxu0 %v12586_v25  ;;  %v12646_v25 = vld [vmem:[%s17737_s3 + $0x14c4] ss:$8 sps:$4 sm:$0xff]  }
 0x35e   :  { %5949 = vmatpush1.bf16.msra.mxu0 %v12584_v40  ;;  %v12722_v40 = vld [vmem:[%s17740_s5 + $0x160] ss:$8 sps:$4 sm:$0xff]  }
 0x35f   :  { %5950 = vmatprep.subr.bf16.mxu0 %v12589_v26  ;;  %v12727_v26 = vld [vmem:[%s17740_s5 + $0x174] ss:$8 sps:$4 sm:$0xff]   ;;  %6312 = vmatpush1.bf16.msra.mxu1 %v12722_v40 }
 0x360   :  { %6313 = vmatprep.subr.bf16.mxu1 %v12727_v26 }
 0x362   :  { %5951 = vmatpush1.bf16.msra.mxu0 %v12587_v27  ;;  %v12644_v27 = vld [vmem:[%s17737_s3 + $0x14c0] ss:$8 sps:$4 sm:$0xff]  }
 0x363   :  { %5952 = vmatprep.subr.bf16.mxu0 %v12592_v2  ;;  %v12649_v2 = vld [vmem:[%s17737_s3 + $0x14d4] ss:$8 sps:$4 sm:$0xff]  }
 0x366   :  { %5953 = vmatpush1.bf16.msra.mxu0 %v12590_v22  ;;  %v12725_v22 = vld [vmem:[%s17740_s5 + $0x170] ss:$8 sps:$4 sm:$0xff]  }
 0x367   :  { %5954 = vmatprep.subr.bf16.mxu0 %v12595_v29  ;;  %v12647_v29 = vld [vmem:[%s17737_s3 + $0x14d0] ss:$8 sps:$4 sm:$0xff]   ;;  %6314 = vmatpush1.bf16.msra.mxu1 %v12725_v22 }
 0x368   :  { %v12731_v22 = vld [vmem:[%s17740_s5 + $0x190] ss:$8 sps:$4 sm:$0xff]  }
 0x36a   :  { %5955 = vmatpush1.bf16.msra.mxu0 %v12593_v31  ;;  %v12652_v31 = vld [vmem:[%s17737_s3 + $0x14e4] ss:$8 sps:$4 sm:$0xff]  }
 0x36b   :  { %5965 = vmatprep.subr.bf16.mxu0 %v12598_v32  ;;  %v12650_v32 = vld [vmem:[%s17737_s3 + $0x14e0] ss:$8 sps:$4 sm:$0xff]  }
 0x36d   :  { %5957 = vmatmul.mubr.bf16.vlgmr.msra.gmra.mrb[28].mxu0 %v13513_v21  ;;  %v12607_v21 = vld [vmem:[%s17737_s3 + $0x13f4] ss:$8 sps:$4 sm:$0xff]  }
 0x36e   :  { %5966 = vmatpush1.bf16.msra.mxu0 %v12596_v33  ;;  %5997 = vmatprep.mubr.bf16.mxu0 %v13606_v61  ;;  %v12605_v61 = vld [vmem:[%s17737_s3 + $0x13f0] ss:$8 sps:$4 sm:$0xff]   ;;  %v12658_v33 = vld [vmem:[%s17737_s3 + $0x1504] ss:$8 sps:$4 sm:$0xff]  }
 0x36f   :  { %5967 = vmatprep.subr.bf16.mxu0 %v12601_v34  ;;  %v12656_v34 = vld [vmem:[%s17737_s3 + $0x1500] ss:$8 sps:$4 sm:$0xff]  }
 0x372   :  { %5968 = vmatpush1.bf16.msra.mxu0 %v12599_v35  ;;  %v12661_v35 = vld [vmem:[%s17737_s3 + $0x1514] ss:$8 sps:$4 sm:$0xff]  }
 0x373   :  { %5969 = vmatprep.subr.bf16.mxu0 %v12604_v36  ;;  %v12659_v36 = vld [vmem:[%s17737_s3 + $0x1510] ss:$8 sps:$4 sm:$0xff]  }
 0x376   :  { %5970 = vmatpush1.bf16.msra.mxu0 %v12602_v37  ;;  %v12664_v37 = vld [vmem:[%s17737_s3 + $0x1524] ss:$8 sps:$4 sm:$0xff]  }
 0x377   :  { %5971 = vmatprep.subr.bf16.mxu0 %v12607_v21  ;;  %v12662_v21 = vld [vmem:[%s17737_s3 + $0x1520] ss:$8 sps:$4 sm:$0xff]  }
 0x37a   :  { %5972 = vmatpush1.bf16.msra.mxu0 %v12605_v61  ;;  %v12667_v61 = vld [vmem:[%s17737_s3 + $0x1534] ss:$8 sps:$4 sm:$0xff]  }
 0x37b   :  { %5973 = vmatprep.subr.bf16.mxu0 %v12610_v38  ;;  %v12665_v38 = vld [vmem:[%s17737_s3 + $0x1530] ss:$8 sps:$4 sm:$0xff]  }
 0x37e   :  { %5974 = vmatpush1.bf16.msra.mxu0 %v12608_v39  ;;  %v12670_v39 = vld [vmem:[%s17737_s3 + $0x1544] ss:$8 sps:$4 sm:$0xff]  }
 0x37f   :  { %5975 = vmatprep.subr.bf16.mxu0 %v12613_v41  ;;  %v12668_v41 = vld [vmem:[%s17737_s3 + $0x1540] ss:$8 sps:$4 sm:$0xff]  }
 0x382   :  { %5976 = vmatpush1.bf16.msra.mxu0 %v12611_v42  ;;  %v12673_v42 = vld [vmem:[%s17737_s3 + $0x1554] ss:$8 sps:$4 sm:$0xff]  }
 0x383   :  { %5977 = vmatprep.subr.bf16.mxu0 %v12616_v43  ;;  %v12671_v43 = vld [vmem:[%s17737_s3 + $0x1550] ss:$8 sps:$4 sm:$0xff]  }
 0x386   :  { %5978 = vmatpush1.bf16.msra.mxu0 %v12614_v44  ;;  %v12676_v44 = vld [vmem:[%s17737_s3 + $0x1564] ss:$8 sps:$4 sm:$0xff]  }
 0x387   :  { %5979 = vmatprep.subr.bf16.mxu0 %v12619_v45  ;;  %v12674_v45 = vld [vmem:[%s17737_s3 + $0x1560] ss:$8 sps:$4 sm:$0xff]  }
 0x38a   :  { %5980 = vmatpush1.bf16.msra.mxu0 %v12617_v5  ;;  %v12679_v5 = vld [vmem:[%s17737_s3 + $0x1574] ss:$8 sps:$4 sm:$0xff]  }
 0x38b   :  { %5981 = vmatprep.subr.bf16.mxu0 %v12622_v46  ;;  %v12677_v46 = vld [vmem:[%s17737_s3 + $0x1570] ss:$8 sps:$4 sm:$0xff]  }
 0x38e   :  { %5982 = vmatpush1.bf16.msra.mxu0 %v12620_v49  ;;  %v12683_v49 = vld [vmem:[%s17737_s3 + $0x1590] ss:$8 sps:$4 sm:$0xff]  }
 0x38f   :  { %5983 = vmatprep.subr.bf16.mxu0 %v12625_v50  ;;  %v12688_v50 = vld [vmem:[%s17737_s3 + $0x15a4] ss:$8 sps:$4 sm:$0xff]  }
 0x392   :  { %5984 = vmatpush1.bf16.msra.mxu0 %v12623_v54  ;;  %v12689_v54 = vld [vmem:[%s17737_s3 + $0x15b0] ss:$8 sps:$4 sm:$0xff]  }
 0x393   :  { %5985 = vmatprep.subr.bf16.mxu0 %v12628_v55  ;;  %v12694_v55 = vld [vmem:[%s17737_s3 + $0x15c4] ss:$8 sps:$4 sm:$0xff]  }
 0x396   :  { %5986 = vmatpush1.bf16.msra.mxu0 %v12626_v59  ;;  %v4629_v59 = vrot.slane %v10689_v56, %v13488_v4 }
 0x397   :  { %5987 = vmatprep.subr.bf16.mxu0 %v12631_v60  ;;  %v4633_v60 = vrot.slane %v10689_v56, %v13496_v6  ;;  %v12743_v56 = vld [vmem:[%s17740_s5 + $0x10] ss:$8 sps:$4 sm:$0xff]  }
 0x39a   :  { %5988 = vmatpush1.bf16.msra.mxu0 %v12629_v63 }
 0x39b   :  { %5989 = vmatprep.subr.bf16.mxu0 %v12634_v7 }
 0x39e   :  { %5990 = vmatpush1.bf16.msra.mxu0 %v12632_v10 }
 0x39f   :  { %5991 = vmatprep.subr.bf16.mxu0 %v12637_v30 }
 0x3a2   :  { %5992 = vmatpush1.bf16.msra.mxu0 %v12635_v3 }
 0x3a3   :  { %5993 = vmatprep.subr.bf16.mxu0 %v12640_v13 }
 0x3a6   :  { %5994 = vmatpush1.bf16.msra.mxu0 %v12638_v17 }
 0x3a7   :  { %5995 = vmatprep.subr.bf16.mxu0 %v12643_v18 }
 0x3aa   :  { %5996 = vmatpush1.bf16.msra.mxu0 %v12641_v24 }
 0x3ab   :  { %6006 = vmatprep.subr.bf16.mxu0 %v12646_v25 }
 0x3ad   :  { %5998 = vmatmul.mubr.bf16.vlgmr.msra.gmra.mrb[28].mxu0 %v13722_v53  ;;  %v12655_v53 = vld [vmem:[%s17737_s3 + $0x14f4] ss:$8 sps:$4 sm:$0xff]  }
 0x3ae   :  { %6007 = vmatpush1.bf16.msra.mxu0 %v12644_v27  ;;  %6038 = vmatprep.mubr.bf16.mxu0 %v13736_v58  ;;  %v12653_v58 = vld [vmem:[%s17737_s3 + $0x14f0] ss:$8 sps:$4 sm:$0xff]   ;;  %v12728_v27 = vld [vmem:[%s17740_s5 + $0x180] ss:$8 sps:$4 sm:$0xff]   ;;  %s13012_s3 = smov 64  }
 0x3af   :  { %6008 = vmatprep.subr.bf16.mxu0 %v12649_v2  ;;  %v12733_v2 = vld [vmem:[%s17740_s5 + $0x194] ss:$8 sps:$4 sm:$0xff]  }
 0x3b2   :  { %6009 = vmatpush1.bf16.msra.mxu0 %v12647_v29  ;;  %v12734_v29 = vld [vmem:[%s17740_s5 + $0x1a0] ss:$8 sps:$4 sm:$0xff]  }
 0x3b3   :  { %6010 = vmatprep.subr.bf16.mxu0 %v12652_v31  ;;  %v12736_v31 = vld [vmem:[%s17740_s5 + $0x1a4] ss:$8 sps:$4 sm:$0xff]  }
 0x3b6   :  { %6011 = vmatpush1.bf16.msra.mxu0 %v12650_v32  ;;  %v12739_v32 = vld [vmem:[%s17740_s5 + $0x1b4] ss:$8 sps:$4 sm:$0xff]  }
 0x3b7   :  { %6012 = vmatprep.subr.bf16.mxu0 %v12655_v53  ;;  %v12737_v53 = vld [vmem:[%s17740_s5 + $0x1b0] ss:$8 sps:$4 sm:$0xff]  }
 0x3ba   :  { %6013 = vmatpush1.bf16.msra.mxu0 %v12653_v58  ;;  %v12742_v58 = vld [vmem:[%s17740_s5 + $0x4] ss:$8 sps:$4 sm:$0xff]  }
 0x3bb   :  { %6014 = vmatprep.subr.bf16.mxu0 %v12658_v33  ;;  %v10891_v33 = vld [vmem:[%s17739_s4 + $0xc] sm:$0x3] }
 0x3be   :  { %6015 = vmatpush1.bf16.msra.mxu0 %v12656_v34  ;;  %v5417_v34 = vrot.slane %v10891_v33, %v13488_v4 }
 0x3bf   :  { %6016 = vmatprep.subr.bf16.mxu0 %v12661_v35  ;;  %v5421_v35 = vrot.slane %v10891_v33, %v13496_v6  ;;  %v12791_v33 = vld [vmem:[%s17740_s5 + $0x1f0] ss:$8 sps:$4 sm:$0xff]  }
 0x3c2   :  { %6017 = vmatpush1.bf16.msra.mxu0 %v12659_v36 }
 0x3c3   :  { %6018 = vmatprep.subr.bf16.mxu0 %v12664_v37 }
 0x3c6   :  { %6019 = vmatpush1.bf16.msra.mxu0 %v12662_v21 }
 0x3c7   :  { %6020 = vmatprep.subr.bf16.mxu0 %v12667_v61 }
 0x3ca   :  { %6021 = vmatpush1.bf16.msra.mxu0 %v12665_v38 }
 0x3cb   :  { %6022 = vmatprep.subr.bf16.mxu0 %v12670_v39 }
 0x3ce   :  { %6023 = vmatpush1.bf16.msra.mxu0 %v12668_v41 }
 0x3cf   :  { %6024 = vmatprep.subr.bf16.mxu0 %v12673_v42 }
 0x3d2   :  { %6025 = vmatpush1.bf16.msra.mxu0 %v12671_v43 }
 0x3d3   :  { %6026 = vmatprep.subr.bf16.mxu0 %v12676_v44 }
 0x3d6   :  { %6027 = vmatpush1.bf16.msra.mxu0 %v12674_v45  ;;  %v6099_v45 = vld [vmem:[#allocation2 + $0x8] sm:$0xff] }
 0x3d7   :  { %6028 = vmatprep.subr.bf16.mxu0 %v12679_v5 }
 0x3da   :  { %6029 = vmatpush1.bf16.msra.mxu0 %v12677_v46 }
 0x3db   :  { %6030 = vmatprep.subr.bf16.mxu0 %v12682_v47  ;;  %v6105_v47 = vld [vmem:[#allocation2 + $0x8] sm:$0xfc] }
 0x3de   :  { %6031 = vmatpush1.bf16.msra.mxu0 %v12680_v48 }
 0x3df   :  { %6032 = vmatprep.subr.bf16.mxu0 %v12685_v20 }
 0x3e2   :  { %6033 = vmatpush1.bf16.msra.mxu0 %v12683_v49  ;;  %v12740_v49 = vld [vmem:[%s17740_s5] ss:$8 sps:$4 sm:$0xff]  }
 0x3e3   :  { %6034 = vmatprep.subr.bf16.mxu0 %v12688_v50  ;;  %v6098_v50 = vld [vmem:[#allocation2] sm:$0xff] }
 0x3e6   :  { %6035 = vmatpush1.bf16.msra.mxu0 %v12686_v51 }
 0x3e7   :  { %6036 = vmatprep.subr.bf16.mxu0 %v12691_v52 }
 0x3ea   :  { %6037 = vmatpush1.bf16.msra.mxu0 %v12689_v54  ;;  %v12745_v54 = vld [vmem:[%s17740_s5 + $0x14] ss:$8 sps:$4 sm:$0xff]  }
 0x3eb   :  { %6047 = vmatprep.subr.bf16.mxu0 %v12694_v55 }
 0x3ed   :  { %6039 = vmatmul.mubr.bf16.vlgmr.msra.gmra.mrb[28].mxu0 %v13931_v16  ;;  %v5293_v63 = vpop.f32.mrb[12].mxu1  ;;  %v10487_v16 = vld [vmem:[%s17739_s4 + $0x8] sm:$0x3]  ;;  %s13014_s4 = smov 32  }
 0x3ee   :  { %v11431_v0 = vadd.f32 %v5293_v63, %v4629_v59  ;;  %6048 = vmatpush1.bf16.msra.mxu0 %v12692_v57  ;;  %v5295_v7 = vpop.f32.mrb[13].mxu1  ;;  %6079 = vmatprep.mubr.bf16.mxu0 %v17753_v1  ;;  %v3847_v14 = vrot.slane %v10487_v16, %v13488_v4  ;;  %v3851_v15 = vrot.slane %v10487_v16, %v13496_v6  ;;  %v12748_v57 = vld [vmem:[%s17740_s5 + $0x24] ss:$8 sps:$4 sm:$0xff]   ;;  %v12746_v59 = vld [vmem:[%s17740_s5 + $0x20] ss:$8 sps:$4 sm:$0xff]  }
 0x3ef   :  { %v11432_v9 = vadd.f32 %v5295_v7, %v4633_v60  ;;  %v5297_v10 = vpop.f32.mrb[14].mxu1  ;;  %6049 = vmatprep.subr.bf16.mxu0 %v12697_v62  ;;  %v12751_v60 = vld [vmem:[%s17740_s5 + $0x34] ss:$8 sps:$4 sm:$0xff]   ;;  %v12749_v62 = vld [vmem:[%s17740_s5 + $0x30] ss:$8 sps:$4 sm:$0xff]  }
 0x3f0   :  { %v5300_v30 = vmax.f32 %v11431_v0, 0.0  ;;  %v5298_v11 = vpop.f32.mrb[15].mxu1  ;;  %v12754_v63 = vld [vmem:[%s17740_s5 + $0x44] ss:$8 sps:$4 sm:$0xff]   ;;  %v12752_v0 = vld [vmem:[%s17740_s5 + $0x40] ss:$8 sps:$4 sm:$0xff]  }
 0x3f1   :  { %v5301_v12 = vmax.f32 %v11432_v9, 0.0  ;;  %v12757_v7 = vld [vmem:[%s17740_s5 + $0x54] ss:$8 sps:$4 sm:$0xff]   ;;  %v12760_v9 = vld [vmem:[%s17740_s5 + $0x64] ss:$8 sps:$4 sm:$0xff]  }
 0x3f2   :  { %v5304_v3 = vrot.slane %v5300_v30, 6  ;;  %6050 = vmatpush1.bf16.msra.mxu0 %v12695_v8  ;;  %v12755_v8 = vld [vmem:[%s17740_s5 + $0x50] ss:$8 sps:$4 sm:$0xff]   ;;  %v12758_v10 = vld [vmem:[%s17740_s5 + $0x60] ss:$8 sps:$4 sm:$0xff]  }
 0x3f3   :  { %v5305_v13 = vrot.slane %v5301_v12, 6  ;;  %v12763_v30 = vld [vmem:[%s17740_s5 + $0x74] ss:$8 sps:$4 sm:$0xff]   ;;  %v12761_v11 = vld [vmem:[%s17740_s5 + $0x70] ss:$8 sps:$4 sm:$0xff]  }
 0x3f4   :  { %5308 = vst [vmem:[#allocation2 + $0x10] sm:$0xc] %v5304_v3  ;;  %v12766_v12 = vld [vmem:[%s17740_s5 + $0x84] ss:$8 sps:$4 sm:$0xff]   ;;  %v12764_v3 = vld [vmem:[%s17740_s5 + $0x80] ss:$8 sps:$4 sm:$0xff]  }
 0x3f5   :  { %5309 = vst.msk [vmem:[#allocation2 + $0x18] sm:$0xc] %vm2161_vm5, %v5305_v13  ;;  %v12769_v13 = vld [vmem:[%s17740_s5 + $0x94] ss:$8 sps:$4 sm:$0xff]   ;;  %v12767_v16 = vld [vmem:[%s17740_s5 + $0x90] ss:$8 sps:$4 sm:$0xff]  }
 0x3f6   :  { %v16304_v1 = vld [vmem:[%s17743_s9 + $0xc4] ss:$8 sps:$4 sm:$0xff]   ;;  %vm8187_vm5 = vcmask 457728  }
 0x3f7   :  { %17794 = vst [vmem:[#allocation23_spill] sm:$0xff] %v16304_v1 }
 0x3f9   :  { %10992 = vmatmul.mubr.msk.bf16.vlgmr.msra.gmra.mrb[28].mxu0 %vm1201_vm3, %v13962_v28  ;;  %v12730_v28 = vld [vmem:[%s17740_s5 + $0x184] ss:$8 sps:$4 sm:$0xff]  }
 0x3fa   :  { %6315 = vmatprep.subr.bf16.mxu1 %v12730_v28 }
 0x3fb   :  { %6316 = vmatpush1.bf16.msra.mxu1 %v12728_v27  ;;  %v12784_v27 = vld [vmem:[%s17740_s5 + $0x1c4] ss:$8 sps:$4 sm:$0xff]  }
 0x3fc   :  { %6317 = vmatprep.subr.bf16.mxu1 %v12733_v2  ;;  %v12782_v2 = vld [vmem:[%s17740_s5 + $0x1c0] ss:$8 sps:$4 sm:$0xff]  }
 0x3ff   :  { %6318 = vmatpush1.bf16.msra.mxu1 %v12731_v22 }
 0x400   :  { %v4511_v17 = vpop.f32.mrb[24].mxu0  ;;  %6319 = vmatprep.subr.bf16.mxu1 %v12736_v31  ;;  %v12785_v31 = vld [vmem:[%s17740_s5 + $0x1d0] ss:$8 sps:$4 sm:$0xff]  }
 0x401   :  { %v11429_v18 = vadd.f32 %v4511_v17, %v3847_v14  ;;  %v4513_v19 = vpop.f32.mrb[25].mxu0  ;;  %v12772_v14 = vld [vmem:[%s17740_s5 + $0xa4] ss:$8 sps:$4 sm:$0xff]   ;;  %v12775_v17 = vld [vmem:[%s17740_s5 + $0xb4] ss:$8 sps:$4 sm:$0xff]  }
 0x402   :  { %v11430_v23 = vadd.f32 %v4513_v19, %v3851_v15  ;;  %v4515_v24 = vpop.f32.mrb[26].mxu0  ;;  %v12770_v15 = vld [vmem:[%s17740_s5 + $0xa0] ss:$8 sps:$4 sm:$0xff]   ;;  %v12778_v19 = vld [vmem:[%s17740_s5 + $0xc4] ss:$8 sps:$4 sm:$0xff]  }
 0x403   :  { %v4518_v25 = vmax.f32 %v11429_v18, 0.0  ;;  %v4516_v40 = vpop.f32.mrb[27].mxu0  ;;  %6320 = vmatpush1.bf16.msra.mxu1 %v12734_v29  ;;  %v12773_v18 = vld [vmem:[%s17740_s5 + $0xb0] ss:$8 sps:$4 sm:$0xff]   ;;  %v12781_v24 = vld [vmem:[%s17740_s5 + $0xd4] ss:$8 sps:$4 sm:$0xff]  }
 0x404   :  { %v4519_v26 = vmax.f32 %v11430_v23, 0.0  ;;  %6321 = vmatprep.subr.bf16.mxu1 %v12739_v32  ;;  %v12776_v23 = vld [vmem:[%s17740_s5 + $0xc0] ss:$8 sps:$4 sm:$0xff]   ;;  %v12779_v40 = vld [vmem:[%s17740_s5 + $0xd0] ss:$8 sps:$4 sm:$0xff]  }
 0x405   :  { %4520 = vst [vmem:[#allocation2 + $0x10] sm:$0x3] %v4518_v25  ;;  %v12787_v29 = vld [vmem:[%s17740_s5 + $0x1d4] ss:$8 sps:$4 sm:$0xff]   ;;  %v12790_v32 = vld [vmem:[%s17740_s5 + $0x1e4] ss:$8 sps:$4 sm:$0xff]  }
 0x406   :  { %4521 = vst.msk [vmem:[#allocation2 + $0x18] sm:$0x3] %vm1372_vm4, %v4519_v26  ;;  %v6104_v26 = vld [vmem:[#allocation2] sm:$0xfc]  ;;  %vm8184_vm4 = vcmask 326656  }
 0x407   :  { %6322 = vmatpush1.bf16.msra.mxu1 %v12737_v53  ;;  %v12788_v53 = vld [vmem:[%s17740_s5 + $0x1e0] ss:$8 sps:$4 sm:$0xff]  }
 0x408   :  { %6543 = vmatprep.subr.bf16.mxu1 %v12742_v58  ;;  %v12793_v58 = vld [vmem:[%s17740_s5 + $0x1f4] ss:$8 sps:$4 sm:$0xff]  }
 0x4cc   :  { %v6081_v36 = vpop.f32.mrb[28].mxu0 }
 0x4cd   :  { %v11433_v37 = vadd.f32 %v6081_v36, %v5417_v34  ;;  %v6083_v21 = vpop.f32.mrb[29].mxu0  ;;  %v12796_v34 = vld [vmem:[%s17740_s5 + $0x204] ss:$8 sps:$4 sm:$0xff]   ;;  %v12799_v36 = vld [vmem:[%s17740_s5 + $0x214] ss:$8 sps:$4 sm:$0xff]  }
 0x4ce   :  { %v11434_v61 = vadd.f32 %v6083_v21, %v5421_v35  ;;  %v6085_v38 = vpop.f32.mrb[30].mxu0  ;;  %v12794_v35 = vld [vmem:[%s17740_s5 + $0x200] ss:$8 sps:$4 sm:$0xff]   ;;  %v12802_v21 = vld [vmem:[%s17740_s5 + $0x224] ss:$8 sps:$4 sm:$0xff]  }
 0x4cf   :  { %v6088_v39 = vmax.f32 %v11433_v37, 0.0  ;;  %v6086_v41 = vpop.f32.mrb[31].mxu0  ;;  %v12797_v37 = vld [vmem:[%s17740_s5 + $0x210] ss:$8 sps:$4 sm:$0xff]   ;;  %v12805_v38 = vld [vmem:[%s17740_s5 + $0x234] ss:$8 sps:$4 sm:$0xff]  }
 0x4d0   :  { %v6089_v42 = vmax.f32 %v11434_v61, 0.0  ;;  %v12800_v61 = vld [vmem:[%s17740_s5 + $0x220] ss:$8 sps:$4 sm:$0xff]   ;;  %v12808_v41 = vld [vmem:[%s17740_s5 + $0x244] ss:$8 sps:$4 sm:$0xff]  }
 0x4d1   :  { %v6092_v43 = vrot.slane %v6088_v39, 4  ;;  %v12803_v39 = vld [vmem:[%s17740_s5 + $0x230] ss:$8 sps:$4 sm:$0xff]  }
 0x4d2   :  { %v6093_v44 = vrot.slane %v6089_v42, 4  ;;  %v12806_v42 = vld [vmem:[%s17740_s5 + $0x240] ss:$8 sps:$4 sm:$0xff]  }
 0x4d3   :  { %6096 = vst [vmem:[#allocation2 + $0x10] sm:$0x30] %v6092_v43  ;;  %v12811_v43 = vld [vmem:[%s17740_s5 + $0x254] ss:$8 sps:$4 sm:$0xff]  }
 0x4d4   :  { %6097 = vst.msk [vmem:[#allocation2 + $0x18] sm:$0x30] %vm2950_vm7, %v6093_v44  ;;  %v12809_v44 = vld [vmem:[%s17740_s5 + $0x250] ss:$8 sps:$4 sm:$0xff]   ;;  %vm8193_vm7 = vcmask 719872  }
 0x4da   :  { %v6100_v5 = vld [vmem:[#allocation2 + $0x10] sm:$0x3f] }
 0x4db   :  { %v6101_v46 = vld [vmem:[#allocation2 + $0x18] sm:$0x3f]  ;;  %v15643_v52 = vpack.c.bf16 %v6100_v5, %v6098_v50  ;;  %v6106_v25 = vld [vmem:[#allocation2 + $0x10] sm:$0xff]  ;;  %v12812_v5 = vld [vmem:[%s17740_s5 + $0x260] ss:$8 sps:$4 sm:$0xff]  }
 0x4dc   :  { %v6107_v48 = vld [vmem:[#allocation2 + $0x18] sm:$0xff]  ;;  %v15638_v20 = vpack.c.bf16 %v6101_v46, %v6099_v45  ;;  %v6108_v28 = vpack.c.bf16 %v6106_v25, %v6104_v26  ;;  %v12814_v45 = vld [vmem:[%s17740_s5 + $0x264] ss:$8 sps:$4 sm:$0xff]  }
 0x4dd   :  { %v6109_v51 = vpack.c.bf16 %v6107_v48, %v6105_v47  ;;  %v12817_v46 = vld [vmem:[%s17740_s5 + $0x274] ss:$8 sps:$4 sm:$0xff]   ;;  %v12815_v47 = vld [vmem:[%s17740_s5 + $0x270] ss:$8 sps:$4 sm:$0xff]   ;;  %v12820_v48 = vld [vmem:[%s17740_s5 + $0x284] ss:$8 sps:$4 sm:$0xff]  }
 0x4de   :  { %11049 = vmatprep.mubr.msk.bf16.mxu1 %vm6291_vm8, %v15638_v20  ;;  %v6397_v22 = vrot.slane %v6108_v28, 1  ;;  %v12821_v50 = vld [vmem:[%s17740_s5 + $0x290] ss:$8 sps:$4 sm:$0xff]  }
 0x4df   :  { %v6398_v55 = vrot.slane %v6109_v51, 1  ;;  %6328 = vmatmul.mubr.bf16.vlgmr.msra.gmra.mrb[16].mxu1 %v15643_v52 }
 0x4e0   :  { %6544 = vmatpush1.bf16.msra.mxu1 %v12740_v49  ;;  %v12823_v49 = vld [vmem:[%s17740_s5 + $0x294] ss:$8 sps:$4 sm:$0xff]  }
 0x4e1   :  { %11106 = vmatprep.mubr.msk.bf16.mxu1 %vm6291_vm8, %v6398_v55  ;;  %6545 = vmatprep.subr.bf16.mxu1 %v12745_v54 }
 0x4e4   :  { %6546 = vmatpush1.bf16.msra.mxu1 %v12743_v56 }
 0x4e5   :  { %6547 = vmatprep.subr.bf16.mxu1 %v12748_v57  ;;  %v6139_v57 = vld [vmem:[%s17741_s6] sm:$0x3]  ;;  %s13011_s6 = smov 112  }
 0x4e8   :  { %6548 = vmatpush1.bf16.msra.mxu1 %v12746_v59  ;;  %v6144_v59 = vrot.slane %v6139_v57, %v13488_v4 }
 0x4e9   :  { %6549 = vmatprep.subr.bf16.mxu1 %v12751_v60 }
 0x4ec   :  { %6550 = vmatpush1.bf16.msra.mxu1 %v12749_v62 }
 0x4ed   :  { %6551 = vmatprep.subr.bf16.mxu1 %v12754_v63 }
 0x4f0   :  { %6552 = vmatpush1.bf16.msra.mxu1 %v12752_v0 }
 0x4f1   :  { %6553 = vmatprep.subr.bf16.mxu1 %v12757_v7  ;;  %v6148_v7 = vrot.slane %v6139_v57, %v13496_v6  ;;  %v16310_v6 = vld [vmem:[%s17743_s9 + $0x1a0] ss:$8 sps:$4 sm:$0xff]  }
 0x4f4   :  { %6554 = vmatpush1.bf16.msra.mxu1 %v12755_v8 }
 0x4f5   :  { %6555 = vmatprep.subr.bf16.mxu1 %v12760_v9 }
 0x4f8   :  { %6556 = vmatpush1.bf16.msra.mxu1 %v12758_v10 }
 0x4f9   :  { %6557 = vmatprep.subr.bf16.mxu1 %v12763_v30 }
 0x4fc   :  { %6558 = vmatpush1.bf16.msra.mxu1 %v12761_v11 }
 0x4fd   :  { %6559 = vmatprep.subr.bf16.mxu1 %v12766_v12 }
 0x500   :  { %6560 = vmatpush1.bf16.msra.mxu1 %v12764_v3 }
 0x501   :  { %6561 = vmatprep.subr.bf16.mxu1 %v12769_v13 }
 0x504   :  { %6562 = vmatpush1.bf16.msra.mxu1 %v12767_v16 }
 0x505   :  { %6563 = vmatprep.subr.bf16.mxu1 %v12772_v14 }
 0x508   :  { %6564 = vmatpush1.bf16.msra.mxu1 %v12770_v15 }
 0x509   :  { %6565 = vmatprep.subr.bf16.mxu1 %v12775_v17 }
 0x50c   :  { %6566 = vmatpush1.bf16.msra.mxu1 %v12773_v18 }
 0x50d   :  { %6567 = vmatprep.subr.bf16.mxu1 %v12778_v19 }
 0x510   :  { %6568 = vmatpush1.bf16.msra.mxu1 %v12776_v23 }
 0x511   :  { %6569 = vmatprep.subr.bf16.mxu1 %v12781_v24 }
 0x514   :  { %6570 = vmatpush1.bf16.msra.mxu1 %v12779_v40 }
 0x515   :  { %6726 = vmatprep.subr.bf16.mxu1 %v12784_v27 }
 0x517   :  { %6576 = vmatmul.mubr.bf16.vlgmr.msra.gmra.mrb[20].mxu1 %v6397_v22 }
 0x518   :  { %6727 = vmatpush1.bf16.msra.mxu1 %v12782_v2  ;;  %11135 = vmatprep.mubr.msk.bf16.mxu1 %vm6291_vm8, %v15638_v20  ;;  %v12818_v20 = vld [vmem:[%s17740_s5 + $0x280] ss:$8 sps:$4 sm:$0xff]   ;;  %s13010_s5 = smov 80  }
 0x519   :  { %6728 = vmatprep.subr.bf16.mxu1 %v12787_v29 }
 0x51c   :  { %6729 = vmatpush1.bf16.msra.mxu1 %v12785_v31 }
 0x51d   :  { %6730 = vmatprep.subr.bf16.mxu1 %v12790_v32 }
 0x520   :  { %6731 = vmatpush1.bf16.msra.mxu1 %v12788_v53 }
 0x521   :  { %6732 = vmatprep.subr.bf16.mxu1 %v12793_v58 }
 0x524   :  { %6733 = vmatpush1.bf16.msra.mxu1 %v12791_v33 }
 0x525   :  { %6734 = vmatprep.subr.bf16.mxu1 %v12796_v34 }
 0x528   :  { %6735 = vmatpush1.bf16.msra.mxu1 %v12794_v35 }
 0x529   :  { %6736 = vmatprep.subr.bf16.mxu1 %v12799_v36 }
 0x52c   :  { %6737 = vmatpush1.bf16.msra.mxu1 %v12797_v37 }
 0x52d   :  { %6738 = vmatprep.subr.bf16.mxu1 %v12802_v21 }
 0x530   :  { %6739 = vmatpush1.bf16.msra.mxu1 %v12800_v61 }
 0x531   :  { %6740 = vmatprep.subr.bf16.mxu1 %v12805_v38 }
 0x534   :  { %6741 = vmatpush1.bf16.msra.mxu1 %v12803_v39 }
 0x535   :  { %6742 = vmatprep.subr.bf16.mxu1 %v12808_v41 }
 0x538   :  { %6743 = vmatpush1.bf16.msra.mxu1 %v12806_v42 }
 0x539   :  { %6744 = vmatprep.subr.bf16.mxu1 %v12811_v43 }
 0x53c   :  { %6745 = vmatpush1.bf16.msra.mxu1 %v12809_v44 }
 0x53d   :  { %6746 = vmatprep.subr.bf16.mxu1 %v12814_v45 }
 0x540   :  { %6747 = vmatpush1.bf16.msra.mxu1 %v12812_v5 }
 0x541   :  { %6748 = vmatprep.subr.bf16.mxu1 %v12817_v46 }
 0x544   :  { %6749 = vmatpush1.bf16.msra.mxu1 %v12815_v47 }
 0x545   :  { %6750 = vmatprep.subr.bf16.mxu1 %v12820_v48 }
 0x548   :  { %6751 = vmatpush1.bf16.msra.mxu1 %v12818_v20 }
 0x549   :  { %6752 = vmatprep.subr.bf16.mxu1 %v12823_v49 }
 0x54c   :  { %6753 = vmatpush1.bf16.msra.mxu1 %v12821_v50 }
 0x54f   :  { %6759 = vmatmul.mubr.bf16.vlgmr.msra.gmra.mrb[20].mxu1 %v15643_v52 }
 0x5b2   :  { %v6329_v51 = vpop.f32.mrb[16].mxu1 }
 0x5b3   :  { %v6331_v54 = vpop.f32.mrb[17].mxu1  ;;  %v15821_v63 = vadd.f32 %v6329_v51, %v6144_v59 }
 0x5b4   :  { %v6333_v55 = vpop.f32.mrb[18].mxu1  ;;  %v15832_v10 = vadd.f32 %v6331_v54, %v6148_v7 }
 0x5b5   :  { %v6335_v56 = vpop.f32.mrb[19].mxu1  ;;  %v15818_v60 = vadd.f32 %v6333_v55, %v6144_v59  ;;  %v6773_v0 = vmax.f32 %v15821_v63, 0.0 }
 0x5b6   :  { %v15830_v9 = vadd.f32 %v6335_v56, %v6148_v7  ;;  %v6774_v13 = vmax.f32 %v15832_v10, 0.0 }
 0x5b7   :  { %v6775_v62 = vmax.f32 %v15818_v60, 0.0 }
 0x5b8   :  { %v6776_v11 = vmax.f32 %v15830_v9, 0.0  ;;  %v6790_v26 = vsel %vm6291_vm8, %v6774_v13, 0.0 }
 0x5b9   :  { %v6782_v52 = vsel %vm6781_vm9, %v6775_v62, 0.0 }
 0x5ba   :  { %v6783_v8 = vadd.f32 %v6782_v52, %v6773_v0  ;;  %v6792_v23 = vsel %vm6791_vm10, %v6776_v11, 0.0 }
 0x5bb   :  { %v6793_v2 = vadd.f32 %v6792_v23, %v6790_v26 }
 0x5bc   :  { %v6784_v30 = vrot.slane %v6783_v8, 4 }
 0x5bd   :  { %v6794_v36 = vrot.slane %v6793_v2, 4 }
 0x5be   :  { %v6785_v19 = vadd.f32 %v6784_v30, %v6783_v8 }
 0x5bf   :  { %v6795_v39 = vadd.f32 %v6794_v36, %v6793_v2 }
 0x5c0   :  { %v6786_v29 = vrot.slane %v6785_v19, 2 }
 0x5c1   :  { %v6796_v45 = vrot.slane %v6795_v39, 2 }
 0x5c2   :  { %v6787_v35 = vadd.f32 %v6786_v29, %v6785_v19 }
 0x5c3   :  { %v6797_v48 = vadd.f32 %v6796_v45, %v6795_v39 }
 0x5c4   :  { %v6788_v38 = vrot.slane %v6787_v35, 1 }
 0x5c5   :  { %v6798_v49 = vrot.slane %v6797_v48, 1 }
 0x5c6   :  { %v6789_v44 = vadd.f32 %v6788_v38, %v6787_v35 }
 0x5c7   :  { %v6799_v51 = vadd.f32 %v6798_v49, %v6797_v48 }
 0x622   :  { %v6760_v12 = vpop.f32.mrb[20].mxu1 }
 0x623   :  { %v6762_v3 = vpop.f32.mrb[21].mxu1  ;;  %v15836_v16 = vadd.f32 %v6760_v12, %v6144_v59 }
 0x624   :  { %v15838_v14 = vadd.f32 %v6762_v3, %v6148_v7  ;;  %v6764_v15 = vpop.f32.mrb[22].mxu1 }
 0x625   :  { %v15840_v17 = vadd.f32 %v6764_v15, %v6144_v59  ;;  %v6766_v18 = vpop.f32.mrb[23].mxu1  ;;  %v6777_v28 = vmax.f32 %v15836_v16, 0.0 }
 0x626   :  { %v6778_v24 = vmax.f32 %v15838_v14, 0.0  ;;  %v15846_v25 = vadd.f32 %v6766_v18, %v6148_v7 }
 0x627   :  { %v6779_v40 = vmax.f32 %v15840_v17, 0.0 }
 0x628   :  { %v6780_v27 = vmax.f32 %v15846_v25, 0.0  ;;  %v6808_v31 = vsel %vm6291_vm8, %v6778_v24, 0.0 }
 0x629   :  { %v6800_v22 = vsel %vm6781_vm9, %v6779_v40, 0.0 }
 0x62a   :  { %v6801_v32 = vadd.f32 %v6800_v22, %v6777_v28  ;;  %v6809_v53 = vsel %vm6791_vm10, %v6780_v27, 0.0 }
 0x62b   :  { %v6810_v58 = vadd.f32 %v6809_v53, %v6808_v31 }
 0x62c   :  { %v6802_v33 = vrot.slane %v6801_v32, 4 }
 0x62d   :  { %v6811_v34 = vrot.slane %v6810_v58, 4 }
 0x62e   :  { %v6803_v37 = vadd.f32 %v6802_v33, %v6801_v32 }
 0x62f   :  { %v6812_v61 = vadd.f32 %v6811_v34, %v6810_v58 }
 0x630   :  { %v6804_v21 = vrot.slane %v6803_v37, 2 }
 0x631   :  { %v6813_v43 = vrot.slane %v6812_v61, 2 }
 0x632   :  { %v6805_v41 = vadd.f32 %v6804_v21, %v6803_v37 }
 0x633   :  { %v6814_v47 = vadd.f32 %v6813_v43, %v6812_v61 }
 0x634   :  { %v6806_v42 = vrot.slane %v6805_v41, 1 }
 0x635   :  { %v6815_v20 = vrot.slane %v6814_v47, 1 }
 0x636   :  { %v6807_v5 = vadd.f32 %v6806_v42, %v6805_v41 }
 0x637   :  { %v6816_v50 = vadd.f32 %v6815_v20, %v6814_v47 }
 0x638   :  { %v6817_v46 = vadd.f32 %v6807_v5, %v6789_v44 }
 0x639   :  { %v6818_v54 = vadd.f32 %v6816_v50, %v6799_v51 }
 0x63a   :  { %6828 = vrot.lane.b32.xlu1 %v6817_v46, %s13010_s5  ;;  %6820 = vrot.lane.b32.xlu0 %v6817_v46, %s13011_s6 }
 0x63e   :  { %6832 = vrot.lane.b32.xlu1 %v6817_v46, %s13012_s3  ;;  %6824 = vrot.lane.b32.xlu0 %v6817_v46, %s13013_s29 }
 0x642   :  { %6840 = vrot.lane.b32.xlu1 %v6817_v46, %s13014_s4  ;;  %6836 = vrot.lane.b32.xlu0 %v6817_v46, %s13015_s30 }
 0x646   :  { %6850 = vrot.lane.b32.xlu1 %v6818_v54, %s13011_s6  ;;  %6844 = vrot.lane.b32.xlu0 %v6817_v46, %s13016_s1 }
 0x64a   :  { %6858 = vrot.lane.b32.xlu1 %v6818_v54, %s13010_s5  ;;  %6854 = vrot.lane.b32.xlu0 %v6818_v54, %s13013_s29 }
 0x64e   :  { %6866 = vrot.lane.b32.xlu1 %v6818_v54, %s13015_s30  ;;  %6862 = vrot.lane.b32.xlu0 %v6818_v54, %s13012_s3 }
 0x6ac   :  { %v6829_v55 = vpop.permute.xlu1 %6828  ;;  %v6821_v56 = vpop.permute.xlu0 %6820 }
 0x6ad   :  { %v6823_v57 = vadd.f32 %v6821_v56, %v6817_v46 }
 0x6b0   :  { %v6833_v59 = vpop.permute.xlu1 %6832  ;;  %v6825_v52 = vpop.permute.xlu0 %6824 }
 0x6b1   :  { %v6827_v7 = vadd.f32 %v6825_v52, %v6823_v57 }
 0x6b3   :  { %v6831_v8 = vadd.f32 %v6829_v55, %v6827_v7 }
 0x6b4   :  { %v6841_v30 = vpop.permute.xlu1 %6840  ;;  %v6837_v12 = vpop.permute.xlu0 %6836 }
 0x6b5   :  { %v6835_v3 = vadd.f32 %v6833_v59, %v6831_v8 }
 0x6b7   :  { %v6839_v15 = vadd.f32 %v6837_v12, %v6835_v3 }
 0x6b8   :  { %v6845_v18 = vpop.permute.xlu0 %6844  ;;  %v6851_v23 = vpop.permute.xlu1 %6850 }
 0x6b9   :  { %v6843_v19 = vadd.f32 %v6841_v30, %v6839_v15 }
 0x6bb   :  { %v6847_v26 = vadd.f32 %v6845_v18, %v6843_v19 }
 0x6bc   :  { %v6855_v22 = vpop.permute.xlu0 %6854  ;;  %v6859_v31 = vpop.permute.xlu1 %6858 }
 0x6bd   :  { %v6848_v2 = vadd.f32 %v6847_v26, %v6818_v54 }
 0x6bf   :  { %v6853_v29 = vadd.f32 %v6851_v23, %v6848_v2 }
 0x6c0   :  { %v6863_v58 = vpop.permute.xlu0 %6862  ;;  %v6867_v34 = vpop.permute.xlu1 %6866 }
 0x6c1   :  { %v6857_v32 = vadd.f32 %v6855_v22, %v6853_v29 }
 0x6c3   :  { %v6861_v53 = vadd.f32 %v6859_v31, %v6857_v32 }
 0x6c5   :  { %v6865_v33 = vadd.f32 %v6863_v58, %v6861_v53 }
 0x6c7   :  { %v6869_v35 = vadd.f32 %v6867_v34, %v6865_v33 }
 0x6c9   :  { %v6870_v36 = vmul.f32 0.0025510204, %v6869_v35 }
 0x6cb   :  { %6875 = vrot.lane.b32.xlu1 %v6870_v36, %s13014_s4  ;;  %6872 = vrot.lane.b32.xlu0 %v6870_v36, %s13016_s1 }
 0x6cf   :  { %6881 = vrot.lane.b32.xlu1 %v6870_v36, %s13012_s3  ;;  %6878 = vrot.lane.b32.xlu0 %v6870_v36, %s13015_s30 }
 0x6d3   :  { %6887 = vrot.lane.b32.xlu1 %v6870_v36, %s13013_s29  ;;  %6884 = vrot.lane.b32.xlu0 %v6870_v36, %s13010_s5 }
 0x6d7   :  { %6890 = vrot.lane.b32.xlu0 %v6870_v36, %s13011_s6 }
 0x73d   :  { %v6876_v37 = vpop.permute.xlu1 %6875  ;;  %v6873_v21 = vpop.permute.xlu0 %6872 }
 0x73e   :  { %v6894_v61 = vsel %vm6893_vm11, %v6870_v36, %v6873_v21 }
 0x73f   :  { %v6895_v39 = vsel %vm1201_vm3, %v6894_v61, %v6876_v37 }
 0x741   :  { %v6882_v38 = vpop.permute.xlu1 %6881  ;;  %v6879_v41 = vpop.permute.xlu0 %6878 }
 0x742   :  { %v6897_v42 = vsel %vm17776_vm12, %v6895_v39, %v6879_v41 }
 0x743   :  { %v6899_v44 = vsel %vm6898_vm13, %v6897_v42, %v6882_v38 }
 0x745   :  { %v6888_v43 = vpop.permute.xlu1 %6887  ;;  %v6885_v45 = vpop.permute.xlu0 %6884 }
 0x746   :  { %v6901_v5 = vsel %vm6900_vm14, %v6899_v44, %v6885_v45  ;;  %v15995_v45 = vld [vmem:[%s17743_s9 + $0xe0] ss:$8 sps:$4 sm:$0xff]  }
 0x747   :  { %v6912_v46 = vrot.slane %v6901_v5, %v13488_v4  ;;  %v6902_v47 = vsel %vm6291_vm8, %v6901_v5, %v6888_v43  ;;  %v15974_v43 = vld [vmem:[%s17742_s8] sm:$0x1]  ;;  %v16000_v5 = vld [vmem:[%s17743_s9 + $0xe4] ss:$8 sps:$4 sm:$0xff]   ;;  %s13018_s8 = smov 104  }
 0x748   :  { %v15982_v44 = vrot.slane %v15974_v43, %v13488_v4  ;;  %7320 = vmatprep.subr.bf16.mxu1 %v16000_v5 }
 0x749   :  { %v15893_v48 = vsub.f32 %v6774_v13, %v6912_v46  ;;  %v15897_v20 = vsub.f32 %v6776_v11, %v6912_v46  ;;  %v15901_v49 = vsub.f32 %v6778_v24, %v6912_v46  ;;  %v15905_v50 = vsub.f32 %v6780_v27, %v6912_v46  ;;  %v6891_v51 = vpop.permute.xlu0 %6890  ;;  %v16005_v46 = vld [vmem:[%s17743_s9] ss:$8 sps:$4 sm:$0xff]   ;;  %7321 = vmatpush1.bf16.msra.mxu1 %v15995_v45 }
 0x74a   :  { %v6904_v54 = vsel %vm6903_vm15, %v6902_v47, %v6891_v51  ;;  %v16010_v47 = vld [vmem:[%s17743_s9 + $0x4] ss:$8 sps:$4 sm:$0xff]   ;;  %v16016_v51 = vld [vmem:[%s17743_s9 + $0xf0] ss:$8 sps:$4 sm:$0xff]  }
 0x74b   :  { %v6922_v10 = vmul.f32 %v15893_v48, %v15893_v48  ;;  %v6924_v13 = vmul.f32 %v15897_v20, %v15897_v20  ;;  %v6943_v9 = vmul.f32 %v15901_v49, %v15901_v49  ;;  %v6945_v11 = vmul.f32 %v15905_v50, %v15905_v50  ;;  %7563 = vmatprep.subr.bf16.mxu0 %v16010_v47 }
 0x74c   :  { %v6908_v14 = vrot.slane %v6904_v54, %v13488_v4  ;;  %v16021_v54 = vld [vmem:[%s17743_s9 + $0xf4] ss:$8 sps:$4 sm:$0xff]   ;;  %7564 = vmatpush1.bf16.msra.mxu0 %v16005_v46 }
 0x74d   :  { %v6933_v24 = vsel %vm6291_vm8, %v6922_v10, 0.0  ;;  %v6934_v25 = vsel %vm6791_vm10, %v6924_v13, 0.0  ;;  %v6954_v56 = vsel %vm6291_vm8, %v6943_v9, 0.0  ;;  %v6955_v57 = vsel %vm6791_vm10, %v6945_v11, 0.0  ;;  %v16028_v10 = vld [vmem:[%s17743_s9 + $0x10] ss:$8 sps:$4 sm:$0xff]   ;;  %7322 = vmatprep.subr.bf16.mxu1 %v16021_v54 }
 0x74e   :  { %v15921_v27 = vsub.f32 %v6773_v0, %v6908_v14  ;;  %v15925_v55 = vsub.f32 %v6775_v62, %v6908_v14  ;;  %v15931_v59 = vsub.f32 %v6777_v28, %v6908_v14  ;;  %v15935_v52 = vsub.f32 %v6779_v40, %v6908_v14  ;;  %v16035_v13 = vld [vmem:[%s17743_s9 + $0x14] ss:$8 sps:$4 sm:$0xff]   ;;  %v16040_v9 = vld [vmem:[%s17743_s9 + $0x104] ss:$8 sps:$4 sm:$0xff]   ;;  %v16046_v11 = vld [vmem:[%s17743_s9 + $0x100] ss:$8 sps:$4 sm:$0xff]   ;;  %7323 = vmatpush1.bf16.msra.mxu1 %v16016_v51 }
 0x74f   :  { %v6935_v7 = vadd.f32 %v6934_v25, %v6933_v24  ;;  %v6956_v16 = vadd.f32 %v6955_v57, %v6954_v56  ;;  %7565 = vmatprep.subr.bf16.mxu0 %v16035_v13  ;;  %v16051_v14 = vld [vmem:[%s17743_s9 + $0x24] ss:$8 sps:$4 sm:$0xff]   ;;  %v16057_v24 = vld [vmem:[%s17743_s9 + $0x20] ss:$8 sps:$4 sm:$0xff]   ;;  %7324 = vmatprep.subr.bf16.mxu1 %v16040_v9  ;;  %v16064_v25 = vld [vmem:[%s17743_s9 + $0x114] ss:$8 sps:$4 sm:$0xff]  }
 0x750   :  { %v6921_v63 = vmul.f32 %v15921_v27, %v15921_v27  ;;  %v6923_v60 = vmul.f32 %v15925_v55, %v15925_v55  ;;  %v6942_v62 = vmul.f32 %v15931_v59, %v15931_v59  ;;  %v6944_v0 = vmul.f32 %v15935_v52, %v15935_v52  ;;  %7566 = vmatpush1.bf16.msra.mxu0 %v16028_v10  ;;  %v16070_v56 = vld [vmem:[%s17743_s9 + $0x34] ss:$8 sps:$4 sm:$0xff]   ;;  %v16075_v57 = vld [vmem:[%s17743_s9 + $0x110] ss:$8 sps:$4 sm:$0xff]  }
 0x751   :  { %v6936_v12 = vrot.slane %v6935_v7, 4  ;;  %v6957_v3 = vrot.slane %v6956_v16, 4  ;;  %7567 = vmatprep.subr.bf16.mxu0 %v16051_v14 }
 0x752   :  { %v6925_v28 = vsel %vm6781_vm9, %v6923_v60, 0.0  ;;  %v6946_v17 = vsel %vm6781_vm9, %v6944_v0, 0.0  ;;  %7325 = vmatpush1.bf16.msra.mxu1 %v16046_v11  ;;  %v16088_v60 = vld [vmem:[%s17743_s9 + $0x124] ss:$8 sps:$4 sm:$0xff]   ;;  %v16099_v0 = vld [vmem:[%s17743_s9 + $0x120] ss:$8 sps:$4 sm:$0xff]  }
 0x753   :  { %v6926_v8 = vadd.f32 %v6925_v28, %v6921_v63  ;;  %v6947_v40 = vadd.f32 %v6946_v17, %v6942_v62  ;;  %v6937_v26 = vadd.f32 %v6936_v12, %v6935_v7  ;;  %v6958_v2 = vadd.f32 %v6957_v3, %v6956_v16  ;;  %v16081_v63 = vld [vmem:[%s17743_s9 + $0x30] ss:$8 sps:$4 sm:$0xff]   ;;  %7326 = vmatprep.subr.bf16.mxu1 %v16064_v25  ;;  %v16094_v62 = vld [vmem:[%s17743_s9 + $0x44] ss:$8 sps:$4 sm:$0xff]   ;;  %v16105_v7 = vld [vmem:[%s17743_s9 + $0x40] ss:$8 sps:$4 sm:$0xff]  }
 0x754   :  { %7568 = vmatpush1.bf16.msra.mxu0 %v16057_v24  ;;  %v16112_v16 = vld [vmem:[%s17743_s9 + $0x134] ss:$8 sps:$4 sm:$0xff]   ;;  %v16118_v28 = vld [vmem:[%s17743_s9 + $0x130] ss:$8 sps:$4 sm:$0xff]   ;;  %v16147_v12 = vld [vmem:[%s17743_s9 + $0x140] ss:$8 sps:$4 sm:$0xff]  }
 0x755   :  { %v6927_v30 = vrot.slane %v6926_v8, 4  ;;  %v6948_v15 = vrot.slane %v6947_v40, 4  ;;  %v6938_v53 = vrot.slane %v6937_v26, 2  ;;  %v6959_v58 = vrot.slane %v6958_v2, 2  ;;  %7569 = vmatprep.subr.bf16.mxu0 %v16070_v56  ;;  %v16128_v17 = vld [vmem:[%s17743_s9 + $0x50] ss:$8 sps:$4 sm:$0xff]  }
 0x756   :  { %7327 = vmatpush1.bf16.msra.mxu1 %v16075_v57  ;;  %17781 = vst [vmem:[#allocation10_spill] sm:$0xff] %v16128_v17  ;;  %v16152_v3 = vld [vmem:[%s17743_s9 + $0x60] ss:$8 sps:$4 sm:$0xff]  }
 0x757   :  { %v6928_v18 = vadd.f32 %v6927_v30, %v6926_v8  ;;  %v6949_v19 = vadd.f32 %v6948_v15, %v6947_v40  ;;  %v6939_v36 = vadd.f32 %v6938_v53, %v6937_v26  ;;  %v6960_v37 = vadd.f32 %v6959_v58, %v6958_v2  ;;  %7328 = vmatprep.subr.bf16.mxu1 %v16088_v60  ;;  %v16123_v8 = vld [vmem:[%s17743_s9 + $0x54] ss:$8 sps:$4 sm:$0xff]   ;;  %v16133_v40 = vld [vmem:[%s17743_s9 + $0x144] ss:$8 sps:$4 sm:$0xff]  }
 0x758   :  { %7570 = vmatpush1.bf16.msra.mxu0 %v16081_v63  ;;  %17780 = vst [vmem:[#allocation9_spill] sm:$0xff] %v16123_v8  ;;  %v16139_v30 = vld [vmem:[%s17743_s9 + $0x64] ss:$8 sps:$4 sm:$0xff]   ;;  %17783 = vst [vmem:[#allocation12_spill] sm:$0xff] %v16152_v3 }
 0x759   :  { %v6929_v23 = vrot.slane %v6928_v18, 2  ;;  %v6950_v22 = vrot.slane %v6949_v19, 2  ;;  %v6940_v61 = vrot.slane %v6939_v36, 1  ;;  %v6961_v38 = vrot.slane %v6960_v37, 1  ;;  %7571 = vmatprep.subr.bf16.mxu0 %v16094_v62  ;;  %17782 = vst [vmem:[#allocation11_spill] sm:$0xff] %v16139_v30 }
 0x75a   :  { %7329 = vmatpush1.bf16.msra.mxu1 %v16099_v0 }
 0x75b   :  { %v6930_v29 = vadd.f32 %v6929_v23, %v6928_v18  ;;  %v6951_v31 = vadd.f32 %v6950_v22, %v6949_v19  ;;  %v6941_v39 = vadd.f32 %v6940_v61, %v6939_v36  ;;  %v6962_v41 = vadd.f32 %v6961_v38, %v6960_v37  ;;  %7330 = vmatprep.subr.bf16.mxu1 %v16112_v16 }
 0x75c   :  { %7572 = vmatpush1.bf16.msra.mxu0 %v16105_v7 }
 0x75d   :  { %v6931_v32 = vrot.slane %v6930_v29, 1  ;;  %v6952_v33 = vrot.slane %v6951_v31, 1  ;;  %v15961_v42 = vadd.f32 %v6962_v41, %v6941_v39  ;;  %7573 = vmatprep.subr.bf16.mxu0 %v16123_v8 }
 0x75e   :  { %7331 = vmatpush1.bf16.msra.mxu1 %v16118_v28 }
 0x75f   :  { %v6932_v34 = vadd.f32 %v6931_v32, %v6930_v29  ;;  %v6953_v35 = vadd.f32 %v6952_v33, %v6951_v31  ;;  %7332 = vmatprep.subr.bf16.mxu1 %v16133_v40 }
 0x760   :  { %7574 = vmatpush1.bf16.msra.mxu0 %v16128_v17 }
 0x761   :  { %v15947_v21 = vadd.f32 %v6953_v35, %v6932_v34  ;;  %7575 = vmatprep.subr.bf16.mxu0 %v16139_v30 }
 0x762   :  { %7333 = vmatpush1.bf16.msra.mxu1 %v16147_v12 }
 0x763   :  { %6970 = vrot.lane.b32.xlu0 %v15947_v21, %s13013_s29  ;;  %6966 = vrot.lane.b32.xlu1 %v15947_v21, %s13011_s6 }
 0x764   :  { %7576 = vmatpush1.bf16.msra.mxu0 %v16152_v3 }
 0x767   :  { %6978 = vrot.lane.b32.xlu0 %v15947_v21, %s13012_s3  ;;  %6974 = vrot.lane.b32.xlu1 %v15947_v21, %s13010_s5 }
 0x76b   :  { %6986 = vrot.lane.b32.xlu0 %v15947_v21, %s13014_s4  ;;  %6982 = vrot.lane.b32.xlu1 %v15947_v21, %s13015_s30 }
 0x76f   :  { %6996 = vrot.lane.b32.xlu0 %v15961_v42, %s13011_s6  ;;  %6990 = vrot.lane.b32.xlu1 %v15947_v21, %s13016_s1 }
 0x773   :  { %7004 = vrot.lane.b32.xlu0 %v15961_v42, %s13010_s5  ;;  %7000 = vrot.lane.b32.xlu1 %v15961_v42, %s13013_s29 }
 0x777   :  { %7012 = vrot.lane.b32.xlu0 %v15961_v42, %s13015_s30  ;;  %7008 = vrot.lane.b32.xlu1 %v15961_v42, %s13012_s3 }
 0x77b   :  { %7060 = vrot.lane.b32.xlu0 %v15982_v44, %s13016_s1 }
 0x77f   :  { %7063 = vrot.lane.b32.xlu0 %v15982_v44, %s13014_s4 }
 0x783   :  { %7066 = vrot.lane.b32.xlu0 %v15982_v44, %s13015_s30 }
 0x787   :  { %7069 = vrot.lane.b32.xlu0 %v15982_v44, %s13012_s3 }
 0x7d5   :  { %v6971_v15 = vpop.permute.xlu0 %6970  ;;  %v6967_v18 = vpop.permute.xlu1 %6966 }
 0x7d6   :  { %v6969_v19 = vadd.f32 %v6967_v18, %v15947_v21 }
 0x7d8   :  { %v6973_v23 = vadd.f32 %v6971_v15, %v6969_v19 }
 0x7d9   :  { %v6979_v26 = vpop.permute.xlu0 %6978  ;;  %v6975_v2 = vpop.permute.xlu1 %6974 }
 0x7da   :  { %v6977_v22 = vadd.f32 %v6975_v2, %v6973_v23  ;;  %v16165_v2 = vld [vmem:[%s17743_s9 + $0x150] ss:$8 sps:$4 sm:$0xff]  }
 0x7dc   :  { %v6981_v29 = vadd.f32 %v6979_v26, %v6977_v22  ;;  %v16175_v22 = vld [vmem:[%s17743_s9 + $0x70] ss:$8 sps:$4 sm:$0xff]  }
 0x7dd   :  { %v6987_v31 = vpop.permute.xlu0 %6986  ;;  %v6983_v32 = vpop.permute.xlu1 %6982  ;;  %17784 = vst [vmem:[#allocation13_spill] sm:$0xff] %v16175_v22 }
 0x7de   :  { %v6985_v53 = vadd.f32 %v6983_v32, %v6981_v29  ;;  %v16180_v29 = vld [vmem:[%s17743_s9 + $0x74] ss:$8 sps:$4 sm:$0xff]   ;;  %v16194_v32 = vld [vmem:[%s17743_s9 + $0x164] ss:$8 sps:$4 sm:$0xff]  }
 0x7df   :  { %17785 = vst [vmem:[#allocation14_spill] sm:$0xff] %v16180_v29  ;;  %7577 = vmatprep.subr.bf16.mxu0 %v16180_v29 }
 0x7e0   :  { %v6989_v58 = vadd.f32 %v6987_v31, %v6985_v53  ;;  %7578 = vmatpush1.bf16.msra.mxu0 %v16175_v22  ;;  %v16189_v31 = vld [vmem:[%s17743_s9 + $0x160] ss:$8 sps:$4 sm:$0xff]  }
 0x7e1   :  { %v6997_v33 = vpop.permute.xlu0 %6996  ;;  %v6991_v34 = vpop.permute.xlu1 %6990  ;;  %v16199_v53 = vld [vmem:[%s17743_s9 + $0x80] ss:$8 sps:$4 sm:$0xff]  }
 0x7e2   :  { %v6993_v35 = vadd.f32 %v6991_v34, %v6989_v58  ;;  %17786 = vst [vmem:[#allocation15_spill] sm:$0xff] %v16199_v53  ;;  %v7017_v58 = vld [vmem:[%s17744_s7] sm:$0x1]  ;;  %s13021_s7 = smov 56  }
 0x7e4   :  { %v6994_v36 = vadd.f32 %v6993_v35, %v15961_v42  ;;  %v16170_v42 = vld [vmem:[%s17743_s9 + $0x154] ss:$8 sps:$4 sm:$0xff]   ;;  %v16215_v35 = vld [vmem:[%s17743_s9 + $0x170] ss:$8 sps:$4 sm:$0xff]  }
 0x7e5   :  { %v7001_v37 = vpop.permute.xlu1 %7000  ;;  %v7005_v38 = vpop.permute.xlu0 %7004  ;;  %7334 = vmatprep.subr.bf16.mxu1 %v16170_v42 }
 0x7e6   :  { %v6999_v61 = vadd.f32 %v6997_v33, %v6994_v36  ;;  %7335 = vmatpush1.bf16.msra.mxu1 %v16165_v2  ;;  %v16207_v33 = vld [vmem:[%s17743_s9 + $0x84] ss:$8 sps:$4 sm:$0xff]   ;;  %v16220_v36 = vld [vmem:[%s17743_s9 + $0x174] ss:$8 sps:$4 sm:$0xff]  }
 0x7e7   :  { %17787 = vst [vmem:[#allocation16_spill] sm:$0xff] %v16207_v33  ;;  %7336 = vmatprep.subr.bf16.mxu1 %v16194_v32  ;;  %7579 = vmatprep.subr.bf16.mxu0 %v16207_v33 }
 0x7e8   :  { %v7003_v39 = vadd.f32 %v7001_v37, %v6999_v61  ;;  %7580 = vmatpush1.bf16.msra.mxu0 %v16199_v53  ;;  %v16228_v61 = vld [vmem:[%s17743_s9 + $0x94] ss:$8 sps:$4 sm:$0xff]  }
 0x7e9   :  { %v7009_v21 = vpop.permute.xlu1 %7008  ;;  %v7013_v18 = vpop.permute.xlu0 %7012  ;;  %17788 = vst [vmem:[#allocation17_spill] sm:$0xff] %v16228_v61  ;;  %7581 = vmatprep.subr.bf16.mxu0 %v16228_v61 }
 0x7ea   :  { %v7007_v41 = vadd.f32 %v7005_v38, %v7003_v39  ;;  %7337 = vmatpush1.bf16.msra.mxu1 %v16189_v31  ;;  %v16234_v38 = vld [vmem:[%s17743_s9 + $0x90] ss:$8 sps:$4 sm:$0xff]  }
 0x7eb   :  { %7338 = vmatprep.subr.bf16.mxu1 %v16220_v36  ;;  %17789 = vst [vmem:[#allocation18_spill] sm:$0xff] %v16234_v38 }
 0x7ec   :  { %v7011_v15 = vadd.f32 %v7009_v21, %v7007_v41  ;;  %v16245_v41 = vld [vmem:[%s17743_s9 + $0x184] ss:$8 sps:$4 sm:$0xff]   ;;  %7582 = vmatpush1.bf16.msra.mxu0 %v16234_v38 }
 0x7ed   :  { %v16250_v21 = vld [vmem:[%s17743_s9 + $0xa4] ss:$8 sps:$4 sm:$0xff]  }
 0x7ee   :  { %v7015_v19 = vadd.f32 %v7013_v18, %v7011_v15  ;;  %7339 = vmatpush1.bf16.msra.mxu1 %v16215_v35  ;;  %17790 = vst [vmem:[#allocation19_spill] sm:$0xff] %v16250_v21  ;;  %v16256_v15 = vld [vmem:[%s17743_s9 + $0x180] ss:$8 sps:$4 sm:$0xff]   ;;  %7583 = vmatprep.subr.bf16.mxu0 %v16250_v21  ;;  %v16340_v21 = vld [vmem:[%s17743_s9 + $0xd0] ss:$8 sps:$4 sm:$0xff]  }
 0x7ef   :  { %v16261_v18 = vld [vmem:[%s17743_s9 + $0xa0] ss:$8 sps:$4 sm:$0xff]   ;;  %7340 = vmatprep.subr.bf16.mxu1 %v16245_v41  ;;  %17797 = vst [vmem:[#allocation26_spill] sm:$0xff] %v16340_v21  ;;  %v16347_v38 = vld [vmem:[%s17743_s9 + $0x1c4] ss:$8 sps:$4 sm:$0xff]  }
 0x7f0   :  { %v7016_v23 = vmul.f32 0.0025510204, %v7015_v19  ;;  %17791 = vst [vmem:[#allocation20_spill] sm:$0xff] %v16261_v18  ;;  %v16269_v19 = vld [vmem:[%s17743_s9 + $0x190] ss:$8 sps:$4 sm:$0xff]   ;;  %7584 = vmatpush1.bf16.msra.mxu0 %v16261_v18  ;;  %17798 = vst [vmem:[#allocation27_spill] sm:$0xff] %v16347_v38 }
 0x7f1   :  { %v16329_v18 = vld [vmem:[%s17743_s9 + $0xd4] ss:$8 sps:$4 sm:$0xff]  }
 0x7f2   :  { %v7018_v26 = vadd.f32 1e-05, %v7016_v23  ;;  %7341 = vmatpush1.bf16.msra.mxu1 %v16256_v15  ;;  %v16274_v23 = vld [vmem:[%s17743_s9 + $0x194] ss:$8 sps:$4 sm:$0xff]   ;;  %17796 = vst [vmem:[#allocation25_spill] sm:$0xff] %v16329_v18 }
 0x7f3   :  { %7342 = vmatprep.subr.bf16.mxu1 %v16274_v23 }
 0x7f4   :  { %12992 = vrsqrt.f32 %v7018_v26  ;;  %v16282_v26 = vld [vmem:[%s17743_s9 + $0xb4] ss:$8 sps:$4 sm:$0xff]  }
 0x7f5   :  { %17792 = vst [vmem:[#allocation21_spill] sm:$0xff] %v16282_v26  ;;  %7585 = vmatprep.subr.bf16.mxu0 %v16282_v26  ;;  %v16315_v26 = vld [vmem:[%s17743_s9 + $0xc0] ss:$8 sps:$4 sm:$0xff]  }
 0x7f6   :  { %7343 = vmatpush1.bf16.msra.mxu1 %v16269_v19  ;;  %17795 = vst [vmem:[#allocation24_spill] sm:$0xff] %v16315_v26 }
 0x7fe   :  { %v12993_v34 = vpop.eup %12992 }
 0x7ff   :  { %v16222_v37 = vmul.f32 %v12993_v34, %v7017_v58  ;;  %v16289_v58 = vld [vmem:[%s17743_s9 + $0xb0] ss:$8 sps:$4 sm:$0xff]   ;;  %v16299_v34 = vld [vmem:[%s17743_s9 + $0x1a4] ss:$8 sps:$4 sm:$0xff]  }
 0x800   :  { %17793 = vst [vmem:[#allocation22_spill] sm:$0xff] %v16289_v58  ;;  %7586 = vmatpush1.bf16.msra.mxu0 %v16289_v58  ;;  %7344 = vmatprep.subr.bf16.mxu1 %v16299_v34  ;;  %v16324_v58 = vld [vmem:[%s17743_s9 + $0x1b4] ss:$8 sps:$4 sm:$0xff]  }
 0x801   :  { %v7025_v39 = vrot.slane %v16222_v37, %v13488_v4  ;;  %7587 = vmatprep.subr.bf16.mxu0 %v16304_v1  ;;  %7345 = vmatpush1.bf16.msra.mxu1 %v16310_v6  ;;  %v16335_v1 = vld [vmem:[%s17743_s9 + $0x1b0] ss:$8 sps:$4 sm:$0xff]  }
 0x802   :  { %7346 = vmatprep.subr.bf16.mxu1 %v16324_v58 }
 0x803   :  { %7029 = vrot.lane.b32.xlu0 %v7025_v39, %s13014_s4  ;;  %7026 = vrot.lane.b32.xlu1 %v7025_v39, %s13016_s1 }
 0x804   :  { %7588 = vmatpush1.bf16.msra.mxu0 %v16315_v26 }
 0x805   :  { %7589 = vmatprep.subr.bf16.mxu0 %v16329_v18  ;;  %7347 = vmatpush1.bf16.msra.mxu1 %v16335_v1  ;;  %v7061_v18 = vpop.permute.xlu0 %7060 }
 0x806   :  { %7793 = vmatprep.subr.bf16.mxu1 %v16000_v5  ;;  %v7081_v33 = vsel %vm6893_vm11, %v15974_v43, %v7061_v18 }
 0x807   :  { %7032 = vrot.lane.b32.xlu1 %v7025_v39, %s13015_s30  ;;  %7072 = vrot.lane.b32.xlu0 %v15982_v44, %s13010_s5 }
 0x808   :  { %7590 = vmatpush1.bf16.msra.mxu0 %v16340_v21 }
 0x809   :  { %7746 = vmatprep.subr.bf16.mxu0 %v16347_v38  ;;  %v7064_v26 = vpop.permute.xlu0 %7063 }
 0x80a   :  { %v7082_v29 = vsel %vm1201_vm3, %v7081_v33, %v7064_v26 }
 0x80b   :  { %7035 = vrot.lane.b32.xlu1 %v7025_v39, %s13012_s3  ;;  %7078 = vrot.lane.b32.xlu0 %v15982_v44, %s13011_s6 }
 0x80d   :  { %v7067_v61 = vpop.permute.xlu0 %7066 }
 0x80e   :  { %v7083_v21 = vsel %vm17776_vm12, %v7082_v29, %v7067_v61 }
 0x80f   :  { %7038 = vrot.lane.b32.xlu1 %v7025_v39, %s13010_s5 }
 0x811   :  { %v7070_v53 = vpop.permute.xlu0 %7069 }
 0x813   :  { %7041 = vrot.lane.b32.xlu1 %v7025_v39, %s13013_s29 }
 0x817   :  { %7044 = vrot.lane.b32.xlu1 %v7025_v39, %s13011_s6 }
 0x81b   :  { %7075 = vrot.lane.b32.xlu1 %v15982_v44, %s13013_s29  ;;  %v7084_v44 = vsel %vm6898_vm13, %v7083_v21, %v7070_v53 }
 0x875   :  { %v7027_v22 = vpop.permute.xlu1 %7026  ;;  %v7030_v5 = vpop.permute.xlu0 %7029 }
 0x876   :  { %v7047_v39 = vsel %vm6893_vm11, %v16222_v37, %v7027_v22 }
 0x877   :  { %v7048_v17 = vsel %vm1201_vm3, %v7047_v39, %v7030_v5 }
 0x879   :  { %v7033_v3 = vpop.permute.xlu1 %7032  ;;  %v7073_v30 = vpop.permute.xlu0 %7072 }
 0x87a   :  { %v7049_v8 = vsel %vm17776_vm12, %v7048_v17, %v7033_v3  ;;  %v7085_v43 = vsel %vm6900_vm14, %v7084_v44, %v7073_v30 }
 0x87b   :  { %v7107_v61 = vrot.slane %v7085_v43, %v13488_v4 }
 0x87d   :  { %v7036_v38 = vpop.permute.xlu1 %7035 }
 0x87e   :  { %v7050_v18 = vsel %vm6898_vm13, %v7049_v8, %v7036_v38 }
 0x881   :  { %v7039_v33 = vpop.permute.xlu1 %7038 }
 0x882   :  { %v7051_v26 = vsel %vm6900_vm14, %v7050_v18, %v7039_v33 }
 0x883   :  { %v7095_v29 = vrot.slane %v7051_v26, %v13488_v4 }
 0x885   :  { %v7097_v22 = vmul.f32 %v7095_v29, %v15893_v48  ;;  %v7099_v53 = vmul.f32 %v7095_v29, %v15897_v20  ;;  %v7113_v37 = vmul.f32 %v7095_v29, %v15901_v49  ;;  %v7115_v21 = vmul.f32 %v7095_v29, %v15905_v50  ;;  %v7042_v17 = vpop.permute.xlu1 %7041  ;;  %v7079_v50 = vpop.permute.xlu0 %7078 }
 0x886   :  { %v7052_v38 = vsel %vm6291_vm8, %v7051_v26, %v7042_v17 }
 0x887   :  { %v7109_v3 = vadd.f32 %v7107_v61, %v7097_v22  ;;  %v7111_v30 = vadd.f32 %v7107_v61, %v7099_v53  ;;  %v7117_v5 = vadd.f32 %v7113_v37, %v7107_v61  ;;  %v7119_v8 = vadd.f32 %v7115_v21, %v7107_v61 }
 0x889   :  { %v7045_v39 = vpop.permute.xlu1 %7044  ;;  %7121 = vst.msk [vmem:[#allocation3 + $0x8] sm:$0xff] %vm6291_vm8, %v7109_v3  ;;  %v7127_v44 = vpack.c.bf16 %v7111_v30, %v7109_v3  ;;  %v16378_v48 = vpack.c.bf16 %v7119_v8, %v7117_v5  ;;  %v16421_v5 = vld [vmem:[%s17743_s9 + $0x1e4] ss:$8 sps:$4 sm:$0xff]   ;;  %v16437_v8 = vld [vmem:[%s17743_s9 + $0x1f4] ss:$8 sps:$4 sm:$0xff]  }
 0x88a   :  { %7123 = vst.msk [vmem:[#allocation3 + $0x18] sm:$0x3f] %vm6791_vm10, %v7111_v30  ;;  %v7053_v20 = vsel %vm6903_vm15, %v7052_v38, %v7045_v39  ;;  %v17799_v39 = vmov 0  }
 0x88b   :  { %v7091_v49 = vrot.slane %v7053_v20, %v13488_v4  ;;  %11192 = vmatprep.mubr.msk.bf16.mxu1 %vm6291_vm8, %v7127_v44  ;;  %11249 = vmatprep.mubr.msk.bf16.mxu0 %vm6291_vm8, %v16378_v48  ;;  %v17813_v20 = vld [vmem:[#allocation22_spill] sm:$0xff] }
 0x88d   :  { %v7076_v18 = vpop.permute.xlu1 %7075  ;;  %v7096_v26 = vmul.f32 %v7091_v49, %v15921_v27  ;;  %v7098_v61 = vmul.f32 %v7091_v49, %v15925_v55  ;;  %v7112_v22 = vmul.f32 %v7091_v49, %v15931_v59  ;;  %v7114_v53 = vmul.f32 %v7091_v49, %v15935_v52  ;;  %v16404_v59 = vld [vmem:[%s17743_s9 + $0x1d4] ss:$8 sps:$4 sm:$0xff]   ;;  %v16413_v52 = vld [vmem:[%s17743_s9 + $0x1d0] ss:$8 sps:$4 sm:$0xff]  }
 0x88e   :  { %v7086_v33 = vsel %vm6291_vm8, %v7085_v43, %v7076_v18  ;;  %v16395_v43 = vld [vmem:[%s17743_s9 + $0x1c0] ss:$8 sps:$4 sm:$0xff]  }
 0x88f   :  { %v7087_v29 = vsel %vm6903_vm15, %v7086_v33, %v7079_v50  ;;  %v17814_v49 = vld [vmem:[#allocation23_spill] sm:$0xff]  ;;  %v17815_v33 = vld [vmem:[#allocation24_spill] sm:$0xff] }
 0x890   :  { %v7103_v37 = vrot.slane %v7087_v29, %v13488_v4 }
 0x891   :  { %v7133_v38 = vld [vmem:[#allocation3 + $0x18] sm:$0xff] }
 0x892   :  { %v7108_v21 = vadd.f32 %v7103_v37, %v7096_v26  ;;  %v7110_v17 = vadd.f32 %v7103_v37, %v7098_v61  ;;  %v7116_v3 = vadd.f32 %v7112_v22, %v7103_v37  ;;  %v7118_v30 = vadd.f32 %v7114_v53, %v7103_v37  ;;  %v17816_v26 = vld [vmem:[#allocation25_spill] sm:$0xff]  ;;  %v17817_v61 = vld [vmem:[#allocation26_spill] sm:$0xff]  ;;  %v17818_v53 = vld [vmem:[#allocation27_spill] sm:$0xff] }
 0x894   :  { %7120 = vst [vmem:[#allocation3] sm:$0xff] %v7108_v21  ;;  %7122 = vst [vmem:[#allocation3 + $0x10] sm:$0x3f] %v7110_v17  ;;  %v16397_v27 = vpack.c.bf16 %v7110_v17, %v7108_v21  ;;  %v16399_v55 = vpack.c.bf16 %v7118_v30, %v7116_v3 }
 0x896   :  { %7353 = vmatmul.mubr.bf16.vlgmr.msra.gmra.mrb[24].mxu1 %v16397_v27  ;;  %7596 = vmatmul.mubr.bf16.vlgmr.msra.gmra.mrb[32].mxu0 %v16399_v55 }
 0x897   :  { %7747 = vmatpush1.bf16.msra.mxu0 %v16395_v43  ;;  %7794 = vmatpush1.bf16.msra.mxu1 %v15995_v45  ;;  %v16430_v45 = vld [vmem:[%s17743_s9 + $0x1e0] ss:$8 sps:$4 sm:$0xff]  }
 0x898   :  { %11278 = vmatprep.mubr.msk.bf16.mxu0 %vm6291_vm8, %v7127_v44  ;;  %11279 = vmatprep.mubr.msk.bf16.mxu1 %vm6291_vm8, %v16378_v48 }
 0x899   :  { %7748 = vmatprep.subr.bf16.mxu0 %v16404_v59  ;;  %7795 = vmatprep.subr.bf16.mxu1 %v16021_v54  ;;  %v16451_v54 = vld [vmem:[%s17743_s9 + $0x204] ss:$8 sps:$4 sm:$0xff]  }
 0x89b   :  { %7749 = vmatpush1.bf16.msra.mxu0 %v16413_v52  ;;  %7796 = vmatpush1.bf16.msra.mxu1 %v16016_v51  ;;  %v16444_v51 = vld [vmem:[%s17743_s9 + $0x1f0] ss:$8 sps:$4 sm:$0xff]   ;;  %v7130_v50 = vld [vmem:[#allocation3] sm:$0xfc] }
 0x89c   :  { %7750 = vmatprep.subr.bf16.mxu0 %v16421_v5  ;;  %7797 = vmatprep.subr.bf16.mxu1 %v16040_v9  ;;  %v16458_v9 = vld [vmem:[%s17743_s9 + $0x200] ss:$8 sps:$4 sm:$0xff]   ;;  %v7132_v18 = vld [vmem:[#allocation3 + $0x10] sm:$0xff] }
 0x89d   :  { %v7134_v29 = vpack.c.bf16 %v7132_v18, %v7130_v50 }
 0x89f   :  { %7751 = vmatpush1.bf16.msra.mxu0 %v16430_v45  ;;  %7798 = vmatpush1.bf16.msra.mxu1 %v16046_v11  ;;  %v16465_v11 = vld [vmem:[%s17743_s9 + $0x214] ss:$8 sps:$4 sm:$0xff]   ;;  %v7838_v22 = vrot.slane %v7134_v29, 1 }
 0x8a0   :  { %7752 = vmatprep.subr.bf16.mxu0 %v16437_v8  ;;  %7799 = vmatprep.subr.bf16.mxu1 %v16064_v25  ;;  %v16472_v25 = vld [vmem:[%s17743_s9 + $0x210] ss:$8 sps:$4 sm:$0xff]  }
 0x8a3   :  { %7753 = vmatpush1.bf16.msra.mxu0 %v16444_v51  ;;  %7800 = vmatpush1.bf16.msra.mxu1 %v16075_v57  ;;  %v16479_v57 = vld [vmem:[%s17743_s9 + $0x224] ss:$8 sps:$4 sm:$0xff]  }
 0x8a4   :  { %7754 = vmatprep.subr.bf16.mxu0 %v16451_v54  ;;  %7801 = vmatprep.subr.bf16.mxu1 %v16088_v60  ;;  %v16486_v60 = vld [vmem:[%s17743_s9 + $0x220] ss:$8 sps:$4 sm:$0xff]  }
 0x8a7   :  { %7755 = vmatpush1.bf16.msra.mxu0 %v16458_v9  ;;  %7802 = vmatpush1.bf16.msra.mxu1 %v16099_v0  ;;  %v16493_v0 = vld [vmem:[%s17743_s9 + $0x234] ss:$8 sps:$4 sm:$0xff]  }
 0x8a8   :  { %7756 = vmatprep.subr.bf16.mxu0 %v16465_v11  ;;  %7803 = vmatprep.subr.bf16.mxu1 %v16112_v16  ;;  %v16500_v16 = vld [vmem:[%s17743_s9 + $0x230] ss:$8 sps:$4 sm:$0xff]  }
 0x8ab   :  { %7757 = vmatpush1.bf16.msra.mxu0 %v16472_v25  ;;  %7804 = vmatpush1.bf16.msra.mxu1 %v16118_v28  ;;  %v16507_v28 = vld [vmem:[%s17743_s9 + $0x244] ss:$8 sps:$4 sm:$0xff]  }
 0x8ac   :  { %7758 = vmatprep.subr.bf16.mxu0 %v16479_v57  ;;  %7805 = vmatprep.subr.bf16.mxu1 %v16133_v40  ;;  %v16514_v40 = vld [vmem:[%s17743_s9 + $0x240] ss:$8 sps:$4 sm:$0xff]  }
 0x8af   :  { %7759 = vmatpush1.bf16.msra.mxu0 %v16486_v60  ;;  %7806 = vmatpush1.bf16.msra.mxu1 %v16147_v12  ;;  %v16521_v12 = vld [vmem:[%s17743_s9 + $0x254] ss:$8 sps:$4 sm:$0xff]  }
 0x8b0   :  { %7760 = vmatprep.subr.bf16.mxu0 %v16493_v0  ;;  %7807 = vmatprep.subr.bf16.mxu1 %v16170_v42  ;;  %v16535_v42 = vld [vmem:[%s17743_s9 + $0x264] ss:$8 sps:$4 sm:$0xff]  }
 0x8b3   :  { %7761 = vmatpush1.bf16.msra.mxu0 %v16500_v16  ;;  %7808 = vmatpush1.bf16.msra.mxu1 %v16165_v2  ;;  %v16528_v2 = vld [vmem:[%s17743_s9 + $0x250] ss:$8 sps:$4 sm:$0xff]  }
 0x8b4   :  { %7762 = vmatprep.subr.bf16.mxu0 %v16507_v28  ;;  %7809 = vmatprep.subr.bf16.mxu1 %v16194_v32  ;;  %v16549_v32 = vld [vmem:[%s17743_s9 + $0x274] ss:$8 sps:$4 sm:$0xff]  }
 0x8b7   :  { %7763 = vmatpush1.bf16.msra.mxu0 %v16514_v40  ;;  %7810 = vmatpush1.bf16.msra.mxu1 %v16189_v31  ;;  %v16542_v31 = vld [vmem:[%s17743_s9 + $0x260] ss:$8 sps:$4 sm:$0xff]  }
 0x8b8   :  { %7764 = vmatprep.subr.bf16.mxu0 %v16521_v12  ;;  %7811 = vmatprep.subr.bf16.mxu1 %v16220_v36  ;;  %v16563_v36 = vld [vmem:[%s17743_s9 + $0x284] ss:$8 sps:$4 sm:$0xff]  }
 0x8bb   :  { %7765 = vmatpush1.bf16.msra.mxu0 %v16528_v2  ;;  %7812 = vmatpush1.bf16.msra.mxu1 %v16215_v35  ;;  %v16556_v35 = vld [vmem:[%s17743_s9 + $0x270] ss:$8 sps:$4 sm:$0xff]  }
 0x8bc   :  { %7766 = vmatprep.subr.bf16.mxu0 %v16535_v42  ;;  %7813 = vmatprep.subr.bf16.mxu1 %v16245_v41  ;;  %v16570_v41 = vld [vmem:[%s17743_s9 + $0x280] ss:$8 sps:$4 sm:$0xff]  }
 0x8bf   :  { %7767 = vmatpush1.bf16.msra.mxu0 %v16542_v31  ;;  %7814 = vmatpush1.bf16.msra.mxu1 %v16256_v15  ;;  %v16577_v15 = vld [vmem:[%s17743_s9 + $0x294] ss:$8 sps:$4 sm:$0xff]  }
 0x8c0   :  { %7768 = vmatprep.subr.bf16.mxu0 %v16549_v32  ;;  %7815 = vmatprep.subr.bf16.mxu1 %v16274_v23  ;;  %v7131_v23 = vld [vmem:[#allocation3 + $0x8] sm:$0xfc] }
 0x8c3   :  { %7769 = vmatpush1.bf16.msra.mxu0 %v16556_v35  ;;  %7816 = vmatpush1.bf16.msra.mxu1 %v16269_v19  ;;  %v16584_v19 = vld [vmem:[%s17743_s9 + $0x290] ss:$8 sps:$4 sm:$0xff]  }
 0x8c4   :  { %7770 = vmatprep.subr.bf16.mxu0 %v16563_v36  ;;  %7817 = vmatprep.subr.bf16.mxu1 %v16299_v34  ;;  %v7135_v34 = vpack.c.bf16 %v7133_v38, %v7131_v23 }
 0x8c6   :  { %v7839_v44 = vrot.slane %v7135_v34, 1 }
 0x8c7   :  { %7771 = vmatpush1.bf16.msra.mxu0 %v16570_v41  ;;  %7818 = vmatpush1.bf16.msra.mxu1 %v16310_v6  ;;  %v17801_v6 = vld [vmem:[#allocation10_spill] sm:$0xff] }
 0x8c8   :  { %7772 = vmatprep.subr.bf16.mxu0 %v16577_v15  ;;  %7819 = vmatprep.subr.bf16.mxu1 %v16324_v58  ;;  %v17812_v58 = vld [vmem:[#allocation21_spill] sm:$0xff] }
 0x8cb   :  { %7773 = vmatpush1.bf16.msra.mxu0 %v16584_v19  ;;  %7820 = vmatpush1.bf16.msra.mxu1 %v16335_v1  ;;  %v17800_v1 = vld [vmem:[#allocation9_spill] sm:$0xff] }
 0x8cc   :  { %7844 = vmatprep.subr.bf16.mxu1 %v16010_v47  ;;  %8798 = vmatprep.subr.bf16.mxu0 %v17799_v39  ;;  %v17803_v47 = vld [vmem:[#allocation12_spill] sm:$0xff] }
 0x8ce   :  { %7779 = vmatmul.mubr.bf16.vlgmr.msra.gmra.mrb[32].mxu0 %v16397_v27  ;;  %7826 = vmatmul.mubr.bf16.vlgmr.msra.gmra.mrb[28].mxu1 %v16399_v55 }
 0x8cf   :  { %7845 = vmatpush1.bf16.msra.mxu1 %v16005_v46  ;;  %11280 = vmatprep.mubr.msk.bf16.mxu1 %vm6291_vm8, %v7839_v44  ;;  %v17802_v46 = vld [vmem:[#allocation11_spill] sm:$0xff] }
 0x8d0   :  { %7846 = vmatprep.subr.bf16.mxu1 %v16035_v13  ;;  %v17805_v13 = vld [vmem:[#allocation13_spill] sm:$0xff] }
 0x8d3   :  { %7847 = vmatpush1.bf16.msra.mxu1 %v16028_v10  ;;  %v17804_v10 = vld [vmem:[#allocation14_spill] sm:$0xff] }
 0x8d4   :  { %7848 = vmatprep.subr.bf16.mxu1 %v16051_v14  ;;  %v17806_v14 = vld [vmem:[#allocation16_spill] sm:$0xff] }
 0x8d7   :  { %7849 = vmatpush1.bf16.msra.mxu1 %v16057_v24  ;;  %v17807_v24 = vld [vmem:[#allocation15_spill] sm:$0xff] }
 0x8d8   :  { %7850 = vmatprep.subr.bf16.mxu1 %v16070_v56  ;;  %v17808_v56 = vld [vmem:[#allocation17_spill] sm:$0xff] }
 0x8db   :  { %7851 = vmatpush1.bf16.msra.mxu1 %v16081_v63  ;;  %v17809_v63 = vld [vmem:[#allocation18_spill] sm:$0xff] }
 0x8dc   :  { %7852 = vmatprep.subr.bf16.mxu1 %v16094_v62  ;;  %v17810_v62 = vld [vmem:[#allocation19_spill] sm:$0xff] }
 0x8df   :  { %7853 = vmatpush1.bf16.msra.mxu1 %v16105_v7  ;;  %v17811_v7 = vld [vmem:[#allocation20_spill] sm:$0xff] }
 0x8e0   :  { %7854 = vmatprep.subr.bf16.mxu1 %v17800_v1 }
 0x8e3   :  { %7855 = vmatpush1.bf16.msra.mxu1 %v17801_v6 }
 0x8e4   :  { %7856 = vmatprep.subr.bf16.mxu1 %v17802_v46 }
 0x8e7   :  { %7857 = vmatpush1.bf16.msra.mxu1 %v17803_v47 }
 0x8e8   :  { %7858 = vmatprep.subr.bf16.mxu1 %v17804_v10 }
 0x8eb   :  { %7859 = vmatpush1.bf16.msra.mxu1 %v17805_v13  ;;  %v17819_v13 = vld [vmem:[#allocation8_spill] sm:$0xff] }
 0x8ec   :  { %7860 = vmatprep.subr.bf16.mxu1 %v17806_v14 }
 0x8ef   :  { %7861 = vmatpush1.bf16.msra.mxu1 %v17807_v24 }
 0x8f0   :  { %7862 = vmatprep.subr.bf16.mxu1 %v17808_v56 }
 0x8f3   :  { %7863 = vmatpush1.bf16.msra.mxu1 %v17809_v63 }
 0x8f4   :  { %7864 = vmatprep.subr.bf16.mxu1 %v17810_v62 }
 0x8f7   :  { %7865 = vmatpush1.bf16.msra.mxu1 %v17811_v7 }
 0x8f8   :  { %7866 = vmatprep.subr.bf16.mxu1 %v17812_v58 }
 0x8fb   :  { %7867 = vmatpush1.bf16.msra.mxu1 %v17813_v20 }
 0x8fc   :  { %7868 = vmatprep.subr.bf16.mxu1 %v17814_v49 }
 0x8ff   :  { %7869 = vmatpush1.bf16.msra.mxu1 %v17815_v33 }
 0x900   :  { %7870 = vmatprep.subr.bf16.mxu1 %v17816_v26 }
 0x903   :  { %7871 = vmatpush1.bf16.msra.mxu1 %v17817_v61 }
 0x904   :  { %7887 = vmatprep.subr.bf16.mxu1 %v17818_v53 }
 0x906   :  { %7877 = vmatmul.mubr.bf16.vlgmr.msra.gmra.mrb[32].mxu1 %v7838_v22 }
 0x907   :  { %7888 = vmatpush1.bf16.msra.mxu1 %v16395_v43  ;;  %11281 = vmatprep.mubr.msk.bf16.mxu1 %vm6291_vm8, %v16378_v48 }
 0x908   :  { %7889 = vmatprep.subr.bf16.mxu1 %v16404_v59 }
 0x90b   :  { %7890 = vmatpush1.bf16.msra.mxu1 %v16413_v52 }
 0x90c   :  { %7891 = vmatprep.subr.bf16.mxu1 %v16421_v5 }
 0x90f   :  { %7892 = vmatpush1.bf16.msra.mxu1 %v16430_v45 }
 0x910   :  { %7893 = vmatprep.subr.bf16.mxu1 %v16437_v8  ;;  %v7165_v8 = vld [vmem:[%s17745_s10] sm:$0x3]  ;;  %s13017_s10 = smov 120  }
 0x911   :  { %v7174_v14 = vrot.slane %v7165_v8, %v17819_v13 }
 0x913   :  { %7894 = vmatpush1.bf16.msra.mxu1 %v16444_v51  ;;  %v7170_v51 = vrot.slane %v7165_v8, %v13488_v4 }
 0x914   :  { %7895 = vmatprep.subr.bf16.mxu1 %v16451_v54 }
 0x917   :  { %7896 = vmatpush1.bf16.msra.mxu1 %v16458_v9 }
 0x918   :  { %7897 = vmatprep.subr.bf16.mxu1 %v16465_v11 }
 0x91b   :  { %7898 = vmatpush1.bf16.msra.mxu1 %v16472_v25 }
 0x91c   :  { %7899 = vmatprep.subr.bf16.mxu1 %v16479_v57 }
 0x91f   :  { %7900 = vmatpush1.bf16.msra.mxu1 %v16486_v60 }
 0x920   :  { %7901 = vmatprep.subr.bf16.mxu1 %v16493_v0 }
 0x923   :  { %7902 = vmatpush1.bf16.msra.mxu1 %v16500_v16 }
 0x924   :  { %7903 = vmatprep.subr.bf16.mxu1 %v16507_v28 }
 0x927   :  { %7904 = vmatpush1.bf16.msra.mxu1 %v16514_v40 }
 0x928   :  { %7905 = vmatprep.subr.bf16.mxu1 %v16521_v12 }
 0x92b   :  { %7906 = vmatpush1.bf16.msra.mxu1 %v16528_v2 }
 0x92c   :  { %7907 = vmatprep.subr.bf16.mxu1 %v16535_v42 }
 0x92f   :  { %7908 = vmatpush1.bf16.msra.mxu1 %v16542_v31 }
 0x930   :  { %7909 = vmatprep.subr.bf16.mxu1 %v16549_v32 }
 0x933   :  { %7910 = vmatpush1.bf16.msra.mxu1 %v16556_v35 }
 0x934   :  { %7911 = vmatprep.subr.bf16.mxu1 %v16563_v36 }
 0x937   :  { %7912 = vmatpush1.bf16.msra.mxu1 %v16570_v41 }
 0x938   :  { %7913 = vmatprep.subr.bf16.mxu1 %v16577_v15 }
 0x93b   :  { %7914 = vmatpush1.bf16.msra.mxu1 %v16584_v19 }
 0x93c   :  { %9125 = vmatprep.subr.bf16.mxu1 %v17799_v39 }
 0x93e   :  { %7920 = vmatmul.mubr.bf16.vlgmr.msra.gmra.mrb[32].mxu1 %v16399_v55 }
 0x969   :  { %v7354_v48 = vpop.f32.mrb[24].mxu1 }
 0x96a   :  { %v7356_v37 = vpop.f32.mrb[25].mxu1  ;;  %v16670_v60 = vadd.f32 %v7354_v48, %v7170_v51 }
 0x96b   :  { %v7358_v21 = vpop.f32.mrb[26].mxu1  ;;  %v16711_v61 = vadd.f32 %v7356_v37, %v7174_v14 }
 0x96c   :  { %v7360_v17 = vpop.f32.mrb[27].mxu1  ;;  %v16662_v54 = vadd.f32 %v7358_v21, %v7170_v51  ;;  %v7934_v12 = vmax.f32 %v16670_v60, 0.0 }
 0x96d   :  { %v16702_v50 = vadd.f32 %v7360_v17, %v7174_v14 }
 0x96e   :  { %v7936_v25 = vmax.f32 %v16662_v54, 0.0 }
 0x96f   :  { %v7937_v17 = vmax.f32 %v16702_v50, 0.0 }
 0x970   :  { %v7950_v28 = vsel %vm6781_vm9, %v7936_v25, 0.0 }
 0x971   :  { %v7951_v31 = vadd.f32 %v7950_v28, %v7934_v12 }
 0x973   :  { %v7952_v41 = vrot.slane %v7951_v31, 4 }
 0x975   :  { %v7953_v38 = vadd.f32 %v7952_v41, %v7951_v31 }
 0x977   :  { %v7954_v6 = vrot.slane %v7953_v38, 2 }
 0x979   :  { %v7955_v58 = vadd.f32 %v7954_v6, %v7953_v38 }
 0x97b   :  { %v7956_v53 = vrot.slane %v7955_v58, 1 }
 0x9a1   :  { %v7780_v3 = vpop.f32.mrb[32].mxu0  ;;  %v7827_v30 = vpop.f32.mrb[28].mxu1 }
 0x9a2   :  { %v7782_v43 = vpop.f32.mrb[33].mxu0  ;;  %v16654_v27 = vpop.f32.mrb[29].mxu1  ;;  %v16665_v11 = vadd.f32 %v7780_v3, %v7170_v51  ;;  %v16681_v2 = vadd.f32 %v7827_v30, %v7170_v51 }
 0x9a3   :  { %v7784_v59 = vpop.f32.mrb[34].mxu0  ;;  %v7831_v52 = vpop.f32.mrb[30].mxu1  ;;  %v16704_v18 = vadd.f32 %v7782_v43, %v7174_v14  ;;  %v16722_v37 = vadd.f32 %v16654_v27, %v7174_v14 }
 0x9a4   :  { %v7786_v5 = vpop.f32.mrb[35].mxu0  ;;  %v7833_v45 = vpop.f32.mrb[31].mxu1  ;;  %v16660_v55 = vadd.f32 %v7784_v59, %v7170_v51  ;;  %v16668_v57 = vadd.f32 %v7831_v52, %v7170_v51  ;;  %v7938_v16 = vmax.f32 %v16665_v11, 0.0  ;;  %v7942_v35 = vmax.f32 %v16681_v2, 0.0 }
 0x9a5   :  { %v16698_v62 = vadd.f32 %v7786_v5, %v7174_v14  ;;  %v7939_v3 = vmax.f32 %v16704_v18, 0.0  ;;  %v16716_v30 = vadd.f32 %v7833_v45, %v7174_v14  ;;  %v7935_v5 = vmax.f32 %v16711_v61, 0.0 }
 0x9a6   :  { %v7940_v9 = vmax.f32 %v16660_v55, 0.0  ;;  %v7944_v40 = vmax.f32 %v16668_v57, 0.0  ;;  %v7959_v45 = vsel %vm6791_vm10, %v7937_v17, 0.0  ;;  %v7943_v38 = vmax.f32 %v16722_v37, 0.0 }
 0x9a7   :  { %v7941_v22 = vmax.f32 %v16698_v62, 0.0  ;;  %v7975_v31 = vsel %vm6291_vm8, %v7939_v3, 0.0  ;;  %v7945_v27 = vmax.f32 %v16716_v30, 0.0 }
 0x9a8   :  { %v7967_v0 = vsel %vm6781_vm9, %v7940_v9, 0.0  ;;  %v7986_v32 = vsel %vm6781_vm9, %v7944_v40, 0.0 }
 0x9a9   :  { %v7968_v42 = vadd.f32 %v7967_v0, %v7938_v16  ;;  %v7987_v15 = vadd.f32 %v7986_v32, %v7942_v35  ;;  %v7976_v8 = vsel %vm6791_vm10, %v7941_v22, 0.0  ;;  %v7957_v0 = vadd.f32 %v7956_v53, %v7955_v58 }
 0x9aa   :  { %v7977_v41 = vadd.f32 %v7976_v8, %v7975_v31  ;;  %v7995_v6 = vsel %vm6791_vm10, %v7945_v27, 0.0 }
 0x9ab   :  { %v7969_v36 = vrot.slane %v7968_v42, 4  ;;  %v7988_v19 = vrot.slane %v7987_v15, 4 }
 0x9ac   :  { %v7978_v13 = vrot.slane %v7977_v41, 4 }
 0x9ad   :  { %v7970_v23 = vadd.f32 %v7969_v36, %v7968_v42  ;;  %v7989_v46 = vadd.f32 %v7988_v19, %v7987_v15 }
 0x9af   :  { %v7971_v34 = vrot.slane %v7970_v23, 2  ;;  %v7990_v20 = vrot.slane %v7989_v46, 2 }
 0x9b1   :  { %v7972_v63 = vadd.f32 %v7971_v34, %v7970_v23  ;;  %v7991_v48 = vadd.f32 %v7990_v20, %v7989_v46  ;;  %v7958_v23 = vsel %vm6291_vm8, %v7935_v5, 0.0 }
 0x9b2   :  { %v7960_v34 = vadd.f32 %v7959_v45, %v7958_v23 }
 0x9b3   :  { %v7973_v26 = vrot.slane %v7972_v63, 1  ;;  %v7992_v28 = vrot.slane %v7991_v48, 1 }
 0x9b4   :  { %v7961_v58 = vrot.slane %v7960_v34, 4 }
 0x9b5   :  { %v7974_v59 = vadd.f32 %v7973_v26, %v7972_v63 }
 0x9b6   :  { %v7962_v53 = vadd.f32 %v7961_v58, %v7960_v34 }
 0x9b7   :  { %v7984_v36 = vadd.f32 %v7974_v59, %v7957_v0 }
 0xa11   :  { %v7921_v44 = vpop.f32.mrb[32].mxu1 }
 0xa12   :  { %v7923_v1 = vpop.f32.mrb[33].mxu1  ;;  %v16693_v47 = vadd.f32 %v7921_v44, %v7170_v51  ;;  %v7993_v44 = vadd.f32 %v7992_v28, %v7991_v48 }
 0xa13   :  { %v7925_v10 = vpop.f32.mrb[34].mxu1 }
 0xa14   :  { %v16696_v24 = vadd.f32 %v7925_v10, %v7170_v51  ;;  %v7927_v56 = vpop.f32.mrb[35].mxu1  ;;  %v7946_v49 = vmax.f32 %v16693_v47, 0.0  ;;  %v16727_v51 = vadd.f32 %v7923_v1, %v7174_v14  ;;  %v8003_v10 = vadd.f32 %v7993_v44, %v7984_v36 }
 0xa15   :  { %v16718_v43 = vadd.f32 %v7927_v56, %v7174_v14  ;;  %v7994_v56 = vsel %vm6291_vm8, %v7943_v38, 0.0 }
 0xa16   :  { %v7948_v7 = vmax.f32 %v16696_v24, 0.0  ;;  %v7947_v19 = vmax.f32 %v16727_v51, 0.0  ;;  %v7996_v20 = vadd.f32 %v7995_v6, %v7994_v56 }
 0xa17   :  { %v7949_v32 = vmax.f32 %v16718_v43, 0.0 }
 0xa18   :  { %v8005_v33 = vsel %vm6781_vm9, %v7948_v7, 0.0  ;;  %v8013_v63 = vsel %vm6291_vm8, %v7947_v19, 0.0  ;;  %v7997_v48 = vrot.slane %v7996_v20, 4 }
 0xa19   :  { %v8006_v29 = vadd.f32 %v8005_v33, %v7946_v49  ;;  %v8014_v46 = vsel %vm6791_vm10, %v7949_v32, 0.0 }
 0xa1a   :  { %v8015_v26 = vadd.f32 %v8014_v46, %v8013_v63  ;;  %v7998_v8 = vadd.f32 %v7997_v48, %v7996_v20 }
 0xa1b   :  { %v8007_v21 = vrot.slane %v8006_v29, 4 }
 0xa1c   :  { %v7999_v45 = vrot.slane %v7998_v8, 2 }
 0xa1d   :  { %v8008_v52 = vadd.f32 %v8007_v21, %v8006_v29  ;;  %v7979_v29 = vadd.f32 %v7978_v13, %v7977_v41  ;;  %v8016_v21 = vrot.slane %v8015_v26, 4 }
 0xa1f   :  { %v8009_v42 = vrot.slane %v8008_v52, 2  ;;  %v7980_v59 = vrot.slane %v7979_v29, 2  ;;  %v8017_v0 = vadd.f32 %v8016_v21, %v8015_v26 }
 0xa21   :  { %v8010_v15 = vadd.f32 %v8009_v42, %v8008_v52  ;;  %v7963_v52 = vrot.slane %v7962_v53, 2  ;;  %v7981_v28 = vadd.f32 %v7980_v59, %v7979_v29  ;;  %v8018_v31 = vrot.slane %v8017_v0, 2 }
 0xa23   :  { %v8011_v1 = vrot.slane %v8010_v15, 1  ;;  %v7964_v42 = vadd.f32 %v7963_v52, %v7962_v53  ;;  %v7982_v36 = vrot.slane %v7981_v28, 1  ;;  %v8019_v23 = vadd.f32 %v8018_v31, %v8017_v0 }
 0xa25   :  { %v8012_v14 = vadd.f32 %v8011_v1, %v8010_v15  ;;  %v7965_v41 = vrot.slane %v7964_v42, 1  ;;  %v8000_v15 = vadd.f32 %v7999_v45, %v7998_v8  ;;  %v7983_v34 = vadd.f32 %v7982_v36, %v7981_v28 }
 0xa26   :  { %v8020_v6 = vrot.slane %v8019_v23, 1 }
 0xa27   :  { %v16754_v33 = vadd.f32 %v8012_v14, %v8003_v10  ;;  %v7966_v44 = vadd.f32 %v7965_v41, %v7964_v42  ;;  %v8001_v1 = vrot.slane %v8000_v15, 1 }
 0xa28   :  { %v8021_v13 = vadd.f32 %v8020_v6, %v8019_v23 }
 0xa29   :  { %8029 = vrot.lane.b32.xlu0 %v16754_v33, %s13011_s6  ;;  %8025 = vrot.lane.b32.xlu1 %v16754_v33, %s13017_s10  ;;  %v7985_v46 = vadd.f32 %v7983_v34, %v7966_v44  ;;  %v8002_v10 = vadd.f32 %v8001_v1, %v8000_v15 }
 0xa2b   :  { %v8004_v14 = vadd.f32 %v8002_v10, %v7985_v46 }
 0xa2d   :  { %8037 = vrot.lane.b32.xlu0 %v16754_v33, %s13013_s29  ;;  %8033 = vrot.lane.b32.xlu1 %v16754_v33, %s13018_s8  ;;  %v8023_v56 = vadd.f32 %v8021_v13, %v8004_v14 }
 0xa31   :  { %8045 = vrot.lane.b32.xlu0 %v16754_v33, %s13010_s5  ;;  %8041 = vrot.lane.b32.xlu1 %v16754_v33, %s13019_s18 }
 0xa35   :  { %8053 = vrot.lane.b32.xlu0 %v16754_v33, %s13012_s3  ;;  %8049 = vrot.lane.b32.xlu1 %v16754_v33, %s13020_s19 }
 0xa39   :  { %8061 = vrot.lane.b32.xlu0 %v16754_v33, %s13015_s30  ;;  %8057 = vrot.lane.b32.xlu1 %v16754_v33, %s13021_s7 }
 0xa3d   :  { %8069 = vrot.lane.b32.xlu0 %v16754_v33, %s13014_s4  ;;  %8065 = vrot.lane.b32.xlu1 %v16754_v33, %s13022_s20 }
 0xa41   :  { %8077 = vrot.lane.b32.xlu0 %v16754_v33, %s13016_s1  ;;  %8073 = vrot.lane.b32.xlu1 %v16754_v33, %s13023_s21 }
 0xa45   :  { %8081 = vrot.lane.b32.xlu1 %v16754_v33, %s13024_s22  ;;  %8087 = vrot.lane.b32.xlu0 %v8023_v56, %s13017_s10 }
 0xa49   :  { %8091 = vrot.lane.b32.xlu1 %v8023_v56, %s13011_s6  ;;  %8095 = vrot.lane.b32.xlu0 %v8023_v56, %s13018_s8 }
 0xa4d   :  { %8099 = vrot.lane.b32.xlu1 %v8023_v56, %s13013_s29  ;;  %8103 = vrot.lane.b32.xlu0 %v8023_v56, %s13019_s18 }
 0xa51   :  { %8107 = vrot.lane.b32.xlu1 %v8023_v56, %s13010_s5  ;;  %8111 = vrot.lane.b32.xlu0 %v8023_v56, %s13020_s19 }
 0xa55   :  { %8115 = vrot.lane.b32.xlu1 %v8023_v56, %s13012_s3  ;;  %8119 = vrot.lane.b32.xlu0 %v8023_v56, %s13021_s7 }
 0xa59   :  { %8123 = vrot.lane.b32.xlu1 %v8023_v56, %s13015_s30  ;;  %8127 = vrot.lane.b32.xlu0 %v8023_v56, %s13022_s20 }
 0xa9b   :  { %v8030_v63 = vpop.permute.xlu0 %8029  ;;  %v8026_v58 = vpop.permute.xlu1 %8025 }
 0xa9c   :  { %v8028_v20 = vadd.f32 %v8026_v58, %v16754_v33 }
 0xa9e   :  { %v8032_v26 = vadd.f32 %v8030_v63, %v8028_v20 }
 0xa9f   :  { %v8038_v29 = vpop.permute.xlu0 %8037  ;;  %v8034_v53 = vpop.permute.xlu1 %8033 }
 0xaa0   :  { %v8036_v48 = vadd.f32 %v8034_v53, %v8032_v26 }
 0xaa2   :  { %v8040_v21 = vadd.f32 %v8038_v29, %v8036_v48 }
 0xaa3   :  { %v8046_v59 = vpop.permute.xlu0 %8045  ;;  %v8042_v52 = vpop.permute.xlu1 %8041 }
 0xaa4   :  { %v8044_v8 = vadd.f32 %v8042_v52, %v8040_v21 }
 0xaa6   :  { %v8048_v0 = vadd.f32 %v8046_v59, %v8044_v8 }
 0xaa7   :  { %v8054_v28 = vpop.permute.xlu0 %8053  ;;  %v8050_v42 = vpop.permute.xlu1 %8049 }
 0xaa8   :  { %v8052_v45 = vadd.f32 %v8050_v42, %v8048_v0 }
 0xaaa   :  { %v8056_v31 = vadd.f32 %v8054_v28, %v8052_v45 }
 0xaab   :  { %v8062_v36 = vpop.permute.xlu0 %8061  ;;  %v8058_v41 = vpop.permute.xlu1 %8057 }
 0xaac   :  { %v8060_v15 = vadd.f32 %v8058_v41, %v8056_v31 }
 0xaae   :  { %v8064_v23 = vadd.f32 %v8062_v36, %v8060_v15 }
 0xaaf   :  { %v8070_v34 = vpop.permute.xlu0 %8069  ;;  %v8066_v44 = vpop.permute.xlu1 %8065 }
 0xab0   :  { %v8068_v33 = vadd.f32 %v8066_v44, %v8064_v23 }
 0xab2   :  { %v8072_v1 = vadd.f32 %v8070_v34, %v8068_v33 }
 0xab3   :  { %v8078_v6 = vpop.permute.xlu0 %8077  ;;  %v8074_v46 = vpop.permute.xlu1 %8073 }
 0xab4   :  { %v8076_v10 = vadd.f32 %v8074_v46, %v8072_v1 }
 0xab6   :  { %v8080_v13 = vadd.f32 %v8078_v6, %v8076_v10 }
 0xab7   :  { %v8082_v14 = vpop.permute.xlu1 %8081  ;;  %v8088_v63 = vpop.permute.xlu0 %8087 }
 0xab8   :  { %v8084_v58 = vadd.f32 %v8082_v14, %v8080_v13 }
 0xaba   :  { %v8085_v20 = vadd.f32 %v8084_v58, %v8023_v56 }
 0xabb   :  { %v8092_v26 = vpop.permute.xlu1 %8091  ;;  %v8096_v29 = vpop.permute.xlu0 %8095 }
 0xabc   :  { %v8090_v53 = vadd.f32 %v8088_v63, %v8085_v20 }
 0xabe   :  { %v8094_v48 = vadd.f32 %v8092_v26, %v8090_v53 }
 0xabf   :  { %v8100_v21 = vpop.permute.xlu1 %8099  ;;  %v8104_v59 = vpop.permute.xlu0 %8103 }
 0xac0   :  { %v8098_v52 = vadd.f32 %v8096_v29, %v8094_v48 }
 0xac2   :  { %v8102_v8 = vadd.f32 %v8100_v21, %v8098_v52 }
 0xac3   :  { %v8108_v0 = vpop.permute.xlu1 %8107  ;;  %v8112_v28 = vpop.permute.xlu0 %8111 }
 0xac4   :  { %v8106_v42 = vadd.f32 %v8104_v59, %v8102_v8 }
 0xac6   :  { %v8110_v45 = vadd.f32 %v8108_v0, %v8106_v42 }
 0xac7   :  { %v8116_v31 = vpop.permute.xlu1 %8115  ;;  %v8120_v41 = vpop.permute.xlu0 %8119 }
 0xac8   :  { %v8114_v36 = vadd.f32 %v8112_v28, %v8110_v45 }
 0xaca   :  { %v8118_v15 = vadd.f32 %v8116_v31, %v8114_v36 }
 0xacb   :  { %v8124_v34 = vpop.permute.xlu1 %8123  ;;  %v8128_v56 = vpop.permute.xlu0 %8127 }
 0xacc   :  { %v8122_v23 = vadd.f32 %v8120_v41, %v8118_v15 }
 0xace   :  { %v8126_v44 = vadd.f32 %v8124_v34, %v8122_v23 }
 0xad0   :  { %v8130_v33 = vadd.f32 %v8128_v56, %v8126_v44 }
 0xad2   :  { %v8131_v1 = vmul.f32 0.0006377551, %v8130_v33 }
 0xad4   :  { %8136 = vrot.lane.b32.xlu0 %v8131_v1, %s13016_s1  ;;  %8133 = vrot.lane.b32.xlu1 %v8131_v1, %s13024_s22 }
 0xad8   :  { %8142 = vrot.lane.b32.xlu0 %v8131_v1, %s13014_s4  ;;  %8139 = vrot.lane.b32.xlu1 %v8131_v1, %s13023_s21 }
 0xadc   :  { %8148 = vrot.lane.b32.xlu0 %v8131_v1, %s13015_s30  ;;  %8145 = vrot.lane.b32.xlu1 %v8131_v1, %s13022_s20 }
 0xae0   :  { %8154 = vrot.lane.b32.xlu0 %v8131_v1, %s13012_s3  ;;  %8151 = vrot.lane.b32.xlu1 %v8131_v1, %s13021_s7 }
 0xae4   :  { %8160 = vrot.lane.b32.xlu0 %v8131_v1, %s13010_s5  ;;  %8157 = vrot.lane.b32.xlu1 %v8131_v1, %s13020_s19 }
 0xae8   :  { %8166 = vrot.lane.b32.xlu0 %v8131_v1, %s13013_s29  ;;  %8163 = vrot.lane.b32.xlu1 %v8131_v1, %s13019_s18 }
 0xaec   :  { %8172 = vrot.lane.b32.xlu0 %v8131_v1, %s13011_s6  ;;  %8169 = vrot.lane.b32.xlu1 %v8131_v1, %s13018_s8 }
 0xaf0   :  { %8175 = vrot.lane.b32.xlu1 %v8131_v1, %s13017_s10 }
 0xb46   :  { %v8137_v6 = vpop.permute.xlu0 %8136  ;;  %v8134_v46 = vpop.permute.xlu1 %8133 }
 0xb47   :  { %v8179_v14 = vsel %vm8178_vm0, %v8131_v1, %v8134_v46 }
 0xb48   :  { %v8180_v20 = vsel %vm6893_vm11, %v8179_v14, %v8137_v6 }
 0xb4a   :  { %v8143_v10 = vpop.permute.xlu0 %8142  ;;  %v8140_v13 = vpop.permute.xlu1 %8139 }
 0xb4b   :  { %v8182_v26 = vsel %vm8181_vm2, %v8180_v20, %v8140_v13 }
 0xb4c   :  { %v8183_v48 = vsel %vm1201_vm3, %v8182_v26, %v8143_v10 }
 0xb4e   :  { %v8149_v63 = vpop.permute.xlu0 %8148  ;;  %v8146_v58 = vpop.permute.xlu1 %8145 }
 0xb4f   :  { %v8185_v21 = vsel %vm8184_vm4, %v8183_v48, %v8146_v58 }
 0xb50   :  { %v8186_v8 = vsel %vm17776_vm12, %v8185_v21, %v8149_v63  ;;  %vm8199_vm12 = vcmask 982016  }
 0xb52   :  { %v8155_v29 = vpop.permute.xlu0 %8154  ;;  %v8152_v53 = vpop.permute.xlu1 %8151 }
 0xb53   :  { %v8188_v0 = vsel %vm8187_vm5, %v8186_v8, %v8152_v53 }
 0xb54   :  { %v8189_v42 = vsel %vm6898_vm13, %v8188_v0, %v8155_v29 }
 0xb56   :  { %v8161_v59 = vpop.permute.xlu0 %8160  ;;  %v8158_v52 = vpop.permute.xlu1 %8157 }
 0xb57   :  { %v8191_v45 = vsel %vm8190_vm6, %v8189_v42, %v8158_v52 }
 0xb58   :  { %v8192_v41 = vsel %vm6900_vm14, %v8191_v45, %v8161_v59 }
 0xb5a   :  { %v8164_v28 = vpop.permute.xlu1 %8163  ;;  %v8167_v31 = vpop.permute.xlu0 %8166 }
 0xb5b   :  { %v8194_v15 = vsel %vm8193_vm7, %v8192_v41, %v8164_v28 }
 0xb5c   :  { %v8195_v34 = vsel %vm6291_vm8, %v8194_v15, %v8167_v31  ;;  %v8208_v63 = vrot.slane %v8194_v15, %v13488_v4 }
 0xb5e   :  { %v8170_v36 = vpop.permute.xlu1 %8169  ;;  %v8173_v23 = vpop.permute.xlu0 %8172  ;;  %v16882_v2 = vsub.f32 %v7939_v3, %v8208_v63  ;;  %v16908_v52 = vsub.f32 %v7943_v38, %v8208_v63  ;;  %v16912_v0 = vsub.f32 %v7945_v27, %v8208_v63  ;;  %v16920_v30 = vsub.f32 %v7947_v19, %v8208_v63 }
 0xb5f   :  { %v8197_v56 = vsel %vm8196_vm1, %v8195_v34, %v8170_v36  ;;  %v16924_v27 = vsub.f32 %v7949_v32, %v8208_v63 }
 0xb60   :  { %v8198_v33 = vsel %vm6903_vm15, %v8197_v56, %v8173_v23  ;;  %v8293_v43 = vmul.f32 %v16920_v30, %v16920_v30 }
 0xb61   :  { %v8295_v32 = vmul.f32 %v16924_v27, %v16924_v27 }
 0xb62   :  { %v8176_v44 = vpop.permute.xlu1 %8175 }
 0xb63   :  { %v8200_v1 = vsel %vm8199_vm12, %v8198_v33, %v8176_v44  ;;  %v8270_v44 = vmul.f32 %v16908_v52, %v16908_v52  ;;  %v8272_v33 = vmul.f32 %v16912_v0, %v16912_v0 }
 0xb64   :  { %v8204_v6 = vrot.slane %v8200_v1, %v13488_v4 }
 0xb66   :  { %v16831_v46 = vsub.f32 %v7934_v12, %v8204_v6  ;;  %v16835_v10 = vsub.f32 %v7936_v25, %v8204_v6  ;;  %v16839_v13 = vsub.f32 %v7938_v16, %v8204_v6  ;;  %v16843_v14 = vsub.f32 %v7940_v9, %v8204_v6 }
 0xb67   :  { %v16848_v58 = vsub.f32 %v7942_v35, %v8204_v6  ;;  %v16852_v60 = vsub.f32 %v7944_v40, %v8204_v6  ;;  %v16856_v54 = vsub.f32 %v7946_v49, %v8204_v6  ;;  %v16862_v55 = vsub.f32 %v7948_v7, %v8204_v6 }
 0xb68   :  { %v8225_v11 = vmul.f32 %v16831_v46, %v16831_v46  ;;  %v8227_v9 = vmul.f32 %v16835_v10, %v16835_v10  ;;  %v8246_v25 = vmul.f32 %v16839_v13, %v16839_v13  ;;  %v8248_v57 = vmul.f32 %v16843_v14, %v16843_v14 }
 0xb69   :  { %v16872_v16 = vsub.f32 %v7935_v5, %v8208_v63  ;;  %v16876_v40 = vsub.f32 %v7937_v17, %v8208_v63  ;;  %v8269_v12 = vmul.f32 %v16848_v58, %v16848_v58  ;;  %v8271_v24 = vmul.f32 %v16852_v60, %v16852_v60 }
 0xb6a   :  { %v8229_v35 = vsel %vm6781_vm9, %v8227_v9, 0.0  ;;  %v8250_v47 = vsel %vm6781_vm9, %v8248_v57, 0.0  ;;  %v16890_v7 = vsub.f32 %v7941_v22, %v8208_v63  ;;  %v8292_v18 = vmul.f32 %v16856_v54, %v16856_v54 }
 0xb6b   :  { %v8230_v49 = vadd.f32 %v8229_v35, %v8225_v11  ;;  %v8251_v50 = vadd.f32 %v8250_v47, %v8246_v25  ;;  %v8273_v61 = vsel %vm6781_vm9, %v8271_v24, 0.0  ;;  %v8294_v17 = vmul.f32 %v16862_v55, %v16862_v55 }
 0xb6c   :  { %v8274_v20 = vadd.f32 %v8273_v61, %v8269_v12  ;;  %v8226_v26 = vmul.f32 %v16872_v16, %v16872_v16  ;;  %v8228_v62 = vmul.f32 %v16876_v40, %v16876_v40  ;;  %v8247_v22 = vmul.f32 %v16882_v2, %v16882_v2 }
 0xb6d   :  { %v8231_v3 = vrot.slane %v8230_v49, 4  ;;  %v8252_v5 = vrot.slane %v8251_v50, 4  ;;  %v8296_v29 = vsel %vm6781_vm9, %v8294_v17, 0.0  ;;  %v8249_v53 = vmul.f32 %v16890_v7, %v16890_v7 }
 0xb6e   :  { %v8275_v59 = vrot.slane %v8274_v20, 4  ;;  %v8297_v8 = vadd.f32 %v8296_v29, %v8292_v18  ;;  %v8237_v31 = vsel %vm6291_vm8, %v8226_v26, 0.0  ;;  %v8238_v36 = vsel %vm6791_vm10, %v8228_v62, 0.0 }
 0xb6f   :  { %v8232_v48 = vadd.f32 %v8231_v3, %v8230_v49  ;;  %v8253_v21 = vadd.f32 %v8252_v5, %v8251_v50  ;;  %v8258_v41 = vsel %vm6291_vm8, %v8247_v22, 0.0  ;;  %v8259_v23 = vsel %vm6791_vm10, %v8249_v53, 0.0 }
 0xb70   :  { %v8276_v45 = vadd.f32 %v8275_v59, %v8274_v20  ;;  %v8298_v15 = vrot.slane %v8297_v8, 4  ;;  %v8239_v9 = vadd.f32 %v8238_v36, %v8237_v31  ;;  %v8260_v25 = vadd.f32 %v8259_v23, %v8258_v41 }
 0xb71   :  { %v8233_v28 = vrot.slane %v8232_v48, 2  ;;  %v8254_v42 = vrot.slane %v8253_v21, 2  ;;  %v8281_v35 = vsel %vm6291_vm8, %v8270_v44, 0.0  ;;  %v8282_v47 = vsel %vm6791_vm10, %v8272_v33, 0.0 }
 0xb72   :  { %v8277_v34 = vrot.slane %v8276_v45, 2  ;;  %v8299_v56 = vadd.f32 %v8298_v15, %v8297_v8  ;;  %v8240_v50 = vrot.slane %v8239_v9, 4  ;;  %v8261_v61 = vrot.slane %v8260_v25, 4 }
 0xb73   :  { %v8234_v37 = vadd.f32 %v8233_v28, %v8232_v48  ;;  %v8255_v38 = vadd.f32 %v8254_v42, %v8253_v21  ;;  %v8283_v3 = vadd.f32 %v8282_v47, %v8281_v35  ;;  %v8304_v20 = vsel %vm6291_vm8, %v8293_v43, 0.0 }
 0xb74   :  { %v8278_v11 = vadd.f32 %v8277_v34, %v8276_v45  ;;  %v8300_v57 = vrot.slane %v8299_v56, 2  ;;  %v8305_v26 = vsel %vm6791_vm10, %v8295_v32, 0.0  ;;  %v8241_v62 = vadd.f32 %v8240_v50, %v8239_v9 }
 0xb75   :  { %v8235_v1 = vrot.slane %v8234_v37, 1  ;;  %v8256_v6 = vrot.slane %v8255_v38, 1  ;;  %v8262_v22 = vadd.f32 %v8261_v61, %v8260_v25  ;;  %v8284_v53 = vrot.slane %v8283_v3, 4 }
 0xb76   :  { %v8279_v12 = vrot.slane %v8278_v11, 1  ;;  %v8301_v63 = vadd.f32 %v8300_v57, %v8299_v56  ;;  %v8306_v48 = vadd.f32 %v8305_v26, %v8304_v20  ;;  %v8242_v21 = vrot.slane %v8241_v62, 2  ;;  %v16982_v57 = vld [vmem:[%s17746_s12] sm:$0x1] }
 0xb77   :  { %v8236_v51 = vadd.f32 %v8235_v1, %v8234_v37  ;;  %v8257_v19 = vadd.f32 %v8256_v6, %v8255_v38  ;;  %v8263_v59 = vrot.slane %v8262_v22, 2  ;;  %v8285_v8 = vadd.f32 %v8284_v53, %v8283_v3 }
 0xb78   :  { %v8280_v49 = vadd.f32 %v8279_v12, %v8278_v11  ;;  %v8302_v18 = vrot.slane %v8301_v63, 1  ;;  %v8307_v28 = vrot.slane %v8306_v48, 4  ;;  %v8243_v42 = vadd.f32 %v8242_v21, %v8241_v62 }
 0xb79   :  { %v8267_v24 = vadd.f32 %v8257_v19, %v8236_v51  ;;  %v8264_v45 = vadd.f32 %v8263_v59, %v8262_v22  ;;  %v8286_v31 = vrot.slane %v8285_v8, 2  ;;  %v16988_v51 = vrot.slane %v16982_v57, %v13488_v4 }
 0xb7a   :  { %v8303_v5 = vadd.f32 %v8302_v18, %v8301_v63  ;;  %v8308_v36 = vadd.f32 %v8307_v28, %v8306_v48  ;;  %v8244_v41 = vrot.slane %v8243_v42, 1  ;;  %vm17820_vm9 = vcmask 392192  }
 0xb7b   :  { %v8290_v17 = vadd.f32 %v8280_v49, %v8267_v24  ;;  %v8265_v15 = vrot.slane %v8264_v45, 1  ;;  %v8287_v23 = vadd.f32 %v8286_v31, %v8285_v8 }
 0xb7c   :  { %v8309_v37 = vrot.slane %v8308_v36, 2  ;;  %v8245_v38 = vadd.f32 %v8244_v41, %v8243_v42 }
 0xb7d   :  { %v16938_v29 = vadd.f32 %v8303_v5, %v8290_v17  ;;  %v8266_v34 = vadd.f32 %v8265_v15, %v8264_v45  ;;  %v8288_v44 = vrot.slane %v8287_v23, 1 }
 0xb7e   :  { %v8310_v56 = vadd.f32 %v8309_v37, %v8308_v36 }
 0xb7f   :  { %8320 = vrot.lane.b32.xlu1 %v16938_v29, %s13011_s6  ;;  %8316 = vrot.lane.b32.xlu0 %v16938_v29, %s13017_s10  ;;  %v8268_v33 = vadd.f32 %v8266_v34, %v8245_v38  ;;  %v8289_v1 = vadd.f32 %v8288_v44, %v8287_v23 }
 0xb80   :  { %v8311_v6 = vrot.slane %v8310_v56, 1 }
 0xb81   :  { %v8291_v11 = vadd.f32 %v8289_v1, %v8268_v33 }
 0xb82   :  { %v8312_v9 = vadd.f32 %v8311_v6, %v8310_v56 }
 0xb83   :  { %8328 = vrot.lane.b32.xlu1 %v16938_v29, %s13013_s29  ;;  %8324 = vrot.lane.b32.xlu0 %v16938_v29, %s13018_s8 }
 0xb84   :  { %v8314_v25 = vadd.f32 %v8312_v9, %v8291_v11 }
 0xb87   :  { %8336 = vrot.lane.b32.xlu1 %v16938_v29, %s13010_s5  ;;  %8332 = vrot.lane.b32.xlu0 %v16938_v29, %s13019_s18 }
 0xb8b   :  { %8344 = vrot.lane.b32.xlu1 %v16938_v29, %s13012_s3  ;;  %8340 = vrot.lane.b32.xlu0 %v16938_v29, %s13020_s19 }
 0xb8f   :  { %8352 = vrot.lane.b32.xlu1 %v16938_v29, %s13015_s30  ;;  %8348 = vrot.lane.b32.xlu0 %v16938_v29, %s13021_s7 }
 0xb93   :  { %8360 = vrot.lane.b32.xlu1 %v16938_v29, %s13014_s4  ;;  %8356 = vrot.lane.b32.xlu0 %v16938_v29, %s13022_s20 }
 0xb97   :  { %8368 = vrot.lane.b32.xlu1 %v16938_v29, %s13016_s1  ;;  %8364 = vrot.lane.b32.xlu0 %v16938_v29, %s13023_s21 }
 0xb9b   :  { %8378 = vrot.lane.b32.xlu1 %v8314_v25, %s13017_s10  ;;  %8372 = vrot.lane.b32.xlu0 %v16938_v29, %s13024_s22 }
 0xb9f   :  { %8386 = vrot.lane.b32.xlu1 %v8314_v25, %s13018_s8  ;;  %8382 = vrot.lane.b32.xlu0 %v8314_v25, %s13011_s6 }
 0xba3   :  { %8394 = vrot.lane.b32.xlu1 %v8314_v25, %s13019_s18  ;;  %8390 = vrot.lane.b32.xlu0 %v8314_v25, %s13013_s29 }
 0xba7   :  { %8402 = vrot.lane.b32.xlu1 %v8314_v25, %s13020_s19  ;;  %8398 = vrot.lane.b32.xlu0 %v8314_v25, %s13010_s5 }
 0xbab   :  { %8410 = vrot.lane.b32.xlu1 %v8314_v25, %s13021_s7  ;;  %8406 = vrot.lane.b32.xlu0 %v8314_v25, %s13012_s3 }
 0xbaf   :  { %8418 = vrot.lane.b32.xlu1 %v8314_v25, %s13022_s20  ;;  %8414 = vrot.lane.b32.xlu0 %v8314_v25, %s13015_s30 }
 0xbb3   :  { %8498 = vrot.lane.b32.xlu1 %v16988_v51, %s13024_s22 }
 0xbb7   :  { %8501 = vrot.lane.b32.xlu1 %v16988_v51, %s13016_s1 }
 0xbbb   :  { %8504 = vrot.lane.b32.xlu1 %v16988_v51, %s13023_s21 }
 0xbbf   :  { %8507 = vrot.lane.b32.xlu1 %v16988_v51, %s13014_s4 }
 0xbc3   :  { %8510 = vrot.lane.b32.xlu1 %v16988_v51, %s13022_s20 }
 0xbc7   :  { %8513 = vrot.lane.b32.xlu1 %v16988_v51, %s13015_s30 }
 0xbcb   :  { %8516 = vrot.lane.b32.xlu1 %v16988_v51, %s13021_s7 }
 0xbcf   :  { %8519 = vrot.lane.b32.xlu1 %v16988_v51, %s13012_s3 }
 0xbd3   :  { %8522 = vrot.lane.b32.xlu1 %v16988_v51, %s13020_s19 }
 0xbd7   :  { %8525 = vrot.lane.b32.xlu1 %v16988_v51, %s13010_s5 }
 0xbf1   :  { %v8321_v19 = vpop.permute.xlu1 %8320  ;;  %v8317_v12 = vpop.permute.xlu0 %8316 }
 0xbf2   :  { %v8319_v43 = vadd.f32 %v8317_v12, %v16938_v29 }
 0xbf4   :  { %v8323_v32 = vadd.f32 %v8321_v19, %v8319_v43 }
 0xbf5   :  { %v8329_v63 = vpop.permute.xlu1 %8328  ;;  %v8325_v35 = vpop.permute.xlu0 %8324 }
 0xbf6   :  { %v8327_v47 = vadd.f32 %v8325_v35, %v8323_v32 }
 0xbf8   :  { %v8331_v24 = vadd.f32 %v8329_v63, %v8327_v47 }
 0xbf9   :  { %v8337_v49 = vpop.permute.xlu1 %8336  ;;  %v8333_v50 = vpop.permute.xlu0 %8332 }
 0xbfa   :  { %v8335_v61 = vadd.f32 %v8333_v50, %v8331_v24 }
 0xbfc   :  { %v8339_v18 = vadd.f32 %v8337_v49, %v8335_v61 }
 0xbfd   :  { %v8345_v17 = vpop.permute.xlu1 %8344  ;;  %v8341_v3 = vpop.permute.xlu0 %8340 }
 0xbfe   :  { %v8343_v5 = vadd.f32 %v8341_v3, %v8339_v18  ;;  %v8423_v18 = vld [vmem:[%s17747_s11] sm:$0x1] }
 0xc00   :  { %v8347_v20 = vadd.f32 %v8345_v17, %v8343_v5  ;;  %v17019_v5 = vld [vmem:[%s17748_s13 + $0x70] sm:$0xff]  }
 0xc01   :  { %v8353_v26 = vpop.permute.xlu1 %8352  ;;  %v8349_v62 = vpop.permute.xlu0 %8348  ;;  %8799 = vmatpush1.bf16.msra.mxu0 %v17019_v5  ;;  %9126 = vmatpush1.bf16.msra.mxu1 %v17019_v5 }
 0xc02   :  { %v8351_v22 = vadd.f32 %v8349_v62, %v8347_v20  ;;  %8800 = vmatprep.subr.bf16.mxu0 %v17799_v39  ;;  %9127 = vmatprep.subr.bf16.mxu1 %v17799_v39  ;;  %v17045_v62 = vld [vmem:[%s17748_s13 + $0x80] sm:$0xff]  }
 0xc04   :  { %v8355_v53 = vadd.f32 %v8353_v26, %v8351_v22  ;;  %v17032_v26 = vld [vmem:[%s17748_s13 + $0x78] sm:$0xff]   ;;  %v17058_v22 = vld [vmem:[%s17748_s13 + $0x88] sm:$0xff]  }
 0xc05   :  { %v8361_v48 = vpop.permute.xlu1 %8360  ;;  %v8357_v21 = vpop.permute.xlu0 %8356  ;;  %8801 = vmatpush1.bf16.msra.mxu0 %v17032_v26  ;;  %9128 = vmatpush1.bf16.msra.mxu1 %v17032_v26 }
 0xc06   :  { %v8359_v29 = vadd.f32 %v8357_v21, %v8355_v53  ;;  %8802 = vmatprep.subr.bf16.mxu0 %v17799_v39  ;;  %9129 = vmatprep.subr.bf16.mxu1 %v17799_v39  ;;  %v17071_v53 = vld [vmem:[%s17748_s13 + $0x90] sm:$0xff]   ;;  %v17097_v21 = vld [vmem:[%s17748_s13 + $0xa0] sm:$0xff]  }
 0xc08   :  { %v8363_v59 = vadd.f32 %v8361_v48, %v8359_v29  ;;  %v17084_v48 = vld [vmem:[%s17748_s13 + $0x98] sm:$0xff]   ;;  %v17110_v29 = vld [vmem:[%s17748_s13 + $0xa8] sm:$0xff]  }
 0xc09   :  { %v8369_v8 = vpop.permute.xlu1 %8368  ;;  %v8365_v28 = vpop.permute.xlu0 %8364  ;;  %8803 = vmatpush1.bf16.msra.mxu0 %v17045_v62  ;;  %9130 = vmatpush1.bf16.msra.mxu1 %v17045_v62 }
 0xc0a   :  { %v8367_v42 = vadd.f32 %v8365_v28, %v8363_v59  ;;  %8804 = vmatprep.subr.bf16.mxu0 %v17799_v39  ;;  %9131 = vmatprep.subr.bf16.mxu1 %v17799_v39  ;;  %v17121_v59 = vld [vmem:[%s17748_s13 + $0xb0] sm:$0xff]   ;;  %v17139_v28 = vld [vmem:[%s17748_s13 + $0xc0] sm:$0xff]  }
 0xc0c   :  { %v8371_v45 = vadd.f32 %v8369_v8, %v8367_v42  ;;  %v17128_v8 = vld [vmem:[%s17748_s13 + $0xb8] sm:$0xff]   ;;  %v17154_v42 = vld [vmem:[%s17748_s13 + $0xc8] sm:$0xff]  }
 0xc0d   :  { %v8379_v31 = vpop.permute.xlu1 %8378  ;;  %v8373_v36 = vpop.permute.xlu0 %8372  ;;  %8805 = vmatpush1.bf16.msra.mxu0 %v17058_v22  ;;  %9132 = vmatpush1.bf16.msra.mxu1 %v17058_v22 }
 0xc0e   :  { %v8375_v41 = vadd.f32 %v8373_v36, %v8371_v45  ;;  %8806 = vmatprep.subr.bf16.mxu0 %v17799_v39  ;;  %9133 = vmatprep.subr.bf16.mxu1 %v17799_v39  ;;  %v17161_v45 = vld [vmem:[%s17748_s13 + $0xd0] sm:$0xff]  }
 0xc10   :  { %v8376_v15 = vadd.f32 %v8375_v41, %v8314_v25 }
 0xc11   :  { %v8387_v23 = vpop.permute.xlu1 %8386  ;;  %v8383_v37 = vpop.permute.xlu0 %8382  ;;  %8807 = vmatpush1.bf16.msra.mxu0 %v17071_v53  ;;  %9134 = vmatpush1.bf16.msra.mxu1 %v17071_v53 }
 0xc12   :  { %v8381_v38 = vadd.f32 %v8379_v31, %v8376_v15  ;;  %8808 = vmatprep.subr.bf16.mxu0 %v17799_v39  ;;  %9135 = vmatprep.subr.bf16.mxu1 %v17799_v39  ;;  %v17176_v31 = vld [vmem:[%s17748_s13 + $0xd8] sm:$0xff]  }
 0xc14   :  { %v8385_v34 = vadd.f32 %v8383_v37, %v8381_v38 }
 0xc15   :  { %v8395_v44 = vpop.permute.xlu1 %8394  ;;  %v8391_v56 = vpop.permute.xlu0 %8390  ;;  %8809 = vmatpush1.bf16.msra.mxu0 %v17084_v48  ;;  %9136 = vmatpush1.bf16.msra.mxu1 %v17084_v48 }
 0xc16   :  { %v8389_v33 = vadd.f32 %v8387_v23, %v8385_v34  ;;  %8810 = vmatprep.subr.bf16.mxu0 %v17799_v39  ;;  %9137 = vmatprep.subr.bf16.mxu1 %v17799_v39 }
 0xc18   :  { %v8393_v1 = vadd.f32 %v8391_v56, %v8389_v33 }
 0xc19   :  { %v8403_v6 = vpop.permute.xlu1 %8402  ;;  %v8399_v11 = vpop.permute.xlu0 %8398  ;;  %8811 = vmatpush1.bf16.msra.mxu0 %v17097_v21  ;;  %9138 = vmatpush1.bf16.msra.mxu1 %v17097_v21 }
 0xc1a   :  { %v8397_v9 = vadd.f32 %v8395_v44, %v8393_v1  ;;  %8812 = vmatprep.subr.bf16.mxu0 %v17799_v39  ;;  %9139 = vmatprep.subr.bf16.mxu1 %v17799_v39 }
 0xc1c   :  { %v8401_v19 = vadd.f32 %v8399_v11, %v8397_v9 }
 0xc1d   :  { %v8407_v12 = vpop.permute.xlu0 %8406  ;;  %v8411_v32 = vpop.permute.xlu1 %8410  ;;  %8813 = vmatpush1.bf16.msra.mxu0 %v17110_v29  ;;  %9140 = vmatpush1.bf16.msra.mxu1 %v17110_v29 }
 0xc1e   :  { %v8405_v43 = vadd.f32 %v8403_v6, %v8401_v19  ;;  %8814 = vmatprep.subr.bf16.mxu0 %v17799_v39  ;;  %9141 = vmatprep.subr.bf16.mxu1 %v17799_v39 }
 0xc20   :  { %v8409_v63 = vadd.f32 %v8407_v12, %v8405_v43 }
 0xc21   :  { %v8415_v47 = vpop.permute.xlu0 %8414  ;;  %v8419_v25 = vpop.permute.xlu1 %8418  ;;  %8815 = vmatpush1.bf16.msra.mxu0 %v17121_v59  ;;  %9142 = vmatpush1.bf16.msra.mxu1 %v17121_v59 }
 0xc22   :  { %v8413_v35 = vadd.f32 %v8411_v32, %v8409_v63  ;;  %8816 = vmatprep.subr.bf16.mxu0 %v17799_v39  ;;  %9143 = vmatprep.subr.bf16.mxu1 %v17799_v39 }
 0xc24   :  { %v8417_v24 = vadd.f32 %v8415_v47, %v8413_v35 }
 0xc25   :  { %8817 = vmatpush1.bf16.msra.mxu0 %v17128_v8  ;;  %9144 = vmatpush1.bf16.msra.mxu1 %v17128_v8  ;;  %v8499_v36 = vpop.permute.xlu1 %8498 }
 0xc26   :  { %v8421_v49 = vadd.f32 %v8419_v25, %v8417_v24  ;;  %8818 = vmatprep.subr.bf16.mxu0 %v17799_v39  ;;  %9145 = vmatprep.subr.bf16.mxu1 %v17799_v39  ;;  %v8543_v33 = vsel %vm8178_vm0, %v16982_v57, %v8499_v36 }
 0xc28   :  { %v8422_v50 = vmul.f32 0.0006377551, %v8421_v49 }
 0xc29   :  { %8819 = vmatpush1.bf16.msra.mxu0 %v17139_v28  ;;  %9146 = vmatpush1.bf16.msra.mxu1 %v17139_v28  ;;  %v8502_v41 = vpop.permute.xlu1 %8501 }
 0xc2a   :  { %v8424_v61 = vadd.f32 1e-05, %v8422_v50  ;;  %8820 = vmatprep.subr.bf16.mxu0 %v17799_v39  ;;  %9147 = vmatprep.subr.bf16.mxu1 %v17799_v39  ;;  %v8544_v11 = vsel %vm6893_vm11, %v8543_v33, %v8502_v41 }
 0xc2c   :  { %12994 = vrsqrt.f32 %v8424_v61 }
 0xc2d   :  { %8821 = vmatpush1.bf16.msra.mxu0 %v17154_v42  ;;  %9148 = vmatpush1.bf16.msra.mxu1 %v17154_v42  ;;  %v8505_v15 = vpop.permute.xlu1 %8504 }
 0xc2e   :  { %8822 = vmatprep.subr.bf16.mxu0 %v17799_v39  ;;  %9149 = vmatprep.subr.bf16.mxu1 %v17799_v39  ;;  %v8545_v9 = vsel %vm8181_vm2, %v8544_v11, %v8505_v15 }
 0xc31   :  { %8823 = vmatpush1.bf16.msra.mxu0 %v17161_v45  ;;  %9150 = vmatpush1.bf16.msra.mxu1 %v17161_v45  ;;  %v8508_v23 = vpop.permute.xlu1 %8507 }
 0xc32   :  { %8824 = vmatprep.subr.bf16.mxu0 %v17799_v39  ;;  %9151 = vmatprep.subr.bf16.mxu1 %v17799_v39  ;;  %v8546_v12 = vsel %vm1201_vm3, %v8545_v9, %v8508_v23 }
 0xc35   :  { %8825 = vmatpush1.bf16.msra.mxu0 %v17176_v31  ;;  %9152 = vmatpush1.bf16.msra.mxu1 %v17176_v31  ;;  %v8511_v37 = vpop.permute.xlu1 %8510 }
 0xc36   :  { %v12995_v17 = vpop.eup %12994  ;;  %8926 = vmatprep.subr.bf16.mxu0 %v17799_v39  ;;  %9166 = vmatprep.subr.bf16.mxu1 %v17799_v39  ;;  %v8547_v32 = vsel %vm8184_vm4, %v8546_v12, %v8511_v37 }
 0xc37   :  { %v17014_v3 = vmul.f32 %v12995_v17, %v8423_v18 }
 0xc39   :  { %v17023_v20 = vrot.slane %v17014_v3, %v13488_v4  ;;  %v8514_v38 = vpop.permute.xlu1 %8513 }
 0xc3a   :  { %v8548_v47 = vsel %vm17820_vm9, %v8547_v32, %v8514_v38 }
 0xc3b   :  { %8435 = vrot.lane.b32.xlu1 %v17023_v20, %s13016_s1  ;;  %8432 = vrot.lane.b32.xlu0 %v17023_v20, %s13024_s22  ;;  %s13026_s1 = smov 84  }
 0xc3d   :  { %v8517_v44 = vpop.permute.xlu1 %8516 }
 0xc3e   :  { %v8549_v24 = vsel %vm8187_vm5, %v8548_v47, %v8517_v44 }
 0xc3f   :  { %8438 = vrot.lane.b32.xlu0 %v17023_v20, %s13023_s21  ;;  %8528 = vrot.lane.b32.xlu1 %v16988_v51, %s13019_s18 }
 0xc41   :  { %v8520_v1 = vpop.permute.xlu1 %8519 }
 0xc42   :  { %v8550_v50 = vsel %vm6898_vm13, %v8549_v24, %v8520_v1 }
 0xc43   :  { %8441 = vrot.lane.b32.xlu0 %v17023_v20, %s13014_s4  ;;  %8531 = vrot.lane.b32.xlu1 %v16988_v51, %s13013_s29 }
 0xc47   :  { %8444 = vrot.lane.b32.xlu0 %v17023_v20, %s13022_s20  ;;  %8534 = vrot.lane.b32.xlu1 %v16988_v51, %s13018_s8 }
 0xc4b   :  { %8447 = vrot.lane.b32.xlu0 %v17023_v20, %s13015_s30  ;;  %8540 = vrot.lane.b32.xlu1 %v16988_v51, %s13017_s10 }
 0xc4f   :  { %8450 = vrot.lane.b32.xlu0 %v17023_v20, %s13021_s7 }
 0xc53   :  { %8453 = vrot.lane.b32.xlu0 %v17023_v20, %s13012_s3 }
 0xc57   :  { %8456 = vrot.lane.b32.xlu0 %v17023_v20, %s13020_s19 }
 0xc5b   :  { %8459 = vrot.lane.b32.xlu0 %v17023_v20, %s13010_s5 }
 0xc5f   :  { %8462 = vrot.lane.b32.xlu0 %v17023_v20, %s13019_s18 }
 0xc63   :  { %8465 = vrot.lane.b32.xlu0 %v17023_v20, %s13013_s29 }
 0xc67   :  { %8468 = vrot.lane.b32.xlu0 %v17023_v20, %s13018_s8 }
 0xc6b   :  { %8471 = vrot.lane.b32.xlu0 %v17023_v20, %s13011_s6 }
 0xc6f   :  { %8474 = vrot.lane.b32.xlu0 %v17023_v20, %s13017_s10 }
 0xc73   :  { %8537 = vrot.lane.b32.xlu0 %v16988_v51, %s13011_s6  ;;  %v8523_v51 = vpop.permute.xlu1 %8522 }
 0xc74   :  { %v8551_v20 = vsel %vm8190_vm6, %v8550_v50, %v8523_v51 }
 0xc77   :  { %v8526_v63 = vpop.permute.xlu1 %8525 }
 0xc78   :  { %v8552_v37 = vsel %vm6900_vm14, %v8551_v20, %v8526_v63 }
 0xcad   :  { %v8433_v34 = vpop.permute.xlu0 %8432  ;;  %v8436_v25 = vpop.permute.xlu1 %8435 }
 0xcae   :  { %v8477_v49 = vsel %vm8178_vm0, %v17014_v3, %v8433_v34 }
 0xcaf   :  { %v8478_v61 = vsel %vm6893_vm11, %v8477_v49, %v8436_v25  ;;  %vm17821_vm11 = vcmask 1041408  }
 0xcb1   :  { %v8439_v56 = vpop.permute.xlu0 %8438  ;;  %v8529_v34 = vpop.permute.xlu1 %8528 }
 0xcb2   :  { %v8479_v17 = vsel %vm8181_vm2, %v8478_v61, %v8439_v56  ;;  %v8553_v56 = vsel %vm8193_vm7, %v8552_v37, %v8529_v34 }
 0xcb3   :  { %v8577_v9 = vrot.slane %v8553_v56, %v13488_v4 }
 0xcb5   :  { %v8442_v6 = vpop.permute.xlu0 %8441 }
 0xcb6   :  { %v8480_v36 = vsel %vm1201_vm3, %v8479_v17, %v8442_v6  ;;  %vm8627_vm3 = vcmask 785410  }
 0xcb9   :  { %v8445_v19 = vpop.permute.xlu0 %8444 }
 0xcba   :  { %v8481_v41 = vsel %vm8184_vm4, %v8480_v36, %v8445_v19 }
 0xcbd   :  { %v8448_v43 = vpop.permute.xlu0 %8447 }
 0xcbe   :  { %v8482_v15 = vsel %vm17820_vm9, %v8481_v41, %v8448_v43 }
 0xcc1   :  { %v8451_v35 = vpop.permute.xlu0 %8450 }
 0xcc2   :  { %v8483_v3 = vsel %vm8187_vm5, %v8482_v15, %v8451_v35 }
 0xcc5   :  { %v8454_v57 = vpop.permute.xlu0 %8453 }
 0xcc6   :  { %v8484_v38 = vsel %vm6898_vm13, %v8483_v3, %v8454_v57 }
 0xcc9   :  { %v8457_v18 = vpop.permute.xlu0 %8456 }
 0xcca   :  { %v8485_v44 = vsel %vm8190_vm6, %v8484_v38, %v8457_v18 }
 0xccd   :  { %v8460_v23 = vpop.permute.xlu0 %8459 }
 0xcce   :  { %v8486_v33 = vsel %vm6900_vm14, %v8485_v44, %v8460_v23 }
 0xcd1   :  { %v8463_v1 = vpop.permute.xlu0 %8462 }
 0xcd2   :  { %v8487_v6 = vsel %vm8193_vm7, %v8486_v33, %v8463_v1 }
 0xcd3   :  { %v8565_v11 = vrot.slane %v8487_v6, %v13488_v4 }
 0xcd5   :  { %v8599_v19 = vmul.f32 %v8565_v11, %v16920_v30  ;;  %v8601_v51 = vmul.f32 %v8565_v11, %v16924_v27  ;;  %v8466_v12 = vpop.permute.xlu0 %8465  ;;  %v8567_v43 = vmul.f32 %v8565_v11, %v16872_v16  ;;  %v8569_v32 = vmul.f32 %v8565_v11, %v16876_v40 }
 0xcd6   :  { %v8583_v63 = vmul.f32 %v8565_v11, %v16882_v2  ;;  %v8585_v35 = vmul.f32 %v8565_v11, %v16890_v7  ;;  %v8591_v47 = vmul.f32 %v8565_v11, %v16908_v52  ;;  %v8593_v27 = vmul.f32 %v8565_v11, %v16912_v0  ;;  %v8532_v7 = vpop.permute.xlu1 %8531 }
 0xcd7   :  { %v8603_v24 = vadd.f32 %v8599_v19, %v8577_v9  ;;  %v8605_v57 = vadd.f32 %v8601_v51, %v8577_v9  ;;  %v8579_v25 = vadd.f32 %v8577_v9, %v8567_v43  ;;  %v8581_v49 = vadd.f32 %v8577_v9, %v8569_v32 }
 0xcd8   :  { %v8587_v50 = vadd.f32 %v8583_v63, %v8577_v9  ;;  %v8589_v30 = vadd.f32 %v8585_v35, %v8577_v9  ;;  %v8595_v61 = vadd.f32 %v8591_v47, %v8577_v9  ;;  %v8597_v20 = vadd.f32 %v8593_v27, %v8577_v9 }
 0xcd9   :  { %v8617_v18 = vrot.slane %v8603_v24, 6  ;;  %v8620_v16 = vrot.slane %v8605_v57, 6  ;;  %v8469_v17 = vpop.permute.xlu0 %8468  ;;  %8607 = vst.msk [vmem:[#allocation4 + $0x8] sm:$0xff] %vm6291_vm8, %v8579_v25  ;;  %v17222_v40 = vpack.c.bf16 %v8581_v49, %v8579_v25  ;;  %v17224_v2 = vpack.c.bf16 %v8605_v57, %v8603_v24 }
 0xcda   :  { %8609 = vst.msk [vmem:[#allocation4 + $0x18] sm:$0x3f] %vm6791_vm10, %v8581_v49  ;;  %v17226_v52 = vpack.c.bf16 %v8589_v30, %v8587_v50  ;;  %v17235_v36 = vpack.c.bf16 %v8597_v20, %v8595_v61  ;;  %v8488_v15 = vsel %vm6291_vm8, %v8487_v6, %v8466_v12  ;;  %v8535_v23 = vpop.permute.xlu1 %8534  ;;  %v8554_v34 = vsel %vm6291_vm8, %v8553_v56, %v8532_v7  ;;  %v17275_v20 = vld [vmem:[%s17748_s13 + $0xe8] sm:$0xff]  }
 0xcdb   :  { %11352 = vmatprep.mubr.msk.bf16.mxu0 %vm6291_vm8, %v17222_v40  ;;  %v8621_v0 = vsel %vm17821_vm11, %v8617_v18, %v8620_v16  ;;  %8628 = vst.msk [vmem:[#allocation5 + $0x8] sm:$0xfc] %vm8627_vm3, %v8617_v18  ;;  %v8489_v37 = vsel %vm8196_vm1, %v8488_v15, %v8469_v17  ;;  %v8555_v11 = vsel %vm8196_vm1, %v8554_v34, %v8535_v23  ;;  %vm17822_vm1 = vmmov %vm17821_vm11  ;;  %v17314_v15 = vld [vmem:[%s17748_s13 + $0x108] sm:$0xff]   ;;  %v17323_v23 = vld [vmem:[%s17748_s13 + $0x110] sm:$0xff]   ;;  %vm9543_vm10 = vcmask 687104  }
 0xcdc   :  { %11383 = vmatprep.mubr.msk.bf16.mxu1 %vm6291_vm8, %v17226_v52  ;;  %8630 = vst.msk [vmem:[#allocation5 + $0x18] sm:$0xff] %vm6291_vm8, %v8621_v0  ;;  %v17287_v0 = vld [vmem:[%s17748_s13 + $0xf0] sm:$0xff]  }
 0xcdd   :  { %v8472_v41 = vpop.permute.xlu0 %8471  ;;  %v17359_v34 = vld [vmem:[%s17748_s13 + $0x130] sm:$0xff]  }
 0xcde   :  { %v8490_v3 = vsel %vm6903_vm15, %v8489_v37, %v8472_v41  ;;  %v8541_v1 = vpop.permute.xlu1 %8540  ;;  %v17305_v41 = vld [vmem:[%s17748_s13 + $0x100] sm:$0xff]   ;;  %v17332_v37 = vld [vmem:[%s17748_s13 + $0x118] sm:$0xff]  }
 0xce1   :  { %v8475_v38 = vpop.permute.xlu0 %8474 }
 0xce2   :  { %v8491_v44 = vsel %vm8199_vm12, %v8490_v3, %v8475_v38  ;;  %v17341_v3 = vld [vmem:[%s17748_s13 + $0x120] sm:$0xff]   ;;  %v17350_v38 = vld [vmem:[%s17748_s13 + $0x128] sm:$0xff]  }
 0xce3   :  { %v8561_v33 = vrot.slane %v8491_v44, %v13488_v4  ;;  %v8650_v30 = vld [vmem:[#allocation5 + $0x18] sm:$0x3f] }
 0xce4   :  { %v17368_v44 = vld [vmem:[%s17748_s13 + $0x138] sm:$0xff]  }
 0xce5   :  { %v8538_v9 = vpop.permute.xlu0 %8537  ;;  %v8598_v6 = vmul.f32 %v8561_v33, %v16856_v54  ;;  %v8600_v12 = vmul.f32 %v8561_v33, %v16862_v55  ;;  %v8566_v56 = vmul.f32 %v8561_v33, %v16831_v46  ;;  %v8568_v32 = vmul.f32 %v8561_v33, %v16835_v10  ;;  %v17258_v55 = vld [vmem:[%s17748_s13 + $0xe0] sm:$0xff]   ;;  %v8648_v10 = vld [vmem:[#allocation5 + $0x8] sm:$0xff] }
 0xce6   :  { %v8556_v19 = vsel %vm6903_vm15, %v8555_v11, %v8538_v9  ;;  %v8582_v63 = vmul.f32 %v8561_v33, %v16839_v13  ;;  %v8584_v35 = vmul.f32 %v8561_v33, %v16843_v14  ;;  %v8590_v47 = vmul.f32 %v8561_v33, %v16848_v58 }
 0xce7   :  { %v8557_v51 = vsel %vm8199_vm12, %v8556_v19, %v8541_v1  ;;  %v8592_v24 = vmul.f32 %v8561_v33, %v16852_v60  ;;  %v8652_v17 = vpack.c.bf16 %v8650_v30, %v8648_v10  ;;  %v17377_v33 = vld [vmem:[%s17748_s13 + $0x140] sm:$0xff]   ;;  %v17386_v1 = vld [vmem:[%s17748_s13 + $0x148] sm:$0xff]   ;;  %vm9547_vm12 = vcmask 914432  }
 0xce8   :  { %v8573_v43 = vrot.slane %v8557_v51, %v13488_v4  ;;  %v17395_v19 = vld [vmem:[%s17748_s13] sm:$0xff]   ;;  %v17405_v51 = vld [vmem:[%s17748_s13 + $0x8] sm:$0xff]  }
 0xcea   :  { %v8602_v57 = vadd.f32 %v8598_v6, %v8573_v43  ;;  %v8604_v54 = vadd.f32 %v8600_v12, %v8573_v43  ;;  %v8578_v25 = vadd.f32 %v8573_v43, %v8566_v56  ;;  %v8580_v49 = vadd.f32 %v8573_v43, %v8568_v32  ;;  %v17418_v12 = vld [vmem:[%s17748_s13 + $0x10] sm:$0xff]   ;;  %v17436_v56 = vld [vmem:[%s17748_s13 + $0x20] sm:$0xff]   ;;  %v17445_v32 = vld [vmem:[%s17748_s13 + $0x28] sm:$0xff]  }
 0xceb   :  { %v8586_v46 = vadd.f32 %v8582_v63, %v8573_v43  ;;  %v8588_v50 = vadd.f32 %v8584_v35, %v8573_v43  ;;  %v8594_v13 = vadd.f32 %v8590_v47, %v8573_v43  ;;  %v8596_v27 = vadd.f32 %v8592_v24, %v8573_v43  ;;  %v17427_v43 = vld [vmem:[%s17748_s13 + $0x18] sm:$0xff]   ;;  %v17454_v63 = vld [vmem:[%s17748_s13 + $0x30] sm:$0xff]   ;;  %v17472_v47 = vld [vmem:[%s17748_s13 + $0x40] sm:$0xff]  }
 0xcec   :  { %v8616_v14 = vrot.slane %v8602_v57, 6  ;;  %v8618_v61 = vrot.slane %v8604_v54, 6  ;;  %8606 = vst [vmem:[#allocation4] sm:$0xff] %v8578_v25  ;;  %8608 = vst [vmem:[#allocation4 + $0x10] sm:$0x3f] %v8580_v49  ;;  %v17260_v58 = vpack.c.bf16 %v8580_v49, %v8578_v25  ;;  %v17262_v60 = vpack.c.bf16 %v8604_v54, %v8602_v57  ;;  %v17463_v35 = vld [vmem:[%s17748_s13 + $0x38] sm:$0xff]  }
 0xced   :  { %v17264_v18 = vpack.c.bf16 %v8588_v50, %v8586_v46  ;;  %v17266_v16 = vpack.c.bf16 %v8596_v27, %v8594_v13  ;;  %v17481_v24 = vld [vmem:[%s17748_s13 + $0x48] sm:$0xff]   ;;  %v17490_v57 = vld [vmem:[%s17748_s13 + $0x50] sm:$0xff]   ;;  %v17499_v54 = vld [vmem:[%s17748_s13 + $0x58] sm:$0xff]  }
 0xcee   :  { %8626 = vst [vmem:[#allocation5] sm:$0xfc] %v8616_v14  ;;  %8831 = vmatmul.mubr.bf16.vlgmr.msra.gmra.mrb[36].mxu0 %v17260_v58  ;;  %v8619_v7 = vsel %vm17822_vm1, %v8616_v14, %v8618_v61  ;;  %v17508_v25 = vld [vmem:[%s17748_s13 + $0x60] sm:$0xff]   ;;  %v17517_v49 = vld [vmem:[%s17748_s13 + $0x68] sm:$0xff]  }
 0xcef   :  { %8927 = vmatpush1.bf16.msra.mxu0 %v17258_v55  ;;  %9158 = vmatmul.mubr.bf16.vlgmr.msra.gmra.mrb[36].mxu1 %v17264_v18  ;;  %8629 = vst [vmem:[#allocation5 + $0x10] sm:$0xff] %v8619_v7 }
 0xcf0   :  { %9167 = vmatpush1.bf16.msra.mxu1 %v17258_v55  ;;  %11367 = vmatprep.mubr.msk.bf16.mxu0 %vm6291_vm8, %v8652_v17 }
 0xcf1   :  { %11384 = vmatprep.mubr.msk.bf16.mxu1 %vm6291_vm8, %v17222_v40  ;;  %8928 = vmatprep.subr.bf16.mxu0 %v17799_v39  ;;  %v17296_v40 = vld [vmem:[%s17748_s13 + $0xf8] sm:$0xff]   ;;  %s13025_s13 = smov 28  }
 0xcf2   :  { %9168 = vmatprep.subr.bf16.mxu1 %v17799_v39 }
 0xcf3   :  { %8929 = vmatpush1.bf16.msra.mxu0 %v17275_v20 }
 0xcf4   :  { %9169 = vmatpush1.bf16.msra.mxu1 %v17275_v20  ;;  %8930 = vmatprep.subr.bf16.mxu0 %v17799_v39 }
 0xcf5   :  { %9170 = vmatprep.subr.bf16.mxu1 %v17799_v39  ;;  %v8647_v11 = vld [vmem:[#allocation5] sm:$0xff] }
 0xcf6   :  { %v8649_v9 = vld [vmem:[#allocation5 + $0x10] sm:$0x3f] }
 0xcf7   :  { %8931 = vmatpush1.bf16.msra.mxu0 %v17287_v0  ;;  %v8651_v6 = vpack.c.bf16 %v8649_v9, %v8647_v11 }
 0xcf8   :  { %9171 = vmatpush1.bf16.msra.mxu1 %v17287_v0  ;;  %8932 = vmatprep.subr.bf16.mxu0 %v17799_v39 }
 0xcf9   :  { %9172 = vmatprep.subr.bf16.mxu1 %v17799_v39 }
 0xcfb   :  { %8933 = vmatpush1.bf16.msra.mxu0 %v17296_v40 }
 0xcfc   :  { %9173 = vmatpush1.bf16.msra.mxu1 %v17296_v40  ;;  %8934 = vmatprep.subr.bf16.mxu0 %v17799_v39 }
 0xcfd   :  { %9174 = vmatprep.subr.bf16.mxu1 %v17799_v39 }
 0xcff   :  { %8935 = vmatpush1.bf16.msra.mxu0 %v17305_v41 }
 0xd00   :  { %9175 = vmatpush1.bf16.msra.mxu1 %v17305_v41  ;;  %8936 = vmatprep.subr.bf16.mxu0 %v17799_v39 }
 0xd01   :  { %9176 = vmatprep.subr.bf16.mxu1 %v17799_v39 }
 0xd03   :  { %8937 = vmatpush1.bf16.msra.mxu0 %v17314_v15 }
 0xd04   :  { %9177 = vmatpush1.bf16.msra.mxu1 %v17314_v15  ;;  %8938 = vmatprep.subr.bf16.mxu0 %v17799_v39 }
 0xd05   :  { %9178 = vmatprep.subr.bf16.mxu1 %v17799_v39 }
 0xd07   :  { %8939 = vmatpush1.bf16.msra.mxu0 %v17323_v23 }
 0xd08   :  { %9179 = vmatpush1.bf16.msra.mxu1 %v17323_v23  ;;  %8940 = vmatprep.subr.bf16.mxu0 %v17799_v39 }
 0xd09   :  { %9180 = vmatprep.subr.bf16.mxu1 %v17799_v39 }
 0xd0b   :  { %8941 = vmatpush1.bf16.msra.mxu0 %v17332_v37 }
 0xd0c   :  { %9181 = vmatpush1.bf16.msra.mxu1 %v17332_v37  ;;  %8942 = vmatprep.subr.bf16.mxu0 %v17799_v39 }
 0xd0d   :  { %9182 = vmatprep.subr.bf16.mxu1 %v17799_v39 }
 0xd0f   :  { %8943 = vmatpush1.bf16.msra.mxu0 %v17341_v3 }
 0xd10   :  { %9183 = vmatpush1.bf16.msra.mxu1 %v17341_v3  ;;  %8944 = vmatprep.subr.bf16.mxu0 %v17799_v39 }
 0xd11   :  { %9184 = vmatprep.subr.bf16.mxu1 %v17799_v39 }
 0xd13   :  { %8945 = vmatpush1.bf16.msra.mxu0 %v17350_v38 }
 0xd14   :  { %9185 = vmatpush1.bf16.msra.mxu1 %v17350_v38  ;;  %8946 = vmatprep.subr.bf16.mxu0 %v17799_v39 }
 0xd15   :  { %9186 = vmatprep.subr.bf16.mxu1 %v17799_v39 }
 0xd17   :  { %8947 = vmatpush1.bf16.msra.mxu0 %v17359_v34 }
 0xd18   :  { %9187 = vmatpush1.bf16.msra.mxu1 %v17359_v34  ;;  %8948 = vmatprep.subr.bf16.mxu0 %v17799_v39 }
 0xd19   :  { %9188 = vmatprep.subr.bf16.mxu1 %v17799_v39 }
 0xd1b   :  { %8949 = vmatpush1.bf16.msra.mxu0 %v17368_v44 }
 0xd1c   :  { %9189 = vmatpush1.bf16.msra.mxu1 %v17368_v44  ;;  %8950 = vmatprep.subr.bf16.mxu0 %v17799_v39 }
 0xd1d   :  { %9190 = vmatprep.subr.bf16.mxu1 %v17799_v39 }
 0xd1f   :  { %8951 = vmatpush1.bf16.msra.mxu0 %v17377_v33 }
 0xd20   :  { %9191 = vmatpush1.bf16.msra.mxu1 %v17377_v33  ;;  %8952 = vmatprep.subr.bf16.mxu0 %v17799_v39 }
 0xd21   :  { %9192 = vmatprep.subr.bf16.mxu1 %v17799_v39 }
 0xd23   :  { %8953 = vmatpush1.bf16.msra.mxu0 %v17386_v1 }
 0xd24   :  { %9193 = vmatpush1.bf16.msra.mxu1 %v17386_v1  ;;  %9082 = vmatprep.subr.bf16.mxu0 %v17799_v39 }
 0xd25   :  { %9210 = vmatprep.subr.bf16.mxu1 %v17799_v39 }
 0xd26   :  { %8959 = vmatmul.mubr.bf16.vlgmr.msra.gmra.mrb[36].mxu0 %v8651_v6 }
 0xd27   :  { %9199 = vmatmul.mubr.bf16.vlgmr.msra.gmra.mrb[36].mxu1 %v17260_v58  ;;  %9083 = vmatpush1.bf16.msra.mxu0 %v17395_v19 }
 0xd28   :  { %11382 = vmatprep.mubr.msk.bf16.mxu0 %vm6291_vm8, %v17226_v52  ;;  %9211 = vmatpush1.bf16.msra.mxu1 %v17395_v19 }
 0xd29   :  { %11385 = vmatprep.mubr.msk.bf16.mxu1 %vm6291_vm8, %v17235_v36  ;;  %9084 = vmatprep.subr.bf16.mxu0 %v17799_v39 }
 0xd2a   :  { %9212 = vmatprep.subr.bf16.mxu1 %v17799_v39 }
 0xd2b   :  { %9085 = vmatpush1.bf16.msra.mxu0 %v17405_v51 }
 0xd2c   :  { %9213 = vmatpush1.bf16.msra.mxu1 %v17405_v51  ;;  %9086 = vmatprep.subr.bf16.mxu0 %v17799_v39 }
 0xd2d   :  { %9214 = vmatprep.subr.bf16.mxu1 %v17799_v39 }
 0xd2f   :  { %9087 = vmatpush1.bf16.msra.mxu0 %v17418_v12 }
 0xd30   :  { %9215 = vmatpush1.bf16.msra.mxu1 %v17418_v12  ;;  %9088 = vmatprep.subr.bf16.mxu0 %v17799_v39 }
 0xd31   :  { %9216 = vmatprep.subr.bf16.mxu1 %v17799_v39 }
 0xd33   :  { %9089 = vmatpush1.bf16.msra.mxu0 %v17427_v43 }
 0xd34   :  { %9217 = vmatpush1.bf16.msra.mxu1 %v17427_v43  ;;  %9090 = vmatprep.subr.bf16.mxu0 %v17799_v39 }
 0xd35   :  { %9218 = vmatprep.subr.bf16.mxu1 %v17799_v39 }
 0xd37   :  { %9091 = vmatpush1.bf16.msra.mxu0 %v17436_v56 }
 0xd38   :  { %9219 = vmatpush1.bf16.msra.mxu1 %v17436_v56  ;;  %9092 = vmatprep.subr.bf16.mxu0 %v17799_v39 }
 0xd39   :  { %9220 = vmatprep.subr.bf16.mxu1 %v17799_v39 }
 0xd3b   :  { %9093 = vmatpush1.bf16.msra.mxu0 %v17445_v32 }
 0xd3c   :  { %9221 = vmatpush1.bf16.msra.mxu1 %v17445_v32  ;;  %9094 = vmatprep.subr.bf16.mxu0 %v17799_v39 }
 0xd3d   :  { %9222 = vmatprep.subr.bf16.mxu1 %v17799_v39 }
 0xd3f   :  { %9095 = vmatpush1.bf16.msra.mxu0 %v17454_v63 }
 0xd40   :  { %9223 = vmatpush1.bf16.msra.mxu1 %v17454_v63  ;;  %9096 = vmatprep.subr.bf16.mxu0 %v17799_v39 }
 0xd41   :  { %9224 = vmatprep.subr.bf16.mxu1 %v17799_v39 }
 0xd43   :  { %9097 = vmatpush1.bf16.msra.mxu0 %v17463_v35 }
 0xd44   :  { %9225 = vmatpush1.bf16.msra.mxu1 %v17463_v35  ;;  %9098 = vmatprep.subr.bf16.mxu0 %v17799_v39 }
 0xd45   :  { %9226 = vmatprep.subr.bf16.mxu1 %v17799_v39 }
 0xd47   :  { %9099 = vmatpush1.bf16.msra.mxu0 %v17472_v47 }
 0xd48   :  { %9227 = vmatpush1.bf16.msra.mxu1 %v17472_v47  ;;  %9100 = vmatprep.subr.bf16.mxu0 %v17799_v39 }
 0xd49   :  { %9228 = vmatprep.subr.bf16.mxu1 %v17799_v39 }
 0xd4b   :  { %9101 = vmatpush1.bf16.msra.mxu0 %v17481_v24 }
 0xd4c   :  { %9229 = vmatpush1.bf16.msra.mxu1 %v17481_v24  ;;  %9102 = vmatprep.subr.bf16.mxu0 %v17799_v39 }
 0xd4d   :  { %9230 = vmatprep.subr.bf16.mxu1 %v17799_v39 }
 0xd4f   :  { %9103 = vmatpush1.bf16.msra.mxu0 %v17490_v57 }
 0xd50   :  { %9231 = vmatpush1.bf16.msra.mxu1 %v17490_v57  ;;  %9104 = vmatprep.subr.bf16.mxu0 %v17799_v39 }
 0xd51   :  { %9232 = vmatprep.subr.bf16.mxu1 %v17799_v39 }
 0xd53   :  { %9105 = vmatpush1.bf16.msra.mxu0 %v17499_v54 }
 0xd54   :  { %9233 = vmatpush1.bf16.msra.mxu1 %v17499_v54  ;;  %9106 = vmatprep.subr.bf16.mxu0 %v17799_v39 }
 0xd55   :  { %9234 = vmatprep.subr.bf16.mxu1 %v17799_v39 }
 0xd57   :  { %9107 = vmatpush1.bf16.msra.mxu0 %v17508_v25 }
 0xd58   :  { %9235 = vmatpush1.bf16.msra.mxu1 %v17508_v25  ;;  %9108 = vmatprep.subr.bf16.mxu0 %v17799_v39 }
 0xd59   :  { %9236 = vmatprep.subr.bf16.mxu1 %v17799_v39 }
 0xd5b   :  { %9109 = vmatpush1.bf16.msra.mxu0 %v17517_v49 }
 0xd5c   :  { %9237 = vmatpush1.bf16.msra.mxu1 %v17517_v49  ;;  %9253 = vmatprep.subr.bf16.mxu0 %v17799_v39 }
 0xd5d   :  { %9381 = vmatprep.subr.bf16.mxu1 %v17799_v39 }
 0xd5e   :  { %9115 = vmatmul.mubr.bf16.vlgmr.msra.gmra.mrb[36].mxu0 %v17264_v18 }
 0xd5f   :  { %9243 = vmatmul.mubr.bf16.vlgmr.msra.gmra.mrb[36].mxu1 %v17266_v16  ;;  %9254 = vmatpush1.bf16.msra.mxu0 %v17019_v5 }
 0xd60   :  { %11386 = vmatprep.mubr.msk.bf16.mxu0 %vm6291_vm8, %v17235_v36  ;;  %9382 = vmatpush1.bf16.msra.mxu1 %v17019_v5  ;;  %v8642_v5 = vld [vmem:[#allocation4 + $0x8] sm:$0xfc] }
 0xd61   :  { %11389 = vmatprep.mubr.msk.bf16.mxu1 %vm6291_vm8, %v17224_v2  ;;  %9255 = vmatprep.subr.bf16.mxu0 %v17799_v39 }
 0xd62   :  { %9383 = vmatprep.subr.bf16.mxu1 %v17799_v39 }
 0xd63   :  { %9256 = vmatpush1.bf16.msra.mxu0 %v17032_v26 }
 0xd64   :  { %9384 = vmatpush1.bf16.msra.mxu1 %v17032_v26  ;;  %9257 = vmatprep.subr.bf16.mxu0 %v17799_v39  ;;  %v8644_v26 = vld [vmem:[#allocation4 + $0x18] sm:$0xff] }
 0xd65   :  { %9385 = vmatprep.subr.bf16.mxu1 %v17799_v39 }
 0xd67   :  { %9258 = vmatpush1.bf16.msra.mxu0 %v17045_v62 }
 0xd68   :  { %9386 = vmatpush1.bf16.msra.mxu1 %v17045_v62  ;;  %9259 = vmatprep.subr.bf16.mxu0 %v17799_v39  ;;  %v8646_v62 = vpack.c.bf16 %v8644_v26, %v8642_v5  ;;  %v23_v5 = vstv %s17750_s15 }
 0xd69   :  { %9387 = vmatprep.subr.bf16.mxu1 %v17799_v39  ;;  %24 = vst [vmem:[#allocation7] sm:$0x1] %v23_v5 }
 0xd6b   :  { %9260 = vmatpush1.bf16.msra.mxu0 %v17058_v22 }
 0xd6c   :  { %9388 = vmatpush1.bf16.msra.mxu1 %v17058_v22  ;;  %9261 = vmatprep.subr.bf16.mxu0 %v17799_v39  ;;  %v9466_v22 = vrot.slane %v8646_v62, 1 }
 0xd6d   :  { %9389 = vmatprep.subr.bf16.mxu1 %v17799_v39 }
 0xd6f   :  { %9262 = vmatpush1.bf16.msra.mxu0 %v17071_v53 }
 0xd70   :  { %9390 = vmatpush1.bf16.msra.mxu1 %v17071_v53  ;;  %9263 = vmatprep.subr.bf16.mxu0 %v17799_v39  ;;  %v8641_v53 = vld [vmem:[#allocation4] sm:$0xfc]  ;;  %v11392_v26 = vld [vmem:[#allocation7] ss:$0 sm:$0xff] }
 0xd71   :  { %9391 = vmatprep.subr.bf16.mxu1 %v17799_v39 }
 0xd73   :  { %9264 = vmatpush1.bf16.msra.mxu0 %v17084_v48 }
 0xd74   :  { %9392 = vmatpush1.bf16.msra.mxu1 %v17084_v48  ;;  %9265 = vmatprep.subr.bf16.mxu0 %v17799_v39  ;;  %v8643_v48 = vld [vmem:[#allocation4 + $0x10] sm:$0xff] }
 0xd75   :  { %9393 = vmatprep.subr.bf16.mxu1 %v17799_v39 }
 0xd77   :  { %9266 = vmatpush1.bf16.msra.mxu0 %v17097_v21 }
 0xd78   :  { %9394 = vmatpush1.bf16.msra.mxu1 %v17097_v21  ;;  %9267 = vmatprep.subr.bf16.mxu0 %v17799_v39  ;;  %v8645_v21 = vpack.c.bf16 %v8643_v48, %v8641_v53 }
 0xd79   :  { %9395 = vmatprep.subr.bf16.mxu1 %v17799_v39 }
 0xd7b   :  { %9268 = vmatpush1.bf16.msra.mxu0 %v17110_v29 }
 0xd7c   :  { %9396 = vmatpush1.bf16.msra.mxu1 %v17110_v29  ;;  %9269 = vmatprep.subr.bf16.mxu0 %v17799_v39  ;;  %v9465_v29 = vrot.slane %v8645_v21, 1 }
 0xd7d   :  { %9397 = vmatprep.subr.bf16.mxu1 %v17799_v39 }
 0xd7f   :  { %9270 = vmatpush1.bf16.msra.mxu0 %v17121_v59 }
 0xd80   :  { %9398 = vmatpush1.bf16.msra.mxu1 %v17121_v59  ;;  %9271 = vmatprep.subr.bf16.mxu0 %v17799_v39 }
 0xd81   :  { %9399 = vmatprep.subr.bf16.mxu1 %v17799_v39 }
 0xd83   :  { %9272 = vmatpush1.bf16.msra.mxu0 %v17128_v8 }
 0xd84   :  { %9400 = vmatpush1.bf16.msra.mxu1 %v17128_v8  ;;  %9273 = vmatprep.subr.bf16.mxu0 %v17799_v39 }
 0xd85   :  { %9401 = vmatprep.subr.bf16.mxu1 %v17799_v39 }
 0xd87   :  { %9274 = vmatpush1.bf16.msra.mxu0 %v17139_v28 }
 0xd88   :  { %9402 = vmatpush1.bf16.msra.mxu1 %v17139_v28  ;;  %9275 = vmatprep.subr.bf16.mxu0 %v17799_v39 }
 0xd89   :  { %9403 = vmatprep.subr.bf16.mxu1 %v17799_v39 }
 0xd8b   :  { %9276 = vmatpush1.bf16.msra.mxu0 %v17154_v42 }
 0xd8c   :  { %9404 = vmatpush1.bf16.msra.mxu1 %v17154_v42  ;;  %9277 = vmatprep.subr.bf16.mxu0 %v17799_v39 }
 0xd8d   :  { %9405 = vmatprep.subr.bf16.mxu1 %v17799_v39 }
 0xd8f   :  { %9278 = vmatpush1.bf16.msra.mxu0 %v17161_v45 }
 0xd90   :  { %9406 = vmatpush1.bf16.msra.mxu1 %v17161_v45  ;;  %9279 = vmatprep.subr.bf16.mxu0 %v17799_v39 }
 0xd91   :  { %9407 = vmatprep.subr.bf16.mxu1 %v17799_v39 }
 0xd93   :  { %9280 = vmatpush1.bf16.msra.mxu0 %v17176_v31 }
 0xd94   :  { %9408 = vmatpush1.bf16.msra.mxu1 %v17176_v31  ;;  %9294 = vmatprep.subr.bf16.mxu0 %v17799_v39 }
 0xd95   :  { %9422 = vmatprep.subr.bf16.mxu1 %v17799_v39 }
 0xd96   :  { %9286 = vmatmul.mubr.bf16.vlgmr.msra.gmra.mrb[40].mxu0 %v17266_v16 }
 0xd97   :  { %9414 = vmatmul.mubr.bf16.vlgmr.msra.gmra.mrb[40].mxu1 %v17262_v60  ;;  %9295 = vmatpush1.bf16.msra.mxu0 %v17258_v55 }
 0xd98   :  { %11387 = vmatprep.mubr.msk.bf16.mxu0 %vm6291_vm8, %v17226_v52  ;;  %9423 = vmatpush1.bf16.msra.mxu1 %v17258_v55 }
 0xd99   :  { %11390 = vmatprep.mubr.msk.bf16.mxu1 %vm6291_vm8, %v17235_v36  ;;  %9296 = vmatprep.subr.bf16.mxu0 %v17799_v39 }
 0xd9a   :  { %9424 = vmatprep.subr.bf16.mxu1 %v17799_v39 }
 0xd9b   :  { %9297 = vmatpush1.bf16.msra.mxu0 %v17275_v20 }
 0xd9c   :  { %9425 = vmatpush1.bf16.msra.mxu1 %v17275_v20  ;;  %9298 = vmatprep.subr.bf16.mxu0 %v17799_v39 }
 0xd9d   :  { %9426 = vmatprep.subr.bf16.mxu1 %v17799_v39 }
 0xd9f   :  { %9299 = vmatpush1.bf16.msra.mxu0 %v17287_v0 }
 0xda0   :  { %9427 = vmatpush1.bf16.msra.mxu1 %v17287_v0  ;;  %9300 = vmatprep.subr.bf16.mxu0 %v17799_v39 }
 0xda1   :  { %9428 = vmatprep.subr.bf16.mxu1 %v17799_v39 }
 0xda3   :  { %9301 = vmatpush1.bf16.msra.mxu0 %v17296_v40 }
 0xda4   :  { %9429 = vmatpush1.bf16.msra.mxu1 %v17296_v40  ;;  %9302 = vmatprep.subr.bf16.mxu0 %v17799_v39 }
 0xda5   :  { %9430 = vmatprep.subr.bf16.mxu1 %v17799_v39 }
 0xda7   :  { %9303 = vmatpush1.bf16.msra.mxu0 %v17305_v41 }
 0xda8   :  { %9431 = vmatpush1.bf16.msra.mxu1 %v17305_v41  ;;  %9304 = vmatprep.subr.bf16.mxu0 %v17799_v39 }
 0xda9   :  { %9432 = vmatprep.subr.bf16.mxu1 %v17799_v39 }
 0xdab   :  { %9305 = vmatpush1.bf16.msra.mxu0 %v17314_v15 }
 0xdac   :  { %9433 = vmatpush1.bf16.msra.mxu1 %v17314_v15  ;;  %9306 = vmatprep.subr.bf16.mxu0 %v17799_v39 }
 0xdad   :  { %9434 = vmatprep.subr.bf16.mxu1 %v17799_v39 }
 0xdaf   :  { %9307 = vmatpush1.bf16.msra.mxu0 %v17323_v23 }
 0xdb0   :  { %9435 = vmatpush1.bf16.msra.mxu1 %v17323_v23  ;;  %9308 = vmatprep.subr.bf16.mxu0 %v17799_v39 }
 0xdb1   :  { %9436 = vmatprep.subr.bf16.mxu1 %v17799_v39 }
 0xdb3   :  { %9309 = vmatpush1.bf16.msra.mxu0 %v17332_v37 }
 0xdb4   :  { %9437 = vmatpush1.bf16.msra.mxu1 %v17332_v37  ;;  %9310 = vmatprep.subr.bf16.mxu0 %v17799_v39 }
 0xdb5   :  { %9438 = vmatprep.subr.bf16.mxu1 %v17799_v39 }
 0xdb7   :  { %9311 = vmatpush1.bf16.msra.mxu0 %v17341_v3 }
 0xdb8   :  { %9439 = vmatpush1.bf16.msra.mxu1 %v17341_v3  ;;  %9312 = vmatprep.subr.bf16.mxu0 %v17799_v39 }
 0xdb9   :  { %9440 = vmatprep.subr.bf16.mxu1 %v17799_v39 }
 0xdbb   :  { %9313 = vmatpush1.bf16.msra.mxu0 %v17350_v38 }
 0xdbc   :  { %9441 = vmatpush1.bf16.msra.mxu1 %v17350_v38  ;;  %9314 = vmatprep.subr.bf16.mxu0 %v17799_v39 }
 0xdbd   :  { %9442 = vmatprep.subr.bf16.mxu1 %v17799_v39 }
 0xdbf   :  { %9315 = vmatpush1.bf16.msra.mxu0 %v17359_v34 }
 0xdc0   :  { %9443 = vmatpush1.bf16.msra.mxu1 %v17359_v34  ;;  %9316 = vmatprep.subr.bf16.mxu0 %v17799_v39 }
 0xdc1   :  { %9444 = vmatprep.subr.bf16.mxu1 %v17799_v39 }
 0xdc3   :  { %9317 = vmatpush1.bf16.msra.mxu0 %v17368_v44 }
 0xdc4   :  { %9445 = vmatpush1.bf16.msra.mxu1 %v17368_v44  ;;  %9318 = vmatprep.subr.bf16.mxu0 %v17799_v39 }
 0xdc5   :  { %9446 = vmatprep.subr.bf16.mxu1 %v17799_v39 }
 0xdc7   :  { %9319 = vmatpush1.bf16.msra.mxu0 %v17377_v33 }
 0xdc8   :  { %9447 = vmatpush1.bf16.msra.mxu1 %v17377_v33  ;;  %9320 = vmatprep.subr.bf16.mxu0 %v17799_v39 }
 0xdc9   :  { %9448 = vmatprep.subr.bf16.mxu1 %v17799_v39 }
 0xdcb   :  { %9321 = vmatpush1.bf16.msra.mxu0 %v17386_v1 }
 0xdcc   :  { %9449 = vmatpush1.bf16.msra.mxu1 %v17386_v1  ;;  %9338 = vmatprep.subr.bf16.mxu0 %v17799_v39 }
 0xdcd   :  { %9471 = vmatprep.subr.bf16.mxu1 %v17799_v39 }
 0xdce   :  { %9327 = vmatmul.mubr.bf16.vlgmr.msra.gmra.mrb[40].mxu0 %v17264_v18 }
 0xdcf   :  { %9455 = vmatmul.mubr.bf16.vlgmr.msra.gmra.mrb[40].mxu1 %v17266_v16  ;;  %9339 = vmatpush1.bf16.msra.mxu0 %v17395_v19 }
 0xdd0   :  { %11388 = vmatprep.mubr.msk.bf16.mxu0 %vm6291_vm8, %v17224_v2  ;;  %9472 = vmatpush1.bf16.msra.mxu1 %v17395_v19 }
 0xdd1   :  { %11391 = vmatprep.mubr.msk.bf16.mxu1 %vm6291_vm8, %v9466_v22  ;;  %9340 = vmatprep.subr.bf16.mxu0 %v17799_v39  ;;  %vm9538_vm8 = vcmask 228352  }
 0xdd2   :  { %9473 = vmatprep.subr.bf16.mxu1 %v17799_v39 }
 0xdd3   :  { %9341 = vmatpush1.bf16.msra.mxu0 %v17405_v51 }
 0xdd4   :  { %9474 = vmatpush1.bf16.msra.mxu1 %v17405_v51  ;;  %9342 = vmatprep.subr.bf16.mxu0 %v17799_v39 }
 0xdd5   :  { %9475 = vmatprep.subr.bf16.mxu1 %v17799_v39 }
 0xdd7   :  { %9343 = vmatpush1.bf16.msra.mxu0 %v17418_v12 }
 0xdd8   :  { %9476 = vmatpush1.bf16.msra.mxu1 %v17418_v12  ;;  %9344 = vmatprep.subr.bf16.mxu0 %v17799_v39 }
 0xdd9   :  { %9477 = vmatprep.subr.bf16.mxu1 %v17799_v39 }
 0xddb   :  { %9345 = vmatpush1.bf16.msra.mxu0 %v17427_v43 }
 0xddc   :  { %9478 = vmatpush1.bf16.msra.mxu1 %v17427_v43  ;;  %9346 = vmatprep.subr.bf16.mxu0 %v17799_v39 }
 0xddd   :  { %9479 = vmatprep.subr.bf16.mxu1 %v17799_v39 }
 0xddf   :  { %9347 = vmatpush1.bf16.msra.mxu0 %v17436_v56 }
 0xde0   :  { %9480 = vmatpush1.bf16.msra.mxu1 %v17436_v56  ;;  %9348 = vmatprep.subr.bf16.mxu0 %v17799_v39 }
 0xde1   :  { %9481 = vmatprep.subr.bf16.mxu1 %v17799_v39 }
 0xde3   :  { %9349 = vmatpush1.bf16.msra.mxu0 %v17445_v32 }
 0xde4   :  { %9482 = vmatpush1.bf16.msra.mxu1 %v17445_v32  ;;  %9350 = vmatprep.subr.bf16.mxu0 %v17799_v39 }
 0xde5   :  { %9483 = vmatprep.subr.bf16.mxu1 %v17799_v39 }
 0xde7   :  { %9351 = vmatpush1.bf16.msra.mxu0 %v17454_v63 }
 0xde8   :  { %9484 = vmatpush1.bf16.msra.mxu1 %v17454_v63  ;;  %9352 = vmatprep.subr.bf16.mxu0 %v17799_v39 }
 0xde9   :  { %9485 = vmatprep.subr.bf16.mxu1 %v17799_v39 }
 0xdeb   :  { %9353 = vmatpush1.bf16.msra.mxu0 %v17463_v35 }
 0xdec   :  { %9486 = vmatpush1.bf16.msra.mxu1 %v17463_v35  ;;  %9354 = vmatprep.subr.bf16.mxu0 %v17799_v39 }
 0xded   :  { %9487 = vmatprep.subr.bf16.mxu1 %v17799_v39 }
 0xdef   :  { %9355 = vmatpush1.bf16.msra.mxu0 %v17472_v47 }
 0xdf0   :  { %9488 = vmatpush1.bf16.msra.mxu1 %v17472_v47  ;;  %9356 = vmatprep.subr.bf16.mxu0 %v17799_v39 }
 0xdf1   :  { %9489 = vmatprep.subr.bf16.mxu1 %v17799_v39 }
 0xdf3   :  { %9357 = vmatpush1.bf16.msra.mxu0 %v17481_v24 }
 0xdf4   :  { %9490 = vmatpush1.bf16.msra.mxu1 %v17481_v24  ;;  %9358 = vmatprep.subr.bf16.mxu0 %v17799_v39 }
 0xdf5   :  { %9491 = vmatprep.subr.bf16.mxu1 %v17799_v39 }
 0xdf7   :  { %9359 = vmatpush1.bf16.msra.mxu0 %v17490_v57 }
 0xdf8   :  { %9492 = vmatpush1.bf16.msra.mxu1 %v17490_v57  ;;  %9360 = vmatprep.subr.bf16.mxu0 %v17799_v39 }
 0xdf9   :  { %9493 = vmatprep.subr.bf16.mxu1 %v17799_v39 }
 0xdfb   :  { %9361 = vmatpush1.bf16.msra.mxu0 %v17499_v54 }
 0xdfc   :  { %9494 = vmatpush1.bf16.msra.mxu1 %v17499_v54  ;;  %9362 = vmatprep.subr.bf16.mxu0 %v17799_v39 }
 0xdfd   :  { %9495 = vmatprep.subr.bf16.mxu1 %v17799_v39 }
 0xdff   :  { %9363 = vmatpush1.bf16.msra.mxu0 %v17508_v25 }
 0xe00   :  { %9496 = vmatpush1.bf16.msra.mxu1 %v17508_v25  ;;  %9364 = vmatprep.subr.bf16.mxu0 %v17799_v39 }
 0xe01   :  { %9497 = vmatprep.subr.bf16.mxu1 %v17799_v39 }
 0xe03   :  { %9365 = vmatpush1.bf16.msra.mxu0 %v17517_v49 }
 0xe04   :  { %9498 = vmatpush1.bf16.msra.mxu1 %v17517_v49  ;;  %v21_v49 = vstv %s17749_s14 }
 0xe05   :  { %22 = vst [vmem:[#allocation6] sm:$0x1] %v21_v49 }
 0xe06   :  { %9371 = vmatmul.mubr.bf16.vlgmr.msra.gmra.mrb[40].mxu0 %v17262_v60 }
 0xe07   :  { %9504 = vmatmul.mubr.bf16.vlgmr.msra.gmra.mrb[40].mxu1 %v9465_v29 }
 0xe0c   :  { %v9577_v48 = vld [vmem:[#allocation6] sm:$0x1] }
 0xe31   :  { %v9116_v59 = vpop.f32.mrb[36].mxu0 }
 0xe32   :  { %v9244_v8 = vpop.f32.mrb[36].mxu1  ;;  %v9118_v28 = vpop.f32.mrb[37].mxu0 }
 0xe33   :  { %9516 = vrot.lane.b32.xlu0 %v9244_v8, %s13025_s13  ;;  %v9246_v42 = vpop.f32.mrb[37].mxu1  ;;  %v9119_v45 = vpop.f32.mrb[38].mxu0 }
 0xe34   :  { %v9247_v31 = vpop.f32.mrb[38].mxu1  ;;  %v9121_v2 = vpop.f32.mrb[39].mxu0 }
 0xe35   :  { %9518 = vrot.lane.b32.xlu1 %v9247_v31, %s13025_s13  ;;  %v9249_v39 = vpop.f32.mrb[39].mxu1 }
 0xea5   :  { %v9517_v27 = vpop.permute.xlu0 %9516 }
 0xea6   :  { %v9539_v60 = vsel %vm9538_vm8, %v9116_v59, %v9517_v27 }
 0xea7   :  { %v9519_v14 = vpop.permute.xlu1 %9518 }
 0xea8   :  { %v9540_v17 = vsel %vm9538_vm8, %v9119_v45, %v9519_v14 }
 0xed9   :  { %v9372_v52 = vpop.f32.mrb[40].mxu0 }
 0xeda   :  { %v9505_v36 = vpop.f32.mrb[40].mxu1  ;;  %9524 = vrot.lane.b32.xlu0 %v9372_v52, %s13021_s7  ;;  %v9374_v55 = vpop.f32.mrb[41].mxu0 }
 0xedb   :  { %v9507_v46 = vpop.f32.mrb[41].mxu1  ;;  %v9375_v50 = vpop.f32.mrb[42].mxu0 }
 0xedc   :  { %v9508_v10 = vpop.f32.mrb[42].mxu1  ;;  %9526 = vrot.lane.b32.xlu1 %v9375_v50, %s13021_s7  ;;  %v9377_v30 = vpop.f32.mrb[43].mxu0 }
 0xedd   :  { %v9510_v13 = vpop.f32.mrb[43].mxu1 }
 0xede   :  { %9532 = vrot.lane.b32.xlu0 %v9505_v36, %s13026_s1 }
 0xee0   :  { %9534 = vrot.lane.b32.xlu1 %v9508_v10, %s13026_s1 }
 0xf4c   :  { %v9525_v61 = vpop.permute.xlu0 %9524 }
 0xf4d   :  { %v9541_v18 = vsel %vm8187_vm5, %v9539_v60, %v9525_v61 }
 0xf4e   :  { %v9527_v58 = vpop.permute.xlu1 %9526 }
 0xf4f   :  { %v9542_v20 = vsel %vm8187_vm5, %v9540_v17, %v9527_v58 }
 0xf50   :  { %v9533_v16 = vpop.permute.xlu0 %9532 }
 0xf51   :  { %v9544_v7 = vsel %vm9543_vm10, %v9541_v18, %v9533_v16 }
 0xf52   :  { %v9535_v0 = vpop.permute.xlu1 %9534  ;;  %v9546_v41 = vsel %vm6903_vm15, %v9544_v7, 0.0 }
 0xf53   :  { %v9545_v40 = vsel %vm9543_vm10, %v9542_v20, %v9535_v0 }
 0xf54   :  { %v9548_v15 = vsel %vm9547_vm12, %v9545_v40, 0.0 }
 0xf55   :  { %v9549_v23 = vadd.f32 %v9548_v15, %v9546_v41 }
 0xf57   :  { %v9550_v37 = vrot.slane %v9549_v23, 4 }
 0xf59   :  { %v9551_v3 = vadd.f32 %v9550_v37, %v9549_v23 }
 0xf5b   :  { %v9552_v38 = vrot.slane %v9551_v3, 2 }
 0xf5d   :  { %v9553_v34 = vadd.f32 %v9552_v38, %v9551_v3 }
 0xf5f   :  { %v9554_v44 = vrot.slane %v9553_v34, 1 }
 0xf61   :  { %v9555_v33 = vadd.f32 %v9554_v44, %v9553_v34 }
 0xf63   :  { %v9556_v1 = vsel %vm6903_vm15, %v9555_v33, 0.0 }
 0xf64   :  { %9557 = vadd.xlane.f32.xlu0 %v9556_v1 }
 0xff1   :  { %v9558_v11 = vpop.xlane.xlu0 %9557 }
 0xff2   :  { %v9559_v9 = vmul.f32 0.0006377551, %v9558_v11 }
 0xff4   :  { %v9560_v19 = vsub.f32 %v9544_v7, %v9559_v9  ;;  %v9561_v6 = vsub.f32 %v9545_v40, %v9559_v9 }
 0xff6   :  { %v9562_v51 = vmul.f32 %v9560_v19, %v9560_v19  ;;  %v9563_v12 = vmul.f32 %v9561_v6, %v9561_v6 }
 0xff8   :  { %v9564_v43 = vsel %vm6903_vm15, %v9562_v51, 0.0  ;;  %v9565_v56 = vsel %vm9547_vm12, %v9563_v12, 0.0 }
 0xff9   :  { %v9566_v32 = vadd.f32 %v9565_v56, %v9564_v43 }
 0xffb   :  { %v9567_v63 = vrot.slane %v9566_v32, 4 }
 0xffd   :  { %v9568_v35 = vadd.f32 %v9567_v63, %v9566_v32 }
 0xfff   :  { %v9569_v47 = vrot.slane %v9568_v35, 2 }
0x1001   :  { %v9570_v24 = vadd.f32 %v9569_v47, %v9568_v35 }
0x1003   :  { %v9571_v57 = vrot.slane %v9570_v24, 1 }
0x1005   :  { %v9572_v54 = vadd.f32 %v9571_v57, %v9570_v24 }
0x1007   :  { %v9573_v25 = vsel %vm6903_vm15, %v9572_v54, 0.0 }
0x1008   :  { %9574 = vadd.xlane.f32.xlu1 %v9573_v25 }
0x1019   :  { %9599 = vperm.xlu1 %11580, %v11392_v26  }
0x1095   :  { %v9575_v62 = vpop.xlane.xlu1 %9574 }
0x1096   :  { %v9576_v22 = vmul.f32 0.0006377551, %v9575_v62 }
0x1098   :  { %v9578_v53 = vadd.f32 1e-05, %v9576_v22 }
0x1099   :  { %v9600_v28 = vpop.permute.xlu1 %9599 }
0x109a   :  { %12996 = vrsqrt.f32 %v9578_v53 }
0x10a4   :  { %v12997_v21 = vpop.eup %12996 }
0x10a5   :  { %v9580_v29 = vmul.f32 %v12997_v21, %v9577_v48 }
0x10a7   :  { %v9585_v59 = vrot.slane %v9580_v29, %v13488_v4 }
0x10a9   :  { %9587 = vperm.xlu0 %11579, %v9585_v59  }
0x1128   :  { %v9588_v8 = vpop.permute.xlu0 %9587 }
0x1129   :  { %v9590_v42 = vmul.f32 %v9588_v8, %v9560_v19  ;;  %v9591_v45 = vmul.f32 %v9588_v8, %v9561_v6 }
0x112b   :  { %v9602_v31 = vadd.f32 %v9600_v28, %v9590_v42  ;;  %v9603_v2 = vadd.f32 %v9600_v28, %v9591_v45 }
0x112d   :  { %v9604_v39 = vsub.f32 0.0, %v9602_v31  ;;  %v9605_v52 = vsub.f32 0.0, %v9603_v2 }
0x112f   :  { %v9606_v36 = vmul.f32 1.442695, %v9604_v39  ;;  %v9608_v55 = vmul.f32 1.442695, %v9605_v52 }
0x1131   :  { %12998 = vpow2.f32 %v9606_v36 }
0x1132   :  { %13000 = vpow2.f32 %v9608_v55 }
0x113b   :  { %v12999_v46 = vpop.eup %12998 }
0x113c   :  { %v13001_v50 = vpop.eup %13000  ;;  %v9610_v10 = vadd.f32 1.0, %v12999_v46 }
0x113d   :  { %v9611_v30 = vadd.f32 1.0, %v13001_v50 }
0x113e   :  { %13002 = vrcp.f32 %v9610_v10 }
0x113f   :  { %13004 = vrcp.f32 %v9611_v30 }
0x1148   :  { %v13003_v4 = vpop.eup %13002 }
0x1149   :  { %v13005_v13 = vpop.eup %13004  ;;  %v9614_v27 = vmax.f32 %v13003_v4, 0.0 }
0x114a   :  { %v9615_v14 = vmax.f32 %v13005_v13, 0.0 }
0x114b   :  { %v9616_v61 = vmin.f32 %v9614_v27, 1.0 }
0x114c   :  { %v9617_v58 = vmin.f32 %v9615_v14, 1.0 }
0x114d   :  { %9618 = vst.msk [vmem:[%s17751_s16] sm:$0xff] %vm6903_vm15, %v9616_v61 }
0x114e   :  { %9619 = vst.msk [vmem:[%s17751_s16 + $0x8] sm:$0x3f] %vm9547_vm12, %v9617_v58 }

</bundles_post_ra>
